<compile_context>
chip_gen: v7x
topology: tpu7x:2x2x1
jax: 0.10.0
libtpu: 0.0.40
codegen_flags: <defaults>
</compile_context>

<pallas_src>
import functools

import jax
import jax.numpy as jnp
from jax import lax
from jax.experimental import pallas as pl
from jax.experimental.pallas import tpu as pltpu

BN_EPS = 1e-5


# ------------------------------ Pallas kernels --------------------------------

def _conv3x3_kernel(x_ref, sc_ref, sh_ref, w_ref, y_ref, sum_ref, sq_ref,
                    xp_scr, col_scr, *, H, W, pre_bn_relu):
    """3x3 stride-1 pad-1 conv for one sample, with optional fused pre-BN+ReLU.

    x_ref   : (1, H, W, Cin)   bf16 input activation
    sc_ref, sh_ref : (1, Cin)  folded BN scale / shift (used only when pre_bn_relu)
    w_ref   : (9*Cin, Cout)    conv weights, (tap, cin)-major along K, bf16
    y_ref   : (1, H, W, Cout)  raw (pre-BN) conv output, bf16
    sum_ref, sq_ref : (1, 1, Cout) per-sample channel sum / sum-of-squares (f32, for BN stats)
    xp_scr  : (H+2, W+2, Cin)  bf16 VMEM scratch (zero-padded activation)
    col_scr : (H*W, 9*Cin)     bf16 VMEM scratch (im2col tile, never in HBM)
    """
    Cin = x_ref.shape[-1]
    Cout = w_ref.shape[-1]

    x = x_ref[0]                                                         # (H, W, Cin) bf16
    if pre_bn_relu:
        scale = sc_ref[...].reshape(1, 1, Cin)
        shift = sh_ref[...].reshape(1, 1, Cin)
        x = jnp.maximum(x.astype(jnp.float32) * scale + shift, 0.0).astype(jnp.bfloat16)

    # Zero-padded copy of the activation lives only in VMEM.  Only the halo is (re)zeroed; the
    # interior rows are written in one aligned store together with the zero side columns.
    z_row = jnp.zeros((1, W + 2, Cin), jnp.bfloat16)
    z_col = jnp.zeros((H, 1, Cin), jnp.bfloat16)
    xp_scr[0:1] = z_row
    xp_scr[H + 1:H + 2] = z_row
    xp_scr[1:H + 1] = jnp.concatenate([z_col, x, z_col], axis=1)

    # Build the (H*W, 9*Cin) bf16 im2col tile in VMEM, then ONE wide-K MXU matmul (f32 accum).
    for t in range(9):
        dy, dx = divmod(t, 3)
        col_scr[:, t * Cin:(t + 1) * Cin] = (
            xp_scr[dy:dy + H, dx:dx + W, :].reshape(H * W, Cin))
    acc = jnp.dot(col_scr[...], w_ref[...], preferred_element_type=jnp.float32)  # (H*W, Cout) f32

    y_ref[0] = acc.reshape(H, W, Cout).astype(y_ref.dtype)
    # Per-sample partial BN statistics in f32 (finalized into scale/shift in the wrapper; the
    # per-sample channel sum is also reused for the SE global average pool).
    sum_ref[0] = jnp.sum(acc, axis=0, keepdims=True)
    sq_ref[0] = jnp.sum(acc * acc, axis=0, keepdims=True)


def _scale_residual_relu_kernel(y_ref, x_ref, a_ref, b_ref, o_ref):
    """Streaming epilogue for one sample: out = relu(y2_raw * a + b + x).

    y_ref : (1, H, W, C) bf16 raw conv2 output; x_ref : (1, H, W, C) f32 residual input
    a_ref, b_ref : (1, 1, C) per-sample folded (scale2*gate, shift2*gate)
    """
    a = a_ref[...]                                                       # (1, 1, C)
    b = b_ref[...]
    out = y_ref[0].astype(jnp.float32) * a + b + x_ref[0]                # BN2+SE scale + residual
    o_ref[0] = jnp.maximum(out, 0.0)                                     # final ReLU


# ------------------------------ pallas_call wrappers ---------------------------

def _conv_call(x, scale, shift, w, *, pre_bn_relu):
    N, H, W, Cin = x.shape
    Cout = w.shape[-1]
    kernel = functools.partial(_conv3x3_kernel, H=H, W=W, pre_bn_relu=pre_bn_relu)
    # NOTE: the weight block's index_map is constant, so it is fetched once; pl.Buffered(1) on it
    # would save one redundant buffer but is skipped here for portability (minor at this size).
    return pl.pallas_call(
        kernel,
        grid=(N,),
        in_specs=[
            pl.BlockSpec((1, H, W, Cin), lambda n: (n, 0, 0, 0)),
            pl.BlockSpec((1, Cin), lambda n: (0, 0)),
            pl.BlockSpec((1, Cin), lambda n: (0, 0)),
            pl.BlockSpec((9 * Cin, Cout), lambda n: (0, 0)),
        ],
        out_specs=[
            pl.BlockSpec((1, H, W, Cout), lambda n: (n, 0, 0, 0)),
            pl.BlockSpec((1, 1, Cout), lambda n: (n, 0, 0)),
            pl.BlockSpec((1, 1, Cout), lambda n: (n, 0, 0)),
        ],
        out_shape=[
            jax.ShapeDtypeStruct((N, H, W, Cout), jnp.bfloat16),  # raw conv output (bf16 HBM)
            jax.ShapeDtypeStruct((N, 1, Cout), jnp.float32),      # per-sample channel sum
            jax.ShapeDtypeStruct((N, 1, Cout), jnp.float32),      # per-sample channel sum of squares
        ],
        scratch_shapes=[
            pltpu.VMEM((H + 2, W + 2, Cin), jnp.bfloat16),        # padded activation
            pltpu.VMEM((H * W, 9 * Cin), jnp.bfloat16),           # im2col tile
        ],
        compiler_params=pltpu.CompilerParams(dimension_semantics=("parallel",)),
    )(x, scale, shift, w)


def _epilogue_call(y2, x_res, a, b):
    N, H, W, C = y2.shape
    return pl.pallas_call(
        _scale_residual_relu_kernel,
        grid=(N,),
        in_specs=[
            pl.BlockSpec((1, H, W, C), lambda n: (n, 0, 0, 0)),
            pl.BlockSpec((1, H, W, C), lambda n: (n, 0, 0, 0)),
            pl.BlockSpec((1, 1, C), lambda n: (n, 0, 0)),
            pl.BlockSpec((1, 1, C), lambda n: (n, 0, 0)),
        ],
        out_specs=pl.BlockSpec((1, H, W, C), lambda n: (n, 0, 0, 0)),
        out_shape=jax.ShapeDtypeStruct((N, H, W, C), jnp.float32),
        compiler_params=pltpu.CompilerParams(dimension_semantics=("parallel",)),
    )(y2, x_res, a, b)


# ------------------------------ glue (plain JAX, O(N*C) work) ------------------

def _bn_scale_shift(sum_nc, sq_nc, gamma, beta, count):
    """Fold BatchNorm (batch statistics) into a per-channel scale/shift."""
    s = jnp.sum(sum_nc[:, 0, :], axis=0)                  # (C,)
    ss = jnp.sum(sq_nc[:, 0, :], axis=0)                  # (C,)
    mean = s / count
    var = jnp.maximum(ss / count - mean * mean, 0.0)      # biased variance (training-mode norm)
    scale = gamma.reshape(1, -1) * lax.rsqrt(var + BN_EPS).reshape(1, -1)
    shift = beta.reshape(1, -1) - mean.reshape(1, -1) * scale
    return scale, shift


def init_params(key, c_in, c_out, r=16):
    c_r = c_out // r
    ks = jax.random.split(key, 6)
    return {
        "w1": 0.1 * jax.random.normal(ks[0], (3, 3, c_in, c_out), jnp.float32),   # HWIO
        "w2": 0.1 * jax.random.normal(ks[1], (3, 3, c_out, c_out), jnp.float32),
        "g1": jnp.ones((1, c_out), jnp.float32),
        "b1": jnp.zeros((1, c_out), jnp.float32),
        "g2": jnp.ones((1, c_out), jnp.float32),
        "b2": jnp.zeros((1, c_out), jnp.float32),
        "fc1_w": 0.2 * jax.random.normal(ks[2], (c_out, c_r), jnp.float32),        # (in, out)
        "fc1_b": 0.1 * jax.random.normal(ks[3], (1, c_r), jnp.float32),
        "fc2_w": 0.2 * jax.random.normal(ks[4], (c_r, c_out), jnp.float32),
        "fc2_b": 0.1 * jax.random.normal(ks[5], (1, c_out), jnp.float32),
    }


def build_block_with_se(x_nchw, p):
    """Forward pass of BuildBlockWithSE (stride=1, identity shortcut)."""
    x_f32 = jnp.transpose(x_nchw, (0, 2, 3, 1)).astype(jnp.float32)     # NHWC residual input
    N, H, W, Cin = x_f32.shape
    Cout = p["w1"].shape[-1]
    assert Cin == Cout, "identity shortcut requires C_in == C_out (stride=1 path)"

    x_bf16 = x_f32.astype(jnp.bfloat16)                                  # single cast, reused
    w1 = p["w1"].reshape(9 * Cin, Cout).astype(jnp.bfloat16)             # (tap, cin)-major K
    w2 = p["w2"].reshape(9 * Cout, Cout).astype(jnp.bfloat16)
    ones = jnp.ones((1, Cin), jnp.float32)
    zeros = jnp.zeros((1, Cin), jnp.float32)
    count = N * H * W

    # conv1 (+ per-sample BN1 statistics).
    y1, s1, q1 = _conv_call(x_bf16, ones, zeros, w1, pre_bn_relu=False)
    scale1, shift1 = _bn_scale_shift(s1, q1, p["g1"], p["b1"], count)

    # BN1 + ReLU fused into the conv2 kernel (+ per-sample BN2 statistics).
    y2, s2, q2 = _conv_call(y1, scale1, shift1, w2, pre_bn_relu=True)
    scale2, shift2 = _bn_scale_shift(s2, q2, p["g2"], p["b2"], count)

    # SE squeeze/excite in O(N*C) glue, reusing the per-sample channel sums conv2 emitted:
    # pooled = spatial mean of BN2(y2) = scale2 * sum2/(H*W) + shift2.
    pooled = s2[:, 0, :] * (scale2 / float(H * W)) + shift2              # (N, C)
    h = jnp.maximum(pooled @ p["fc1_w"] + p["fc1_b"], 0.0)               # (N, Cr)
    gate = jax.nn.sigmoid(h @ p["fc2_w"] + p["fc2_b"])                   # (N, C)
    a = (scale2 * gate).reshape(N, 1, Cout)                              # per-sample folded scale
    b = (shift2 * gate).reshape(N, 1, Cout)                              # per-sample folded shift

    # Streaming epilogue: BN2 + SE channel scale + residual add + final ReLU, fused.
    out = _epilogue_call(y2, x_f32, a, b)
    return jnp.transpose(out, (0, 3, 1, 2))                              # back to NCHW


# ------------------------------ pure-JAX reference -----------------------------

def ref_forward(x_nchw, p):
    x = jnp.transpose(x_nchw, (0, 2, 3, 1)).astype(jnp.float32)
    dn = ("NHWC", "HWIO", "NHWC")

    def conv(inp, w):   # same bf16-input / f32-accumulation precision policy as the kernel
        return lax.conv_general_dilated(inp.astype(jnp.bfloat16), w.astype(jnp.bfloat16),
                                        (1, 1), "SAME", dimension_numbers=dn,
                                        preferred_element_type=jnp.float32)

    def bn(y, g, b):
        m = jnp.mean(y, axis=(0, 1, 2))
        v = jnp.mean((y - m) ** 2, axis=(0, 1, 2))
        return (y - m) * lax.rsqrt(v + BN_EPS) * g.reshape(-1) + b.reshape(-1)

    y = jnp.maximum(bn(conv(x, p["w1"]), p["g1"], p["b1"]), 0.0)
    y2 = bn(conv(y, p["w2"]), p["g2"], p["b2"])
    pooled = jnp.mean(y2, axis=(1, 2))
    h = jnp.maximum(pooled @ p["fc1_w"] + p["fc1_b"], 0.0)
    s = jax.nn.sigmoid(h @ p["fc2_w"] + p["fc2_b"])
    out = jnp.maximum(y2 * s[:, None, None, :] + x, 0.0)
    return jnp.transpose(out, (0, 3, 1, 2))


if __name__ == "__main__":
    # C=128 keeps channels lane-dense; r=16 -> SE hidden width 8; N=4 so v7x gets 2 steps/core.
    N, C, H, W = 4, 128, 16, 16
    key = jax.random.PRNGKey(0)
    params = init_params(key, C, C)
    x = jax.random.normal(jax.random.fold_in(key, 999), (N, C, H, W), jnp.float32)

    out = jax.jit(build_block_with_se)(x, params)
    out = jax.block_until_ready(out)

    ref = ref_forward(x, params)
    assert out.shape == (N, C, H, W), out.shape
    # Tolerance accounts for the bf16 HBM round-trip of the raw conv outputs (BN statistics and
    # the SE pool are still computed from f32 sums inside the conv kernel).
    if not bool(jnp.allclose(out, ref, atol=3e-2, rtol=3e-2)):
        err = float(jnp.max(jnp.abs(out - ref)))
        raise AssertionError(f"Pallas output does not match JAX reference (max abs err {err})")
    print("KERNEL_OK")
</pallas_src>

<mosaic_0001>
module attributes {stable_mosaic.version = 11 : i64} {
  func.func @_conv3x3_kernel(%arg0: i32, %arg1: memref<1x16x16x128xbf16, #tpu.memory_space<vmem>>, %arg2: memref<1x128xf32, #tpu.memory_space<vmem>>, %arg3: memref<1x128xf32, #tpu.memory_space<vmem>>, %arg4: memref<1152x128xbf16, #tpu.memory_space<vmem>>, %arg5: memref<1x16x16x128xbf16, #tpu.memory_space<vmem>>, %arg6: memref<1x1x128xf32, #tpu.memory_space<vmem>>, %arg7: memref<1x1x128xf32, #tpu.memory_space<vmem>>, %arg8: memref<18x18x128xbf16, #tpu.memory_space<vmem>>, %arg9: memref<256x1152xbf16, #tpu.memory_space<vmem>>) attributes {dimension_semantics = [#tpu.dimension_semantics<parallel>], iteration_bounds = array<i64: 4>, scalar_prefetch = 0 : i64, scratch_operands = 2 : i64, tpu.core_type = #tpu.core_type<tc>, window_params = [{transform_indices = @transform_0, window_bounds = array<i64: 1, 16, 16, 128>}, {pipeline_mode = #tpu.pipeline_mode<synchronous>, transform_indices = @transform_1, window_bounds = array<i64: 1, 128>}, {pipeline_mode = #tpu.pipeline_mode<synchronous>, transform_indices = @transform_2, window_bounds = array<i64: 1, 128>}, {pipeline_mode = #tpu.pipeline_mode<synchronous>, transform_indices = @transform_3, window_bounds = array<i64: 1152, 128>}, {transform_indices = @transform_4, window_bounds = array<i64: 1, 16, 16, 128>}, {transform_indices = @transform_5, window_bounds = array<i64: 1, 1, 128>}, {transform_indices = @transform_6, window_bounds = array<i64: 1, 1, 128>}]} {
    %c0 = arith.constant 0 : index
    %c0_0 = arith.constant 0 : index
    %c0_1 = arith.constant 0 : index
    %c0_2 = arith.constant 0 : index
    %0 = vector.load %arg1[%c0, %c0_0, %c0_1, %c0_2] : memref<1x16x16x128xbf16, #tpu.memory_space<vmem>>, vector<1x16x16x128xbf16>
    %1 = vector.shape_cast %0 : vector<1x16x16x128xbf16> to vector<16x16x128xbf16>
    %cst = arith.constant 0.000000e+00 : bf16
    %2 = vector.broadcast %cst : bf16 to vector<1x18x128xbf16>
    %cst_3 = arith.constant 0.000000e+00 : bf16
    %3 = vector.broadcast %cst_3 : bf16 to vector<16x1x128xbf16>
    %c0_4 = arith.constant 0 : index
    %c0_5 = arith.constant 0 : index
    %c0_6 = arith.constant 0 : index
    %4 = vector.load %arg8[%c0_4, %c0_5, %c0_6] : memref<18x18x128xbf16, #tpu.memory_space<vmem>>, vector<1x18x128xbf16>
    tpu.vector_store %arg8[%c0_4, %c0_5, %c0_6], %2 {strides = array<i32>} : memref<18x18x128xbf16, #tpu.memory_space<vmem>>, vector<1x18x128xbf16>,
    %c17 = arith.constant 17 : index
    %c0_7 = arith.constant 0 : index
    %c0_8 = arith.constant 0 : index
    %5 = vector.load %arg8[%c17, %c0_7, %c0_8] : memref<18x18x128xbf16, #tpu.memory_space<vmem>>, vector<1x18x128xbf16>
    tpu.vector_store %arg8[%c17, %c0_7, %c0_8], %2 {strides = array<i32>} : memref<18x18x128xbf16, #tpu.memory_space<vmem>>, vector<1x18x128xbf16>,
    %6 = tpu.concatenate %3, %1, %3 in 1 : vector<16x1x128xbf16>, vector<16x16x128xbf16>, vector<16x1x128xbf16> -> vector<16x18x128xbf16>
    %c1 = arith.constant 1 : index
    %c0_9 = arith.constant 0 : index
    %c0_10 = arith.constant 0 : index
    %7 = vector.load %arg8[%c1, %c0_9, %c0_10] : memref<18x18x128xbf16, #tpu.memory_space<vmem>>, vector<16x18x128xbf16>
    tpu.vector_store %arg8[%c1, %c0_9, %c0_10], %6 {strides = array<i32>} : memref<18x18x128xbf16, #tpu.memory_space<vmem>>, vector<16x18x128xbf16>,
    %c0_11 = arith.constant 0 : index
    %c0_12 = arith.constant 0 : index
    %c0_13 = arith.constant 0 : index
    %8 = vector.load %arg8[%c0_11, %c0_12, %c0_13] : memref<18x18x128xbf16, #tpu.memory_space<vmem>>, vector<16x16x128xbf16>
    %9 = vector.shape_cast %8 : vector<16x16x128xbf16> to vector<256x128xbf16>
    %c0_14 = arith.constant 0 : index
    %c0_15 = arith.constant 0 : index
    %10 = vector.load %arg9[%c0_14, %c0_15] : memref<256x1152xbf16, #tpu.memory_space<vmem>>, vector<256x128xbf16>
    tpu.vector_store %arg9[%c0_14, %c0_15], %9 {strides = array<i32>} : memref<256x1152xbf16, #tpu.memory_space<vmem>>, vector<256x128xbf16>,
    %c0_16 = arith.constant 0 : index
    %c1_17 = arith.constant 1 : index
    %c0_18 = arith.constant 0 : index
    %11 = vector.load %arg8[%c0_16, %c1_17, %c0_18] : memref<18x18x128xbf16, #tpu.memory_space<vmem>>, vector<16x16x128xbf16>
    %12 = vector.shape_cast %11 : vector<16x16x128xbf16> to vector<256x128xbf16>
    %c0_19 = arith.constant 0 : index
    %c128 = arith.constant 128 : index
    %13 = vector.load %arg9[%c0_19, %c128] : memref<256x1152xbf16, #tpu.memory_space<vmem>>, vector<256x128xbf16>
    tpu.vector_store %arg9[%c0_19, %c128], %12 {strides = array<i32>} : memref<256x1152xbf16, #tpu.memory_space<vmem>>, vector<256x128xbf16>,
    %c0_20 = arith.constant 0 : index
    %c2 = arith.constant 2 : index
    %c0_21 = arith.constant 0 : index
    %14 = vector.load %arg8[%c0_20, %c2, %c0_21] : memref<18x18x128xbf16, #tpu.memory_space<vmem>>, vector<16x16x128xbf16>
    %15 = vector.shape_cast %14 : vector<16x16x128xbf16> to vector<256x128xbf16>
    %c0_22 = arith.constant 0 : index
    %c256 = arith.constant 256 : index
    %16 = vector.load %arg9[%c0_22, %c256] : memref<256x1152xbf16, #tpu.memory_space<vmem>>, vector<256x128xbf16>
    tpu.vector_store %arg9[%c0_22, %c256], %15 {strides = array<i32>} : memref<256x1152xbf16, #tpu.memory_space<vmem>>, vector<256x128xbf16>,
    %c1_23 = arith.constant 1 : index
    %c0_24 = arith.constant 0 : index
    %c0_25 = arith.constant 0 : index
    %17 = vector.load %arg8[%c1_23, %c0_24, %c0_25] : memref<18x18x128xbf16, #tpu.memory_space<vmem>>, vector<16x16x128xbf16>
    %18 = vector.shape_cast %17 : vector<16x16x128xbf16> to vector<256x128xbf16>
    %c0_26 = arith.constant 0 : index
    %c384 = arith.constant 384 : index
    %19 = vector.load %arg9[%c0_26, %c384] : memref<256x1152xbf16, #tpu.memory_space<vmem>>, vector<256x128xbf16>
    tpu.vector_store %arg9[%c0_26, %c384], %18 {strides = array<i32>} : memref<256x1152xbf16, #tpu.memory_space<vmem>>, vector<256x128xbf16>,
    %c1_27 = arith.constant 1 : index
    %c1_28 = arith.constant 1 : index
    %c0_29 = arith.constant 0 : index
    %20 = vector.load %arg8[%c1_27, %c1_28, %c0_29] : memref<18x18x128xbf16, #tpu.memory_space<vmem>>, vector<16x16x128xbf16>
    %21 = vector.shape_cast %20 : vector<16x16x128xbf16> to vector<256x128xbf16>
    %c0_30 = arith.constant 0 : index
    %c512 = arith.constant 512 : index
    %22 = vector.load %arg9[%c0_30, %c512] : memref<256x1152xbf16, #tpu.memory_space<vmem>>, vector<256x128xbf16>
    tpu.vector_store %arg9[%c0_30, %c512], %21 {strides = array<i32>} : memref<256x1152xbf16, #tpu.memory_space<vmem>>, vector<256x128xbf16>,
    %c1_31 = arith.constant 1 : index
    %c2_32 = arith.constant 2 : index
    %c0_33 = arith.constant 0 : index
    %23 = vector.load %arg8[%c1_31, %c2_32, %c0_33] : memref<18x18x128xbf16, #tpu.memory_space<vmem>>, vector<16x16x128xbf16>
    %24 = vector.shape_cast %23 : vector<16x16x128xbf16> to vector<256x128xbf16>
    %c0_34 = arith.constant 0 : index
    %c640 = arith.constant 640 : index
    %25 = vector.load %arg9[%c0_34, %c640] : memref<256x1152xbf16, #tpu.memory_space<vmem>>, vector<256x128xbf16>
    tpu.vector_store %arg9[%c0_34, %c640], %24 {strides = array<i32>} : memref<256x1152xbf16, #tpu.memory_space<vmem>>, vector<256x128xbf16>,
    %c2_35 = arith.constant 2 : index
    %c0_36 = arith.constant 0 : index
    %c0_37 = arith.constant 0 : index
    %26 = vector.load %arg8[%c2_35, %c0_36, %c0_37] : memref<18x18x128xbf16, #tpu.memory_space<vmem>>, vector<16x16x128xbf16>
    %27 = vector.shape_cast %26 : vector<16x16x128xbf16> to vector<256x128xbf16>
    %c0_38 = arith.constant 0 : index
    %c768 = arith.constant 768 : index
    %28 = vector.load %arg9[%c0_38, %c768] : memref<256x1152xbf16, #tpu.memory_space<vmem>>, vector<256x128xbf16>
    tpu.vector_store %arg9[%c0_38, %c768], %27 {strides = array<i32>} : memref<256x1152xbf16, #tpu.memory_space<vmem>>, vector<256x128xbf16>,
    %c2_39 = arith.constant 2 : index
    %c1_40 = arith.constant 1 : index
    %c0_41 = arith.constant 0 : index
    %29 = vector.load %arg8[%c2_39, %c1_40, %c0_41] : memref<18x18x128xbf16, #tpu.memory_space<vmem>>, vector<16x16x128xbf16>
    %30 = vector.shape_cast %29 : vector<16x16x128xbf16> to vector<256x128xbf16>
    %c0_42 = arith.constant 0 : index
    %c896 = arith.constant 896 : index
    %31 = vector.load %arg9[%c0_42, %c896] : memref<256x1152xbf16, #tpu.memory_space<vmem>>, vector<256x128xbf16>
    tpu.vector_store %arg9[%c0_42, %c896], %30 {strides = array<i32>} : memref<256x1152xbf16, #tpu.memory_space<vmem>>, vector<256x128xbf16>,
    %c2_43 = arith.constant 2 : index
    %c2_44 = arith.constant 2 : index
    %c0_45 = arith.constant 0 : index
    %32 = vector.load %arg8[%c2_43, %c2_44, %c0_45] : memref<18x18x128xbf16, #tpu.memory_space<vmem>>, vector<16x16x128xbf16>
    %33 = vector.shape_cast %32 : vector<16x16x128xbf16> to vector<256x128xbf16>
    %c0_46 = arith.constant 0 : index
    %c1024 = arith.constant 1024 : index
    %34 = vector.load %arg9[%c0_46, %c1024] : memref<256x1152xbf16, #tpu.memory_space<vmem>>, vector<256x128xbf16>
    tpu.vector_store %arg9[%c0_46, %c1024], %33 {strides = array<i32>} : memref<256x1152xbf16, #tpu.memory_space<vmem>>, vector<256x128xbf16>,
    %c0_47 = arith.constant 0 : index
    %c0_48 = arith.constant 0 : index
    %35 = vector.load %arg9[%c0_47, %c0_48] : memref<256x1152xbf16, #tpu.memory_space<vmem>>, vector<256x1152xbf16>
    %c0_49 = arith.constant 0 : index
    %c0_50 = arith.constant 0 : index
    %36 = vector.load %arg4[%c0_49, %c0_50] : memref<1152x128xbf16, #tpu.memory_space<vmem>>, vector<1152x128xbf16>
    %cst_51 = arith.constant dense<0.000000e+00> : vector<256x128xf32>
    %37 = tpu.matmul %35, %36, %cst_51 {dimension_numbers = #tpu.dot_dimension_numbers<[1], [0], [0], [1], [0, 0, 1, 1], [], []>} : vector<256x1152xbf16>, vector<1152x128xbf16>, vector<256x128xf32> -> vector<256x128xf32>
    %38 = vector.shape_cast %37 : vector<256x128xf32> to vector<16x16x128xf32>
    %39 = arith.truncf %38 : vector<16x16x128xf32> to vector<16x16x128xbf16>
    %c0_52 = arith.constant 0 : index
    %c0_53 = arith.constant 0 : index
    %c0_54 = arith.constant 0 : index
    %c0_55 = arith.constant 0 : index
    %40 = vector.load %arg5[%c0_52, %c0_53, %c0_54, %c0_55] : memref<1x16x16x128xbf16, #tpu.memory_space<vmem>>, vector<1x16x16x128xbf16>
    %41 = vector.shape_cast %40 : vector<1x16x16x128xbf16> to vector<16x16x128xbf16>
    %42 = vector.shape_cast %39 : vector<16x16x128xbf16> to vector<1x16x16x128xbf16>
    tpu.vector_store %arg5[%c0_52, %c0_53, %c0_54, %c0_55], %42 {strides = array<i32>} : memref<1x16x16x128xbf16, #tpu.memory_space<vmem>>, vector<1x16x16x128xbf16>,
    %cst_56 = arith.constant dense<0.000000e+00> : vector<128xf32>
    %43 = vector.multi_reduction <add>, %37, %cst_56 [0] : vector<256x128xf32> to vector<128xf32>
    %44 = vector.shape_cast %43 : vector<128xf32> to vector<1x128xf32>
    %c0_57 = arith.constant 0 : index
    %c0_58 = arith.constant 0 : index
    %c0_59 = arith.constant 0 : index
    %45 = vector.load %arg6[%c0_57, %c0_58, %c0_59] : memref<1x1x128xf32, #tpu.memory_space<vmem>>, vector<1x1x128xf32>
    %46 = vector.shape_cast %45 : vector<1x1x128xf32> to vector<1x128xf32>
    %47 = vector.shape_cast %44 : vector<1x128xf32> to vector<1x1x128xf32>
    tpu.vector_store %arg6[%c0_57, %c0_58, %c0_59], %47 {strides = array<i32>} : memref<1x1x128xf32, #tpu.memory_space<vmem>>, vector<1x1x128xf32>,
    %48 = arith.mulf %37, %37 : vector<256x128xf32>
    %cst_60 = arith.constant dense<0.000000e+00> : vector<128xf32>
    %49 = vector.multi_reduction <add>, %48, %cst_60 [0] : vector<256x128xf32> to vector<128xf32>
    %50 = vector.shape_cast %49 : vector<128xf32> to vector<1x128xf32>
    %c0_61 = arith.constant 0 : index
    %c0_62 = arith.constant 0 : index
    %c0_63 = arith.constant 0 : index
    %51 = vector.load %arg7[%c0_61, %c0_62, %c0_63] : memref<1x1x128xf32, #tpu.memory_space<vmem>>, vector<1x1x128xf32>
    %52 = vector.shape_cast %51 : vector<1x1x128xf32> to vector<1x128xf32>
    %53 = vector.shape_cast %50 : vector<1x128xf32> to vector<1x1x128xf32>
    tpu.vector_store %arg7[%c0_61, %c0_62, %c0_63], %53 {strides = array<i32>} : memref<1x1x128xf32, #tpu.memory_space<vmem>>, vector<1x1x128xf32>,
    return
  }
  func.func @transform_0(%arg0: i32) -> (i32, i32, i32, i32) {
    %c0_i32 = arith.constant 0 : i32
    %c0_i32_0 = arith.constant 0 : i32
    %c0_i32_1 = arith.constant 0 : i32
    %c0_i32_2 = arith.constant 0 : i32
    return %arg0, %c0_i32, %c0_i32_0, %c0_i32_1 : i32, i32, i32, i32
  }
  func.func @transform_1(%arg0: i32) -> (i32, i32) {
    %c0_i32 = arith.constant 0 : i32
    %c0_i32_0 = arith.constant 0 : i32
    %c0_i32_1 = arith.constant 0 : i32
    return %c0_i32, %c0_i32_0 : i32, i32
  }
  func.func @transform_2(%arg0: i32) -> (i32, i32) {
    %c0_i32 = arith.constant 0 : i32
    %c0_i32_0 = arith.constant 0 : i32
    %c0_i32_1 = arith.constant 0 : i32
    return %c0_i32, %c0_i32_0 : i32, i32
  }
  func.func @transform_3(%arg0: i32) -> (i32, i32) {
    %c0_i32 = arith.constant 0 : i32
    %c0_i32_0 = arith.constant 0 : i32
    %c0_i32_1 = arith.constant 0 : i32
    return %c0_i32, %c0_i32_0 : i32, i32
  }
  func.func @transform_4(%arg0: i32) -> (i32, i32, i32, i32) {
    %c0_i32 = arith.constant 0 : i32
    %c0_i32_0 = arith.constant 0 : i32
    %c0_i32_1 = arith.constant 0 : i32
    %c0_i32_2 = arith.constant 0 : i32
    return %arg0, %c0_i32, %c0_i32_0, %c0_i32_1 : i32, i32, i32, i32
  }
  func.func @transform_5(%arg0: i32) -> (i32, i32, i32) {
    %c0_i32 = arith.constant 0 : i32
    %c0_i32_0 = arith.constant 0 : i32
    %c0_i32_1 = arith.constant 0 : i32
    return %arg0, %c0_i32, %c0_i32_0 : i32, i32, i32
  }
  func.func @transform_6(%arg0: i32) -> (i32, i32, i32) {
    %c0_i32 = arith.constant 0 : i32
    %c0_i32_0 = arith.constant 0 : i32
    %c0_i32_1 = arith.constant 0 : i32
    return %arg0, %c0_i32, %c0_i32_0 : i32, i32, i32
  }
}

module attributes {stable_mosaic.version = 11 : i64} {
  func.func @_conv3x3_kernel(%arg0: i32, %arg1: memref<1x16x16x128xbf16, #tpu.memory_space<vmem>>, %arg2: memref<1x128xf32, #tpu.memory_space<vmem>>, %arg3: memref<1x128xf32, #tpu.memory_space<vmem>>, %arg4: memref<1152x128xbf16, #tpu.memory_space<vmem>>, %arg5: memref<1x16x16x128xbf16, #tpu.memory_space<vmem>>, %arg6: memref<1x1x128xf32, #tpu.memory_space<vmem>>, %arg7: memref<1x1x128xf32, #tpu.memory_space<vmem>>, %arg8: memref<18x18x128xbf16, #tpu.memory_space<vmem>>, %arg9: memref<256x1152xbf16, #tpu.memory_space<vmem>>) attributes {dimension_semantics = [#tpu.dimension_semantics<parallel>], iteration_bounds = array<i64: 4>, scalar_prefetch = 0 : i64, scratch_operands = 2 : i64, tpu.core_type = #tpu.core_type<tc>, window_params = [{transform_indices = @transform_0, window_bounds = array<i64: 1, 16, 16, 128>}, {pipeline_mode = #tpu.pipeline_mode<synchronous>, transform_indices = @transform_1, window_bounds = array<i64: 1, 128>}, {pipeline_mode = #tpu.pipeline_mode<synchronous>, transform_indices = @transform_2, window_bounds = array<i64: 1, 128>}, {pipeline_mode = #tpu.pipeline_mode<synchronous>, transform_indices = @transform_3, window_bounds = array<i64: 1152, 128>}, {transform_indices = @transform_4, window_bounds = array<i64: 1, 16, 16, 128>}, {transform_indices = @transform_5, window_bounds = array<i64: 1, 1, 128>}, {transform_indices = @transform_6, window_bounds = array<i64: 1, 1, 128>}]} {
    %c0 = arith.constant 0 : index
    %c0_0 = arith.constant 0 : index
    %c0_1 = arith.constant 0 : index
    %c0_2 = arith.constant 0 : index
    %0 = vector.load %arg1[%c0, %c0_0, %c0_1, %c0_2] : memref<1x16x16x128xbf16, #tpu.memory_space<vmem>>, vector<1x16x16x128xbf16>
    %1 = vector.shape_cast %0 : vector<1x16x16x128xbf16> to vector<16x16x128xbf16>
    %c0_3 = arith.constant 0 : index
    %c0_4 = arith.constant 0 : index
    %2 = vector.load %arg2[%c0_3, %c0_4] : memref<1x128xf32, #tpu.memory_space<vmem>>, vector<1x128xf32>
    %3 = vector.shape_cast %2 : vector<1x128xf32> to vector<1x1x128xf32>
    %c0_5 = arith.constant 0 : index
    %c0_6 = arith.constant 0 : index
    %4 = vector.load %arg3[%c0_5, %c0_6] : memref<1x128xf32, #tpu.memory_space<vmem>>, vector<1x128xf32>
    %5 = vector.shape_cast %4 : vector<1x128xf32> to vector<1x1x128xf32>
    %6 = arith.extf %1 : vector<16x16x128xbf16> to vector<16x16x128xf32>
    %7 = vector.broadcast %3 : vector<1x1x128xf32> to vector<16x16x128xf32>
    %8 = arith.mulf %6, %7 : vector<16x16x128xf32>
    %9 = vector.broadcast %5 : vector<1x1x128xf32> to vector<16x16x128xf32>
    %10 = arith.addf %8, %9 : vector<16x16x128xf32>
    %cst = arith.constant 0.000000e+00 : f32
    %11 = vector.broadcast %cst : f32 to vector<16x16x128xf32>
    %12 = arith.maximumf %10, %11 : vector<16x16x128xf32>
    %13 = arith.truncf %12 : vector<16x16x128xf32> to vector<16x16x128xbf16>
    %cst_7 = arith.constant 0.000000e+00 : bf16
    %14 = vector.broadcast %cst_7 : bf16 to vector<1x18x128xbf16>
    %cst_8 = arith.constant 0.000000e+00 : bf16
    %15 = vector.broadcast %cst_8 : bf16 to vector<16x1x128xbf16>
    %c0_9 = arith.constant 0 : index
    %c0_10 = arith.constant 0 : index
    %c0_11 = arith.constant 0 : index
    %16 = vector.load %arg8[%c0_9, %c0_10, %c0_11] : memref<18x18x128xbf16, #tpu.memory_space<vmem>>, vector<1x18x128xbf16>
    tpu.vector_store %arg8[%c0_9, %c0_10, %c0_11], %14 {strides = array<i32>} : memref<18x18x128xbf16, #tpu.memory_space<vmem>>, vector<1x18x128xbf16>,
    %c17 = arith.constant 17 : index
    %c0_12 = arith.constant 0 : index
    %c0_13 = arith.constant 0 : index
    %17 = vector.load %arg8[%c17, %c0_12, %c0_13] : memref<18x18x128xbf16, #tpu.memory_space<vmem>>, vector<1x18x128xbf16>
    tpu.vector_store %arg8[%c17, %c0_12, %c0_13], %14 {strides = array<i32>} : memref<18x18x128xbf16, #tpu.memory_space<vmem>>, vector<1x18x128xbf16>,
    %18 = tpu.concatenate %15, %13, %15 in 1 : vector<16x1x128xbf16>, vector<16x16x128xbf16>, vector<16x1x128xbf16> -> vector<16x18x128xbf16>
    %c1 = arith.constant 1 : index
    %c0_14 = arith.constant 0 : index
    %c0_15 = arith.constant 0 : index
    %19 = vector.load %arg8[%c1, %c0_14, %c0_15] : memref<18x18x128xbf16, #tpu.memory_space<vmem>>, vector<16x18x128xbf16>
    tpu.vector_store %arg8[%c1, %c0_14, %c0_15], %18 {strides = array<i32>} : memref<18x18x128xbf16, #tpu.memory_space<vmem>>, vector<16x18x128xbf16>,
    %c0_16 = arith.constant 0 : index
    %c0_17 = arith.constant 0 : index
    %c0_18 = arith.constant 0 : index
    %20 = vector.load %arg8[%c0_16, %c0_17, %c0_18] : memref<18x18x128xbf16, #tpu.memory_space<vmem>>, vector<16x16x128xbf16>
    %21 = vector.shape_cast %20 : vector<16x16x128xbf16> to vector<256x128xbf16>
    %c0_19 = arith.constant 0 : index
    %c0_20 = arith.constant 0 : index
    %22 = vector.load %arg9[%c0_19, %c0_20] : memref<256x1152xbf16, #tpu.memory_space<vmem>>, vector<256x128xbf16>
    tpu.vector_store %arg9[%c0_19, %c0_20], %21 {strides = array<i32>} : memref<256x1152xbf16, #tpu.memory_space<vmem>>, vector<256x128xbf16>,
    %c0_21 = arith.constant 0 : index
    %c1_22 = arith.constant 1 : index
    %c0_23 = arith.constant 0 : index
    %23 = vector.load %arg8[%c0_21, %c1_22, %c0_23] : memref<18x18x128xbf16, #tpu.memory_space<vmem>>, vector<16x16x128xbf16>
    %24 = vector.shape_cast %23 : vector<16x16x128xbf16> to vector<256x128xbf16>
    %c0_24 = arith.constant 0 : index
    %c128 = arith.constant 128 : index
    %25 = vector.load %arg9[%c0_24, %c128] : memref<256x1152xbf16, #tpu.memory_space<vmem>>, vector<256x128xbf16>
    tpu.vector_store %arg9[%c0_24, %c128], %24 {strides = array<i32>} : memref<256x1152xbf16, #tpu.memory_space<vmem>>, vector<256x128xbf16>,
    %c0_25 = arith.constant 0 : index
    %c2 = arith.constant 2 : index
    %c0_26 = arith.constant 0 : index
    %26 = vector.load %arg8[%c0_25, %c2, %c0_26] : memref<18x18x128xbf16, #tpu.memory_space<vmem>>, vector<16x16x128xbf16>
    %27 = vector.shape_cast %26 : vector<16x16x128xbf16> to vector<256x128xbf16>
    %c0_27 = arith.constant 0 : index
    %c256 = arith.constant 256 : index
    %28 = vector.load %arg9[%c0_27, %c256] : memref<256x1152xbf16, #tpu.memory_space<vmem>>, vector<256x128xbf16>
    tpu.vector_store %arg9[%c0_27, %c256], %27 {strides = array<i32>} : memref<256x1152xbf16, #tpu.memory_space<vmem>>, vector<256x128xbf16>,
    %c1_28 = arith.constant 1 : index
    %c0_29 = arith.constant 0 : index
    %c0_30 = arith.constant 0 : index
    %29 = vector.load %arg8[%c1_28, %c0_29, %c0_30] : memref<18x18x128xbf16, #tpu.memory_space<vmem>>, vector<16x16x128xbf16>
    %30 = vector.shape_cast %29 : vector<16x16x128xbf16> to vector<256x128xbf16>
    %c0_31 = arith.constant 0 : index
    %c384 = arith.constant 384 : index
    %31 = vector.load %arg9[%c0_31, %c384] : memref<256x1152xbf16, #tpu.memory_space<vmem>>, vector<256x128xbf16>
    tpu.vector_store %arg9[%c0_31, %c384], %30 {strides = array<i32>} : memref<256x1152xbf16, #tpu.memory_space<vmem>>, vector<256x128xbf16>,
    %c1_32 = arith.constant 1 : index
    %c1_33 = arith.constant 1 : index
    %c0_34 = arith.constant 0 : index
    %32 = vector.load %arg8[%c1_32, %c1_33, %c0_34] : memref<18x18x128xbf16, #tpu.memory_space<vmem>>, vector<16x16x128xbf16>
    %33 = vector.shape_cast %32 : vector<16x16x128xbf16> to vector<256x128xbf16>
    %c0_35 = arith.constant 0 : index
    %c512 = arith.constant 512 : index
    %34 = vector.load %arg9[%c0_35, %c512] : memref<256x1152xbf16, #tpu.memory_space<vmem>>, vector<256x128xbf16>
    tpu.vector_store %arg9[%c0_35, %c512], %33 {strides = array<i32>} : memref<256x1152xbf16, #tpu.memory_space<vmem>>, vector<256x128xbf16>,
    %c1_36 = arith.constant 1 : index
    %c2_37 = arith.constant 2 : index
    %c0_38 = arith.constant 0 : index
    %35 = vector.load %arg8[%c1_36, %c2_37, %c0_38] : memref<18x18x128xbf16, #tpu.memory_space<vmem>>, vector<16x16x128xbf16>
    %36 = vector.shape_cast %35 : vector<16x16x128xbf16> to vector<256x128xbf16>
    %c0_39 = arith.constant 0 : index
    %c640 = arith.constant 640 : index
    %37 = vector.load %arg9[%c0_39, %c640] : memref<256x1152xbf16, #tpu.memory_space<vmem>>, vector<256x128xbf16>
    tpu.vector_store %arg9[%c0_39, %c640], %36 {strides = array<i32>} : memref<256x1152xbf16, #tpu.memory_space<vmem>>, vector<256x128xbf16>,
    %c2_40 = arith.constant 2 : index
    %c0_41 = arith.constant 0 : index
    %c0_42 = arith.constant 0 : index
    %38 = vector.load %arg8[%c2_40, %c0_41, %c0_42] : memref<18x18x128xbf16, #tpu.memory_space<vmem>>, vector<16x16x128xbf16>
    %39 = vector.shape_cast %38 : vector<16x16x128xbf16> to vector<256x128xbf16>
    %c0_43 = arith.constant 0 : index
    %c768 = arith.constant 768 : index
    %40 = vector.load %arg9[%c0_43, %c768] : memref<256x1152xbf16, #tpu.memory_space<vmem>>, vector<256x128xbf16>
    tpu.vector_store %arg9[%c0_43, %c768], %39 {strides = array<i32>} : memref<256x1152xbf16, #tpu.memory_space<vmem>>, vector<256x128xbf16>,
    %c2_44 = arith.constant 2 : index
    %c1_45 = arith.constant 1 : index
    %c0_46 = arith.constant 0 : index
    %41 = vector.load %arg8[%c2_44, %c1_45, %c0_46] : memref<18x18x128xbf16, #tpu.memory_space<vmem>>, vector<16x16x128xbf16>
    %42 = vector.shape_cast %41 : vector<16x16x128xbf16> to vector<256x128xbf16>
    %c0_47 = arith.constant 0 : index
    %c896 = arith.constant 896 : index
    %43 = vector.load %arg9[%c0_47, %c896] : memref<256x1152xbf16, #tpu.memory_space<vmem>>, vector<256x128xbf16>
    tpu.vector_store %arg9[%c0_47, %c896], %42 {strides = array<i32>} : memref<256x1152xbf16, #tpu.memory_space<vmem>>, vector<256x128xbf16>,
    %c2_48 = arith.constant 2 : index
    %c2_49 = arith.constant 2 : index
    %c0_50 = arith.constant 0 : index
    %44 = vector.load %arg8[%c2_48, %c2_49, %c0_50] : memref<18x18x128xbf16, #tpu.memory_space<vmem>>, vector<16x16x128xbf16>
    %45 = vector.shape_cast %44 : vector<16x16x128xbf16> to vector<256x128xbf16>
    %c0_51 = arith.constant 0 : index
    %c1024 = arith.constant 1024 : index
    %46 = vector.load %arg9[%c0_51, %c1024] : memref<256x1152xbf16, #tpu.memory_space<vmem>>, vector<256x128xbf16>
    tpu.vector_store %arg9[%c0_51, %c1024], %45 {strides = array<i32>} : memref<256x1152xbf16, #tpu.memory_space<vmem>>, vector<256x128xbf16>,
    %c0_52 = arith.constant 0 : index
    %c0_53 = arith.constant 0 : index
    %47 = vector.load %arg9[%c0_52, %c0_53] : memref<256x1152xbf16, #tpu.memory_space<vmem>>, vector<256x1152xbf16>
    %c0_54 = arith.constant 0 : index
    %c0_55 = arith.constant 0 : index
    %48 = vector.load %arg4[%c0_54, %c0_55] : memref<1152x128xbf16, #tpu.memory_space<vmem>>, vector<1152x128xbf16>
    %cst_56 = arith.constant dense<0.000000e+00> : vector<256x128xf32>
    %49 = tpu.matmul %47, %48, %cst_56 {dimension_numbers = #tpu.dot_dimension_numbers<[1], [0], [0], [1], [0, 0, 1, 1], [], []>} : vector<256x1152xbf16>, vector<1152x128xbf16>, vector<256x128xf32> -> vector<256x128xf32>
    %50 = vector.shape_cast %49 : vector<256x128xf32> to vector<16x16x128xf32>
    %51 = arith.truncf %50 : vector<16x16x128xf32> to vector<16x16x128xbf16>
    %c0_57 = arith.constant 0 : index
    %c0_58 = arith.constant 0 : index
    %c0_59 = arith.constant 0 : index
    %c0_60 = arith.constant 0 : index
    %52 = vector.load %arg5[%c0_57, %c0_58, %c0_59, %c0_60] : memref<1x16x16x128xbf16, #tpu.memory_space<vmem>>, vector<1x16x16x128xbf16>
    %53 = vector.shape_cast %52 : vector<1x16x16x128xbf16> to vector<16x16x128xbf16>
    %54 = vector.shape_cast %51 : vector<16x16x128xbf16> to vector<1x16x16x128xbf16>
    tpu.vector_store %arg5[%c0_57, %c0_58, %c0_59, %c0_60], %54 {strides = array<i32>} : memref<1x16x16x128xbf16, #tpu.memory_space<vmem>>, vector<1x16x16x128xbf16>,
    %cst_61 = arith.constant dense<0.000000e+00> : vector<128xf32>
    %55 = vector.multi_reduction <add>, %49, %cst_61 [0] : vector<256x128xf32> to vector<128xf32>
    %56 = vector.shape_cast %55 : vector<128xf32> to vector<1x128xf32>
    %c0_62 = arith.constant 0 : index
    %c0_63 = arith.constant 0 : index
    %c0_64 = arith.constant 0 : index
    %57 = vector.load %arg6[%c0_62, %c0_63, %c0_64] : memref<1x1x128xf32, #tpu.memory_space<vmem>>, vector<1x1x128xf32>
    %58 = vector.shape_cast %57 : vector<1x1x128xf32> to vector<1x128xf32>
    %59 = vector.shape_cast %56 : vector<1x128xf32> to vector<1x1x128xf32>
    tpu.vector_store %arg6[%c0_62, %c0_63, %c0_64], %59 {strides = array<i32>} : memref<1x1x128xf32, #tpu.memory_space<vmem>>, vector<1x1x128xf32>,
    %60 = arith.mulf %49, %49 : vector<256x128xf32>
    %cst_65 = arith.constant dense<0.000000e+00> : vector<128xf32>
    %61 = vector.multi_reduction <add>, %60, %cst_65 [0] : vector<256x128xf32> to vector<128xf32>
    %62 = vector.shape_cast %61 : vector<128xf32> to vector<1x128xf32>
    %c0_66 = arith.constant 0 : index
    %c0_67 = arith.constant 0 : index
    %c0_68 = arith.constant 0 : index
    %63 = vector.load %arg7[%c0_66, %c0_67, %c0_68] : memref<1x1x128xf32, #tpu.memory_space<vmem>>, vector<1x1x128xf32>
    %64 = vector.shape_cast %63 : vector<1x1x128xf32> to vector<1x128xf32>
    %65 = vector.shape_cast %62 : vector<1x128xf32> to vector<1x1x128xf32>
    tpu.vector_store %arg7[%c0_66, %c0_67, %c0_68], %65 {strides = array<i32>} : memref<1x1x128xf32, #tpu.memory_space<vmem>>, vector<1x1x128xf32>,
    return
  }
  func.func @transform_0(%arg0: i32) -> (i32, i32, i32, i32) {
    %c0_i32 = arith.constant 0 : i32
    %c0_i32_0 = arith.constant 0 : i32
    %c0_i32_1 = arith.constant 0 : i32
    %c0_i32_2 = arith.constant 0 : i32
    return %arg0, %c0_i32, %c0_i32_0, %c0_i32_1 : i32, i32, i32, i32
  }
  func.func @transform_1(%arg0: i32) -> (i32, i32) {
    %c0_i32 = arith.constant 0 : i32
    %c0_i32_0 = arith.constant 0 : i32
    %c0_i32_1 = arith.constant 0 : i32
    return %c0_i32, %c0_i32_0 : i32, i32
  }
  func.func @transform_2(%arg0: i32) -> (i32, i32) {
    %c0_i32 = arith.constant 0 : i32
    %c0_i32_0 = arith.constant 0 : i32
    %c0_i32_1 = arith.constant 0 : i32
    return %c0_i32, %c0_i32_0 : i32, i32
  }
  func.func @transform_3(%arg0: i32) -> (i32, i32) {
    %c0_i32 = arith.constant 0 : i32
    %c0_i32_0 = arith.constant 0 : i32
    %c0_i32_1 = arith.constant 0 : i32
    return %c0_i32, %c0_i32_0 : i32, i32
  }
  func.func @transform_4(%arg0: i32) -> (i32, i32, i32, i32) {
    %c0_i32 = arith.constant 0 : i32
    %c0_i32_0 = arith.constant 0 : i32
    %c0_i32_1 = arith.constant 0 : i32
    %c0_i32_2 = arith.constant 0 : i32
    return %arg0, %c0_i32, %c0_i32_0, %c0_i32_1 : i32, i32, i32, i32
  }
  func.func @transform_5(%arg0: i32) -> (i32, i32, i32) {
    %c0_i32 = arith.constant 0 : i32
    %c0_i32_0 = arith.constant 0 : i32
    %c0_i32_1 = arith.constant 0 : i32
    return %arg0, %c0_i32, %c0_i32_0 : i32, i32, i32
  }
  func.func @transform_6(%arg0: i32) -> (i32, i32, i32) {
    %c0_i32 = arith.constant 0 : i32
    %c0_i32_0 = arith.constant 0 : i32
    %c0_i32_1 = arith.constant 0 : i32
    return %arg0, %c0_i32, %c0_i32_0 : i32, i32, i32
  }
}

module attributes {stable_mosaic.version = 11 : i64} {
  func.func @_scale_residual_relu_kernel(%arg0: i32, %arg1: memref<1x16x16x128xbf16, #tpu.memory_space<vmem>>, %arg2: memref<1x16x16x128xf32, #tpu.memory_space<vmem>>, %arg3: memref<1x1x128xf32, #tpu.memory_space<vmem>>, %arg4: memref<1x1x128xf32, #tpu.memory_space<vmem>>, %arg5: memref<1x16x16x128xf32, #tpu.memory_space<vmem>>) attributes {dimension_semantics = [#tpu.dimension_semantics<parallel>], iteration_bounds = array<i64: 4>, scalar_prefetch = 0 : i64, scratch_operands = 0 : i64, tpu.core_type = #tpu.core_type<tc>, window_params = [{transform_indices = @transform_0, window_bounds = array<i64: 1, 16, 16, 128>}, {transform_indices = @transform_1, window_bounds = array<i64: 1, 16, 16, 128>}, {transform_indices = @transform_2, window_bounds = array<i64: 1, 1, 128>}, {transform_indices = @transform_3, window_bounds = array<i64: 1, 1, 128>}, {transform_indices = @transform_4, window_bounds = array<i64: 1, 16, 16, 128>}]} {
    %c0 = arith.constant 0 : index
    %c0_0 = arith.constant 0 : index
    %c0_1 = arith.constant 0 : index
    %0 = vector.load %arg3[%c0, %c0_0, %c0_1] : memref<1x1x128xf32, #tpu.memory_space<vmem>>, vector<1x1x128xf32>
    %c0_2 = arith.constant 0 : index
    %c0_3 = arith.constant 0 : index
    %c0_4 = arith.constant 0 : index
    %1 = vector.load %arg4[%c0_2, %c0_3, %c0_4] : memref<1x1x128xf32, #tpu.memory_space<vmem>>, vector<1x1x128xf32>
    %c0_5 = arith.constant 0 : index
    %c0_6 = arith.constant 0 : index
    %c0_7 = arith.constant 0 : index
    %c0_8 = arith.constant 0 : index
    %2 = vector.load %arg1[%c0_5, %c0_6, %c0_7, %c0_8] : memref<1x16x16x128xbf16, #tpu.memory_space<vmem>>, vector<1x16x16x128xbf16>
    %3 = vector.shape_cast %2 : vector<1x16x16x128xbf16> to vector<16x16x128xbf16>
    %4 = arith.extf %3 : vector<16x16x128xbf16> to vector<16x16x128xf32>
    %5 = vector.broadcast %0 : vector<1x1x128xf32> to vector<16x16x128xf32>
    %6 = arith.mulf %4, %5 : vector<16x16x128xf32>
    %7 = vector.broadcast %1 : vector<1x1x128xf32> to vector<16x16x128xf32>
    %8 = arith.addf %6, %7 : vector<16x16x128xf32>
    %c0_9 = arith.constant 0 : index
    %c0_10 = arith.constant 0 : index
    %c0_11 = arith.constant 0 : index
    %c0_12 = arith.constant 0 : index
    %9 = vector.load %arg2[%c0_9, %c0_10, %c0_11, %c0_12] : memref<1x16x16x128xf32, #tpu.memory_space<vmem>>, vector<1x16x16x128xf32>
    %10 = vector.shape_cast %9 : vector<1x16x16x128xf32> to vector<16x16x128xf32>
    %11 = arith.addf %8, %10 : vector<16x16x128xf32>
    %cst = arith.constant 0.000000e+00 : f32
    %12 = vector.broadcast %cst : f32 to vector<16x16x128xf32>
    %13 = arith.maximumf %11, %12 : vector<16x16x128xf32>
    %c0_13 = arith.constant 0 : index
    %c0_14 = arith.constant 0 : index
    %c0_15 = arith.constant 0 : index
    %c0_16 = arith.constant 0 : index
    %14 = vector.load %arg5[%c0_13, %c0_14, %c0_15, %c0_16] : memref<1x16x16x128xf32, #tpu.memory_space<vmem>>, vector<1x16x16x128xf32>
    %15 = vector.shape_cast %14 : vector<1x16x16x128xf32> to vector<16x16x128xf32>
    %16 = vector.shape_cast %13 : vector<16x16x128xf32> to vector<1x16x16x128xf32>
    tpu.vector_store %arg5[%c0_13, %c0_14, %c0_15, %c0_16], %16 {strides = array<i32>} : memref<1x16x16x128xf32, #tpu.memory_space<vmem>>, vector<1x16x16x128xf32>,
    return
  }
  func.func @transform_0(%arg0: i32) -> (i32, i32, i32, i32) {
    %c0_i32 = arith.constant 0 : i32
    %c0_i32_0 = arith.constant 0 : i32
    %c0_i32_1 = arith.constant 0 : i32
    %c0_i32_2 = arith.constant 0 : i32
    return %arg0, %c0_i32, %c0_i32_0, %c0_i32_1 : i32, i32, i32, i32
  }
  func.func @transform_1(%arg0: i32) -> (i32, i32, i32, i32) {
    %c0_i32 = arith.constant 0 : i32
    %c0_i32_0 = arith.constant 0 : i32
    %c0_i32_1 = arith.constant 0 : i32
    %c0_i32_2 = arith.constant 0 : i32
    return %arg0, %c0_i32, %c0_i32_0, %c0_i32_1 : i32, i32, i32, i32
  }
  func.func @transform_2(%arg0: i32) -> (i32, i32, i32) {
    %c0_i32 = arith.constant 0 : i32
    %c0_i32_0 = arith.constant 0 : i32
    %c0_i32_1 = arith.constant 0 : i32
    return %arg0, %c0_i32, %c0_i32_0 : i32, i32, i32
  }
  func.func @transform_3(%arg0: i32) -> (i32, i32, i32) {
    %c0_i32 = arith.constant 0 : i32
    %c0_i32_0 = arith.constant 0 : i32
    %c0_i32_1 = arith.constant 0 : i32
    return %arg0, %c0_i32, %c0_i32_0 : i32, i32, i32
  }
  func.func @transform_4(%arg0: i32) -> (i32, i32, i32, i32) {
    %c0_i32 = arith.constant 0 : i32
    %c0_i32_0 = arith.constant 0 : i32
    %c0_i32_1 = arith.constant 0 : i32
    %c0_i32_2 = arith.constant 0 : i32
    return %arg0, %c0_i32, %c0_i32_0, %c0_i32_1 : i32, i32, i32, i32
  }
}

</mosaic_0001>

<bundles_post_ra>
// kernel: build_block_with_se.5
= control target key start
LH: loop header
LB: loop body
LE: loop exit
PB: predicated region body
PF: predicated region fallthrough
CT: control target
= control target key end

     0   :  { %9 = vsyncpa [#allocation3], 0  ;;  %s1125_s0 = inlined_call_operand.vmem [shape: bf16[4,16,16,128], index: 0, kind: input, shape index: {}]   ;;  %s1126_s1 = inlined_call_operand.vmem [shape: f32[4,16,16,128], index: 1, kind: input, shape index: {}]   ;;  %s1127_s2 = inlined_call_operand.vmem [shape: f32[4,1,128], index: 2, kind: input, shape index: {}]   ;;  %s1128_s3 = inlined_call_operand.vmem [shape: f32[4,1,128], index: 3, kind: input, shape index: {}]   ;;  %s1129_s4 = inlined_call_operand.hbm [shape: f32[4,16,16,128], index: 4, kind: output, shape index: {}]  }
   0x1   :  { %11 = vsyncpa [#allocation3 + $0x1], 0  ;;  %s851_s15 = smov 0   ;;  %s853_s16 = smov 0  }
   0x2   :  { %s855_s17 = smov 0   ;;  %s857_s18 = smov 0  }
   0x3 LB: > { %s872_s19 = sadd.s32 4294967295, %s821_s18   ;;  %s620_s20 = sadd.s32 4294967294, %s821_s18   ;;  %s821_s18 = sphi %s857_s18, %s1135_s18   ;;  %s817_s17 = sphi %s855_s17, %s1134_s17   ;;  %s813_s16 = sphi %s853_s16, %s1133_s16   ;;  %s809_s15 = sphi %s851_s15, %s1132_s15  }
   0x4   : > { %s876_s21 = sadd.s32 1, %s821_s18   ;;  %s128_s22 = sadd.s32 1, %s817_s17 }
   0x5   : > { %s125_s23 = ssub.s32 %s821_s18, %s876_s21  ;;  %p138_p0 = scmp.ne.s32.totalorder %s817_s17, %s813_s16 }
   0x6   : > { %p126_p1 = scmp.eq.s32.totalorder %s125_s23, 0  ;;  %p139_p2 = scmp.eq.s32.totalorder %s872_s19, 3 }
   0x7   : > { %p144_p3 = scmp.ne.s32.totalorder %s813_s16, %s809_s15  ;;  %p145_p4 = scmp.eq.s32.totalorder %s620_s20, 3 }
   0x8   : > { %s887_s24 = scalar_select %p126_p1, %s817_s17, %s128_s22  }
   0x9   : > { %p889_p5 = por %p139_p2, %p138_p0  ;;  %p893_p6 = por %p145_p4, %p144_p3 }
   0xa   : > { %p623_p7 = scmp.ge.s32.totalorder %s821_s18, 1  ;;  %p191_p8 = scmp.lt.s32.totalorder %s821_s18, 5 }
   0xc   : > { %p192_p9 = pnand %p623_p7, %p191_p8 }
   0xd   : > { %p228_p10 = scmp.lt.s32.totalorder (!%p192_p9), %s872_s19, 3  ;;  %s225_s22 = sand.u32 (!%p192_p9), 1, %s813_s16  }
   0xe   : > { %195 = sbr.rel (%p192_p9) target bundleno = 83 (0x53), region = 36  ;;  %s934_s23 = sshll.u32 (!%p192_p9), %s225_s22, 8 }
   0xf   : > { %s823_s8 = smov (!%p192_p9), [#allocation2]  }
  0x15   : > { %s229_s27 = scalar_select %p228_p10, %s872_s19, 3 }
  0x17   : > { %s636_s28 = sshll.u32 %s229_s27, 7  ;;  %s637_s29 = sshll.u32 %s229_s27, 8 }
  0x18   : > { %s904_s6 = scalar_lea.vmem %s1125_s0, %s636_s28  ;;  %s240_s9 = scalar_lea.vmem %s1127_s2, %s229_s27 }
  0x19   : > { %s243_s12 = scalar_lea.vmem %s1128_s3, %s229_s27  ;;  %v640_v0 = vld [vmem:[%s904_s6] sm:$0xff]   ;;  %s916_s20 = scalar_lea.vmem %s1126_s1, %s637_s29  ;;  %v703_v4 = vld [vmem:[%s904_s6 + $0x8] sm:$0xff]   ;;  %v704_v8 = vld [vmem:[%s904_s6 + $0x10] sm:$0xff]  }
  0x1a   : > { %v918_v1 = vld [vmem:[%s240_s9] ss:$0 sm:$0xff]  ;;  %v641_v2 = vunpack.c.l.bf16 %v640_v0  ;;  %v642_v3 = vunpack.c.h.bf16 %v640_v0  ;;  %v645_v6 = vunpack.c.l.bf16 %v703_v4  ;;  %v646_v7 = vunpack.c.h.bf16 %v703_v4  ;;  %v705_v13 = vld [vmem:[%s904_s6 + $0x18] sm:$0xff]   ;;  %v387_v15 = vld [vmem:[%s916_s20 + $0x8] sm:$0xff]  ;;  %s958_s27 = scalar_lea.vmem [#allocation2], %s934_s23  ;;  %s638_s28 = sshll.u32 %s872_s19, 12 }
  0x1b   : > { %v922_v5 = vld [vmem:[%s243_s12] ss:$0 sm:$0xff]  ;;  %v649_v11 = vunpack.c.l.bf16 %v704_v8  ;;  %v650_v12 = vunpack.c.h.bf16 %v704_v8  ;;  %v653_v18 = vunpack.c.l.bf16 %v705_v13  ;;  %v654_v19 = vunpack.c.h.bf16 %v705_v13  ;;  %v388_v22 = vld [vmem:[%s916_s20 + $0x10] sm:$0xff]  ;;  %v389_v23 = vld [vmem:[%s916_s20 + $0x18] sm:$0xff]  ;;  %s528_s29 = sshll.u32 %s958_s27, 4  ;;  %s1072_s5 = scalar_lea.hbm %s1129_s4, %s638_s28  ;;  %s1074_s29 = int_to_ptr.vmem [resolvable:$true] %s528_s29 }
  0x1c   : > { %v316_v9 = vmul.f32 %v641_v2, %v918_v1  ;;  %v317_v10 = vmul.f32 %v642_v3, %v918_v1  ;;  %v386_v14 = vld [vmem:[%s916_s20] sm:$0xff]  ;;  %v318_v16 = vmul.f32 %v645_v6, %v918_v1  ;;  %v319_v17 = vmul.f32 %v646_v7, %v918_v1  ;;  %v391_v29 = vld [vmem:[%s916_s20 + $0x28] sm:$0xff]  ;;  %v392_v36 = vld [vmem:[%s916_s20 + $0x30] sm:$0xff]  ;;  %s759_s7 = scalar_lea.vmem %s1074_s29, 4096  ;;  %s763_s9 = sshll.u32 %s823_s8, 4  ;;  %s764_s9 = int_to_ptr.vmem [resolvable:$false] %s763_s9 }
  0x1d   : > { %v320_v24 = vmul.f32 %v649_v11, %v918_v1  ;;  %v321_v25 = vmul.f32 %v650_v12, %v918_v1  ;;  %v390_v28 = vld [vmem:[%s916_s20 + $0x20] sm:$0xff]  ;;  %v322_v30 = vmul.f32 %v653_v18, %v918_v1  ;;  %v323_v31 = vmul.f32 %v654_v19, %v918_v1  ;;  %v393_v37 = vld [vmem:[%s916_s20 + $0x38] sm:$0xff]  ;;  %v707_v47 = vld [vmem:[%s904_s6 + $0x28] sm:$0xff]   ;;  %p760_p11 = scmp.ne.s32.totalorder %s1074_s29, %s759_s7  ;;  %s765_s10 = scalar_lea.vmem %s764_s9, 8192 }
  0x1e   : > { %v354_v20 = vadd.f32 %v922_v5, %v316_v9  ;;  %v355_v21 = vadd.f32 %v922_v5, %v317_v10  ;;  %v356_v26 = vadd.f32 %v922_v5, %v318_v16  ;;  %v357_v27 = vadd.f32 %v922_v5, %v319_v17  ;;  %v706_v42 = vld [vmem:[%s904_s6 + $0x20] sm:$0xff]   ;;  %v708_v52 = vld [vmem:[%s904_s6 + $0x30] sm:$0xff]   ;;  %v709_v57 = vld [vmem:[%s904_s6 + $0x38] sm:$0xff]   ;;  %p766_p0 = scmp.lt.s32.totalorder %s1074_s29, %s764_s9  ;;  %p767_p1 = scmp.lt.s32.totalorder %s765_s10, %s759_s7 }
  0x1f   : > { %v358_v34 = vadd.f32 %v922_v5, %v320_v24  ;;  %v359_v35 = vadd.f32 %v922_v5, %v321_v25  ;;  %v360_v40 = vadd.f32 %v922_v5, %v322_v30  ;;  %v361_v41 = vadd.f32 %v922_v5, %v323_v31  ;;  %v394_v3 = vld [vmem:[%s916_s20 + $0x40] sm:$0xff]  ;;  %v395_v4 = vld [vmem:[%s916_s20 + $0x48] sm:$0xff]  ;;  %v396_v12 = vld [vmem:[%s916_s20 + $0x50] sm:$0xff]  ;;  %p761_p12 = pnand %p760_p11, %p889_p5 }
  0x20   : > { %v418_v32 = vadd.f32 %v386_v14, %v354_v20  ;;  %v419_v33 = vadd.f32 %v387_v15, %v355_v21  ;;  %v420_v38 = vadd.f32 %v388_v22, %v356_v26  ;;  %v421_v39 = vadd.f32 %v389_v23, %v357_v27  ;;  %v397_v13 = vld [vmem:[%s916_s20 + $0x58] sm:$0xff]  ;;  %v398_v18 = vld [vmem:[%s916_s20 + $0x60] sm:$0xff]  ;;  %v399_v19 = vld [vmem:[%s916_s20 + $0x68] sm:$0xff]  ;;  %p768_p2 = por %p767_p1, %p766_p0 }
  0x21   : > { %v422_v45 = vadd.f32 %v390_v28, %v358_v34  ;;  %v423_v46 = vadd.f32 %v391_v29, %v359_v35  ;;  %v424_v50 = vadd.f32 %v392_v36, %v360_v40  ;;  %v425_v51 = vadd.f32 %v393_v37, %v361_v41  ;;  %v400_v26 = vld [vmem:[%s916_s20 + $0x70] sm:$0xff]  ;;  %v401_v27 = vld [vmem:[%s916_s20 + $0x78] sm:$0xff]  ;;  %v711_v37 = vld [vmem:[%s904_s6 + $0x48] sm:$0xff]   ;;  %p762_p13 = pneg %p761_p12 }
  0x22   : > { %v450_v43 = vmax.f32 %v418_v32, 0.0  ;;  %v451_v44 = vmax.f32 %v419_v33, 0.0  ;;  %v452_v48 = vmax.f32 %v420_v38, 0.0  ;;  %v453_v49 = vmax.f32 %v421_v39, 0.0  ;;  %v710_v32 = vld [vmem:[%s904_s6 + $0x40] sm:$0xff]  }
  0x23   : > { %v454_v53 = vmax.f32 %v422_v45, 0.0  ;;  %v455_v54 = vmax.f32 %v423_v46, 0.0  ;;  %v657_v55 = vunpack.c.l.bf16 %v706_v42  ;;  %v658_v56 = vunpack.c.h.bf16 %v706_v42  ;;  %v712_v42 = vld [vmem:[%s904_s6 + $0x50] sm:$0xff]   ;;  %p769_p3 = pnand %p768_p2, %p762_p13 }
  0x24   : > { %482 = vst [vmem:[%s958_s27] sm:$0xff] %v450_v43  ;;  %483 = vst [vmem:[%s958_s27 + $0x8] sm:$0xff] %v451_v44  ;;  %v456_v58 = vmax.f32 %v424_v50, 0.0  ;;  %v457_v59 = vmax.f32 %v425_v51, 0.0  ;;  %v661_v60 = vunpack.c.l.bf16 %v707_v47  ;;  %v662_v61 = vunpack.c.h.bf16 %v707_v47  ;;  %v713_v47 = vld [vmem:[%s904_s6 + $0x58] sm:$0xff]  }
  0x25   : > { %484 = vst [vmem:[%s958_s27 + $0x10] sm:$0xff] %v452_v48  ;;  %485 = vst [vmem:[%s958_s27 + $0x18] sm:$0xff] %v453_v49  ;;  %v324_v62 = vmul.f32 %v657_v55, %v918_v1  ;;  %v325_v63 = vmul.f32 %v658_v56, %v918_v1  ;;  %v665_v0 = vunpack.c.l.bf16 %v708_v52  ;;  %v666_v2 = vunpack.c.h.bf16 %v708_v52  ;;  %v402_v56 = vld [vmem:[%s916_s20 + $0x80] sm:$0xff] }
  0x26   : > { %486 = vst [vmem:[%s958_s27 + $0x20] sm:$0xff] %v454_v53  ;;  %487 = vst [vmem:[%s958_s27 + $0x28] sm:$0xff] %v455_v54  ;;  %v326_v6 = vmul.f32 %v661_v60, %v918_v1  ;;  %v327_v7 = vmul.f32 %v662_v61, %v918_v1  ;;  %v669_v8 = vunpack.c.l.bf16 %v709_v57  ;;  %v670_v9 = vunpack.c.h.bf16 %v709_v57  ;;  %v403_v57 = vld [vmem:[%s916_s20 + $0x88] sm:$0xff] }
  0x27   : > { %488 = vst [vmem:[%s958_s27 + $0x30] sm:$0xff] %v456_v58  ;;  %489 = vst [vmem:[%s958_s27 + $0x38] sm:$0xff] %v457_v59  ;;  %v362_v10 = vadd.f32 %v922_v5, %v324_v62  ;;  %v363_v11 = vadd.f32 %v922_v5, %v325_v63  ;;  %v328_v14 = vmul.f32 %v665_v0, %v918_v1  ;;  %v673_v45 = vunpack.c.l.bf16 %v710_v32  ;;  %v404_v0 = vld [vmem:[%s916_s20 + $0x90] sm:$0xff] }
  0x28   : > { %v329_v15 = vmul.f32 %v666_v2, %v918_v1  ;;  %v364_v16 = vadd.f32 %v922_v5, %v326_v6  ;;  %v365_v17 = vadd.f32 %v922_v5, %v327_v7  ;;  %v330_v20 = vmul.f32 %v669_v8, %v918_v1  ;;  %v405_v2 = vld [vmem:[%s916_s20 + $0x98] sm:$0xff]  ;;  %v406_v8 = vld [vmem:[%s916_s20 + $0xa0] sm:$0xff] }
  0x29   : > { %v331_v21 = vmul.f32 %v670_v9, %v918_v1  ;;  %v426_v22 = vadd.f32 %v394_v3, %v362_v10  ;;  %v427_v23 = vadd.f32 %v395_v4, %v363_v11  ;;  %v366_v24 = vadd.f32 %v922_v5, %v328_v14  ;;  %v407_v9 = vld [vmem:[%s916_s20 + $0xa8] sm:$0xff] }
  0x2a   : > { %v367_v25 = vadd.f32 %v922_v5, %v329_v15  ;;  %v428_v28 = vadd.f32 %v396_v12, %v364_v16  ;;  %v429_v29 = vadd.f32 %v397_v13, %v365_v17  ;;  %v368_v30 = vadd.f32 %v922_v5, %v330_v20  ;;  %v408_v16 = vld [vmem:[%s916_s20 + $0xb0] sm:$0xff]  ;;  %v409_v17 = vld [vmem:[%s916_s20 + $0xb8] sm:$0xff] }
  0x2b   : > { %v369_v31 = vadd.f32 %v922_v5, %v331_v21  ;;  %v458_v33 = vmax.f32 %v426_v22, 0.0  ;;  %v459_v34 = vmax.f32 %v427_v23, 0.0  ;;  %v430_v35 = vadd.f32 %v398_v18, %v366_v24  ;;  %v714_v22 = vld [vmem:[%s904_s6 + $0x60] sm:$0xff]  }
  0x2c   : > { %v431_v36 = vadd.f32 %v399_v19, %v367_v25  ;;  %v460_v38 = vmax.f32 %v428_v28, 0.0  ;;  %v461_v39 = vmax.f32 %v429_v29, 0.0  ;;  %v432_v40 = vadd.f32 %v400_v26, %v368_v30 }
  0x2d   : > { %v433_v41 = vadd.f32 %v401_v27, %v369_v31  ;;  %490 = vst [vmem:[%s958_s27 + $0x40] sm:$0xff] %v458_v33  ;;  %491 = vst [vmem:[%s958_s27 + $0x48] sm:$0xff] %v459_v34  ;;  %v462_v43 = vmax.f32 %v430_v35, 0.0  ;;  %v674_v46 = vunpack.c.h.bf16 %v710_v32  ;;  %v677_v50 = vunpack.c.l.bf16 %v711_v37  ;;  %v715_v27 = vld [vmem:[%s904_s6 + $0x68] sm:$0xff]   ;;  %v716_v32 = vld [vmem:[%s904_s6 + $0x70] sm:$0xff]  }
  0x2e   : > { %v463_v44 = vmax.f32 %v431_v36, 0.0  ;;  %492 = vst [vmem:[%s958_s27 + $0x50] sm:$0xff] %v460_v38  ;;  %493 = vst [vmem:[%s958_s27 + $0x58] sm:$0xff] %v461_v39  ;;  %v464_v48 = vmax.f32 %v432_v40, 0.0  ;;  %v678_v51 = vunpack.c.h.bf16 %v711_v37  ;;  %v332_v52 = vmul.f32 %v673_v45, %v918_v1  ;;  %v717_v37 = vld [vmem:[%s904_s6 + $0x78] sm:$0xff]   ;;  %s1084_s6 = scalar_lea.sflag [#allocation3], %s225_s22 }
  0x2f   : > { %v465_v49 = vmax.f32 %v433_v41, 0.0  ;;  %494 = vst [vmem:[%s958_s27 + $0x60] sm:$0xff] %v462_v43  ;;  %v333_v53 = vmul.f32 %v674_v46, %v918_v1  ;;  %v681_v54 = vunpack.c.l.bf16 %v712_v42  ;;  %v682_v55 = vunpack.c.h.bf16 %v712_v42  ;;  %v410_v46 = vld [vmem:[%s916_s20 + $0xc0] sm:$0xff] }
  0x30   : > { %495 = vst [vmem:[%s958_s27 + $0x68] sm:$0xff] %v463_v44  ;;  %496 = vst [vmem:[%s958_s27 + $0x70] sm:$0xff] %v464_v48  ;;  %v334_v58 = vmul.f32 %v677_v50, %v918_v1  ;;  %v335_v59 = vmul.f32 %v678_v51, %v918_v1  ;;  %v685_v60 = vunpack.c.l.bf16 %v713_v47  ;;  %v686_v61 = vunpack.c.h.bf16 %v713_v47  ;;  %v411_v47 = vld [vmem:[%s916_s20 + $0xc8] sm:$0xff] }
  0x31   : > { %497 = vst [vmem:[%s958_s27 + $0x78] sm:$0xff] %v465_v49  ;;  %v370_v62 = vadd.f32 %v922_v5, %v332_v52  ;;  %v371_v63 = vadd.f32 %v922_v5, %v333_v53  ;;  %v336_v3 = vmul.f32 %v681_v54, %v918_v1  ;;  %v337_v4 = vmul.f32 %v682_v55, %v918_v1  ;;  %v412_v54 = vld [vmem:[%s916_s20 + $0xd0] sm:$0xff]  ;;  %v413_v55 = vld [vmem:[%s916_s20 + $0xd8] sm:$0xff] }
  0x32   : > { %v372_v6 = vadd.f32 %v922_v5, %v334_v58  ;;  %v373_v7 = vadd.f32 %v922_v5, %v335_v59  ;;  %v338_v10 = vmul.f32 %v685_v60, %v918_v1  ;;  %v339_v11 = vmul.f32 %v686_v61, %v918_v1  ;;  %v414_v60 = vld [vmem:[%s916_s20 + $0xe0] sm:$0xff]  ;;  %v415_v61 = vld [vmem:[%s916_s20 + $0xe8] sm:$0xff] }
  0x33   : > { %v434_v12 = vadd.f32 %v402_v56, %v370_v62  ;;  %v435_v13 = vadd.f32 %v403_v57, %v371_v63  ;;  %v374_v14 = vadd.f32 %v922_v5, %v336_v3  ;;  %v375_v15 = vadd.f32 %v922_v5, %v337_v4 }
  0x34   : > { %v436_v18 = vadd.f32 %v404_v0, %v372_v6  ;;  %v437_v19 = vadd.f32 %v405_v2, %v373_v7  ;;  %v376_v20 = vadd.f32 %v922_v5, %v338_v10  ;;  %v377_v21 = vadd.f32 %v922_v5, %v339_v11  ;;  %v416_v6 = vld [vmem:[%s916_s20 + $0xf0] sm:$0xff]  ;;  %v417_v7 = vld [vmem:[%s916_s20 + $0xf8] sm:$0xff] }
  0x35   : > { %v466_v23 = vmax.f32 %v434_v12, 0.0  ;;  %v467_v24 = vmax.f32 %v435_v13, 0.0  ;;  %v438_v25 = vadd.f32 %v406_v8, %v374_v14  ;;  %v439_v26 = vadd.f32 %v407_v9, %v375_v15 }
  0x36   : > { %v468_v28 = vmax.f32 %v436_v18, 0.0  ;;  %v469_v29 = vmax.f32 %v437_v19, 0.0  ;;  %v440_v30 = vadd.f32 %v408_v16, %v376_v20  ;;  %v441_v31 = vadd.f32 %v409_v17, %v377_v21 }
  0x37   : > { %498 = vst [vmem:[%s958_s27 + $0x80] sm:$0xff] %v466_v23  ;;  %499 = vst [vmem:[%s958_s27 + $0x88] sm:$0xff] %v467_v24  ;;  %v470_v33 = vmax.f32 %v438_v25, 0.0  ;;  %v471_v34 = vmax.f32 %v439_v26, 0.0  ;;  %v689_v35 = vunpack.c.l.bf16 %v714_v22  ;;  %v690_v36 = vunpack.c.h.bf16 %v714_v22 }
  0x38   : > { %500 = vst [vmem:[%s958_s27 + $0x90] sm:$0xff] %v468_v28  ;;  %501 = vst [vmem:[%s958_s27 + $0x98] sm:$0xff] %v469_v29  ;;  %v472_v38 = vmax.f32 %v440_v30, 0.0  ;;  %v473_v39 = vmax.f32 %v441_v31, 0.0  ;;  %v693_v40 = vunpack.c.l.bf16 %v715_v27  ;;  %v694_v41 = vunpack.c.h.bf16 %v715_v27 }
  0x39   : > { %502 = vst [vmem:[%s958_s27 + $0xa0] sm:$0xff] %v470_v33  ;;  %503 = vst [vmem:[%s958_s27 + $0xa8] sm:$0xff] %v471_v34  ;;  %v340_v42 = vmul.f32 %v689_v35, %v918_v1  ;;  %v341_v43 = vmul.f32 %v690_v36, %v918_v1  ;;  %v697_v44 = vunpack.c.l.bf16 %v716_v32  ;;  %v698_v45 = vunpack.c.h.bf16 %v716_v32 }
  0x3a   : > { %504 = vst [vmem:[%s958_s27 + $0xb0] sm:$0xff] %v472_v38  ;;  %505 = vst [vmem:[%s958_s27 + $0xb8] sm:$0xff] %v473_v39  ;;  %v342_v48 = vmul.f32 %v693_v40, %v918_v1  ;;  %v343_v49 = vmul.f32 %v694_v41, %v918_v1  ;;  %v701_v50 = vunpack.c.l.bf16 %v717_v37  ;;  %v702_v51 = vunpack.c.h.bf16 %v717_v37 }
  0x3b   : > { %v378_v52 = vadd.f32 %v922_v5, %v340_v42  ;;  %v379_v53 = vadd.f32 %v922_v5, %v341_v43  ;;  %v344_v56 = vmul.f32 %v697_v44, %v918_v1  ;;  %v345_v57 = vmul.f32 %v698_v45, %v918_v1 }
  0x3c   : > { %v380_v58 = vadd.f32 %v922_v5, %v342_v48  ;;  %v381_v59 = vadd.f32 %v922_v5, %v343_v49  ;;  %v346_v62 = vmul.f32 %v701_v50, %v918_v1  ;;  %v347_v63 = vmul.f32 %v702_v51, %v918_v1 }
  0x3d   : > { %v442_v0 = vadd.f32 %v410_v46, %v378_v52  ;;  %v443_v2 = vadd.f32 %v411_v47, %v379_v53  ;;  %v382_v3 = vadd.f32 %v922_v5, %v344_v56  ;;  %v383_v4 = vadd.f32 %v922_v5, %v345_v57 }
  0x3e   : > { %v444_v8 = vadd.f32 %v412_v54, %v380_v58  ;;  %v445_v9 = vadd.f32 %v413_v55, %v381_v59  ;;  %v384_v10 = vadd.f32 %v922_v5, %v346_v62  ;;  %v385_v11 = vadd.f32 %v922_v5, %v347_v63 }
  0x3f   : > { %v474_v1 = vmax.f32 %v442_v0, 0.0  ;;  %v475_v12 = vmax.f32 %v443_v2, 0.0  ;;  %v446_v13 = vadd.f32 %v414_v60, %v382_v3  ;;  %v447_v14 = vadd.f32 %v415_v61, %v383_v4 }
  0x40   : > { %v476_v15 = vmax.f32 %v444_v8, 0.0  ;;  %v477_v16 = vmax.f32 %v445_v9, 0.0  ;;  %v448_v17 = vadd.f32 %v416_v6, %v384_v10  ;;  %v449_v18 = vadd.f32 %v417_v7, %v385_v11 }
  0x41   : > { %506 = vst [vmem:[%s958_s27 + $0xc0] sm:$0xff] %v474_v1  ;;  %507 = vst [vmem:[%s958_s27 + $0xc8] sm:$0xff] %v475_v12  ;;  %v478_v5 = vmax.f32 %v446_v13, 0.0  ;;  %v479_v19 = vmax.f32 %v447_v14, 0.0 }
  0x42   : > { %508 = vst [vmem:[%s958_s27 + $0xd0] sm:$0xff] %v476_v15  ;;  %509 = vst [vmem:[%s958_s27 + $0xd8] sm:$0xff] %v477_v16  ;;  %v480_v20 = vmax.f32 %v448_v17, 0.0  ;;  %v481_v21 = vmax.f32 %v449_v18, 0.0 }
  0x43   : > { %510 = vst [vmem:[%s958_s27 + $0xe0] sm:$0xff] %v478_v5  ;;  %511 = vst [vmem:[%s958_s27 + $0xe8] sm:$0xff] %v479_v19 }
  0x44   : > { %512 = vst [vmem:[%s958_s27 + $0xf0] sm:$0xff] %v480_v20  ;;  %513 = vst [vmem:[%s958_s27 + $0xf8] sm:$0xff] %v481_v21 }
  0x45   : > { %772 = shalt.err (!%p769_p3)
}
  0x46   : > { %s773_s11 = scalar_lea.hbm %s1072_s5, 4096  ;;  %s777_s14 = scalar_lea.hbm %s1129_s4, 16384 }
  0x47   : > { %p774_p4 = scmp.ne.s32.totalorder %s1072_s5, %s773_s11  ;;  %p778_p9 = scmp.lt.u32.totalorder %s1072_s5, %s1129_s4 }
  0x48   : > { %p779_p10 = scmp.lt.u32.totalorder %s777_s14, %s773_s11  ;;  %p781_p12 = scmp.lt.u32.totalorder %s773_s11, %s1072_s5 }
  0x49   : > { %p775_p7 = pnand %p774_p4, %p889_p5 }
  0x4a   : > { %p780_p11 = por %p779_p10, %p778_p9 }
  0x4b   : > { %p776_p8 = pneg %p775_p7 }
  0x4c   : > { %p782_p13 = por %p781_p12, %p780_p11 }
  0x4e   : > { %p783_p0 = pnand %p782_p13, %p776_p8 }
  0x50   : > { %786 = shalt.err (!%p783_p0)
}
  0x51   : > { %s824_s23 = smov 128   ;;  %s825_s27 = smov 8  }
  0x52   : > { %718 = dma.vmem_to_hbm [thread:$0]  (%p889_p5), %s1074_s29, 4096, %s1072_s5, %s1084_s6, %s824_s23, %s824_s23, %s825_s27  }
  0x53 PF: > { %p724_p1 = scmp.ge.s32.totalorder %s821_s18, 2  ;;  %s543_s28 = sand.u32 1, %s809_s15  }
  0x54   : > { %s544_s19 = scalar_lea.sflag [#allocation3], %s543_s28 }
  0x55   : > { %p721_p2 = pnand %p724_p1, %p893_p6 }
  0x57   : > { %804 = dma.done.wait (!%p721_p2), %s544_s19, 4096  }
  0x58   : > { %806 = vsyncadd (!%p721_p2), %s544_s19, 4294963200  ;;  %p14_p3 = scmp.ge.s32.totalorder %s876_s21, 6   ;;  %s1132_s15 = smov %s813_s16 }
  0x59   : > { %s1133_s16 = smov %s817_s17  ;;  %s1134_s17 = smov %s887_s24 }
  0x5a   : > { %s1135_s18 = smov %s876_s21  ;;  %16 = sbr.rel (!%p14_p3) target bundleno = 3 (0x3), region = 80 }
  0x61   :  { %549 = vsyncpa [#allocation3], 1 }
  0x62   :  { %551 = vsyncpa [#allocation3 + $0x1], 1 }

// kernel: build_block_with_se.3
= control target key start
LH: loop header
LB: loop body
LE: loop exit
PB: predicated region body
PF: predicated region fallthrough
CT: control target
= control target key end

     0   :  { %s6755_s21 = smov 0   ;;  %s8186_s0 = inlined_call_operand.vmem [shape: bf16[4,16,16,128], index: 0, kind: input, shape index: {}]   ;;  %s8187_s1 = inlined_call_operand.vmem [shape: f32[1,128], index: 1, kind: input, shape index: {}]   ;;  %s8188_s2 = inlined_call_operand.vmem [shape: f32[1,128], index: 2, kind: input, shape index: {}]   ;;  %s8189_s3 = inlined_call_operand.vmem [shape: bf16[1152,128], index: 3, kind: input, shape index: {}]   ;;  %s8190_s4 = inlined_call_operand.vmem [shape: bf16[4,16,16,128], index: 4, kind: output, shape index: {0}]   ;;  %s8191_s5 = inlined_call_operand.vmem [shape: f32[4,1,128], index: 5, kind: output, shape index: {1}]   ;;  %s8192_s6 = inlined_call_operand.vmem [shape: f32[4,1,128], index: 6, kind: output, shape index: {2}]  }
   0x1 LB: > { %s5530_s1 = sadd.s32 4294967295, %s6717_s21   ;;  %p5534_p0 = scmp.ge.s32.totalorder %s6717_s21, 1  ;;  %s6717_s21 = sphi %s6755_s21, %s17_s21  }
   0x2   : > { %p217_p1 = scmp.lt.s32.totalorder %s6717_s21, 5 }
   0x4   : > { %p218_p2 = pnand %p5534_p0, %p217_p1 }
   0x6   : > { %221 = sbr.rel (%p218_p2) target bundleno = 619 (0x26b), region = 36 }
   0xd   : > { %v6575_v0 = vld [vmem:[%s8189_s3 + $0x40] sm:$0xff]   ;;  %v6719_v2 = vmov 0   ;;  %v6577_v3 = vld [vmem:[%s8189_s3 + $0x48] sm:$0xff]   ;;  %v6579_v5 = vld [vmem:[%s8189_s3 + $0x50] sm:$0xff]   ;;  %p253_p3 = scmp.lt.s32.totalorder %s5530_s1, 3  ;;  %vm533_vm0 = vcmask 1040384  }
   0xe   : > { %v6576_v1 = vld [vmem:[%s8189_s3] sm:$0xff]   ;;  %302 = vst [vmem:[#allocation2] sm:$0xf] %v6719_v2  ;;  %303 = vst [vmem:[#allocation2 + $0x4] sm:$0xf] %v6719_v2  ;;  %6030 = vmatprep.subr.bf16.mxu0 %v6575_v0  ;;  %6550 = vmatprep.subr.bf16.mxu1 %v6575_v0  ;;  %v6578_v4 = vld [vmem:[%s8189_s3 + $0x8] sm:$0xff]  }
   0xf   : > { %304 = vst [vmem:[#allocation2 + $0x8] sm:$0x1] %v6719_v2  ;;  %306 = vst [vmem:[#allocation2 + $0xcc] sm:$0xf] %v6719_v2  ;;  %6031 = vmatpush3.bf16.msra.mxu0 %v6576_v1  ;;  %6558 = vmatpush3.bf16.msra.mxu1 %v6576_v1  ;;  %v6580_v6 = vld [vmem:[%s8189_s3 + $0x10] sm:$0xff]   ;;  %v6581_v7 = vld [vmem:[%s8189_s3 + $0x58] sm:$0xff]  }
  0x10   : > { %307 = vst [vmem:[#allocation2 + $0xd0] sm:$0xf] %v6719_v2  ;;  %308 = vst [vmem:[#allocation2 + $0xd4] sm:$0x1] %v6719_v2  ;;  %6032 = vmatprep.subr.bf16.mxu0 %v6577_v3  ;;  %6551 = vmatprep.subr.bf16.mxu1 %v6577_v3  ;;  %s8230_s1 = smov (!%p253_p3, %s5530_s1), 3  ;;  %v6582_v8 = vld [vmem:[%s8189_s3 + $0x18] sm:$0xff]  }
  0x11   : > { %v6583_v9 = vld [vmem:[%s8189_s3 + $0x60] sm:$0xff]   ;;  %s5901_s17 = sshll.u32 %s8230_s1, 7  ;;  %v6585_v11 = vld [vmem:[%s8189_s3 + $0x68] sm:$0xff]   ;;  %vm985_vm1 = vsmask.f32 3328  ;;  %v6587_v23 = vld [vmem:[%s8189_s3 + $0x70] sm:$0xff]   ;;  %s265_s14 = scalar_lea.vmem %s8191_s5, %s8230_s1 }
  0x12   : > { %v6584_v10 = vld [vmem:[%s8189_s3 + $0x20] sm:$0xff]   ;;  %vm986_vm2 = vsmask.f32 7440  ;;  %s6808_s22 = scalar_lea.vmem %s8186_s0, %s5901_s17  ;;  %v6586_v17 = vld [vmem:[%s8189_s3 + $0x28] sm:$0xff]   ;;  %vm534_vm3 = vsmask.f32 256  ;;  %s8116_s12 = scalar_lea.vmem %s8190_s4, %s5901_s17 }
  0x13   : > { %6033 = vmatpush3.bf16.msra.mxu0 %v6578_v4  ;;  %6559 = vmatpush3.bf16.msra.mxu1 %v6578_v4  ;;  %v6592_v26 = vld [vmem:[%s6808_s22 + $0x58] sm:$0xff]   ;;  %vm6819_vm4 = vmor %vm985_vm1, %vm986_vm2  ;;  %v6588_v33 = vld [vmem:[%s8189_s3 + $0x30] sm:$0xff]   ;;  %vm1548_vm6 = vcmask 1042432   ;;  %vm1549_vm7 = vcmask 1046532   ;;  %s268_s18 = scalar_lea.vmem %s8192_s6, %s8230_s1 }
  0x14   : > { %6034 = vmatprep.subr.bf16.mxu0 %v6579_v5  ;;  %6552 = vmatprep.subr.bf16.mxu1 %v6579_v5  ;;  %v467_v31 = vshrl.u32 %v6592_v26, 16  ;;  %v470_v32 = vshll.u32 %v6592_v26, 16  ;;  %v6589_v35 = vld [vmem:[%s8189_s3 + $0x78] sm:$0xff]   ;;  %vm6831_vm5 = vmand %vm533_vm0, %vm534_vm3  ;;  %v6593_v44 = vld [vmem:[%s8189_s3 + $0xc0] sm:$0xff]  }
  0x15   : > { %v937_v12 = vld [vmem:[#allocation2] sm:$0xf]  ;;  %v938_v13 = vld [vmem:[#allocation2 + $0x4] sm:$0xf]  ;;  %v6590_v39 = vld [vmem:[%s8189_s3 + $0x38] sm:$0xff]  }
  0x16   : > { %v939_v14 = vld [vmem:[#allocation2 + $0x8] sm:$0x1]  ;;  %v989_v15 = vshrl.u32 %v937_v12, 16  ;;  %v992_v16 = vshll.u32 %v937_v12, 16  ;;  %v998_v18 = vshll.u32 %v938_v13, 16  ;;  %v1002_v19 = vshrl.u32 %v938_v13, 16  ;;  %vm7001_vm8 = vmor %vm1548_vm6, %vm1549_vm7 }
  0x17   : > { %6035 = vmatpush3.bf16.msra.mxu0 %v6580_v6  ;;  %6560 = vmatpush3.bf16.msra.mxu1 %v6580_v6  ;;  %v1008_v20 = vshll.u32 %v939_v14, 16  ;;  %v469_v37 = vrot.slane %v467_v31, 7  ;;  %v6599_v47 = vld [vmem:[%s6808_s22] sm:$0xff]   ;;  %v6607_v0 = vld [vmem:[%s8189_s3 + $0x148] sm:$0xff]  }
  0x18   : > { %6036 = vmatprep.subr.bf16.mxu0 %v6581_v7  ;;  %6553 = vmatprep.subr.bf16.mxu1 %v6581_v7  ;;  %v991_v21 = vrot.slane %v989_v15, 4  ;;  %v994_v22 = vrot.slane %v992_v16, 5  ;;  %v1000_v24 = vrot.slane %v998_v18, 5  ;;  %v1004_v25 = vrot.slane %v1002_v19, 4  ;;  %v6594_v49 = vld [vmem:[%s8189_s3 + $0x140] sm:$0xff]   ;;  %v6608_v4 = vld [vmem:[%s6808_s22 + $0x8] sm:$0xff]  }
  0x19   : > { %v1010_v30 = vrot.slane %v1008_v20, 5  ;;  %v472_v42 = vor.u32 %v470_v32, %v469_v37  ;;  %v563_v43 = vsel %vm6831_vm5, %v469_v37, 0  ;;  %v6591_v50 = vld [vmem:[#allocation2] sm:$0xff]   ;;  %v390_v53 = vshrl.u32 %v6599_v47, 16 }
  0x1a   : > { %v995_v27 = vor.u32 %v994_v22, %v991_v21  ;;  %v1005_v29 = vor.u32 %v1004_v25, %v1000_v24  ;;  %v5590_v46 = vcombine.low %v563_v43, %v563_v43  ;;  %v393_v54 = vshll.u32 %v6599_v47, 16  ;;  %v6602_v55 = vld [vmem:[%s6808_s22 + $0x60] sm:$0xff]   ;;  %v6610_v22 = vld [vmem:[%s8189_s3 + $0x108] sm:$0xff]  }
  0x1b   : > { %6037 = vmatpush3.bf16.msra.mxu0 %v6582_v8  ;;  %6561 = vmatpush3.bf16.msra.mxu1 %v6582_v8  ;;  %v547_v48 = vsel %vm6831_vm5, 0, %v472_v42  ;;  %v6597_v56 = vld [vmem:[%s8189_s3 + $0x100] sm:$0xff]   ;;  %v392_v57 = vrot.slane %v390_v53, 7  ;;  %v474_v58 = vshrl.u32 %v6602_v55, 16  ;;  %v477_v59 = vshll.u32 %v6602_v55, 16 }
  0x1c   : > { %6038 = vmatprep.subr.bf16.mxu0 %v6583_v9  ;;  %6554 = vmatprep.subr.bf16.mxu1 %v6583_v9  ;;  %v996_v34 = vrot.slane %v995_v27, 4  ;;  %v1006_v36 = vrot.slane %v1005_v29, 4  ;;  %v5588_v51 = vcombine.low %v547_v48, %v547_v48  ;;  %v5589_v52 = vcombine.high %v547_v48, %v547_v48  ;;  %780 = vst [vmem:[#allocation2 + $0x98] sm:$0x1] %v5590_v46  ;;  %v6596_v47 = vld [vmem:[%s8189_s3 + $0x80] sm:$0xff]  }
  0x1d   : > { %v395_v60 = vor.u32 %v393_v54, %v392_v57  ;;  %v552_v61 = vsel %vm6831_vm5, %v392_v57, 0  ;;  %v476_v62 = vrot.slane %v474_v58, 7  ;;  %v400_v12 = vshll.u32 %v6608_v4, 16  ;;  %v6598_v58 = vld [vmem:[%s8189_s3 + $0xc8] sm:$0xff]  }
  0x1e   : > { %v1001_v40 = vsel %vm6819_vm4, %v996_v34, %v1000_v24  ;;  %v1011_v41 = vsel %vm6819_vm4, %v1006_v36, %v1010_v30  ;;  %778 = vst [vmem:[#allocation2 + $0x90] sm:$0xf] %v5588_v51  ;;  %779 = vst [vmem:[#allocation2 + $0x94] sm:$0xf] %v5589_v52  ;;  %v5557_v63 = vcombine.low %v552_v61, %v552_v61  ;;  %v6875_v30 = vld [vmem:[%s6808_s22 + $0x68] sm:$0xff]  }
  0x1f   : > { %6039 = vmatpush3.bf16.msra.mxu0 %v6584_v10  ;;  %6562 = vmatpush3.bf16.msra.mxu1 %v6584_v10  ;;  %v5619_v45 = vcombine.low %v1001_v40, %v1011_v41  ;;  %v536_v1 = vsel %vm6831_vm5, 0, %v395_v60  ;;  %v479_v2 = vor.u32 %v477_v59, %v476_v62  ;;  %v564_v3 = vsel %vm6831_vm5, %v476_v62, 0 }
  0x20   : > { %6040 = vmatprep.subr.bf16.mxu0 %v6585_v11  ;;  %6555 = vmatprep.subr.bf16.mxu1 %v6585_v11  ;;  %v5555_v6 = vcombine.low %v536_v1, %v536_v1  ;;  %v5556_v7 = vcombine.high %v536_v1, %v536_v1  ;;  %747 = vst [vmem:[#allocation2 + $0x14] sm:$0x1] %v5557_v63  ;;  %v397_v11 = vshrl.u32 %v6608_v4, 16 }
  0x21   : > { %4384 = vmatprep.mubr.bf16.mxu0 %v5619_v45  ;;  %v5593_v8 = vcombine.low %v564_v3, %v564_v3  ;;  %v548_v10 = vsel %vm6831_vm5, 0, %v479_v2 }
  0x22   : > { %745 = vst [vmem:[#allocation2 + $0xc] sm:$0xf] %v5555_v6  ;;  %746 = vst [vmem:[#allocation2 + $0x10] sm:$0xf] %v5556_v7  ;;  %v5591_v15 = vcombine.low %v548_v10, %v548_v10  ;;  %v5592_v16 = vcombine.high %v548_v10, %v548_v10  ;;  %v399_v21 = vrot.slane %v397_v11, 7 }
  0x23   : > { %6041 = vmatpush3.bf16.msra.mxu0 %v6586_v17  ;;  %6563 = vmatpush3.bf16.msra.mxu1 %v6586_v17  ;;  %v975_v5 = vld [vmem:[#allocation2 + $0x98] sm:$0x1]  ;;  %783 = vst [vmem:[#allocation2 + $0xa4] sm:$0x1] %v5593_v8 }
  0x24   : > { %6042 = vmatprep.subr.bf16.mxu0 %v6587_v23  ;;  %6556 = vmatprep.subr.bf16.mxu1 %v6587_v23  ;;  %v1296_v9 = vshll.u32 %v975_v5, 16  ;;  %781 = vst [vmem:[#allocation2 + $0x9c] sm:$0xf] %v5591_v15  ;;  %782 = vst [vmem:[#allocation2 + $0xa0] sm:$0xf] %v5592_v16  ;;  %v402_v27 = vor.u32 %v400_v12, %v399_v21  ;;  %v553_v29 = vsel %vm6831_vm5, %v399_v21, 0 }
  0x25   : > { %v973_v13 = vld [vmem:[#allocation2 + $0x90] sm:$0xf]  ;;  %v974_v14 = vld [vmem:[#allocation2 + $0x94] sm:$0xf]  ;;  %v6600_v12 = vld [vmem:[%s8189_s3 + $0x88] sm:$0xff]  }
  0x26   : > { %v1277_v17 = vshrl.u32 %v973_v13, 16  ;;  %v1280_v18 = vshll.u32 %v973_v13, 16  ;;  %v1286_v19 = vshll.u32 %v974_v14, 16  ;;  %v1290_v20 = vshrl.u32 %v974_v14, 16  ;;  %v6595_v42 = vld [vmem:[#allocation2 + $0x90] sm:$0xff]  }
  0x27   : > { %6043 = vmatpush3.bf16.msra.mxu0 %v6588_v33  ;;  %6564 = vmatpush3.bf16.msra.mxu1 %v6588_v33  ;;  %v1298_v33 = vrot.slane %v1296_v9, 5  ;;  %v942_v34 = vld [vmem:[#allocation2 + $0x14] sm:$0x1]  ;;  %v537_v37 = vsel %vm6831_vm5, 0, %v402_v27 }
  0x28   : > { %6044 = vmatprep.subr.bf16.mxu0 %v6589_v35  ;;  %6557 = vmatprep.subr.bf16.mxu1 %v6589_v35  ;;  %v1279_v23 = vrot.slane %v1277_v17, 4  ;;  %v1282_v24 = vrot.slane %v1280_v18, 5  ;;  %v1288_v25 = vrot.slane %v1286_v19, 5  ;;  %v1292_v26 = vrot.slane %v1290_v20, 4  ;;  %v6603_v19 = vld [vmem:[%s8189_s3 + $0xd0] sm:$0xff]  }
  0x29   : > { %v5560_v35 = vcombine.low %v553_v29, %v553_v29  ;;  %v1032_v36 = vshll.u32 %v942_v34, 16  ;;  %v940_v43 = vld [vmem:[#allocation2 + $0xc] sm:$0xf]  ;;  %v5558_v45 = vcombine.low %v537_v37, %v537_v37  ;;  %v5559_v46 = vcombine.high %v537_v37, %v537_v37 }
  0x2a   : > { %v1283_v31 = vor.u32 %v1282_v24, %v1279_v23  ;;  %v1293_v32 = vor.u32 %v1292_v26, %v1288_v25  ;;  %v1013_v48 = vshrl.u32 %v940_v43, 16  ;;  %v6605_v23 = vld [vmem:[%s8189_s3 + $0x90] sm:$0xff]  }
  0x2b   : > { %6045 = vmatpush3.bf16.msra.mxu0 %v6590_v39  ;;  %6565 = vmatpush3.bf16.msra.mxu1 %v6590_v39  ;;  %v481_v39 = vshrl.u32 %v6875_v30, 16  ;;  %750 = vst [vmem:[#allocation2 + $0x20] sm:$0x1] %v5560_v35  ;;  %v1034_v54 = vrot.slane %v1032_v36, 5  ;;  %v976_v55 = vld [vmem:[#allocation2 + $0x9c] sm:$0xf] }
  0x2c   : > { %6142 = vmatprep.subr.bf16.mxu1 %v6593_v44  ;;  %6254 = vmatprep.subr.bf16.mxu0 %v6594_v49  ;;  %v1284_v40 = vrot.slane %v1283_v31, 4  ;;  %v1294_v41 = vrot.slane %v1293_v32, 4  ;;  %v941_v44 = vld [vmem:[#allocation2 + $0x10] sm:$0xf]  ;;  %v1016_v49 = vshll.u32 %v940_v43, 16  ;;  %v1015_v59 = vrot.slane %v1013_v48, 4 }
  0x2d   : > { %v1026_v51 = vshrl.u32 %v941_v44, 16  ;;  %748 = vst [vmem:[#allocation2 + $0x18] sm:$0xf] %v5558_v45  ;;  %749 = vst [vmem:[#allocation2 + $0x1c] sm:$0xf] %v5559_v46  ;;  %v1301_v1 = vshrl.u32 %v976_v55, 16 }
  0x2e   : > { %4385 = vmatmul.mubr.bf16.vlgmr.msra.gmra.mrb[0].mxu0 %v6591_v50  ;;  %v1022_v50 = vshll.u32 %v941_v44, 16  ;;  %v1289_v52 = vsel %vm6819_vm4, %v1284_v40, %v1288_v25  ;;  %v1299_v53 = vsel %vm6819_vm4, %v1294_v41, %v1298_v33  ;;  %v1018_v60 = vrot.slane %v1016_v49, 5  ;;  %v977_v62 = vld [vmem:[#allocation2 + $0xa0] sm:$0xf]  ;;  %v6601_v29 = vld [vmem:[#allocation2 + $0xc] sm:$0xff]   ;;  %v6606_v31 = vld [vmem:[%s8189_s3 + $0xd8] sm:$0xff]  }
  0x2f   : > { %6255 = vmatpush3.bf16.msra.mxu0 %v6597_v56  ;;  %v484_v56 = vshll.u32 %v6875_v30, 16  ;;  %v5631_v57 = vcombine.low %v1289_v52, %v1299_v53  ;;  %v1028_v63 = vrot.slane %v1026_v51, 4  ;;  %v1304_v2 = vshll.u32 %v976_v55, 16  ;;  %v6620_v44 = vld [vmem:[%s6808_s22 + $0x70] sm:$0xff]   ;;  %v6604_v46 = vld [vmem:[#allocation2 + $0x9c] sm:$0xff]  }
  0x30   : > { %6256 = vmatprep.subr.bf16.mxu0 %v6607_v0  ;;  %v1024_v61 = vrot.slane %v1022_v50, 5  ;;  %v978_v0 = vld [vmem:[#allocation2 + $0xa4] sm:$0x1]  ;;  %v1310_v3 = vshll.u32 %v977_v62, 16  ;;  %v1019_v4 = vor.u32 %v1018_v60, %v1015_v59  ;;  %v1314_v5 = vshrl.u32 %v977_v62, 16  ;;  %v6609_v49 = vld [vmem:[%s8189_s3 + $0x98] sm:$0xff]  }
  0x31   : > { %4480 = vmatprep.mubr.bf16.mxu1 %v5631_v57  ;;  %v1320_v6 = vshll.u32 %v978_v0, 16  ;;  %v1303_v8 = vrot.slane %v1301_v1, 4  ;;  %v1306_v9 = vrot.slane %v1304_v2, 5  ;;  %v483_v15 = vrot.slane %v481_v39, 7  ;;  %v6617_v39 = vld [vmem:[%s6808_s22 + $0x10] sm:$0xff]   ;;  %v6613_v59 = vld [vmem:[%s8189_s3 + $0xe0] sm:$0xff]  }
  0x32   : > { %4481 = vmatmul.mubr.bf16.vlgmr.msra.gmra.mrb[0].mxu1 %v6595_v42  ;;  %v1029_v7 = vor.u32 %v1028_v63, %v1024_v61  ;;  %v1312_v10 = vrot.slane %v1310_v3, 5  ;;  %v1020_v11 = vrot.slane %v1019_v4, 4  ;;  %v1316_v13 = vrot.slane %v1314_v5, 4  ;;  %v945_v14 = vld [vmem:[#allocation2 + $0x20] sm:$0x1]  ;;  %v6622_v55 = vld [vmem:[%s8189_s3 + $0x150] sm:$0xff]  }
  0x33   : > { %6257 = vmatpush3.bf16.msra.mxu0 %v6610_v22  ;;  %6143 = vmatpush3.bf16.msra.mxu1 %v6596_v47  ;;  %v1307_v17 = vor.u32 %v1306_v9, %v1303_v8  ;;  %v1322_v18 = vrot.slane %v1320_v6, 5  ;;  %v1056_v20 = vshll.u32 %v945_v14, 16  ;;  %v486_v26 = vor.u32 %v484_v56, %v483_v15  ;;  %v6615_v2 = vld [vmem:[%s8189_s3 + $0xa0] sm:$0xff]   ;;  %v6616_v5 = vld [vmem:[%s8189_s3 + $0xe8] sm:$0xff]  }
  0x34   : > { %6144 = vmatprep.subr.bf16.mxu1 %v6598_v58  ;;  %v1030_v16 = vrot.slane %v1029_v7, 4  ;;  %v1025_v21 = vsel %vm6819_vm4, %v1020_v11, %v1024_v61  ;;  %v1317_v22 = vor.u32 %v1316_v13, %v1312_v10  ;;  %v943_v24 = vld [vmem:[#allocation2 + $0x18] sm:$0xf]  ;;  %v944_v25 = vld [vmem:[#allocation2 + $0x1c] sm:$0xf]  ;;  %v565_v53 = vsel %vm6831_vm5, %v483_v15, 0  ;;  %6258 = vmatprep.subr.bf16.mxu0 %v6622_v55 }
  0x35   : > { %v1308_v30 = vrot.slane %v1307_v17, 4  ;;  %v1037_v32 = vshrl.u32 %v943_v24, 16  ;;  %v1040_v33 = vshll.u32 %v943_v24, 16  ;;  %v1046_v36 = vshll.u32 %v944_v25, 16  ;;  %v6625_v7 = vld [vmem:[%s8189_s3 + $0x110] sm:$0xff]   ;;  %v6611_v9 = vld [vmem:[#allocation2 + $0x18] sm:$0xff]  }
  0x36   : > { %v1035_v27 = vsel %vm6819_vm4, %v1030_v16, %v1034_v54  ;;  %v1318_v35 = vrot.slane %v1317_v22, 4  ;;  %v1050_v37 = vshrl.u32 %v944_v25, 16  ;;  %v1058_v43 = vrot.slane %v1056_v20, 5  ;;  %v6627_v16 = vld [vmem:[%s6808_s22 + $0x18] sm:$0xff]  }
  0x37   : > { %v5620_v34 = vcombine.low %v1025_v21, %v1035_v27  ;;  %6145 = vmatpush3.bf16.msra.mxu1 %v6600_v12  ;;  %v1313_v40 = vsel %vm6819_vm4, %v1308_v30, %v1312_v10  ;;  %v1039_v41 = vrot.slane %v1037_v32, 4  ;;  %v1042_v42 = vrot.slane %v1040_v33, 5  ;;  %6259 = vmatpush3.bf16.msra.mxu0 %v6625_v7  ;;  %v6621_v27 = vld [vmem:[%s8189_s3 + $0xf0] sm:$0xff]  }
  0x38   : > { %6146 = vmatprep.subr.bf16.mxu1 %v6603_v19  ;;  %v1323_v45 = vsel %vm6819_vm4, %v1318_v35, %v1322_v18  ;;  %v1048_v47 = vrot.slane %v1046_v36, 5  ;;  %v1052_v48 = vrot.slane %v1050_v37, 4  ;;  %v549_v50 = vsel %vm6831_vm5, 0, %v486_v26  ;;  %v6618_v18 = vld [vmem:[%s8189_s3 + $0xa8] sm:$0xff]  }
  0x39   : > { %4392 = vmatprep.mubr.bf16.mxu0 %v5620_v34  ;;  %v5632_v51 = vcombine.low %v1313_v40, %v1323_v45  ;;  %v1043_v52 = vor.u32 %v1042_v42, %v1039_v41  ;;  %v5594_v54 = vcombine.low %v549_v50, %v549_v50  ;;  %v5595_v57 = vcombine.high %v549_v50, %v549_v50 }
  0x3a   : > { %4393 = vmatmul.mubr.bf16.gmra.mrb[4].mxu0 %v6601_v29  ;;  %v1053_v56 = vor.u32 %v1052_v48, %v1048_v47  ;;  %v5596_v58 = vcombine.low %v565_v53, %v565_v53  ;;  %v404_v60 = vshrl.u32 %v6617_v39, 16  ;;  %v407_v62 = vshll.u32 %v6617_v39, 16  ;;  %v6633_v48 = vld [vmem:[%s8189_s3 + $0x158] sm:$0xff]   ;;  %v6965_v53 = vld [vmem:[#allocation2] sm:$0xe] }
  0x3b   : > { %6147 = vmatpush3.bf16.msra.mxu1 %v6605_v23  ;;  %4488 = vmatprep.mubr.bf16.mxu1 %v5632_v51  ;;  %v1044_v61 = vrot.slane %v1043_v52, 4  ;;  %784 = vst [vmem:[#allocation2 + $0xa8] sm:$0xf] %v5594_v54  ;;  %v488_v63 = vshrl.u32 %v6620_v44, 16  ;;  %v491_v0 = vshll.u32 %v6620_v44, 16  ;;  %v411_v23 = vshrl.u32 %v6627_v16, 16 }
  0x3c   : > { %6148 = vmatprep.subr.bf16.mxu1 %v6606_v31  ;;  %4489 = vmatmul.mubr.bf16.gmra.mrb[4].mxu1 %v6604_v46  ;;  %v1054_v1 = vrot.slane %v1053_v56, 4  ;;  %785 = vst [vmem:[#allocation2 + $0xac] sm:$0xf] %v5595_v57  ;;  %786 = vst [vmem:[#allocation2 + $0xb0] sm:$0x1] %v5596_v58  ;;  %v406_v3 = vrot.slane %v404_v60, 7 }
  0x3d   : > { %v1049_v4 = vsel %vm6819_vm4, %v1044_v61, %v1048_v47  ;;  %v490_v6 = vrot.slane %v488_v63, 7  ;;  %v414_v29 = vshll.u32 %v6627_v16, 16  ;;  %v413_v40 = vrot.slane %v411_v23, 7  ;;  %v6626_v44 = vld [vmem:[%s8189_s3 + $0xf8] sm:$0xff]   ;;  %6260 = vmatprep.subr.bf16.mxu0 %v6633_v48 }
  0x3e   : > { %v1059_v8 = vsel %vm6819_vm4, %v1054_v1, %v1058_v43  ;;  %v409_v10 = vor.u32 %v407_v62, %v406_v3  ;;  %v554_v11 = vsel %vm6831_vm5, %v406_v3, 0  ;;  %v6624_v43 = vld [vmem:[%s8189_s3 + $0xb0] sm:$0xff]   ;;  %v6628_v57 = vld [vmem:[%s8189_s3 + $0xb8] sm:$0xff]   ;;  %v5635_v1 = vrot.slane %v6965_v53, 9 }
  0x3f   : > { %6149 = vmatpush3.bf16.msra.mxu1 %v6609_v49  ;;  %v5621_v12 = vcombine.low %v1049_v4, %v1059_v8  ;;  %v5563_v13 = vcombine.low %v554_v11, %v554_v11  ;;  %v493_v14 = vor.u32 %v491_v0, %v490_v6  ;;  %v566_v15 = vsel %vm6831_vm5, %v490_v6, 0  ;;  %v6631_v6 = vld [vmem:[%s8189_s3 + $0x1c0] sm:$0xff]  }
  0x40   : > { %6150 = vmatprep.subr.bf16.mxu1 %v6613_v59  ;;  %v538_v17 = vsel %vm6831_vm5, 0, %v409_v10  ;;  %v5599_v19 = vcombine.low %v566_v15, %v566_v15  ;;  %v416_v46 = vor.u32 %v414_v29, %v413_v40  ;;  %v555_v47 = vsel %vm6831_vm5, %v413_v40, 0  ;;  %v6980_v11 = vld [vmem:[#allocation2 + $0x4] sm:$0xf] }
  0x41   : > { %4400 = vmatprep.mubr.bf16.mxu0 %v5621_v12  ;;  %v5561_v20 = vcombine.low %v538_v17, %v538_v17  ;;  %v5562_v21 = vcombine.high %v538_v17, %v538_v17  ;;  %753 = vst [vmem:[#allocation2 + $0x2c] sm:$0x1] %v5563_v13  ;;  %v550_v22 = vsel %vm6831_vm5, 0, %v493_v14  ;;  %v5566_v52 = vcombine.low %v555_v47, %v555_v47 }
  0x42   : > { %4401 = vmatmul.mubr.bf16.gmra.mrb[8].mxu0 %v6611_v9  ;;  %v979_v24 = vld [vmem:[#allocation2 + $0xa8] sm:$0xf]  ;;  %v5597_v25 = vcombine.low %v550_v22, %v550_v22  ;;  %v5598_v26 = vcombine.high %v550_v22, %v550_v22  ;;  %789 = vst [vmem:[#allocation2 + $0xbc] sm:$0x1] %v5599_v19  ;;  %v539_v56 = vsel %vm6831_vm5, 0, %v416_v46 }
  0x43   : > { %6151 = vmatpush3.bf16.msra.mxu1 %v6615_v2  ;;  %v980_v30 = vld [vmem:[#allocation2 + $0xac] sm:$0xf]  ;;  %v981_v31 = vld [vmem:[#allocation2 + $0xb0] sm:$0x1]  ;;  %v1325_v32 = vshrl.u32 %v979_v24, 16  ;;  %v1328_v33 = vshll.u32 %v979_v24, 16  ;;  %v5564_v63 = vcombine.low %v539_v56, %v539_v56  ;;  %v5565_v0 = vcombine.high %v539_v56, %v539_v56 }
  0x44   : > { %6152 = vmatprep.subr.bf16.mxu1 %v6616_v5  ;;  %751 = vst [vmem:[#allocation2 + $0x24] sm:$0xf] %v5561_v20  ;;  %752 = vst [vmem:[#allocation2 + $0x28] sm:$0xf] %v5562_v21  ;;  %v1334_v34 = vshll.u32 %v980_v30, 16  ;;  %v1338_v35 = vshrl.u32 %v980_v30, 16 }
  0x45   : > { %v1344_v36 = vshll.u32 %v981_v31, 16  ;;  %787 = vst [vmem:[#allocation2 + $0xb4] sm:$0xf] %v5597_v25  ;;  %788 = vst [vmem:[#allocation2 + $0xb8] sm:$0xf] %v5598_v26  ;;  %v1327_v37 = vrot.slane %v1325_v32, 4 }
  0x46   : > { %v1330_v39 = vrot.slane %v1328_v33, 5  ;;  %v1336_v41 = vrot.slane %v1334_v34, 5  ;;  %v1340_v42 = vrot.slane %v1338_v35, 4  ;;  %v6614_v59 = vld [vmem:[#allocation2 + $0xa8] sm:$0xff]   ;;  %756 = vst [vmem:[#allocation2 + $0x38] sm:$0x1] %v5566_v52 }
  0x47   : > { %6153 = vmatpush3.bf16.msra.mxu1 %v6618_v18  ;;  %v1346_v50 = vrot.slane %v1344_v36, 5  ;;  %754 = vst [vmem:[#allocation2 + $0x30] sm:$0xf] %v5564_v63  ;;  %755 = vst [vmem:[#allocation2 + $0x34] sm:$0xf] %v5565_v0  ;;  %v6635_v30 = vld [vmem:[%s8189_s3 + $0x118] sm:$0xff]  }
  0x48   : > { %v1331_v45 = vor.u32 %v1330_v39, %v1327_v37  ;;  %6154 = vmatprep.subr.bf16.mxu1 %v6621_v27  ;;  %v1341_v49 = vor.u32 %v1340_v42, %v1336_v41  ;;  %v948_v51 = vld [vmem:[#allocation2 + $0x2c] sm:$0x1]  ;;  %v6982_v24 = vld [vmem:[#allocation2 + $0x8] sm:$0x1]  ;;  %v1553_v35 = vrot.slane %v6980_v11, 5  ;;  %6261 = vmatpush3.bf16.msra.mxu0 %v6635_v30  ;;  %v6632_v30 = vld [vmem:[%s8189_s3 + $0x180] sm:$0xff]  }
  0x49   : > { %v1080_v55 = vshll.u32 %v948_v51, 16  ;;  %v984_v62 = vld [vmem:[#allocation2 + $0xbc] sm:$0x1] }
  0x4a   : > { %v1332_v54 = vrot.slane %v1331_v45, 4  ;;  %v1342_v58 = vrot.slane %v1341_v49, 4  ;;  %v1368_v23 = vshll.u32 %v984_v62, 16  ;;  %v6638_v62 = vld [vmem:[%s6808_s22 + $0x28] sm:$0xff]  }
  0x4b   : > { %v946_v60 = vld [vmem:[#allocation2 + $0x24] sm:$0xf]  ;;  %v947_v61 = vld [vmem:[#allocation2 + $0x28] sm:$0xf]  ;;  %6155 = vmatpush3.bf16.msra.mxu1 %v6624_v43  ;;  %v1082_v9 = vrot.slane %v1080_v55, 5 }
  0x4c   : > { %v1337_v2 = vsel %vm6819_vm4, %v1332_v54, %v1336_v41  ;;  %v1061_v3 = vshrl.u32 %v946_v60, 16  ;;  %v1064_v4 = vshll.u32 %v946_v60, 16  ;;  %v1070_v5 = vshll.u32 %v947_v61, 16  ;;  %6156 = vmatprep.subr.bf16.mxu1 %v6626_v44  ;;  %v982_v10 = vld [vmem:[#allocation2 + $0xb4] sm:$0xf]  ;;  %v6619_v37 = vld [vmem:[#allocation2 + $0x24] sm:$0xff]  }
  0x4d   : > { %v1347_v7 = vsel %vm6819_vm4, %v1342_v58, %v1346_v50  ;;  %v1074_v8 = vshrl.u32 %v947_v61, 16  ;;  %v983_v16 = vld [vmem:[#allocation2 + $0xb8] sm:$0xf]  ;;  %v1349_v18 = vshrl.u32 %v982_v10, 16  ;;  %v1352_v19 = vshll.u32 %v982_v10, 16  ;;  %v6634_v50 = vld [vmem:[%s6808_s22 + $0x20] sm:$0xff]  }
  0x4e   : > { %v5633_v12 = vcombine.low %v1337_v2, %v1347_v7  ;;  %v1063_v13 = vrot.slane %v1061_v3, 4  ;;  %v1066_v14 = vrot.slane %v1064_v4, 5  ;;  %v1072_v15 = vrot.slane %v1070_v5, 5  ;;  %v951_v34 = vld [vmem:[#allocation2 + $0x38] sm:$0x1]  ;;  %v6630_v61 = vld [vmem:[#allocation2 + $0xc] sm:$0xff]  }
  0x4f   : > { %v1076_v17 = vrot.slane %v1074_v8, 4  ;;  %v1358_v20 = vshll.u32 %v983_v16, 16  ;;  %6157 = vmatpush3.bf16.msra.mxu1 %v6628_v57  ;;  %v1362_v22 = vshrl.u32 %v983_v16, 16  ;;  %v1351_v26 = vrot.slane %v1349_v18, 4  ;;  %v949_v44 = vld [vmem:[#allocation2 + $0x30] sm:$0xf] }
  0x50   : > { %4496 = vmatprep.mubr.bf16.mxu1 %v5633_v12  ;;  %v1067_v21 = vor.u32 %v1066_v14, %v1063_v13  ;;  %6366 = vmatprep.subr.bf16.mxu1 %v6631_v6  ;;  %v1354_v27 = vrot.slane %v1352_v19, 5  ;;  %v1370_v33 = vrot.slane %v1368_v23, 5  ;;  %v1104_v40 = vshll.u32 %v951_v34, 16  ;;  %v950_v45 = vld [vmem:[#allocation2 + $0x34] sm:$0xf]  ;;  %v6641_v5 = vld [vmem:[%s8189_s3 + $0x160] sm:$0xff]  }
  0x51   : > { %4497 = vmatmul.mubr.bf16.gmra.mrb[8].mxu1 %v6614_v59  ;;  %v1077_v25 = vor.u32 %v1076_v17, %v1072_v15  ;;  %v1360_v29 = vrot.slane %v1358_v20, 5  ;;  %v1364_v32 = vrot.slane %v1362_v22, 4  ;;  %v1556_v41 = vrot.slane %v6982_v24, 5  ;;  %v6623_v54 = vld [vmem:[#allocation2 + $0xb4] sm:$0xff]   ;;  %6262 = vmatprep.subr.bf16.mxu0 %v6641_v5  ;;  %v1455_v14 = vld [vmem:[#allocation2 + $0xc] sm:$0xe] }
  0x52   : > { %v1068_v31 = vrot.slane %v1067_v21, 4  ;;  %v1355_v39 = vor.u32 %v1354_v27, %v1351_v26  ;;  %v1085_v48 = vshrl.u32 %v949_v44, 16  ;;  %v1088_v49 = vshll.u32 %v949_v44, 16  ;;  %v6629_v17 = vld [vmem:[#allocation2 + $0x30] sm:$0xff]   ;;  %v1459_v44 = vld [vmem:[#allocation2 + $0x1c] sm:$0xf] }
  0x53   : > { %v1078_v36 = vrot.slane %v1077_v25, 4  ;;  %v1365_v43 = vor.u32 %v1364_v32, %v1360_v29  ;;  %v1094_v55 = vshll.u32 %v950_v45, 16  ;;  %v1098_v56 = vshrl.u32 %v950_v45, 16  ;;  %v1457_v19 = vld [vmem:[#allocation2 + $0x14] sm:$0x1]  ;;  %v6637_v32 = vld [vmem:[#allocation2 + $0x18] sm:$0xff]  }
  0x54   : > { %v1073_v42 = vsel %vm6819_vm4, %v1068_v31, %v1072_v15  ;;  %v1356_v47 = vrot.slane %v1355_v39, 4  ;;  %v1087_v58 = vrot.slane %v1085_v48, 4  ;;  %v1090_v59 = vrot.slane %v1088_v49, 5  ;;  %v1456_v15 = vld [vmem:[#allocation2 + $0x10] sm:$0xf]  ;;  %v6640_v5 = vld [vmem:[#allocation2 + $0x24] sm:$0xff]  }
  0x55   : > { %v1083_v46 = vsel %vm6819_vm4, %v1078_v36, %v1082_v9  ;;  %v1366_v52 = vrot.slane %v1365_v43, 4  ;;  %v1106_v60 = vrot.slane %v1104_v40, 5  ;;  %v1096_v0 = vrot.slane %v1094_v55, 5  ;;  %v1458_v43 = vld [vmem:[#allocation2 + $0x18] sm:$0xe] }
  0x56   : > { %v5622_v51 = vcombine.low %v1073_v42, %v1083_v46  ;;  %v1361_v57 = vsel %vm6819_vm4, %v1356_v47, %v1360_v29  ;;  %v1100_v2 = vrot.slane %v1098_v56, 4  ;;  %v1555_v4 = vrot.slane %v1553_v35, 4  ;;  %v6642_v42 = vld [vmem:[%s8189_s3 + $0x1c8] sm:$0xff]   ;;  %v1460_v46 = vld [vmem:[#allocation2 + $0x20] sm:$0x1]  ;;  %v6645_v56 = vld [vmem:[%s6808_s22 + $0x30] sm:$0xff]  }
  0x57   : > { %v1371_v63 = vsel %vm6819_vm4, %v1366_v52, %v1370_v33  ;;  %v1091_v7 = vor.u32 %v1090_v59, %v1087_v58  ;;  %v418_v8 = vshrl.u32 %v6634_v50, 16  ;;  %v421_v9 = vshll.u32 %v6634_v50, 16 }
  0x58   : > { %4408 = vmatprep.mubr.bf16.mxu0 %v5622_v51  ;;  %v5634_v6 = vcombine.low %v1361_v57, %v1371_v63  ;;  %v1101_v10 = vor.u32 %v1100_v2, %v1096_v0  ;;  %v1554_v12 = vsel %vm7001_vm8, %v5635_v1, %v1553_v35  ;;  %v1557_v18 = vsel %vm7001_vm8, %v1555_v4, %v1556_v41  ;;  %v6643_v35 = vld [vmem:[%s8189_s3 + $0x120] sm:$0xff]   ;;  %v6644_v51 = vld [vmem:[%s8189_s3 + $0x188] sm:$0xff]  }
  0x59   : > { %4409 = vmatmul.mubr.bf16.gmra.mrb[12].mxu0 %v6619_v37  ;;  %v1092_v11 = vrot.slane %v1091_v7, 4  ;;  %v420_v13 = vrot.slane %v418_v8, 7  ;;  %v1560_v20 = vrot.slane %v1456_v15, 5  ;;  %v425_v21 = vshrl.u32 %v6638_v62, 16 }
  0x5a   : > { %4504 = vmatprep.mubr.bf16.mxu1 %v5634_v6  ;;  %v1102_v16 = vrot.slane %v1101_v10, 4  ;;  %v5636_v23 = vrot.slane %v1455_v14, 9  ;;  %v1563_v27 = vrot.slane %v1457_v19, 5  ;;  %v428_v34 = vshll.u32 %v6638_v62, 16  ;;  %6263 = vmatpush3.bf16.msra.mxu0 %v6643_v35 }
  0x5b   : > { %4505 = vmatmul.mubr.bf16.gmra.mrb[12].mxu1 %v6623_v54  ;;  %v1097_v22 = vsel %vm6819_vm4, %v1092_v11, %v1096_v0  ;;  %v423_v53 = vor.u32 %v421_v9, %v420_v13  ;;  %v556_v1 = vsel %vm6831_vm5, %v420_v13, 0  ;;  %v1562_v26 = vrot.slane %v1560_v20, 4  ;;  %v7048_v0 = vld [vmem:[#allocation2 + $0x28] sm:$0xf] }
  0x5c   : > { %4545 = vmatprep.mubr.bf16.mxu1 %v6630_v61  ;;  %v1107_v24 = vsel %vm6819_vm4, %v1102_v16, %v1106_v60  ;;  %v5569_v25 = vcombine.low %v556_v1, %v556_v1  ;;  %v427_v33 = vrot.slane %v425_v21, 7  ;;  %v5651_v36 = vcombine.low %v1554_v12, %v1557_v18  ;;  %v7043_v60 = vld [vmem:[#allocation2 + $0x24] sm:$0xe]  ;;  %v6648_v61 = vld [vmem:[%s8189_s3 + $0x168] sm:$0xff]  }
  0x5d   : > { %v5623_v29 = vcombine.low %v1097_v22, %v1107_v24  ;;  %v540_v31 = vsel %vm6831_vm5, 0, %v423_v53  ;;  %v5637_v47 = vrot.slane %v1458_v43, 9  ;;  %v1567_v48 = vrot.slane %v1459_v44, 5  ;;  %6264 = vmatprep.subr.bf16.mxu0 %v6648_v61  ;;  %v6653_v61 = vld [vmem:[%s8189_s3 + $0x1d0] sm:$0xff]  }
  0x5e   : > { %v5567_v37 = vcombine.low %v540_v31, %v540_v31  ;;  %v5568_v39 = vcombine.high %v540_v31, %v540_v31  ;;  %759 = vst [vmem:[#allocation2 + $0x44] sm:$0x1] %v5569_v25  ;;  %v430_v40 = vor.u32 %v428_v34, %v427_v33  ;;  %v557_v41 = vsel %vm6831_vm5, %v427_v33, 0  ;;  %v1463_v34 = vld [vmem:[#allocation2 + $0x2c] sm:$0x1] }
  0x5f   : > { %4416 = vmatprep.mubr.bf16.mxu0 %v5623_v29  ;;  %v5572_v45 = vcombine.low %v557_v41, %v557_v41  ;;  %v1570_v50 = vrot.slane %v1460_v46, 5  ;;  %v1569_v55 = vrot.slane %v1567_v48, 4  ;;  %v1561_v57 = vsel %vm7001_vm8, %v5636_v23, %v1560_v20  ;;  %v6649_v29 = vld [vmem:[%s6808_s22 + $0x38] sm:$0xff]  }
  0x60   : > { %757 = vst [vmem:[#allocation2 + $0x3c] sm:$0xf] %v5567_v37  ;;  %758 = vst [vmem:[#allocation2 + $0x40] sm:$0xf] %v5568_v39  ;;  %v541_v49 = vsel %vm6831_vm5, 0, %v430_v40  ;;  %v1564_v58 = vsel %vm7001_vm8, %v1562_v26, %v1563_v27  ;;  %v432_v59 = vshrl.u32 %v6645_v56, 16  ;;  %v1568_v10 = vsel %vm7001_vm8, %v5637_v47, %v1567_v48 }
  0x61   : > { %4417 = vmatmul.mubr.bf16.gmra.mrb[16].mxu0 %v6629_v17  ;;  %v5570_v52 = vcombine.low %v541_v49, %v541_v49  ;;  %v5571_v54 = vcombine.high %v541_v49, %v541_v49  ;;  %762 = vst [vmem:[#allocation2 + $0x50] sm:$0x1] %v5572_v45  ;;  %v435_v63 = vshll.u32 %v6645_v56, 16  ;;  %v5652_v4 = vcombine.low %v1561_v57, %v1564_v58  ;;  %v6647_v40 = vld [vmem:[#allocation2 + $0x30] sm:$0xff]  }
  0x62   : > { %v434_v6 = vrot.slane %v432_v59, 7  ;;  %v5638_v7 = vrot.slane %v7043_v60, 9  ;;  %v1571_v11 = vsel %vm7001_vm8, %v1569_v55, %v1570_v50  ;;  %v1574_v20 = vrot.slane %v7048_v0, 5  ;;  %v6650_v55 = vld [vmem:[%s8189_s3 + $0x128] sm:$0xff]  }
  0x63   : > { %4546 = vmatmul.mubr.bf16.vlgmr.msra.gmra.mrb[16].mxu1 %v5651_v36  ;;  %760 = vst [vmem:[#allocation2 + $0x48] sm:$0xf] %v5570_v52  ;;  %761 = vst [vmem:[#allocation2 + $0x4c] sm:$0xf] %v5571_v54  ;;  %v5653_v26 = vcombine.low %v1568_v10, %v1571_v11  ;;  %v1577_v58 = vrot.slane %v1463_v34, 5  ;;  %v439_v59 = vshrl.u32 %v6649_v29, 16  ;;  %6265 = vmatpush3.bf16.msra.mxu0 %v6650_v55 }
  0x64   : > { %6367 = vmatpush3.bf16.msra.mxu1 %v6632_v30  ;;  %4553 = vmatprep.mubr.bf16.mxu1 %v6637_v32  ;;  %v437_v18 = vor.u32 %v435_v63, %v434_v6  ;;  %v558_v19 = vsel %vm6831_vm5, %v434_v6, 0  ;;  %v1576_v54 = vrot.slane %v1574_v20, 4  ;;  %v1575_v63 = vsel %vm7001_vm8, %v5638_v7, %v1574_v20 }
  0x65   : > { %6368 = vmatprep.subr.bf16.mxu1 %v6642_v42  ;;  %v954_v62 = vld [vmem:[#allocation2 + $0x44] sm:$0x1]  ;;  %v5575_v27 = vcombine.low %v558_v19, %v558_v19  ;;  %v442_v0 = vshll.u32 %v6649_v29, 16  ;;  %v441_v6 = vrot.slane %v439_v59, 7 }
  0x66   : > { %v1128_v2 = vshll.u32 %v954_v62, 16  ;;  %v542_v39 = vsel %vm6831_vm5, 0, %v437_v18  ;;  %v1469_v55 = vld [vmem:[#allocation2 + $0x44] sm:$0x1] }
  0x67   : > { %v952_v8 = vld [vmem:[#allocation2 + $0x3c] sm:$0xf]  ;;  %v953_v9 = vld [vmem:[#allocation2 + $0x40] sm:$0xf]  ;;  %765 = vst [vmem:[#allocation2 + $0x5c] sm:$0x1] %v5575_v27  ;;  %v5573_v48 = vcombine.low %v542_v39, %v542_v39  ;;  %v5574_v49 = vcombine.high %v542_v39, %v542_v39 }
  0x68   : > { %6369 = vmatpush3.bf16.msra.mxu1 %v6644_v51  ;;  %v1109_v12 = vshrl.u32 %v952_v8, 16  ;;  %v1112_v13 = vshll.u32 %v952_v8, 16  ;;  %v1118_v14 = vshll.u32 %v953_v9, 16  ;;  %v1122_v15 = vshrl.u32 %v953_v9, 16  ;;  %v957_v17 = vld [vmem:[#allocation2 + $0x50] sm:$0x1] }
  0x69   : > { %v1130_v16 = vrot.slane %v1128_v2, 5  ;;  %v1152_v25 = vshll.u32 %v957_v17, 16  ;;  %v6636_v43 = vld [vmem:[#allocation2 + $0x3c] sm:$0xff]   ;;  %763 = vst [vmem:[#allocation2 + $0x54] sm:$0xf] %v5573_v48  ;;  %6370 = vmatprep.subr.bf16.mxu1 %v6653_v61  ;;  %v6659_v48 = vld [vmem:[%s8189_s3 + $0x130] sm:$0xff]  }
  0x6a   : > { %v1111_v21 = vrot.slane %v1109_v12, 4  ;;  %v1114_v22 = vrot.slane %v1112_v13, 5  ;;  %v1120_v53 = vrot.slane %v1118_v14, 5  ;;  %v1124_v1 = vrot.slane %v1122_v15, 4  ;;  %v955_v23 = vld [vmem:[#allocation2 + $0x48] sm:$0xf] }
  0x6b   : > { %4554 = vmatmul.mubr.bf16.gmra.mrb[20].mxu1 %v5652_v4  ;;  %v956_v24 = vld [vmem:[#allocation2 + $0x4c] sm:$0xf]  ;;  %v1133_v32 = vshrl.u32 %v955_v23, 16  ;;  %v1136_v33 = vshll.u32 %v955_v23, 16  ;;  %v1154_v37 = vrot.slane %v1152_v25, 5  ;;  %v444_v14 = vor.u32 %v442_v0, %v441_v6  ;;  %v6655_v17 = vld [vmem:[%s6808_s22 + $0x40] sm:$0xff]  }
  0x6c   : > { %4561 = vmatprep.mubr.bf16.mxu1 %v6640_v5  ;;  %v1115_v30 = vor.u32 %v1114_v22, %v1111_v21  ;;  %v1125_v31 = vor.u32 %v1124_v1, %v1120_v53  ;;  %v1142_v35 = vshll.u32 %v956_v24, 16  ;;  %v1146_v36 = vshrl.u32 %v956_v24, 16  ;;  %764 = vst [vmem:[#allocation2 + $0x58] sm:$0xf] %v5574_v49  ;;  %v1464_v2 = vld [vmem:[#allocation2 + $0x30] sm:$0xe] }
  0x6d   : > { %v1135_v44 = vrot.slane %v1133_v32, 4  ;;  %v1138_v45 = vrot.slane %v1136_v33, 5  ;;  %v1578_v5 = vsel %vm7001_vm8, %v1576_v54, %v1577_v58  ;;  %v1465_v8 = vld [vmem:[#allocation2 + $0x34] sm:$0xf]  ;;  %v1466_v9 = vld [vmem:[#allocation2 + $0x38] sm:$0x1] }
  0x6e   : > { %v1116_v41 = vrot.slane %v1115_v30, 4  ;;  %v1126_v42 = vrot.slane %v1125_v31, 4  ;;  %v1144_v46 = vrot.slane %v1142_v35, 5  ;;  %v1148_v47 = vrot.slane %v1146_v36, 4  ;;  %v960_v10 = vld [vmem:[#allocation2 + $0x5c] sm:$0x1] }
  0x6f   : > { %v1139_v52 = vor.u32 %v1138_v45, %v1135_v44  ;;  %v5639_v7 = vrot.slane %v1464_v2, 9  ;;  %v1581_v11 = vrot.slane %v1465_v8, 5  ;;  %v5654_v13 = vcombine.low %v1575_v63, %v1578_v5  ;;  %v6639_v19 = vld [vmem:[#allocation2 + $0x48] sm:$0xff]   ;;  %v6652_v1 = vld [vmem:[#allocation2 + $0x3c] sm:$0xff]  }
  0x70   : > { %v1121_v50 = vsel %vm6819_vm4, %v1116_v41, %v1120_v53  ;;  %v1131_v51 = vsel %vm6819_vm4, %v1126_v42, %v1130_v16  ;;  %v1149_v57 = vor.u32 %v1148_v47, %v1144_v46  ;;  %v559_v15 = vsel %vm6831_vm5, %v441_v6, 0  ;;  %v6654_v16 = vld [vmem:[%s8189_s3 + $0x190] sm:$0xff]   ;;  %v1467_v47 = vld [vmem:[#allocation2 + $0x3c] sm:$0xe]  ;;  %v1468_v54 = vld [vmem:[#allocation2 + $0x40] sm:$0xf] }
  0x71   : > { %v5624_v56 = vcombine.low %v1121_v50, %v1131_v51  ;;  %v1140_v62 = vrot.slane %v1139_v52, 4  ;;  %v1176_v20 = vshll.u32 %v960_v10, 16  ;;  %v5578_v21 = vcombine.low %v559_v15, %v559_v15  ;;  %6371 = vmatpush3.bf16.msra.mxu1 %v6654_v16  ;;  %v958_v25 = vld [vmem:[#allocation2 + $0x54] sm:$0xf]  ;;  %v6657_v52 = vld [vmem:[#allocation2 + $0x48] sm:$0xff]  }
  0x72   : > { %v1150_v4 = vrot.slane %v1149_v57, 4  ;;  %v1583_v22 = vrot.slane %v1581_v11, 4  ;;  %v543_v53 = vsel %vm6831_vm5, 0, %v444_v14  ;;  %v1584_v23 = vrot.slane %v1466_v9, 5 }
  0x73   : > { %4562 = vmatmul.mubr.bf16.gmra.mrb[24].mxu1 %v5653_v26  ;;  %4424 = vmatprep.mubr.bf16.mxu0 %v5624_v56  ;;  %v1145_v60 = vsel %vm6819_vm4, %v1140_v62, %v1144_v46  ;;  %v446_v24 = vshrl.u32 %v6655_v17, 16  ;;  %v959_v26 = vld [vmem:[#allocation2 + $0x58] sm:$0xf]  ;;  %v5576_v27 = vcombine.low %v543_v53, %v543_v53  ;;  %v5577_v29 = vcombine.high %v543_v53, %v543_v53  ;;  %v6660_v62 = vld [vmem:[%s6808_s22 + $0x48] sm:$0xff]  }
  0x74   : > { %4569 = vmatprep.mubr.bf16.mxu1 %v6647_v40  ;;  %4425 = vmatmul.mubr.bf16.gmra.mrb[20].mxu0 %v6636_v43  ;;  %v1155_v12 = vsel %vm6819_vm4, %v1150_v4, %v1154_v37  ;;  %768 = vst [vmem:[#allocation2 + $0x68] sm:$0x1] %v5578_v21  ;;  %v1582_v30 = vsel %vm7001_vm8, %v5639_v7, %v1581_v11  ;;  %v1157_v31 = vshrl.u32 %v958_v25, 16  ;;  %v1160_v32 = vshll.u32 %v958_v25, 16  ;;  %v6658_v40 = vld [vmem:[%s8189_s3 + $0x170] sm:$0xff]  }
  0x75   : > { %v5625_v18 = vcombine.low %v1145_v60, %v1155_v12  ;;  %v1166_v33 = vshll.u32 %v959_v26, 16  ;;  %v1170_v34 = vshrl.u32 %v959_v26, 16  ;;  %v1178_v35 = vrot.slane %v1176_v20, 5  ;;  %766 = vst [vmem:[#allocation2 + $0x60] sm:$0xf] %v5576_v27  ;;  %6266 = vmatprep.subr.bf16.mxu0 %v6658_v40  ;;  %v6646_v2 = vld [vmem:[#allocation2 + $0x54] sm:$0xff]  }
  0x76   : > { %767 = vst [vmem:[#allocation2 + $0x64] sm:$0xf] %v5577_v29  ;;  %v1585_v36 = vsel %vm7001_vm8, %v1583_v22, %v1584_v23  ;;  %v448_v37 = vrot.slane %v446_v24, 7  ;;  %v449_v39 = vshll.u32 %v6655_v17, 16  ;;  %v1159_v41 = vrot.slane %v1157_v31, 4  ;;  %6267 = vmatpush3.bf16.msra.mxu0 %v6659_v48  ;;  %v6663_v20 = vld [vmem:[%s8189_s3 + $0x1d8] sm:$0xff]  }
  0x77   : > { %4432 = vmatprep.mubr.bf16.mxu0 %v5625_v18  ;;  %v1162_v42 = vrot.slane %v1160_v32, 5  ;;  %v1168_v43 = vrot.slane %v1166_v33, 5  ;;  %v1172_v44 = vrot.slane %v1170_v34, 4  ;;  %v5640_v56 = vrot.slane %v1467_v47, 9  ;;  %6372 = vmatprep.subr.bf16.mxu1 %v6663_v20  ;;  %v6665_v26 = vld [vmem:[%s8189_s3 + $0x178] sm:$0xff]  }
  0x78   : > { %v451_v45 = vor.u32 %v449_v39, %v448_v37  ;;  %v560_v46 = vsel %vm6831_vm5, %v448_v37, 0  ;;  %v5655_v57 = vcombine.low %v1582_v30, %v1585_v36  ;;  %v1588_v59 = vrot.slane %v1468_v54, 5  ;;  %v6662_v36 = vld [vmem:[#allocation2 + $0x54] sm:$0xff]   ;;  %6268 = vmatprep.subr.bf16.mxu0 %v6665_v26 }
  0x79   : > { %v1163_v49 = vor.u32 %v1162_v42, %v1159_v41  ;;  %v1173_v50 = vor.u32 %v1172_v44, %v1168_v43  ;;  %v5581_v51 = vcombine.low %v560_v46, %v560_v46  ;;  %v1591_v61 = vrot.slane %v1469_v55, 5  ;;  %v1470_v42 = vld [vmem:[#allocation2 + $0x48] sm:$0xe]  ;;  %v1472_v44 = vld [vmem:[#allocation2 + $0x50] sm:$0x1] }
  0x7a   : > { %v544_v58 = vsel %vm6831_vm5, 0, %v451_v45  ;;  %v1590_v9 = vrot.slane %v1588_v59, 4  ;;  %v1589_v17 = vsel %vm7001_vm8, %v5640_v56, %v1588_v59  ;;  %v456_v25 = vshll.u32 %v6660_v62, 16  ;;  %v6666_v55 = vld [vmem:[%s6808_s22 + $0x50] sm:$0xff]   ;;  %v1474_v20 = vld [vmem:[#allocation2 + $0x58] sm:$0xf] }
  0x7b   : > { %4570 = vmatmul.mubr.bf16.gmra.mrb[28].mxu1 %v5654_v13  ;;  %v1164_v63 = vrot.slane %v1163_v49, 4  ;;  %v1174_v0 = vrot.slane %v1173_v50, 4  ;;  %v963_v4 = vld [vmem:[#allocation2 + $0x68] sm:$0x1]  ;;  %v5579_v5 = vcombine.low %v544_v58, %v544_v58  ;;  %v5580_v6 = vcombine.high %v544_v58, %v544_v58  ;;  %771 = vst [vmem:[#allocation2 + $0x74] sm:$0x1] %v5581_v51 }
  0x7c   : > { %4577 = vmatprep.mubr.bf16.mxu1 %v6652_v1  ;;  %4433 = vmatmul.mubr.bf16.gmra.mrb[24].mxu0 %v6639_v19  ;;  %v1200_v8 = vshll.u32 %v963_v4, 16  ;;  %v961_v7 = vld [vmem:[#allocation2 + $0x60] sm:$0xf]  ;;  %v1592_v18 = vsel %vm7001_vm8, %v1590_v9, %v1591_v61  ;;  %v453_v19 = vshrl.u32 %v6660_v62, 16  ;;  %v6664_v1 = vld [vmem:[%s8189_s3 + $0x198] sm:$0xff]  }
  0x7d   : > { %v1169_v60 = vsel %vm6819_vm4, %v1164_v63, %v1168_v43  ;;  %v1179_v10 = vsel %vm6819_vm4, %v1174_v0, %v1178_v35  ;;  %v962_v11 = vld [vmem:[#allocation2 + $0x64] sm:$0xf]  ;;  %769 = vst [vmem:[#allocation2 + $0x6c] sm:$0xf] %v5579_v5  ;;  %770 = vst [vmem:[#allocation2 + $0x70] sm:$0xf] %v5580_v6  ;;  %v5656_v31 = vcombine.low %v1589_v17, %v1592_v18  ;;  %6373 = vmatpush3.bf16.msra.mxu1 %v6664_v1 }
  0x7e   : > { %v5626_v12 = vcombine.low %v1169_v60, %v1179_v10  ;;  %v1181_v13 = vshrl.u32 %v961_v7, 16  ;;  %v1184_v14 = vshll.u32 %v961_v7, 16  ;;  %v1190_v15 = vshll.u32 %v962_v11, 16  ;;  %v1471_v43 = vld [vmem:[#allocation2 + $0x4c] sm:$0xf]  ;;  %v6651_v46 = vld [vmem:[#allocation2 + $0x60] sm:$0xff]  }
  0x7f   : > { %v1194_v16 = vshrl.u32 %v962_v11, 16  ;;  %v455_v24 = vrot.slane %v453_v19, 7  ;;  %v1202_v29 = vrot.slane %v1200_v8, 5  ;;  %v6667_v61 = vld [vmem:[%s8189_s3 + $0x138] sm:$0xff]   ;;  %v5641_v5 = vrot.slane %v1470_v42, 9 }
  0x80   : > { %4440 = vmatprep.mubr.bf16.mxu0 %v5626_v12  ;;  %v1183_v21 = vrot.slane %v1181_v13, 4  ;;  %v1186_v22 = vrot.slane %v1184_v14, 5  ;;  %v1192_v53 = vrot.slane %v1190_v15, 5  ;;  %v1595_v6 = vrot.slane %v1471_v43, 5  ;;  %6269 = vmatpush3.bf16.msra.mxu0 %v6667_v61  ;;  %v6669_v13 = vld [vmem:[#allocation2 + $0x60] sm:$0xff]  }
  0x81   : > { %v1196_v23 = vrot.slane %v1194_v16, 4  ;;  %v458_v34 = vor.u32 %v456_v25, %v455_v24  ;;  %v561_v35 = vsel %vm6831_vm5, %v455_v24, 0  ;;  %v1598_v8 = vrot.slane %v1472_v44, 5  ;;  %v1473_v19 = vld [vmem:[#allocation2 + $0x54] sm:$0xe]  ;;  %v6671_v25 = vld [vmem:[%s8189_s3 + $0x1e0] sm:$0xff]  }
  0x82   : > { %v1187_v27 = vor.u32 %v1186_v22, %v1183_v21  ;;  %v966_v30 = vld [vmem:[#allocation2 + $0x74] sm:$0x1]  ;;  %v5584_v41 = vcombine.low %v561_v35, %v561_v35  ;;  %v460_v60 = vshrl.u32 %v6666_v55, 16  ;;  %v463_v10 = vshll.u32 %v6666_v55, 16  ;;  %v1475_v24 = vld [vmem:[#allocation2 + $0x5c] sm:$0x1]  ;;  %6374 = vmatprep.subr.bf16.mxu1 %v6671_v25 }
  0x83   : > { %4578 = vmatmul.mubr.bf16.gmra.mrb[32].mxu1 %v5655_v57  ;;  %v1197_v32 = vor.u32 %v1196_v23, %v1192_v53  ;;  %v1224_v33 = vshll.u32 %v966_v30, 16  ;;  %v545_v54 = vsel %vm6831_vm5, 0, %v458_v34  ;;  %v1596_v11 = vsel %vm7001_vm8, %v5641_v5, %v1595_v6 }
  0x84   : > { %4585 = vmatprep.mubr.bf16.mxu1 %v6657_v52  ;;  %4441 = vmatmul.mubr.bf16.gmra.mrb[28].mxu0 %v6646_v2  ;;  %v1188_v37 = vrot.slane %v1187_v27, 4  ;;  %v964_v39 = vld [vmem:[#allocation2 + $0x6c] sm:$0xf]  ;;  %v965_v40 = vld [vmem:[#allocation2 + $0x70] sm:$0xf]  ;;  %v5582_v0 = vcombine.low %v545_v54, %v545_v54  ;;  %v5583_v2 = vcombine.high %v545_v54, %v545_v54  ;;  %v1597_v12 = vrot.slane %v1595_v6, 4 }
  0x85   : > { %v1198_v45 = vrot.slane %v1197_v32, 4  ;;  %v1205_v47 = vshrl.u32 %v964_v39, 16  ;;  %v1208_v48 = vshll.u32 %v964_v39, 16  ;;  %v1214_v49 = vshll.u32 %v965_v40, 16  ;;  %774 = vst [vmem:[#allocation2 + $0x80] sm:$0x1] %v5584_v41 }
  0x86   : > { %v1193_v50 = vsel %vm6819_vm4, %v1188_v37, %v1192_v53  ;;  %v1218_v51 = vshrl.u32 %v965_v40, 16  ;;  %v1226_v52 = vrot.slane %v1224_v33, 5  ;;  %772 = vst [vmem:[#allocation2 + $0x78] sm:$0xf] %v5582_v0  ;;  %773 = vst [vmem:[#allocation2 + $0x7c] sm:$0xf] %v5583_v2  ;;  %v1599_v18 = vsel %vm7001_vm8, %v1597_v12, %v1598_v8 }
  0x87   : > { %v1203_v56 = vsel %vm6819_vm4, %v1198_v45, %v1202_v29  ;;  %v1207_v57 = vrot.slane %v1205_v47, 4  ;;  %v1210_v58 = vrot.slane %v1208_v48, 5  ;;  %v1216_v59 = vrot.slane %v1214_v49, 5  ;;  %v6656_v22 = vld [vmem:[#allocation2 + $0x6c] sm:$0xff]   ;;  %v7151_v32 = vld [vmem:[%s8189_s3 + $0x200] sm:$0xff]  }
  0x88   : > { %v5627_v62 = vcombine.low %v1193_v50, %v1203_v56  ;;  %v1220_v63 = vrot.slane %v1218_v51, 4  ;;  %v462_v15 = vrot.slane %v460_v60, 7  ;;  %v5657_v1 = vcombine.low %v1596_v11, %v1599_v18  ;;  %v6673_v37 = vld [vmem:[%s8189_s3 + $0x1a0] sm:$0xff]   ;;  %6502 = vmatprep.subr.bf16.mxu0 %v7151_v32  ;;  %v2401_v50 = vld [vmem:[#allocation2 + $0x14] sm:$0x1]  ;;  %v6676_v8 = vld [vmem:[%s8189_s3 + $0x1e8] sm:$0xff]  }
  0x89   : > { %v1211_v4 = vor.u32 %v1210_v58, %v1207_v57  ;;  %v5642_v29 = vrot.slane %v1473_v19, 9  ;;  %v1602_v30 = vrot.slane %v1474_v20, 5  ;;  %v1605_v35 = vrot.slane %v1475_v24, 5  ;;  %6375 = vmatpush3.bf16.msra.mxu1 %v6673_v37  ;;  %v1887_v58 = vld [vmem:[#allocation2 + $0xc] sm:$0xf] }
  0x8a   : > { %4448 = vmatprep.mubr.bf16.mxu0 %v5627_v62  ;;  %v1221_v9 = vor.u32 %v1220_v63, %v1216_v59  ;;  %v465_v23 = vor.u32 %v463_v10, %v462_v15  ;;  %v562_v27 = vsel %vm6831_vm5, %v462_v15, 0  ;;  %v1888_v62 = vld [vmem:[#allocation2 + $0x10] sm:$0xf]  ;;  %v1889_v63 = vld [vmem:[#allocation2 + $0x14] sm:$0x1]  ;;  %v1936_v0 = vshrl.u32 %v1887_v58, 16  ;;  %6376 = vmatprep.subr.bf16.mxu1 %v6676_v8 }
  0x8b   : > { %4586 = vmatmul.mubr.bf16.gmra.mrb[36].mxu1 %v5656_v31  ;;  %v1212_v7 = vrot.slane %v1211_v4, 4  ;;  %v7146_v31 = vld [vmem:[#allocation2 + $0xc] sm:$0xe]  ;;  %v5587_v34 = vcombine.low %v562_v27, %v562_v27  ;;  %v1603_v48 = vsel %vm7001_vm8, %v5642_v29, %v1602_v30  ;;  %v1604_v49 = vrot.slane %v1602_v30, 4 }
  0x8c   : > { %4593 = vmatprep.mubr.bf16.mxu1 %v6662_v36  ;;  %4449 = vmatmul.mubr.bf16.gmra.mrb[32].mxu0 %v6651_v46  ;;  %v1222_v14 = vrot.slane %v1221_v9, 4  ;;  %v969_v17 = vld [vmem:[#allocation2 + $0x80] sm:$0x1]  ;;  %v546_v33 = vsel %vm6831_vm5, 0, %v465_v23  ;;  %v7155_v36 = vld [vmem:[#allocation2 + $0x10] sm:$0xf] }
  0x8d   : > { %v1217_v16 = vsel %vm6819_vm4, %v1212_v7, %v1216_v59  ;;  %v1248_v53 = vshll.u32 %v969_v17, 16  ;;  %v967_v39 = vld [vmem:[#allocation2 + $0x78] sm:$0xf]  ;;  %v968_v40 = vld [vmem:[#allocation2 + $0x7c] sm:$0xf]  ;;  %v5585_v41 = vcombine.low %v546_v33, %v546_v33  ;;  %v5586_v42 = vcombine.high %v546_v33, %v546_v33 }
  0x8e   : > { %v1227_v21 = vsel %vm6819_vm4, %v1222_v14, %v1226_v52  ;;  %v1229_v43 = vshrl.u32 %v967_v39, 16  ;;  %v1232_v44 = vshll.u32 %v967_v39, 16  ;;  %v1238_v45 = vshll.u32 %v968_v40, 16  ;;  %777 = vst [vmem:[#allocation2 + $0x8c] sm:$0x1] %v5587_v34  ;;  %v6670_v52 = vld [vmem:[#allocation2 + $0x6c] sm:$0xff]  }
  0x8f   : > { %v5628_v26 = vcombine.low %v1217_v16, %v1227_v21  ;;  %v1242_v46 = vshrl.u32 %v968_v40, 16  ;;  %v1250_v47 = vrot.slane %v1248_v53, 5  ;;  %775 = vst [vmem:[#allocation2 + $0x84] sm:$0xf] %v5585_v41  ;;  %776 = vst [vmem:[#allocation2 + $0x88] sm:$0xf] %v5586_v42  ;;  %v1606_v59 = vsel %vm7001_vm8, %v1604_v49, %v1605_v35 }
  0x90   : > { %v5699_v51 = vrot.slane %v7146_v31, 9  ;;  %v1231_v54 = vrot.slane %v1229_v43, 4  ;;  %v1234_v55 = vrot.slane %v1232_v44, 5  ;;  %v1240_v56 = vrot.slane %v1238_v45, 5  ;;  %v6678_v14 = vld [vmem:[%s8189_s3 + $0x1a8] sm:$0xff]  }
  0x91   : > { %4456 = vmatprep.mubr.bf16.mxu0 %v5628_v26  ;;  %v1244_v57 = vrot.slane %v1242_v46, 4  ;;  %v2497_v61 = vrot.slane %v7155_v36, 5  ;;  %v5658_v5 = vcombine.low %v1603_v48, %v1606_v59  ;;  %v1939_v6 = vshll.u32 %v1887_v58, 16  ;;  %6377 = vmatpush3.bf16.msra.mxu1 %v6678_v14  ;;  %v1476_v43 = vld [vmem:[#allocation2 + $0x60] sm:$0xe]  ;;  %v6681_v48 = vld [vmem:[%s8189_s3 + $0x1f0] sm:$0xff]  }
  0x92   : > { %v1235_v2 = vor.u32 %v1234_v55, %v1231_v54  ;;  %v2500_v9 = vrot.slane %v2401_v50, 5  ;;  %v1938_v60 = vrot.slane %v1936_v0, 4  ;;  %v1945_v10 = vshll.u32 %v1888_v62, 16  ;;  %v1477_v45 = vld [vmem:[#allocation2 + $0x64] sm:$0xf]  ;;  %6378 = vmatprep.subr.bf16.mxu1 %v6681_v48 }
  0x93   : > { %4594 = vmatmul.mubr.bf16.gmra.mrb[40].mxu1 %v5657_v1  ;;  %v1245_v4 = vor.u32 %v1244_v57, %v1240_v56  ;;  %v1949_v7 = vshrl.u32 %v1888_v62, 16  ;;  %v2499_v16 = vrot.slane %v2497_v61, 4  ;;  %v1955_v19 = vshll.u32 %v1889_v63, 16  ;;  %v1478_v46 = vld [vmem:[#allocation2 + $0x68] sm:$0x1] }
  0x94   : > { %4601 = vmatprep.mubr.bf16.mxu1 %v6669_v13  ;;  %4457 = vmatmul.mubr.bf16.gmra.mrb[36].mxu0 %v6656_v22  ;;  %v1236_v11 = vrot.slane %v1235_v2, 4  ;;  %v1941_v13 = vrot.slane %v1939_v6, 5  ;;  %v7173_v17 = vrot.slane %v1945_v10, 5  ;;  %v6661_v22 = vld [vmem:[#allocation2 + $0x78] sm:$0xff]   ;;  %v7184_v40 = vsel %vm7001_vm8, %v5699_v51, %v2497_v61  ;;  %v2404_v63 = vld [vmem:[#allocation2 + $0x20] sm:$0x1] }
  0x95   : > { %v1246_v12 = vrot.slane %v1245_v4, 4  ;;  %v972_v15 = vld [vmem:[#allocation2 + $0x8c] sm:$0x1]  ;;  %v1951_v18 = vrot.slane %v1949_v7, 4  ;;  %v2501_v41 = vsel %vm7001_vm8, %v2499_v16, %v2500_v9  ;;  %v7188_v42 = vrot.slane %v1955_v19, 5  ;;  %v6674_v2 = vld [vmem:[#allocation2 + $0x78] sm:$0xff]  }
  0x96   : > { %v1241_v20 = vsel %vm6819_vm4, %v1236_v11, %v1240_v56  ;;  %v970_v53 = vld [vmem:[#allocation2 + $0x84] sm:$0xf]  ;;  %v971_v1 = vld [vmem:[#allocation2 + $0x88] sm:$0xf]  ;;  %v1272_v23 = vshll.u32 %v972_v15, 16  ;;  %v1942_v24 = vor.u32 %v1941_v13, %v1938_v60  ;;  %v1609_v50 = vrot.slane %v1477_v45, 5 }
  0x97   : > { %v1251_v21 = vsel %vm6819_vm4, %v1246_v12, %v1250_v47  ;;  %v1253_v26 = vshrl.u32 %v970_v53, 16  ;;  %v1256_v27 = vshll.u32 %v970_v53, 16  ;;  %v1262_v29 = vshll.u32 %v971_v1, 16  ;;  %v2402_v56 = vld [vmem:[#allocation2 + $0x18] sm:$0xe]  ;;  %v6668_v59 = vld [vmem:[#allocation2 + $0x84] sm:$0xff]  }
  0x98   : > { %v5629_v25 = vcombine.low %v1241_v20, %v1251_v21  ;;  %v1266_v30 = vshrl.u32 %v971_v1, 16  ;;  %v1274_v31 = vrot.slane %v1272_v23, 5  ;;  %v7179_v33 = vrot.slane %v1942_v24, 4  ;;  %v2403_v57 = vld [vmem:[#allocation2 + $0x1c] sm:$0xf]  ;;  %v6683_v4 = vld [vmem:[%s8189_s3 + $0x1b0] sm:$0xff]  }
  0x99   : > { %v1255_v34 = vrot.slane %v1253_v26, 4  ;;  %v1258_v35 = vrot.slane %v1256_v27, 5  ;;  %v1264_v36 = vrot.slane %v1262_v29, 5  ;;  %v1952_v37 = vor.u32 %v1951_v18, %v7173_v17  ;;  %v1890_v60 = vld [vmem:[#allocation2 + $0x18] sm:$0xf]  ;;  %6379 = vmatpush3.bf16.msra.mxu1 %v6683_v4  ;;  %v6675_v48 = vld [vmem:[#allocation2 + $0x84] sm:$0xff]  }
  0x9a   : > { %4464 = vmatprep.mubr.bf16.mxu0 %v5629_v25  ;;  %v1268_v39 = vrot.slane %v1266_v30, 4  ;;  %v5643_v47 = vrot.slane %v1476_v43, 9  ;;  %v5715_v51 = vcombine.low %v7184_v40, %v2501_v41  ;;  %v1611_v62 = vrot.slane %v1609_v50, 4  ;;  %v1891_v10 = vld [vmem:[#allocation2 + $0x1c] sm:$0xf] }
  0x9b   : > { %4602 = vmatmul.mubr.bf16.gmra.mrb[44].mxu1 %v5658_v5  ;;  %v1259_v44 = vor.u32 %v1258_v35, %v1255_v34  ;;  %v7194_v55 = vrot.slane %v1952_v37, 4  ;;  %v5700_v0 = vrot.slane %v2402_v56, 9  ;;  %v1948_v6 = vsel %vm6819_vm4, %v7179_v33, %v7173_v17  ;;  %v1892_v12 = vld [vmem:[#allocation2 + $0x20] sm:$0x1]  ;;  %v1479_v19 = vld [vmem:[#allocation2 + $0x6c] sm:$0xe] }
  0x9c   : > { %4609 = vmatprep.mubr.bf16.mxu1 %v6670_v52  ;;  %4465 = vmatmul.mubr.bf16.gmra.mrb[40].mxu0 %v6661_v22  ;;  %v1269_v49 = vor.u32 %v1268_v39, %v1264_v36  ;;  %v1612_v52 = vrot.slane %v1478_v46, 5  ;;  %v1610_v61 = vsel %vm7001_vm8, %v5643_v47, %v1609_v50  ;;  %v2504_v8 = vrot.slane %v2403_v57, 5  ;;  %v1480_v1 = vld [vmem:[#allocation2 + $0x70] sm:$0xf]  ;;  %v1481_v25 = vld [vmem:[#allocation2 + $0x74] sm:$0x1] }
  0x9d   : > { %v1260_v54 = vrot.slane %v1259_v44, 4  ;;  %v2507_v9 = vrot.slane %v2404_v63, 5  ;;  %v1960_v13 = vshrl.u32 %v1890_v60, 16  ;;  %v1963_v14 = vshll.u32 %v1890_v60, 16  ;;  %v2405_v34 = vld [vmem:[#allocation2 + $0x24] sm:$0xe] }
  0x9e   : > { %v1270_v58 = vrot.slane %v1269_v49, 4  ;;  %v1613_v11 = vsel %vm7001_vm8, %v1611_v62, %v1612_v52  ;;  %v1958_v16 = vsel %vm6819_vm4, %v7194_v55, %v7188_v42  ;;  %v2506_v18 = vrot.slane %v2504_v8, 4  ;;  %v2406_v35 = vld [vmem:[#allocation2 + $0x28] sm:$0xf]  ;;  %v2407_v41 = vld [vmem:[#allocation2 + $0x2c] sm:$0x1] }
  0x9f   : > { %v1265_v5 = vsel %vm6819_vm4, %v1260_v54, %v1264_v36  ;;  %v5659_v17 = vcombine.low %v1610_v61, %v1613_v11  ;;  %v1962_v20 = vrot.slane %v1960_v13, 4  ;;  %v1965_v21 = vrot.slane %v1963_v14, 5  ;;  %v6686_v42 = vld [vmem:[%s8189_s3 + $0x1f8] sm:$0xff]   ;;  %v1893_v47 = vld [vmem:[#allocation2 + $0x24] sm:$0xf] }
  0xa0   : > { %v1275_v7 = vsel %vm6819_vm4, %v1270_v58, %v1274_v31  ;;  %v1969_v22 = vshll.u32 %v1891_v10, 16  ;;  %v1973_v53 = vshrl.u32 %v1891_v10, 16  ;;  %v2505_v23 = vsel %vm7001_vm8, %v5700_v0, %v2504_v8  ;;  %v1894_v52 = vld [vmem:[#allocation2 + $0x28] sm:$0xf]  ;;  %v1895_v54 = vld [vmem:[#allocation2 + $0x2c] sm:$0x1]  ;;  %6380 = vmatprep.subr.bf16.mxu1 %v6686_v42 }
  0xa1   : > { %v5630_v15 = vcombine.low %v1265_v5, %v1275_v7  ;;  %v1979_v24 = vshll.u32 %v1892_v12, 16  ;;  %v5644_v26 = vrot.slane %v1479_v19, 9  ;;  %v1616_v27 = vrot.slane %v1480_v1, 5  ;;  %v6688_v61 = vld [vmem:[%s8189_s3 + $0x1b8] sm:$0xff]   ;;  %v2409_v1 = vld [vmem:[#allocation2 + $0x34] sm:$0xf] }
  0xa2   : > { %v2508_v29 = vsel %vm7001_vm8, %v2506_v18, %v2507_v9  ;;  %v1966_v30 = vor.u32 %v1965_v21, %v1962_v20  ;;  %v1971_v31 = vrot.slane %v1969_v22, 5  ;;  %v1975_v33 = vrot.slane %v1973_v53, 4  ;;  %6381 = vmatpush3.bf16.msra.mxu1 %v6688_v61  ;;  %v1482_v10 = vld [vmem:[#allocation2 + $0x78] sm:$0xe]  ;;  %v1483_v14 = vld [vmem:[#allocation2 + $0x7c] sm:$0xf] }
  0xa3   : > { %4472 = vmatprep.mubr.bf16.mxu0 %v5630_v15  ;;  %4610 = vmatmul.mubr.bf16.gmra.mrb[48].mxu1 %v5659_v17  ;;  %v1981_v36 = vrot.slane %v1979_v24, 5  ;;  %v1617_v37 = vsel %vm7001_vm8, %v5644_v26, %v1616_v27  ;;  %v1618_v39 = vrot.slane %v1616_v27, 4  ;;  %v1619_v40 = vrot.slane %v1481_v25, 5  ;;  %v1484_v15 = vld [vmem:[#allocation2 + $0x80] sm:$0x1]  ;;  %v6682_v20 = vld [vmem:[%s8189_s3 + $0x210] sm:$0xff]  }
  0xa4   : > { %4473 = vmatmul.mubr.bf16.gmra.mrb[44].mxu0 %v6668_v59  ;;  %4617 = vmatprep.mubr.bf16.mxu1 %v6674_v2  ;;  %v1967_v43 = vrot.slane %v1966_v30, 4  ;;  %v1976_v44 = vor.u32 %v1975_v33, %v1971_v31  ;;  %v5701_v45 = vrot.slane %v2405_v34, 9  ;;  %v2511_v46 = vrot.slane %v2406_v35, 5  ;;  %v6677_v59 = vld [vmem:[%s8189_s3 + $0x208] sm:$0xff]   ;;  %v2408_v53 = vld [vmem:[#allocation2 + $0x30] sm:$0xe] }
  0xa5   : > { %4706 = vmatprep.mubr.bf16.mxu0 %v5715_v51  ;;  %v1620_v49 = vsel %vm7001_vm8, %v1618_v39, %v1619_v40  ;;  %v2514_v50 = vrot.slane %v2407_v41, 5  ;;  %v1984_v51 = vshrl.u32 %v1893_v47, 16  ;;  %v5683_v55 = vcombine.low %v1948_v6, %v1958_v16  ;;  %v2410_v26 = vld [vmem:[#allocation2 + $0x38] sm:$0x1]  ;;  %v6679_v27 = vld [vmem:[#allocation2 + $0x90] sm:$0xff]  }
  0xa6   : > { %v5716_v56 = vcombine.low %v2505_v23, %v2508_v29  ;;  %v1977_v57 = vrot.slane %v1976_v44, 4  ;;  %v5660_v58 = vcombine.low %v1617_v37, %v1620_v49  ;;  %v2513_v62 = vrot.slane %v2511_v46, 4  ;;  %v7247_v29 = vld [vmem:[%s6808_s22 + $0x78] sm:$0xff]   ;;  %v1896_v35 = vld [vmem:[#allocation2 + $0x30] sm:$0xf] }
  0xa7   : > { %v1986_v63 = vrot.slane %v1984_v51, 4  ;;  %v1987_v0 = vshll.u32 %v1893_v47, 16  ;;  %v1993_v2 = vshll.u32 %v1894_v52, 16  ;;  %v1997_v4 = vshrl.u32 %v1894_v52, 16  ;;  %v1897_v39 = vld [vmem:[#allocation2 + $0x34] sm:$0xf] }
  0xa8   : > { %v2003_v5 = vshll.u32 %v1895_v54, 16  ;;  %v1972_v6 = vsel %vm6819_vm4, %v1967_v43, %v1971_v31  ;;  %v1982_v8 = vsel %vm6819_vm4, %v1977_v57, %v1981_v36  ;;  %v2512_v7 = vsel %vm7001_vm8, %v5701_v45, %v2511_v46  ;;  %v1898_v40 = vld [vmem:[#allocation2 + $0x38] sm:$0x1]  ;;  %v1486_v57 = vld [vmem:[#allocation2 + $0x88] sm:$0xf] }
  0xa9   : > { %v1989_v9 = vrot.slane %v1987_v0, 5  ;;  %v1995_v60 = vrot.slane %v1993_v2, 5  ;;  %v2515_v11 = vsel %vm7001_vm8, %v2513_v62, %v2514_v50  ;;  %v1999_v12 = vrot.slane %v1997_v4, 4  ;;  %v6687_v46 = vld [vmem:[%s8189_s3 + $0x218] sm:$0xff]   ;;  %v1485_v50 = vld [vmem:[#allocation2 + $0x84] sm:$0xe] }
  0xaa   : > { %v2005_v13 = vrot.slane %v2003_v5, 5  ;;  %v5645_v17 = vrot.slane %v1482_v10, 9  ;;  %v1623_v18 = vrot.slane %v1483_v14, 5  ;;  %v1626_v19 = vrot.slane %v1484_v15, 5  ;;  %v2411_v0 = vld [vmem:[#allocation2 + $0x3c] sm:$0xe] }
  0xab   : > { %4618 = vmatmul.mubr.bf16.gmra.mrb[52].mxu1 %v5660_v58  ;;  %v1990_v16 = vor.u32 %v1989_v9, %v1986_v63  ;;  %v5684_v21 = vcombine.low %v1972_v6, %v1982_v8  ;;  %v2000_v22 = vor.u32 %v1999_v12, %v1995_v60  ;;  %v5717_v23 = vcombine.low %v2512_v7, %v2515_v11  ;;  %v1487_v58 = vld [vmem:[#allocation2 + $0x8c] sm:$0x1]  ;;  %v2412_v2 = vld [vmem:[#allocation2 + $0x40] sm:$0xf] }
  0xac   : > { %4707 = vmatmul.mubr.bf16.vlgmr.msra.gmra.mrb[48].mxu0 %v5683_v55  ;;  %4625 = vmatprep.mubr.bf16.mxu1 %v6675_v48  ;;  %v1625_v25 = vrot.slane %v1623_v18, 4  ;;  %v5702_v31 = vrot.slane %v2408_v53, 9  ;;  %v2518_v33 = vrot.slane %v2409_v1, 5  ;;  %v2521_v34 = vrot.slane %v2410_v26, 5  ;;  %v6691_v4 = vld [vmem:[%s8189_s3 + $0x220] sm:$0xff]  }
  0xad   : > { %6503 = vmatpush3.bf16.msra.mxu0 %v7151_v32  ;;  %4714 = vmatprep.mubr.bf16.mxu0 %v5716_v56  ;;  %v1991_v24 = vrot.slane %v1990_v16, 4  ;;  %v1624_v32 = vsel %vm7001_vm8, %v5645_v17, %v1623_v18  ;;  %v2001_v30 = vrot.slane %v2000_v22, 4  ;;  %v2008_v41 = vshrl.u32 %v1896_v35, 16  ;;  %v1900_v17 = vld [vmem:[#allocation2 + $0x40] sm:$0xf] }
  0xae   : > { %6504 = vmatprep.subr.bf16.mxu0 %v6677_v59  ;;  %v1627_v37 = vsel %vm7001_vm8, %v1625_v25, %v1626_v19  ;;  %v2011_v42 = vshll.u32 %v1896_v35, 16  ;;  %v2520_v45 = vrot.slane %v2518_v33, 4  ;;  %v2017_v49 = vshll.u32 %v1897_v39, 16  ;;  %v1901_v18 = vld [vmem:[#allocation2 + $0x44] sm:$0x1]  ;;  %v6694_v25 = vld [vmem:[%s8189_s3 + $0x228] sm:$0xff]  }
  0xaf   : > { %v1996_v36 = vsel %vm6819_vm4, %v1991_v24, %v1995_v60  ;;  %v2006_v43 = vsel %vm6819_vm4, %v2001_v30, %v2005_v13  ;;  %v5661_v44 = vcombine.low %v1624_v32, %v1627_v37  ;;  %v2010_v47 = vrot.slane %v2008_v41, 4  ;;  %v2413_v60 = vld [vmem:[#allocation2 + $0x44] sm:$0x1]  ;;  %v1899_v13 = vld [vmem:[#allocation2 + $0x3c] sm:$0xf] }
  0xb0   : > { %v2013_v48 = vrot.slane %v2011_v42, 5  ;;  %v495_v52 = vshrl.u32 %v7247_v29, 16  ;;  %v5685_v54 = vcombine.low %v1996_v36, %v2006_v43  ;;  %v2519_v51 = vsel %vm7001_vm8, %v5702_v31, %v2518_v33  ;;  %v1488_v37 = vld [vmem:[#allocation2 + $0x90] sm:$0xe]  ;;  %v1489_v42 = vld [vmem:[#allocation2 + $0x94] sm:$0xf] }
  0xb1   : > { %6505 = vmatpush3.bf16.msra.mxu0 %v6677_v59  ;;  %v2021_v55 = vshrl.u32 %v1897_v39, 16  ;;  %v2027_v56 = vshll.u32 %v1898_v40, 16  ;;  %v2522_v59 = vsel %vm7001_vm8, %v2520_v45, %v2521_v34  ;;  %v7263_v62 = vrot.slane %v2017_v49, 5  ;;  %v1490_v43 = vld [vmem:[#allocation2 + $0x98] sm:$0x1] }
  0xb2   : > { %6506 = vmatprep.subr.bf16.mxu0 %v6682_v20  ;;  %v2014_v61 = vor.u32 %v2013_v48, %v2010_v47  ;;  %v5646_v63 = vrot.slane %v1485_v50, 9  ;;  %v1630_v8 = vrot.slane %v1486_v57, 5  ;;  %v1633_v9 = vrot.slane %v1487_v58, 5  ;;  %v2415_v58 = vld [vmem:[#allocation2 + $0x4c] sm:$0xf] }
  0xb3   : > { %4626 = vmatmul.mubr.bf16.gmra.mrb[56].mxu1 %v5661_v44  ;;  %v2023_v5 = vrot.slane %v2021_v55, 4  ;;  %v2029_v6 = vrot.slane %v2027_v56, 5  ;;  %v5703_v7 = vrot.slane %v2411_v0, 9  ;;  %v2525_v11 = vrot.slane %v2412_v2, 5 }
  0xb4   : > { %4715 = vmatmul.mubr.bf16.gmra.mrb[52].mxu0 %v5684_v21  ;;  %4633 = vmatprep.mubr.bf16.mxu1 %v6679_v27  ;;  %v2015_v10 = vrot.slane %v2014_v61, 4  ;;  %v2528_v12 = vrot.slane %v2413_v60, 5  ;;  %v1631_v15 = vsel %vm7001_vm8, %v5646_v63, %v1630_v8  ;;  %v1632_v16 = vrot.slane %v1630_v8, 4  ;;  %v6680_v21 = vld [vmem:[#allocation2 + $0x9c] sm:$0xff]   ;;  %v1903_v8 = vld [vmem:[#allocation2 + $0x4c] sm:$0xf] }
  0xb5   : > { %4722 = vmatprep.mubr.bf16.mxu0 %v5717_v23  ;;  %6507 = vmatpush3.bf16.msra.mxu0 %v6682_v20  ;;  %v2024_v14 = vor.u32 %v2023_v5, %v7263_v62  ;;  %v2032_v19 = vshrl.u32 %v1899_v13, 16  ;;  %v5718_v22 = vcombine.low %v2519_v51, %v2522_v59  ;;  %v2527_v53 = vrot.slane %v2525_v11, 4  ;;  %v2416_v59 = vld [vmem:[#allocation2 + $0x50] sm:$0x1] }
  0xb6   : > { %6508 = vmatprep.subr.bf16.mxu0 %v6687_v46  ;;  %v2035_v1 = vshll.u32 %v1899_v13, 16  ;;  %v1634_v23 = vsel %vm7001_vm8, %v1632_v16, %v1633_v9  ;;  %v2041_v32 = vshll.u32 %v1900_v17, 16  ;;  %v2020_v26 = vsel %vm6819_vm4, %v2015_v10, %v7263_v62  ;;  %v6684_v62 = vld [vmem:[#allocation2 + $0xa8] sm:$0xff]   ;;  %v1904_v9 = vld [vmem:[#allocation2 + $0x50] sm:$0x1] }
  0xb7   : > { %v2025_v20 = vrot.slane %v2024_v14, 4  ;;  %v2034_v24 = vrot.slane %v2032_v19, 4  ;;  %v5662_v27 = vcombine.low %v1631_v15, %v1634_v23  ;;  %v2045_v31 = vshrl.u32 %v1900_v17, 16  ;;  %v1491_v16 = vld [vmem:[#allocation2 + $0x9c] sm:$0xe]  ;;  %v6697_v17 = vld [vmem:[%s8189_s3 + $0x230] sm:$0xff]  }
  0xb8   : > { %v2037_v30 = vrot.slane %v2035_v1, 5  ;;  %v2526_v33 = vsel %vm7001_vm8, %v5703_v7, %v2525_v11  ;;  %v2529_v34 = vsel %vm7001_vm8, %v2527_v53, %v2528_v12  ;;  %v2043_v35 = vrot.slane %v2041_v32, 5  ;;  %v1492_v53 = vld [vmem:[#allocation2 + $0xa0] sm:$0xf]  ;;  %v1493_v1 = vld [vmem:[#allocation2 + $0xa4] sm:$0x1] }
  0xb9   : > { %6509 = vmatpush3.bf16.msra.mxu0 %v6687_v46  ;;  %v2051_v36 = vshll.u32 %v1901_v18, 16  ;;  %v2030_v39 = vsel %vm6819_vm4, %v2025_v20, %v2029_v6  ;;  %v2047_v41 = vrot.slane %v2045_v31, 4  ;;  %v5647_v44 = vrot.slane %v1488_v37, 9 }
  0xba   : > { %6510 = vmatprep.subr.bf16.mxu0 %v6691_v4  ;;  %v2038_v40 = vor.u32 %v2037_v30, %v2034_v24  ;;  %v1637_v46 = vrot.slane %v1489_v42, 5  ;;  %v1640_v47 = vrot.slane %v1490_v43, 5  ;;  %v5719_v48 = vcombine.low %v2526_v33, %v2529_v34  ;;  %v2419_v34 = vld [vmem:[#allocation2 + $0x5c] sm:$0x1] }
  0xbb   : > { %4634 = vmatmul.mubr.bf16.gmra.mrb[60].mxu1 %v5662_v27  ;;  %v2053_v45 = vrot.slane %v2051_v36, 5  ;;  %v2048_v50 = vor.u32 %v2047_v41, %v2043_v35  ;;  %v7287_v51 = vrot.slane %v495_v52, 7  ;;  %v5686_v55 = vcombine.low %v2020_v26, %v2030_v39  ;;  %v2418_v26 = vld [vmem:[#allocation2 + $0x58] sm:$0xf] }
  0xbc   : > { %4723 = vmatmul.mubr.bf16.gmra.mrb[56].mxu0 %v5685_v54  ;;  %4641 = vmatprep.mubr.bf16.mxu1 %v6680_v21  ;;  %v2039_v49 = vrot.slane %v2038_v40, 4  ;;  %v2414_v54 = vld [vmem:[#allocation2 + $0x48] sm:$0xe]  ;;  %v1638_v56 = vsel %vm7001_vm8, %v5647_v44, %v1637_v46  ;;  %v1639_v57 = vrot.slane %v1637_v46, 4  ;;  %v2532_v0 = vrot.slane %v2415_v58, 5  ;;  %v6685_v58 = vld [vmem:[#allocation2 + $0xb4] sm:$0xff]  }
  0xbd   : > { %4730 = vmatprep.mubr.bf16.mxu0 %v5718_v22  ;;  %6511 = vmatpush3.bf16.msra.mxu0 %v6691_v4  ;;  %v5704_v61 = vrot.slane %v2414_v54, 9  ;;  %v2049_v63 = vrot.slane %v2048_v50, 4  ;;  %v2535_v2 = vrot.slane %v2416_v59, 5  ;;  %v1902_v4 = vld [vmem:[#allocation2 + $0x48] sm:$0xf]  ;;  %v498_v5 = vshll.u32 %v7247_v29, 16 }
  0xbe   : > { %6512 = vmatprep.subr.bf16.mxu0 %v6694_v25  ;;  %v2044_v52 = vsel %vm6819_vm4, %v2039_v49, %v2043_v35  ;;  %v1641_v6 = vsel %vm7001_vm8, %v1639_v57, %v1640_v47  ;;  %v2056_v60 = vshrl.u32 %v1902_v4, 16  ;;  %v2059_v10 = vshll.u32 %v1902_v4, 16  ;;  %v1905_v40 = vld [vmem:[#allocation2 + $0x54] sm:$0xf]  ;;  %v1906_v44 = vld [vmem:[#allocation2 + $0x58] sm:$0xf] }
  0xbf   : > { %v2054_v7 = vsel %vm6819_vm4, %v2049_v63, %v2053_v45  ;;  %v5663_v11 = vcombine.low %v1638_v56, %v1641_v6  ;;  %v2533_v12 = vsel %vm7001_vm8, %v5704_v61, %v2532_v0  ;;  %v2534_v13 = vrot.slane %v2532_v0, 4  ;;  %v1907_v45 = vld [vmem:[#allocation2 + $0x5c] sm:$0x1] }
  0xc0   : > { %v2058_v29 = vrot.slane %v2056_v60, 4  ;;  %v2061_v14 = vrot.slane %v2059_v10, 5  ;;  %v2065_v15 = vshll.u32 %v1903_v8, 16  ;;  %v5687_v18 = vcombine.low %v2044_v52, %v2054_v7  ;;  %v1494_v52 = vld [vmem:[#allocation2 + $0xa8] sm:$0xe] }
  0xc1   : > { %6513 = vmatpush3.bf16.msra.mxu0 %v6694_v25  ;;  %v2536_v19 = vsel %vm7001_vm8, %v2534_v13, %v2535_v2  ;;  %v2069_v21 = vshrl.u32 %v1903_v8, 16  ;;  %v2075_v22 = vshll.u32 %v1904_v9, 16  ;;  %v5648_v32 = vrot.slane %v1491_v16, 9  ;;  %v2417_v25 = vld [vmem:[#allocation2 + $0x54] sm:$0xe] }
  0xc2   : > { %v5720_v20 = vcombine.low %v2533_v12, %v2536_v19  ;;  %v2062_v23 = vor.u32 %v2061_v14, %v2058_v29  ;;  %v2067_v24 = vrot.slane %v2065_v15, 5  ;;  %6514 = vmatprep.subr.bf16.mxu0 %v6697_v17  ;;  %v1644_v31 = vrot.slane %v1492_v53, 5  ;;  %v1495_v60 = vld [vmem:[#allocation2 + $0xac] sm:$0xf]  ;;  %v1496_v10 = vld [vmem:[#allocation2 + $0xb0] sm:$0x1] }
  0xc3   : > { %4642 = vmatmul.mubr.bf16.gmra.mrb[64].mxu1 %v5663_v11  ;;  %v2071_v27 = vrot.slane %v2069_v21, 4  ;;  %v2077_v30 = vrot.slane %v2075_v22, 5  ;;  %v1647_v33 = vrot.slane %v1493_v1, 5  ;;  %v5705_v36 = vrot.slane %v2417_v25, 9  ;;  %v2420_v16 = vld [vmem:[#allocation2 + $0x60] sm:$0xe] }
  0xc4   : > { %4731 = vmatmul.mubr.bf16.gmra.mrb[60].mxu0 %v5686_v55  ;;  %4649 = vmatprep.mubr.bf16.mxu1 %v6684_v62  ;;  %v2063_v35 = vrot.slane %v2062_v23, 4  ;;  %v2539_v37 = vrot.slane %v2418_v26, 5  ;;  %v2542_v39 = vrot.slane %v2419_v34, 5  ;;  %v1645_v42 = vsel %vm7001_vm8, %v5648_v32, %v1644_v31  ;;  %v2421_v53 = vld [vmem:[#allocation2 + $0x64] sm:$0xf]  ;;  %v6700_v26 = vld [vmem:[%s8189_s3 + $0x238] sm:$0xff]  }
  0xc5   : > { %4738 = vmatprep.mubr.bf16.mxu0 %v5719_v48  ;;  %6515 = vmatpush3.bf16.msra.mxu0 %v6697_v17  ;;  %v2072_v41 = vor.u32 %v2071_v27, %v2067_v24  ;;  %v1646_v43 = vrot.slane %v1644_v31, 4  ;;  %v2080_v46 = vshrl.u32 %v1905_v40, 16  ;;  %v2083_v49 = vshll.u32 %v1905_v40, 16  ;;  %v2422_v1 = vld [vmem:[#allocation2 + $0x68] sm:$0x1] }
  0xc6   : > { %v2068_v47 = vsel %vm6819_vm4, %v2063_v35, %v2067_v24  ;;  %v2541_v48 = vrot.slane %v2539_v37, 4  ;;  %v500_v50 = vor.u32 %v498_v5, %v7287_v51  ;;  %v2089_v57 = vshll.u32 %v1906_v44, 16  ;;  %v1908_v25 = vld [vmem:[#allocation2 + $0x60] sm:$0xf]  ;;  %v1910_v31 = vld [vmem:[#allocation2 + $0x68] sm:$0x1]  ;;  %6516 = vmatprep.subr.bf16.mxu0 %v6700_v26 }
  0xc7   : > { %v2073_v54 = vrot.slane %v2072_v41, 4  ;;  %v1648_v55 = vsel %vm7001_vm8, %v1646_v43, %v1647_v33  ;;  %v2082_v56 = vrot.slane %v2080_v46, 4  ;;  %v2540_v61 = vsel %vm7001_vm8, %v5705_v36, %v2539_v37  ;;  %v1497_v43 = vld [vmem:[#allocation2 + $0xb4] sm:$0xe] }
  0xc8   : > { %v5664_v59 = vcombine.low %v1645_v42, %v1648_v55  ;;  %v2085_v62 = vrot.slane %v2083_v49, 5  ;;  %v2093_v63 = vshrl.u32 %v1906_v44, 16  ;;  %v2543_v2 = vsel %vm7001_vm8, %v2541_v48, %v2542_v39  ;;  %v1498_v48 = vld [vmem:[#allocation2 + $0xb8] sm:$0xf]  ;;  %v1499_v49 = vld [vmem:[#allocation2 + $0xbc] sm:$0x1] }
  0xc9   : > { %v2078_v0 = vsel %vm6819_vm4, %v2073_v54, %v2077_v30  ;;  %v2091_v4 = vrot.slane %v2089_v57, 5  ;;  %v2099_v5 = vshll.u32 %v1907_v45, 16  ;;  %v5649_v7 = vrot.slane %v1494_v52, 9  ;;  %v1909_v30 = vld [vmem:[#allocation2 + $0x64] sm:$0xf]  ;;  %6517 = vmatpush3.bf16.msra.mxu0 %v6700_v26 }
  0xca   : > { %v5688_v6 = vcombine.low %v2068_v47, %v2078_v0  ;;  %v2086_v8 = vor.u32 %v2085_v62, %v2082_v56  ;;  %v2095_v9 = vrot.slane %v2093_v63, 4  ;;  %v1651_v12 = vrot.slane %v1495_v60, 5  ;;  %v2423_v57 = vld [vmem:[#allocation2 + $0x6c] sm:$0xe]  ;;  %v2425_v0 = vld [vmem:[#allocation2 + $0x74] sm:$0x1] }
  0xcb   : > { %4650 = vmatmul.mubr.bf16.gmra.mrb[68].mxu1 %v5664_v59  ;;  %v2101_v11 = vrot.slane %v2099_v5, 5  ;;  %v1654_v13 = vrot.slane %v1496_v10, 5  ;;  %v551_v29 = vsel %vm6831_vm5, 0, %v500_v50  ;;  %v5721_v19 = vcombine.low %v2540_v61, %v2543_v2  ;;  %v1911_v60 = vld [vmem:[#allocation2 + $0x6c] sm:$0xf] }
  0xcc   : > { %4739 = vmatmul.mubr.bf16.gmra.mrb[64].mxu0 %v5687_v18  ;;  %4657 = vmatprep.mubr.bf16.mxu1 %v6685_v58  ;;  %v2087_v14 = vrot.slane %v2086_v8, 4  ;;  %v2096_v15 = vor.u32 %v2095_v9, %v2091_v4  ;;  %v5600_v17 = vcombine.low %v551_v29, %v551_v29  ;;  %v5601_v18 = vcombine.high %v551_v29, %v551_v29  ;;  %v2424_v58 = vld [vmem:[#allocation2 + $0x70] sm:$0xf] }
  0xcd   : > { %4746 = vmatprep.mubr.bf16.mxu0 %v5720_v20  ;;  %v1652_v21 = vsel %vm7001_vm8, %v5649_v7, %v1651_v12  ;;  %v1653_v22 = vrot.slane %v1651_v12, 4  ;;  %v5706_v20 = vrot.slane %v2420_v16, 9  ;;  %v2546_v24 = vrot.slane %v2421_v53, 5  ;;  %v1912_v10 = vld [vmem:[#allocation2 + $0x70] sm:$0xf] }
  0xce   : > { %v2097_v23 = vrot.slane %v2096_v15, 4  ;;  %v2549_v32 = vrot.slane %v2422_v1, 5  ;;  %790 = vst [vmem:[#allocation2 + $0xc0] sm:$0xf] %v5600_v17  ;;  %791 = vst [vmem:[#allocation2 + $0xc4] sm:$0xf] %v5601_v18  ;;  %v2092_v35 = vsel %vm6819_vm4, %v2087_v14, %v2091_v4 }
  0xcf   : > { %v1655_v27 = vsel %vm7001_vm8, %v1653_v22, %v1654_v13  ;;  %v2104_v33 = vshrl.u32 %v1908_v25, 16  ;;  %v2107_v34 = vshll.u32 %v1908_v25, 16  ;;  %v2548_v39 = vrot.slane %v2546_v24, 4  ;;  %v1913_v13 = vld [vmem:[#allocation2 + $0x74] sm:$0x1] }
  0xd0   : > { %v2102_v36 = vsel %vm6819_vm4, %v2097_v23, %v2101_v11  ;;  %v5665_v37 = vcombine.low %v1652_v21, %v1655_v27  ;;  %v2113_v42 = vshll.u32 %v1909_v30, 16  ;;  %v2547_v44 = vsel %vm7001_vm8, %v5706_v20, %v2546_v24  ;;  %v2832_v18 = vld [vmem:[#allocation2 + $0x18] sm:$0xf]  ;;  %v2833_v1 = vld [vmem:[#allocation2 + $0x1c] sm:$0xf] }
  0xd1   : > { %v2106_v40 = vrot.slane %v2104_v33, 4  ;;  %v2109_v41 = vrot.slane %v2107_v34, 5  ;;  %v2550_v45 = vsel %vm7001_vm8, %v2548_v39, %v2549_v32  ;;  %v2117_v46 = vshrl.u32 %v1909_v30, 16  ;;  %v2834_v20 = vld [vmem:[#allocation2 + $0x20] sm:$0x1] }
  0xd2   : > { %v2123_v47 = vshll.u32 %v1910_v31, 16  ;;  %v5689_v50 = vcombine.low %v2092_v35, %v2102_v36  ;;  %v2115_v55 = vrot.slane %v2113_v42, 5  ;;  %v5650_v56 = vrot.slane %v1497_v43, 9  ;;  %v2427_v43 = vld [vmem:[#allocation2 + $0x7c] sm:$0xf] }
  0xd3   : > { %4658 = vmatmul.mubr.bf16.gmra.mrb[72].mxu1 %v5665_v37  ;;  %v2110_v54 = vor.u32 %v2109_v41, %v2106_v40  ;;  %v2119_v59 = vrot.slane %v2117_v46, 4  ;;  %v1658_v62 = vrot.slane %v1498_v48, 5  ;;  %v1661_v63 = vrot.slane %v1499_v49, 5  ;;  %v2426_v37 = vld [vmem:[#allocation2 + $0x78] sm:$0xe] }
  0xd4   : > { %4747 = vmatmul.mubr.bf16.gmra.mrb[68].mxu0 %v5688_v6  ;;  %v2125_v61 = vrot.slane %v2123_v47, 5  ;;  %v5722_v2 = vcombine.low %v2547_v44, %v2550_v45  ;;  %v5707_v9 = vrot.slane %v2423_v57, 9  ;;  %v2553_v11 = vrot.slane %v2424_v58, 5  ;;  %v2428_v48 = vld [vmem:[#allocation2 + $0x80] sm:$0x1] }
  0xd5   : > { %4754 = vmatprep.mubr.bf16.mxu0 %v5721_v19  ;;  %v2111_v4 = vrot.slane %v2110_v54, 4  ;;  %v6690_v5 = vld [vmem:[#allocation2 + $0xc0] sm:$0xff]   ;;  %v2120_v52 = vor.u32 %v2119_v59, %v2115_v55  ;;  %v1659_v6 = vsel %vm7001_vm8, %v5650_v56, %v1658_v62  ;;  %v1660_v8 = vrot.slane %v1658_v62, 4  ;;  %v1914_v56 = vld [vmem:[#allocation2 + $0x78] sm:$0xf] }
  0xd6   : > { %4665 = vmatprep.mubr.bf16.mxu1 %v6690_v5  ;;  %v2556_v12 = vrot.slane %v2425_v0, 5  ;;  %v2128_v29 = vshrl.u32 %v1911_v60, 16  ;;  %v2131_v16 = vshll.u32 %v1911_v60, 16  ;;  %v2137_v17 = vshll.u32 %v1912_v10, 16  ;;  %v1915_v62 = vld [vmem:[#allocation2 + $0x7c] sm:$0xf] }
  0xd7   : > { %v2116_v7 = vsel %vm6819_vm4, %v2111_v4, %v2115_v55  ;;  %v2121_v14 = vrot.slane %v2120_v52, 4  ;;  %v1662_v15 = vsel %vm7001_vm8, %v1660_v8, %v1661_v63  ;;  %v2554_v21 = vsel %vm7001_vm8, %v5707_v9, %v2553_v11  ;;  %v1916_v5 = vld [vmem:[#allocation2 + $0x80] sm:$0x1]  ;;  %v2835_v60 = vld [vmem:[#allocation2 + $0x24] sm:$0xf] }
  0xd8   : > { %v5666_v19 = vcombine.low %v1659_v6, %v1662_v15  ;;  %v2555_v22 = vrot.slane %v2553_v11, 4  ;;  %v2130_v53 = vrot.slane %v2128_v29, 4  ;;  %v2133_v24 = vrot.slane %v2131_v16, 5  ;;  %v2836_v16 = vld [vmem:[#allocation2 + $0x28] sm:$0xf] }
  0xd9   : > { %v2126_v23 = vsel %vm6819_vm4, %v2121_v14, %v2125_v61  ;;  %v2139_v32 = vrot.slane %v2137_v17, 5  ;;  %v2141_v25 = vshrl.u32 %v1912_v10, 16  ;;  %v2147_v30 = vshll.u32 %v1913_v13, 16 }
  0xda   : > { %v5690_v26 = vcombine.low %v2116_v7, %v2126_v23  ;;  %v2557_v27 = vsel %vm7001_vm8, %v2555_v22, %v2556_v12  ;;  %v2881_v31 = vshrl.u32 %v2832_v18, 16  ;;  %v2134_v34 = vor.u32 %v2133_v24, %v2130_v53  ;;  %v2837_v53 = vld [vmem:[#allocation2 + $0x2c] sm:$0x1] }
  0xdb   : > { %4666 = vmatmul.mubr.bf16.gmra.mrb[76].mxu1 %v5666_v19  ;;  %v5723_v33 = vcombine.low %v2554_v21, %v2557_v27  ;;  %v2143_v35 = vrot.slane %v2141_v25, 4  ;;  %v2884_v36 = vshll.u32 %v2832_v18, 16  ;;  %v2149_v39 = vrot.slane %v2147_v30, 5  ;;  %v6692_v18 = vld [vmem:[#allocation2 + $0x18] sm:$0xff]   ;;  %v2430_v25 = vld [vmem:[#allocation2 + $0x88] sm:$0xf] }
  0xdc   : > { %4755 = vmatmul.mubr.bf16.gmra.mrb[72].mxu0 %v5689_v50  ;;  %v2883_v40 = vrot.slane %v2881_v31, 4  ;;  %v2890_v41 = vshll.u32 %v2833_v1, 16  ;;  %v2894_v42 = vshrl.u32 %v2833_v1, 16  ;;  %v2135_v44 = vrot.slane %v2134_v34, 4 }
  0xdd   : > { %4762 = vmatprep.mubr.bf16.mxu0 %v5722_v2  ;;  %v2144_v45 = vor.u32 %v2143_v35, %v2139_v32  ;;  %v2886_v46 = vrot.slane %v2884_v36, 5  ;;  %v2900_v47 = vshll.u32 %v2834_v20, 16  ;;  %v5708_v54 = vrot.slane %v2426_v37, 9 }
  0xde   : > { %v2892_v49 = vrot.slane %v2890_v41, 5  ;;  %v2896_v50 = vrot.slane %v2894_v42, 4  ;;  %v2560_v55 = vrot.slane %v2427_v43, 5  ;;  %v2140_v57 = vsel %vm6819_vm4, %v2135_v44, %v2139_v32  ;;  %v2429_v32 = vld [vmem:[#allocation2 + $0x84] sm:$0xe] }
  0xdf   : > { %v2145_v58 = vrot.slane %v2144_v45, 4  ;;  %v2887_v59 = vor.u32 %v2886_v46, %v2883_v40  ;;  %v2902_v61 = vrot.slane %v2900_v47, 5  ;;  %v2563_v4 = vrot.slane %v2428_v48, 5 }
  0xe0   : > { %v2897_v63 = vor.u32 %v2896_v50, %v2892_v49  ;;  %v2561_v0 = vsel %vm7001_vm8, %v5708_v54, %v2560_v55  ;;  %v2562_v2 = vrot.slane %v2560_v55, 4  ;;  %v2152_v8 = vshrl.u32 %v1914_v56, 16 }
  0xe1   : > { %v2150_v52 = vsel %vm6819_vm4, %v2145_v58, %v2149_v39  ;;  %v2888_v6 = vrot.slane %v2887_v59, 4  ;;  %v2155_v9 = vshll.u32 %v1914_v56, 16  ;;  %v2161_v12 = vshll.u32 %v1915_v62, 16  ;;  %v1917_v39 = vld [vmem:[#allocation2 + $0x84] sm:$0xf] }
  0xe2   : > { %v5691_v10 = vcombine.low %v2140_v57, %v2150_v52  ;;  %v2898_v7 = vrot.slane %v2897_v63, 4  ;;  %v2564_v11 = vsel %vm7001_vm8, %v2562_v2, %v2563_v4  ;;  %v2154_v14 = vrot.slane %v2152_v8, 4  ;;  %v1919_v56 = vld [vmem:[#allocation2 + $0x8c] sm:$0x1]  ;;  %v2838_v58 = vld [vmem:[#allocation2 + $0x30] sm:$0xf] }
  0xe3   : > { %v2893_v13 = vsel %vm6819_vm4, %v2888_v6, %v2892_v49  ;;  %v5724_v29 = vcombine.low %v2561_v0, %v2564_v11  ;;  %v2157_v15 = vrot.slane %v2155_v9, 5  ;;  %v2163_v19 = vrot.slane %v2161_v12, 5  ;;  %v1918_v49 = vld [vmem:[#allocation2 + $0x88] sm:$0xf]  ;;  %v2839_v11 = vld [vmem:[#allocation2 + $0x34] sm:$0xf] }
  0xe4   : > { %4763 = vmatmul.mubr.bf16.gmra.mrb[76].mxu0 %v5690_v26  ;;  %v2903_v17 = vsel %vm6819_vm4, %v2898_v7, %v2902_v61  ;;  %v2165_v21 = vshrl.u32 %v1915_v62, 16  ;;  %v2171_v22 = vshll.u32 %v1916_v5, 16  ;;  %v2905_v23 = vshrl.u32 %v2835_v60, 16 }
  0xe5   : > { %4770 = vmatprep.mubr.bf16.mxu0 %v5723_v33  ;;  %v5747_v1 = vcombine.low %v2893_v13, %v2903_v17  ;;  %v2158_v20 = vor.u32 %v2157_v15, %v2154_v14  ;;  %v2908_v24 = vshll.u32 %v2835_v60, 16  ;;  %v2914_v30 = vshll.u32 %v2836_v16, 16  ;;  %v2431_v33 = vld [vmem:[#allocation2 + $0x8c] sm:$0x1]  ;;  %v6693_v13 = vld [vmem:[#allocation2 + $0x24] sm:$0xff]  }
  0xe6   : > { %v2167_v26 = vrot.slane %v2165_v21, 4  ;;  %v2173_v27 = vrot.slane %v2171_v22, 5  ;;  %v2918_v31 = vshrl.u32 %v2836_v16, 16  ;;  %v2907_v35 = vrot.slane %v2905_v23, 4  ;;  %v2840_v16 = vld [vmem:[#allocation2 + $0x38] sm:$0x1] }
  0xe7   : > { %4867 = vmatprep.mubr.bf16.mxu1 %v5747_v1  ;;  %v2159_v34 = vrot.slane %v2158_v20, 4  ;;  %v2910_v36 = vrot.slane %v2908_v24, 5  ;;  %v2924_v37 = vshll.u32 %v2837_v53, 16  ;;  %v2916_v41 = vrot.slane %v2914_v30, 5  ;;  %v2432_v22 = vld [vmem:[#allocation2 + $0x90] sm:$0xe] }
  0xe8   : > { %4868 = vmatmul.mubr.bf16.vlgmr.msra.gmra.mrb[80].mxu1 %v6692_v18  ;;  %v2168_v40 = vor.u32 %v2167_v26, %v2163_v19  ;;  %v2920_v42 = vrot.slane %v2918_v31, 4  ;;  %v5709_v43 = vrot.slane %v2429_v32, 9  ;;  %v2567_v48 = vrot.slane %v2430_v25, 5  ;;  %v2433_v53 = vld [vmem:[#allocation2 + $0x94] sm:$0xf] }
  0xe9   : > { %v2164_v45 = vsel %vm6819_vm4, %v2159_v34, %v2163_v19  ;;  %v2911_v46 = vor.u32 %v2910_v36, %v2907_v35  ;;  %v2926_v47 = vrot.slane %v2924_v37, 5  ;;  %v2570_v55 = vrot.slane %v2431_v33, 5  ;;  %v2434_v32 = vld [vmem:[#allocation2 + $0x98] sm:$0x1]  ;;  %v1920_v31 = vld [vmem:[#allocation2 + $0x90] sm:$0xf] }
  0xea   : > { %v2169_v50 = vrot.slane %v2168_v40, 4  ;;  %v2921_v54 = vor.u32 %v2920_v42, %v2916_v41  ;;  %v2176_v57 = vshrl.u32 %v1917_v39, 16  ;;  %v2568_v62 = vsel %vm7001_vm8, %v5709_v43, %v2567_v48  ;;  %v1921_v37 = vld [vmem:[#allocation2 + $0x94] sm:$0xf] }
  0xeb   : > { %v2912_v61 = vrot.slane %v2911_v46, 4  ;;  %v2569_v63 = vrot.slane %v2567_v48, 4  ;;  %v2179_v0 = vshll.u32 %v1917_v39, 16  ;;  %v2185_v6 = vshll.u32 %v1918_v49, 16 }
  0xec   : > { %4771 = vmatmul.mubr.bf16.gmra.mrb[80].mxu0 %v5691_v10  ;;  %v2174_v4 = vsel %vm6819_vm4, %v2169_v50, %v2173_v27  ;;  %v2922_v5 = vrot.slane %v2921_v54, 4  ;;  %v2178_v52 = vrot.slane %v2176_v57, 4  ;;  %v2189_v15 = vshrl.u32 %v1918_v49, 16 }
  0xed   : > { %4778 = vmatprep.mubr.bf16.mxu0 %v5724_v29  ;;  %v5692_v9 = vcombine.low %v2164_v45, %v2174_v4  ;;  %v2917_v60 = vsel %vm6819_vm4, %v2912_v61, %v2916_v41  ;;  %v2571_v10 = vsel %vm7001_vm8, %v2569_v63, %v2570_v55  ;;  %v2181_v7 = vrot.slane %v2179_v0, 5  ;;  %v1922_v61 = vld [vmem:[#allocation2 + $0x98] sm:$0x1] }
  0xee   : > { %v2927_v12 = vsel %vm6819_vm4, %v2922_v5, %v2926_v47  ;;  %v5725_v29 = vcombine.low %v2568_v62, %v2571_v10  ;;  %v2187_v14 = vrot.slane %v2185_v6, 5  ;;  %v2195_v19 = vshll.u32 %v1919_v56, 16  ;;  %v2841_v6 = vld [vmem:[#allocation2 + $0x3c] sm:$0xf] }
  0xef   : > { %v5748_v17 = vcombine.low %v2917_v60, %v2927_v12  ;;  %v2182_v18 = vor.u32 %v2181_v7, %v2178_v52  ;;  %v2929_v21 = vshrl.u32 %v2838_v58, 16  ;;  %v2191_v1 = vrot.slane %v2189_v15, 4  ;;  %v2843_v12 = vld [vmem:[#allocation2 + $0x44] sm:$0x1] }
  0xf0   : > { %v2932_v20 = vshll.u32 %v2838_v58, 16  ;;  %v2938_v23 = vshll.u32 %v2839_v11, 16  ;;  %v2942_v24 = vshrl.u32 %v2839_v11, 16  ;;  %v2197_v26 = vrot.slane %v2195_v19, 5  ;;  %v6695_v58 = vld [vmem:[#allocation2 + $0x30] sm:$0xff]  }
  0xf1   : > { %4875 = vmatprep.mubr.bf16.mxu1 %v5748_v17  ;;  %v2183_v25 = vrot.slane %v2182_v18, 4  ;;  %v2931_v27 = vrot.slane %v2929_v21, 4  ;;  %v2948_v30 = vshll.u32 %v2840_v16, 16  ;;  %v2192_v33 = vor.u32 %v2191_v1, %v2187_v14  ;;  %v2436_v18 = vld [vmem:[#allocation2 + $0xa0] sm:$0xf] }
  0xf2   : > { %4876 = vmatmul.mubr.bf16.gmra.mrb[84].mxu1 %v6693_v13  ;;  %v2934_v34 = vrot.slane %v2932_v20, 5  ;;  %v2940_v35 = vrot.slane %v2938_v23, 5  ;;  %v2944_v36 = vrot.slane %v2942_v24, 4  ;;  %v5710_v41 = vrot.slane %v2432_v22, 9  ;;  %v2435_v13 = vld [vmem:[#allocation2 + $0x9c] sm:$0xe] }
  0xf3   : > { %v2188_v39 = vsel %vm6819_vm4, %v2183_v25, %v2187_v14  ;;  %v2950_v40 = vrot.slane %v2948_v30, 5  ;;  %v2574_v42 = vrot.slane %v2433_v53, 5  ;;  %v2193_v43 = vrot.slane %v2192_v33, 4  ;;  %v2437_v19 = vld [vmem:[#allocation2 + $0xa4] sm:$0x1] }
  0xf4   : > { %4779 = vmatmul.mubr.bf16.gmra.mrb[84].mxu0 %v5692_v9  ;;  %v2935_v45 = vor.u32 %v2934_v34, %v2931_v27  ;;  %v2945_v46 = vor.u32 %v2944_v36, %v2940_v35  ;;  %v2577_v47 = vrot.slane %v2434_v32, 5  ;;  %v2200_v50 = vshrl.u32 %v1920_v31, 16  ;;  %v2842_v9 = vld [vmem:[#allocation2 + $0x40] sm:$0xf]  ;;  %v1923_v20 = vld [vmem:[#allocation2 + $0x9c] sm:$0xf] }
  0xf5   : > { %4786 = vmatprep.mubr.bf16.mxu0 %v5725_v29  ;;  %v2575_v48 = vsel %vm7001_vm8, %v5710_v41, %v2574_v42  ;;  %v2576_v49 = vrot.slane %v2574_v42, 4  ;;  %v2203_v54 = vshll.u32 %v1920_v31, 16  ;;  %v2198_v55 = vsel %vm6819_vm4, %v2193_v43, %v2197_v26  ;;  %v1924_v23 = vld [vmem:[#allocation2 + $0xa0] sm:$0xf] }
  0xf6   : > { %v2936_v56 = vrot.slane %v2935_v45, 4  ;;  %v2946_v57 = vrot.slane %v2945_v46, 4  ;;  %v2209_v62 = vshll.u32 %v1921_v37, 16  ;;  %v5693_v0 = vcombine.low %v2188_v39, %v2198_v55  ;;  %v1925_v45 = vld [vmem:[#allocation2 + $0xa4] sm:$0x1] }
  0xf7   : > { %v2578_v4 = vsel %vm7001_vm8, %v2576_v49, %v2577_v47  ;;  %v2202_v5 = vrot.slane %v2200_v50, 4  ;;  %v2205_v52 = vrot.slane %v2203_v54, 5  ;;  %v2213_v16 = vshrl.u32 %v1921_v37, 16 }
  0xf8   : > { %v2941_v60 = vsel %vm6819_vm4, %v2936_v56, %v2940_v35  ;;  %v2951_v10 = vsel %vm6819_vm4, %v2946_v57, %v2950_v40  ;;  %v5726_v7 = vcombine.low %v2575_v48, %v2578_v4  ;;  %v2211_v11 = vrot.slane %v2209_v62, 5  ;;  %v2844_v56 = vld [vmem:[#allocation2 + $0x48] sm:$0xf]  ;;  %v2845_v4 = vld [vmem:[#allocation2 + $0x4c] sm:$0xf] }
  0xf9   : > { %v5749_v14 = vcombine.low %v2941_v60, %v2951_v10  ;;  %v2206_v15 = vor.u32 %v2205_v52, %v2202_v5  ;;  %v2219_v17 = vshll.u32 %v1922_v61, 16  ;;  %v2953_v21 = vshrl.u32 %v2841_v6, 16  ;;  %v6696_v60 = vld [vmem:[#allocation2 + $0x3c] sm:$0xff]  }
  0xfa   : > { %v2956_v22 = vshll.u32 %v2841_v6, 16  ;;  %v2962_v53 = vshll.u32 %v2842_v9, 16  ;;  %v2966_v1 = vshrl.u32 %v2842_v9, 16  ;;  %v2215_v32 = vrot.slane %v2213_v16, 4 }
  0xfb   : > { %4883 = vmatprep.mubr.bf16.mxu1 %v5749_v14  ;;  %v2207_v24 = vrot.slane %v2206_v15, 4  ;;  %v2221_v25 = vrot.slane %v2219_v17, 5  ;;  %v2972_v26 = vshll.u32 %v2843_v12, 16  ;;  %v2955_v27 = vrot.slane %v2953_v21, 4  ;;  %v2438_v15 = vld [vmem:[#allocation2 + $0xa8] sm:$0xe] }
  0xfc   : > { %4787 = vmatmul.mubr.bf16.gmra.mrb[88].mxu0 %v5693_v0  ;;  %4884 = vmatmul.mubr.bf16.gmra.mrb[88].mxu1 %v6695_v58  ;;  %v2958_v30 = vrot.slane %v2956_v22, 5  ;;  %v2964_v31 = vrot.slane %v2962_v53, 5  ;;  %v2968_v33 = vrot.slane %v2966_v1, 4  ;;  %v2216_v35 = vor.u32 %v2215_v32, %v2211_v11  ;;  %v2439_v22 = vld [vmem:[#allocation2 + $0xac] sm:$0xf] }
  0xfd   : > { %4794 = vmatprep.mubr.bf16.mxu0 %v5726_v7  ;;  %v2212_v34 = vsel %vm6819_vm4, %v2207_v24, %v2211_v11  ;;  %v2974_v36 = vrot.slane %v2972_v26, 5  ;;  %v5711_v37 = vrot.slane %v2435_v13, 9  ;;  %v2581_v41 = vrot.slane %v2436_v18, 5  ;;  %v2846_v7 = vld [vmem:[#allocation2 + $0x50] sm:$0x1] }
  0xfe   : > { %v2959_v39 = vor.u32 %v2958_v30, %v2955_v27  ;;  %v2969_v40 = vor.u32 %v2968_v33, %v2964_v31  ;;  %v2584_v42 = vrot.slane %v2437_v19, 5  ;;  %v2217_v43 = vrot.slane %v2216_v35, 4  ;;  %v2440_v32 = vld [vmem:[#allocation2 + $0xb0] sm:$0x1]  ;;  %v1926_v30 = vld [vmem:[#allocation2 + $0xa8] sm:$0xf] }
  0xff   : > { %v2224_v46 = vshrl.u32 %v1923_v20, 16  ;;  %v2227_v47 = vshll.u32 %v1923_v20, 16  ;;  %v2233_v48 = vshll.u32 %v1924_v23, 16  ;;  %v2582_v54 = vsel %vm7001_vm8, %v5711_v37, %v2581_v41 }
 0x100   : > { %v2960_v49 = vrot.slane %v2959_v39, 4  ;;  %v2970_v50 = vrot.slane %v2969_v40, 4  ;;  %v2583_v55 = vrot.slane %v2581_v41, 4  ;;  %v2222_v58 = vsel %vm6819_vm4, %v2217_v43, %v2221_v25 }
 0x101   : > { %v7359_v44 = vpop.f32.mrb[0].mxu0  ;;  %v2226_v61 = vrot.slane %v2224_v46, 4  ;;  %v2229_v62 = vrot.slane %v2227_v47, 5  ;;  %v7403_v0 = vrot.slane %v2233_v48, 5  ;;  %v5694_v52 = vcombine.low %v2212_v34, %v2222_v58  ;;  %v1928_v46 = vld [vmem:[#allocation2 + $0xb0] sm:$0x1] }
 0x102   : > { %v7363_v59 = vpop.f32.mrb[1].mxu0  ;;  %v2965_v6 = vsel %vm6819_vm4, %v2960_v49, %v2964_v31  ;;  %v2975_v9 = vsel %vm6819_vm4, %v2970_v50, %v2974_v36  ;;  %v2585_v10 = vsel %vm7001_vm8, %v2583_v55, %v2584_v42  ;;  %v2237_v14 = vshrl.u32 %v1924_v23, 16  ;;  %v1927_v36 = vld [vmem:[#allocation2 + $0xac] sm:$0xf]  ;;  %v2847_v49 = vld [vmem:[#allocation2 + $0x54] sm:$0xf] }
 0x103   : > { %v7367_v2 = vpop.f32.mrb[2].mxu0  ;;  %v5750_v11 = vcombine.low %v2965_v6, %v2975_v9  ;;  %v5727_v12 = vcombine.low %v2582_v54, %v2585_v10  ;;  %v2230_v13 = vor.u32 %v2229_v62, %v2226_v61  ;;  %v2243_v17 = vshll.u32 %v1925_v45, 16  ;;  %v2848_v61 = vld [vmem:[#allocation2 + $0x58] sm:$0xf] }
 0x104   : > { %v7371_v8 = vpop.f32.mrb[3].mxu0  ;;  %4795 = vmatmul.mubr.bf16.gmra.mrb[92].mxu0 %v5694_v52  ;;  %v2977_v18 = vshrl.u32 %v2844_v56, 16  ;;  %v2980_v19 = vshll.u32 %v2844_v56, 16  ;;  %v2986_v21 = vshll.u32 %v2845_v4, 16  ;;  %v2239_v1 = vrot.slane %v2237_v14, 4  ;;  %v6698_v52 = vld [vmem:[#allocation2 + $0x48] sm:$0xff]  }
 0x105   : > { %v7385_v63 = vpop.f32.mrb[0].mxu1  ;;  %4891 = vmatprep.mubr.bf16.mxu1 %v5750_v11  ;;  %4802 = vmatprep.mubr.bf16.mxu0 %v5727_v12  ;;  %v2231_v53 = vrot.slane %v2230_v13, 4  ;;  %v2990_v20 = vshrl.u32 %v2845_v4, 16  ;;  %v2996_v24 = vshll.u32 %v2846_v7, 16  ;;  %v2245_v25 = vrot.slane %v2243_v17, 5 }
 0x106   : > { %v7393_v29 = vpop.f32.mrb[1].mxu1  ;;  %4892 = vmatmul.mubr.bf16.gmra.mrb[92].mxu1 %v6696_v60  ;;  %v2979_v26 = vrot.slane %v2977_v18, 4  ;;  %v2982_v23 = vrot.slane %v2980_v19, 5  ;;  %v2988_v27 = vrot.slane %v2986_v21, 5  ;;  %v2240_v33 = vor.u32 %v2239_v1, %v7403_v0  ;;  %v2849_v60 = vld [vmem:[#allocation2 + $0x5c] sm:$0x1] }
 0x107   : > { %v7399_v57 = vpop.f32.mrb[2].mxu1  ;;  %v2236_v31 = vsel %vm6819_vm4, %v2231_v53, %v7403_v0  ;;  %v2992_v34 = vrot.slane %v2990_v20, 4  ;;  %v2998_v35 = vrot.slane %v2996_v24, 5  ;;  %v5712_v39 = vrot.slane %v2438_v15, 9  ;;  %v2441_v21 = vld [vmem:[#allocation2 + $0xb4] sm:$0xe] }
 0x108   : > { %v7405_v5 = vpop.f32.mrb[3].mxu1  ;;  %v2983_v37 = vor.u32 %v2982_v23, %v2979_v26  ;;  %v2588_v40 = vrot.slane %v2439_v22, 5  ;;  %v2591_v41 = vrot.slane %v2440_v32, 5  ;;  %v2241_v43 = vrot.slane %v2240_v33, 4  ;;  %v2442_v32 = vld [vmem:[#allocation2 + $0xb8] sm:$0xf] }
 0x109   : > { %v2993_v45 = vor.u32 %v2992_v34, %v2988_v27  ;;  %v2248_v47 = vshrl.u32 %v1926_v30, 16  ;;  %v2251_v48 = vshll.u32 %v1926_v30, 16  ;;  %v2257_v58 = vshll.u32 %v1927_v36, 16 }
 0x10a   : > { %v2984_v54 = vrot.slane %v2983_v37, 4  ;;  %v2589_v55 = vsel %vm7001_vm8, %v5712_v39, %v2588_v40  ;;  %v2590_v56 = vrot.slane %v2588_v40, 4  ;;  %v2246_v0 = vsel %vm6819_vm4, %v2241_v43, %v2245_v25  ;;  %v1929_v37 = vld [vmem:[#allocation2 + $0xb4] sm:$0xf] }
 0x10b   : > { %v2994_v4 = vrot.slane %v2993_v45, 4  ;;  %v2250_v6 = vrot.slane %v2248_v47, 4  ;;  %v2253_v9 = vrot.slane %v2251_v48, 5  ;;  %v5695_v7 = vcombine.low %v2236_v31, %v2246_v0  ;;  %v2443_v31 = vld [vmem:[#allocation2 + $0xbc] sm:$0x1] }
 0x10c   : > { %v2989_v11 = vsel %vm6819_vm4, %v2984_v54, %v2988_v27  ;;  %v2592_v12 = vsel %vm7001_vm8, %v2590_v56, %v2591_v41  ;;  %v2259_v13 = vrot.slane %v2257_v58, 5  ;;  %v2261_v19 = vshrl.u32 %v1927_v36, 16 }
 0x10d   : > { %v7413_v16 = vpop.f32.mrb[4].mxu0  ;;  %v2999_v15 = vsel %vm6819_vm4, %v2994_v4, %v2998_v35  ;;  %v5728_v17 = vcombine.low %v2589_v55, %v2592_v12  ;;  %v2254_v18 = vor.u32 %v2253_v9, %v2250_v6  ;;  %4803 = vmatmul.mubr.bf16.gmra.mrb[96].mxu0 %v5695_v7  ;;  %v2267_v1 = vshll.u32 %v1928_v46, 16  ;;  %v2850_v4 = vld [vmem:[#allocation2 + $0x60] sm:$0xf] }
 0x10e   : > { %v7419_v42 = vpop.f32.mrb[5].mxu0  ;;  %v5751_v53 = vcombine.low %v2989_v11, %v2999_v15  ;;  %v3001_v20 = vshrl.u32 %v2847_v49, 16  ;;  %v3004_v24 = vshll.u32 %v2847_v49, 16  ;;  %v2263_v23 = vrot.slane %v2261_v19, 4  ;;  %v1930_v49 = vld [vmem:[#allocation2 + $0xb8] sm:$0xf] }
 0x10f   : > { %v7421_v50 = vpop.f32.mrb[6].mxu0  ;;  %v7429_v10 = vpop.f32.mrb[4].mxu1  ;;  %4810 = vmatprep.mubr.bf16.mxu0 %v5728_v17  ;;  %v2255_v26 = vrot.slane %v2254_v18, 4  ;;  %v3010_v27 = vshll.u32 %v2848_v61, 16  ;;  %v3014_v30 = vshrl.u32 %v2848_v61, 16  ;;  %v2269_v33 = vrot.slane %v2267_v1, 5 }
 0x110   : > { %v7425_v62 = vpop.f32.mrb[7].mxu0  ;;  %v7435_v14 = vpop.f32.mrb[5].mxu1  ;;  %4899 = vmatprep.mubr.bf16.mxu1 %v5751_v53  ;;  %v3003_v34 = vrot.slane %v3001_v20, 4  ;;  %v3006_v35 = vrot.slane %v3004_v24, 5  ;;  %v3020_v36 = vshll.u32 %v2849_v60, 16  ;;  %v2264_v40 = vor.u32 %v2263_v23, %v2259_v13 }
 0x111   : > { %v7439_v22 = vpop.f32.mrb[6].mxu1  ;;  %4900 = vmatmul.mubr.bf16.gmra.mrb[96].mxu1 %v6698_v52  ;;  %v2260_v39 = vsel %vm6819_vm4, %v2255_v26, %v2259_v13  ;;  %v3012_v41 = vrot.slane %v3010_v27, 5  ;;  %v3016_v43 = vrot.slane %v3014_v30, 4  ;;  %v5713_v47 = vrot.slane %v2441_v21, 9  ;;  %v1931_v61 = vld [vmem:[#allocation2 + $0xbc] sm:$0x1] }
 0x112   : > { %v7441_v25 = vpop.f32.mrb[7].mxu1  ;;  %v3007_v45 = vor.u32 %v3006_v35, %v3003_v34  ;;  %v3022_v46 = vrot.slane %v3020_v36, 5  ;;  %v2595_v48 = vrot.slane %v2442_v32, 5  ;;  %v2265_v55 = vrot.slane %v2264_v40, 4  ;;  %v2851_v20 = vld [vmem:[#allocation2 + $0x64] sm:$0xf] }
 0x113   : > { %v3017_v56 = vor.u32 %v3016_v43, %v3012_v41  ;;  %v2598_v58 = vrot.slane %v2443_v31, 5  ;;  %v2272_v0 = vshrl.u32 %v1929_v37, 16  ;;  %v2275_v7 = vshll.u32 %v1929_v37, 16  ;;  %v6699_v26 = vld [vmem:[#allocation2 + $0x54] sm:$0xff]   ;;  %v2852_v31 = vld [vmem:[#allocation2 + $0x68] sm:$0x1] }
 0x114   : > { %v3008_v6 = vrot.slane %v3007_v45, 4  ;;  %v2596_v9 = vsel %vm7001_vm8, %v5713_v47, %v2595_v48  ;;  %v2597_v60 = vrot.slane %v2595_v48, 4  ;;  %v2270_v12 = vsel %vm6819_vm4, %v2265_v55, %v2269_v33  ;;  %v2444_v43 = vld [vmem:[#allocation2 + $0xc0] sm:$0xe]  ;;  %v2445_v55 = vld [vmem:[#allocation2 + $0xc4] sm:$0xf] }
 0x115   : > { %v7445_v54 = vpop.f32.mrb[8].mxu0  ;;  %v3018_v13 = vrot.slane %v3017_v56, 4  ;;  %v2274_v15 = vrot.slane %v2272_v0, 4  ;;  %v2281_v17 = vshll.u32 %v1930_v49, 16  ;;  %v5696_v19 = vcombine.low %v2260_v39, %v2270_v12 }
 0x116   : > { %v7447_v52 = vpop.f32.mrb[9].mxu0  ;;  %v3013_v21 = vsel %vm6819_vm4, %v3008_v6, %v3012_v41  ;;  %v2599_v53 = vsel %vm7001_vm8, %v2597_v60, %v2598_v58  ;;  %v2277_v1 = vrot.slane %v2275_v7, 5  ;;  %v2285_v30 = vshrl.u32 %v1930_v49, 16  ;;  %v1932_v6 = vld [vmem:[#allocation2 + $0xc0] sm:$0xf] }
 0x117   : > { %v7451_v11 = vpop.f32.mrb[10].mxu0  ;;  %v3023_v32 = vsel %vm6819_vm4, %v3018_v13, %v3022_v46  ;;  %v5729_v23 = vcombine.low %v2596_v9, %v2599_v53  ;;  %v2283_v27 = vrot.slane %v2281_v17, 5  ;;  %4811 = vmatmul.mubr.bf16.gmra.mrb[100].mxu0 %v5696_v19  ;;  %v2291_v35 = vshll.u32 %v1931_v61, 16 }
 0x118   : > { %v7455_v18 = vpop.f32.mrb[11].mxu0  ;;  %v5752_v33 = vcombine.low %v3013_v21, %v3023_v32  ;;  %v2278_v34 = vor.u32 %v2277_v1, %v2274_v15  ;;  %v3025_v36 = vshrl.u32 %v2850_v4, 16  ;;  %v2287_v37 = vrot.slane %v2285_v30, 4  ;;  %v1933_v1 = vld [vmem:[#allocation2 + $0xc4] sm:$0xf] }
 0x119   : > { %4818 = vmatprep.mubr.bf16.mxu0 %v5729_v23  ;;  %v3028_v39 = vshll.u32 %v2850_v4, 16  ;;  %v3034_v40 = vshll.u32 %v2851_v20, 16  ;;  %v3038_v41 = vshrl.u32 %v2851_v20, 16  ;;  %v2293_v47 = vrot.slane %v2291_v35, 5  ;;  %v2853_v23 = vld [vmem:[#allocation2 + $0x6c] sm:$0xf] }
 0x11a   : > { %4907 = vmatprep.mubr.bf16.mxu1 %v5752_v33  ;;  %v2279_v45 = vrot.slane %v2278_v34, 4  ;;  %v3027_v46 = vrot.slane %v3025_v36, 4  ;;  %v3044_v48 = vshll.u32 %v2852_v31, 16  ;;  %v2288_v49 = vor.u32 %v2287_v37, %v2283_v27  ;;  %v6701_v33 = vld [vmem:[#allocation2 + $0x60] sm:$0xff]   ;;  %v2855_v36 = vld [vmem:[#allocation2 + $0x74] sm:$0x1] }
 0x11b   : > { %4908 = vmatmul.mubr.bf16.gmra.mrb[100].mxu1 %v6699_v26  ;;  %v3030_v56 = vrot.slane %v3028_v39, 5  ;;  %v3036_v58 = vrot.slane %v3034_v40, 5  ;;  %v3040_v0 = vrot.slane %v3038_v41, 4  ;;  %v7471_v60 = vadd.f32 %v7363_v59, %v7359_v44 }
 0x11c   : > { %v2284_v4 = vsel %vm6819_vm4, %v2279_v45, %v2283_v27  ;;  %v3046_v9 = vrot.slane %v3044_v48, 5  ;;  %v7475_v7 = vadd.f32 %v7371_v8, %v7367_v2  ;;  %v2289_v13 = vrot.slane %v2288_v49, 4 }
 0x11d   : > { %v3031_v15 = vor.u32 %v3030_v56, %v3027_v46  ;;  %v3041_v17 = vor.u32 %v3040_v0, %v3036_v58  ;;  %v7481_v19 = vadd.f32 %v7393_v29, %v7385_v63  ;;  %v567_v44 = vsel %vm6831_vm5, %v7287_v51, 0  ;;  %v2854_v51 = vld [vmem:[#allocation2 + $0x70] sm:$0xf] }
 0x11e   : > { %v5714_v59 = vrot.slane %v2444_v43, 9  ;;  %v2602_v53 = vrot.slane %v2445_v55, 5  ;;  %v2296_v2 = vshrl.u32 %v1932_v6, 16  ;;  %v2294_v8 = vsel %vm6819_vm4, %v2289_v13, %v2293_v47  ;;  %v3344_v43 = vld [vmem:[#allocation2 + $0x18] sm:$0xe] }
 0x11f   : > { %8199 = vst [vmem:[#allocation4_spill] sm:$0xff] %v7481_v19  ;;  %v3032_v20 = vrot.slane %v3031_v15, 4  ;;  %v3042_v32 = vrot.slane %v3041_v17, 4  ;;  %v5602_v26 = vcombine.low %v567_v44, %v567_v44  ;;  %v5697_v27 = vcombine.low %v2284_v4, %v2294_v8  ;;  %v3345_v17 = vld [vmem:[#allocation2 + $0x1c] sm:$0xf] }
 0x120   : > { %v7492_v63 = vsel %vm7001_vm8, %v5714_v59, %v2602_v53  ;;  %v7494_v29 = vrot.slane %v2602_v53, 4  ;;  %v2298_v38 = vrot.slane %v2296_v2, 4  ;;  %v2299_v34 = vshll.u32 %v1932_v6, 16  ;;  %v3382_v19 = vld [vmem:[#allocation2 + $0xb0] sm:$0x1] }
 0x121   : > { %v3037_v30 = vsel %vm6819_vm4, %v3032_v20, %v3036_v58  ;;  %v3047_v31 = vsel %vm6819_vm4, %v3042_v32, %v3046_v9  ;;  %792 = vst [vmem:[#allocation2 + $0xc8] sm:$0x1] %v5602_v26  ;;  %v2305_v35 = vshll.u32 %v1933_v1, 16  ;;  %4819 = vmatmul.mubr.bf16.gmra.mrb[104].mxu0 %v5697_v27  ;;  %v2309_v39 = vshrl.u32 %v1933_v1, 16 }
 0x122   : > { %v5753_v37 = vcombine.low %v3037_v30, %v3047_v31  ;;  %v7502_v40 = vadd.f32 %v7405_v5, %v7399_v57  ;;  %v3049_v41 = vshrl.u32 %v2853_v23, 16  ;;  %v2301_v46 = vrot.slane %v2299_v34, 5 }
 0x123   : > { %v7508_v48 = vrot.slane %v2305_v35, 5  ;;  %v3052_v55 = vshll.u32 %v2853_v23, 16  ;;  %v3058_v49 = vshll.u32 %v2854_v51, 16  ;;  %v2311_v56 = vrot.slane %v2309_v39, 4  ;;  %v3346_v23 = vld [vmem:[#allocation2 + $0x20] sm:$0x1] }
 0x124   : > { %v7461_v24 = vpop.f32.mrb[8].mxu1  ;;  %8200 = vst [vmem:[#allocation5_spill] sm:$0xff] %v7502_v40  ;;  %4915 = vmatprep.mubr.bf16.mxu1 %v5753_v37  ;;  %v3051_v58 = vrot.slane %v3049_v41, 4  ;;  %v3062_v0 = vshrl.u32 %v2854_v51, 16  ;;  %v3068_v6 = vshll.u32 %v2855_v36, 16  ;;  %v2302_v5 = vor.u32 %v2301_v46, %v2298_v38  ;;  %v6702_v41 = vld [vmem:[#allocation2 + $0x6c] sm:$0xff]  }
 0x125   : > { %v7465_v61 = vpop.f32.mrb[9].mxu1  ;;  %4916 = vmatmul.mubr.bf16.gmra.mrb[104].mxu1 %v6701_v33  ;;  %v3054_v9 = vrot.slane %v3052_v55, 5  ;;  %v3060_v13 = vrot.slane %v3058_v49, 5  ;;  %v7516_v15 = vadd.f32 %v7419_v42, %v7413_v16  ;;  %v2312_v53 = vor.u32 %v2311_v56, %v7508_v48  ;;  %v3347_v38 = vld [vmem:[#allocation2 + $0x24] sm:$0xe] }
 0x126   : > { %v7477_v12 = vpop.f32.mrb[10].mxu1  ;;  %v3064_v1 = vrot.slane %v3062_v0, 4  ;;  %v3070_v2 = vrot.slane %v3068_v6, 5  ;;  %v7525_v8 = vadd.f32 %v7425_v62, %v7421_v50  ;;  %v2303_v26 = vrot.slane %v2302_v5, 4  ;;  %v3349_v49 = vld [vmem:[#allocation2 + $0x2c] sm:$0x1] }
 0x127   : > { %v7483_v21 = vpop.f32.mrb[11].mxu1  ;;  %v3055_v16 = vor.u32 %v3054_v9, %v3051_v58  ;;  %v7533_v42 = vadd.f32 %v7435_v14, %v7429_v10  ;;  %v5763_v27 = vrot.slane %v3344_v43, 9  ;;  %v2313_v31 = vrot.slane %v2312_v53, 4  ;;  %v3348_v14 = vld [vmem:[#allocation2 + $0x28] sm:$0xf] }
 0x128   : > { %v2446_v51 = vld [vmem:[#allocation2 + $0xc8] sm:$0x1]  ;;  %v3065_v33 = vor.u32 %v3064_v1, %v3060_v13  ;;  %v3442_v34 = vrot.slane %v3345_v17, 5  ;;  %v7537_v50 = vadd.f32 %v7441_v25, %v7439_v22  ;;  %v2308_v35 = vsel %vm6819_vm4, %v2303_v26, %v7508_v48  ;;  %v2856_v0 = vld [vmem:[#allocation2 + $0x78] sm:$0xf] }
 0x129   : > { %8201 = vst [vmem:[#allocation6_spill] sm:$0xff] %v7533_v42  ;;  %v1934_v30 = vld [vmem:[#allocation2 + $0xc8] sm:$0x1]  ;;  %v2605_v62 = vrot.slane %v2446_v51, 5  ;;  %v3056_v10 = vrot.slane %v3055_v16, 4  ;;  %v3445_v55 = vrot.slane %v3346_v23, 5 }
 0x12a   : > { %8202 = vst [vmem:[#allocation7_spill] sm:$0xff] %v7537_v50  ;;  %v2315_v36 = vshll.u32 %v1934_v30, 16  ;;  %v3066_v39 = vrot.slane %v3065_v33, 4  ;;  %v3443_v43 = vsel %vm7001_vm8, %v5763_v27, %v3442_v34  ;;  %v3444_v46 = vrot.slane %v3442_v34, 4  ;;  %v2857_v6 = vld [vmem:[#allocation2 + $0x7c] sm:$0xf] }
 0x12b   : > { %v2606_v25 = vsel %vm7001_vm8, %v7494_v29, %v2605_v62  ;;  %v3061_v56 = vsel %vm6819_vm4, %v3056_v10, %v3060_v13  ;;  %v5764_v58 = vrot.slane %v3347_v38, 9  ;;  %v3449_v53 = vrot.slane %v3348_v14, 5  ;;  %v2858_v1 = vld [vmem:[#allocation2 + $0x80] sm:$0x1]  ;;  %v3350_v27 = vld [vmem:[#allocation2 + $0x30] sm:$0xe] }
 0x12c   : > { %v7504_v45 = vpop.f32.mrb[12].mxu0  ;;  %v2317_v48 = vrot.slane %v2315_v36, 5  ;;  %v5730_v5 = vcombine.low %v7492_v63, %v2606_v25  ;;  %v3071_v9 = vsel %vm6819_vm4, %v3066_v39, %v3070_v2  ;;  %v3446_v17 = vsel %vm7001_vm8, %v3444_v46, %v3445_v55  ;;  %v3351_v34 = vld [vmem:[#allocation2 + $0x34] sm:$0xf]  ;;  %v3352_v39 = vld [vmem:[#allocation2 + $0x38] sm:$0x1] }
 0x12d   : > { %v7510_v4 = vpop.f32.mrb[13].mxu0  ;;  %v5754_v16 = vcombine.low %v3061_v56, %v3071_v9  ;;  %v5779_v13 = vcombine.low %v3443_v43, %v3446_v17  ;;  %v3452_v23 = vrot.slane %v3349_v49, 5  ;;  %v3450_v51 = vsel %vm7001_vm8, %v5764_v58, %v3449_v53  ;;  %v3353_v49 = vld [vmem:[#allocation2 + $0x3c] sm:$0xe]  ;;  %v3354_v25 = vld [vmem:[#allocation2 + $0x40] sm:$0xf] }
 0x12e   : > { %v7506_v47 = vpop.f32.mrb[12].mxu1  ;;  %v7518_v44 = vpop.f32.mrb[14].mxu0  ;;  %v2318_v29 = vsel %vm6819_vm4, %v2313_v31, %v2317_v48  ;;  %4826 = vmatprep.mubr.bf16.mxu0 %v5730_v5  ;;  %v3451_v30 = vrot.slane %v3449_v53, 4  ;;  %v3073_v33 = vshrl.u32 %v2856_v0, 16  ;;  %v3076_v31 = vshll.u32 %v2856_v0, 16 }
 0x12f   : > { %v7512_v57 = vpop.f32.mrb[13].mxu1  ;;  %v7527_v20 = vpop.f32.mrb[15].mxu0  ;;  %v5698_v2 = vcombine.low %v2308_v35, %v2318_v29  ;;  %4923 = vmatprep.mubr.bf16.mxu1 %v5754_v16  ;;  %v3082_v36 = vshll.u32 %v2857_v6, 16  ;;  %v3086_v10 = vshrl.u32 %v2857_v6, 16  ;;  %v3092_v14 = vshll.u32 %v2858_v1, 16 }
 0x130   : > { %v7520_v59 = vpop.f32.mrb[14].mxu1  ;;  %4924 = vmatmul.mubr.bf16.gmra.mrb[108].mxu1 %v6702_v41  ;;  %v3453_v43 = vsel %vm7001_vm8, %v3451_v30, %v3452_v23  ;;  %v3075_v35 = vrot.slane %v3073_v33, 4  ;;  %v7574_v46 = vadd.f32 %v7447_v52, %v7445_v54  ;;  %v7578_v55 = vadd.f32 %v7455_v18, %v7451_v11  ;;  %v3355_v6 = vld [vmem:[#allocation2 + $0x44] sm:$0x1]  ;;  %v2860_v30 = vld [vmem:[#allocation2 + $0x88] sm:$0xf] }
 0x131   : > { %v7529_v32 = vpop.f32.mrb[15].mxu1  ;;  %4827 = vmatmul.mubr.bf16.gmra.mrb[108].mxu0 %v5698_v2  ;;  %v5780_v56 = vcombine.low %v3450_v51, %v3453_v43  ;;  %v3078_v58 = vrot.slane %v3076_v31, 5  ;;  %v3084_v41 = vrot.slane %v3082_v36, 5  ;;  %v3088_v0 = vrot.slane %v3086_v10, 4  ;;  %v2859_v18 = vld [vmem:[#allocation2 + $0x84] sm:$0xf] }
 0x132   : > { %6518 = vmatprep.mubr.bf16.mxu0 %v5779_v13  ;;  %v3094_v9 = vrot.slane %v3092_v14, 5  ;;  %v7586_v54 = vadd.f32 %v7465_v61, %v7461_v24  ;;  %v5765_v52 = vrot.slane %v3350_v27, 9  ;;  %v3456_v11 = vrot.slane %v3351_v34, 5 }
 0x133   : > { %v3079_v53 = vor.u32 %v3078_v58, %v3075_v35  ;;  %v3089_v1 = vor.u32 %v3088_v0, %v3084_v41  ;;  %v3459_v29 = vrot.slane %v3352_v39, 5  ;;  %v5766_v16 = vrot.slane %v3353_v49, 9  ;;  %v2861_v39 = vld [vmem:[#allocation2 + $0x8c] sm:$0x1]  ;;  %v3356_v58 = vld [vmem:[#allocation2 + $0x48] sm:$0xe] }
 0x134   : > { %v7542_v37 = vpop.f32.mrb[16].mxu0  ;;  %8203 = vst [vmem:[#allocation8_spill] sm:$0xff] %v7586_v54  ;;  %v3457_v13 = vsel %vm7001_vm8, %v5765_v52, %v3456_v11  ;;  %v3458_v23 = vrot.slane %v3456_v11, 4  ;;  %v3463_v2 = vrot.slane %v3354_v25, 5  ;;  %v3466_v51 = vrot.slane %v3355_v6, 5 }
 0x135   : > { %v7546_v22 = vpop.f32.mrb[17].mxu0  ;;  %v3080_v24 = vrot.slane %v3079_v53, 4  ;;  %v3090_v61 = vrot.slane %v3089_v1, 4  ;;  %v7596_v27 = vadd.f32 %v7483_v21, %v7477_v12  ;;  %v3097_v34 = vshrl.u32 %v2859_v18, 16  ;;  %v6703_v21 = vld [vmem:[#allocation2 + $0x78] sm:$0xff]  }
 0x136   : > { %v7558_v26 = vpop.f32.mrb[18].mxu0  ;;  %v7564_v63 = vpop.f32.mrb[16].mxu1  ;;  %v3460_v36 = vsel %vm7001_vm8, %v3458_v23, %v3459_v29  ;;  %v7604_v10 = vsel %vm7001_vm8, %v5766_v16, %v3463_v2  ;;  %v3465_v14 = vrot.slane %v3463_v2, 4  ;;  %v3100_v43 = vshll.u32 %v2859_v18, 16  ;;  %v3357_v18 = vld [vmem:[#allocation2 + $0x4c] sm:$0xf] }
 0x137   : > { %v7562_v38 = vpop.f32.mrb[19].mxu0  ;;  %v7568_v62 = vpop.f32.mrb[17].mxu1  ;;  %8204 = vst [vmem:[#allocation9_spill] sm:$0xff] %v7596_v27  ;;  %v3085_v35 = vsel %vm6819_vm4, %v3080_v24, %v3084_v41  ;;  %v3095_v12 = vsel %vm6819_vm4, %v3090_v61, %v3094_v9  ;;  %v5781_v49 = vcombine.low %v3457_v13, %v3460_v36  ;;  %v3099_v25 = vrot.slane %v3097_v34, 4  ;;  %v3358_v1 = vld [vmem:[#allocation2 + $0x50] sm:$0x1] }
 0x138   : > { %v7580_v48 = vpop.f32.mrb[18].mxu1  ;;  %v5755_v6 = vcombine.low %v3085_v35, %v3095_v12  ;;  %v3467_v52 = vsel %vm7001_vm8, %v3465_v14, %v3466_v51  ;;  %v3102_v11 = vrot.slane %v3100_v43, 5  ;;  %v3106_v53 = vshll.u32 %v2860_v30, 16  ;;  %v3359_v13 = vld [vmem:[#allocation2 + $0x54] sm:$0xe] }
 0x139   : > { %v7582_v5 = vpop.f32.mrb[19].mxu1  ;;  %6519 = vmatmul.mubr.bf16.vlgmr.msra.gmra.mrb[112].mxu0 %v5780_v56  ;;  %v5782_v41 = vcombine.low %v7604_v10, %v3467_v52  ;;  %v3110_v29 = vshrl.u32 %v2860_v30, 16  ;;  %v3116_v9 = vshll.u32 %v2861_v39, 16  ;;  %v7617_v16 = vadd.f32 %v7510_v4, %v7504_v45  ;;  %v3360_v23 = vld [vmem:[#allocation2 + $0x58] sm:$0xf] }
 0x13a   : > { %6522 = vmatprep.mubr.bf16.mxu0 %v5781_v49  ;;  %4931 = vmatprep.mubr.bf16.mxu1 %v5755_v6  ;;  %v3103_v56 = vor.u32 %v3102_v11, %v3099_v25  ;;  %v3108_v2 = vrot.slane %v3106_v53, 5  ;;  %v7621_v51 = vadd.f32 %v7527_v20, %v7518_v44  ;;  %v7625_v24 = vadd.f32 %v7512_v57, %v7506_v47  ;;  %v3361_v61 = vld [vmem:[#allocation2 + $0x5c] sm:$0x1]  ;;  %v2862_v30 = vld [vmem:[#allocation2 + $0x90] sm:$0xf] }
 0x13b   : > { %4932 = vmatmul.mubr.bf16.gmra.mrb[112].mxu1 %v6703_v21  ;;  %v3112_v45 = vrot.slane %v3110_v29, 4  ;;  %v3118_v4 = vrot.slane %v3116_v9, 5  ;;  %v5767_v36 = vrot.slane %v3356_v58, 9  ;;  %v3470_v10 = vrot.slane %v3357_v18, 5  ;;  %v2863_v14 = vld [vmem:[#allocation2 + $0x94] sm:$0xf] }
 0x13c   : > { %8205 = vst [vmem:[#allocation10_spill] sm:$0xff] %v7625_v24  ;;  %v3104_v44 = vrot.slane %v3103_v56, 4  ;;  %v3473_v20 = vrot.slane %v3358_v1, 5  ;;  %v5768_v35 = vrot.slane %v3359_v13, 9  ;;  %v3477_v12 = vrot.slane %v3360_v23, 5  ;;  %v6704_v13 = vld [vmem:[#allocation2 + $0x84] sm:$0xff]  }
 0x13d   : > { %v3113_v49 = vor.u32 %v3112_v45, %v3108_v2  ;;  %v3471_v21 = vsel %vm7001_vm8, %v5767_v36, %v3470_v10  ;;  %v3472_v25 = vrot.slane %v3470_v10, 4  ;;  %v3480_v58 = vrot.slane %v3361_v61, 5  ;;  %v2864_v56 = vld [vmem:[#allocation2 + $0x98] sm:$0x1]  ;;  %v3364_v24 = vld [vmem:[#allocation2 + $0x68] sm:$0x1] }
 0x13e   : > { %v7588_v17 = vpop.f32.mrb[20].mxu1  ;;  %v3109_v11 = vsel %vm6819_vm4, %v3104_v44, %v3108_v2  ;;  %v3478_v53 = vsel %vm7001_vm8, %v5768_v35, %v3477_v12  ;;  %v3479_v18 = vrot.slane %v3477_v12, 4  ;;  %v7649_v1 = vadd.f32 %v7529_v32, %v7520_v59  ;;  %v3362_v35 = vld [vmem:[#allocation2 + $0x60] sm:$0xe]  ;;  %v3363_v59 = vld [vmem:[#allocation2 + $0x64] sm:$0xf] }
 0x13f   : > { %v7592_v33 = vpop.f32.mrb[21].mxu1  ;;  %v3114_v9 = vrot.slane %v3113_v49, 4  ;;  %v3474_v23 = vsel %vm7001_vm8, %v3472_v25, %v3473_v20  ;;  %v3121_v61 = vshrl.u32 %v2862_v30, 16  ;;  %v3124_v45 = vshll.u32 %v2862_v30, 16  ;;  %v3365_v20 = vld [vmem:[#allocation2 + $0x6c] sm:$0xe] }
 0x140   : > { %v7598_v31 = vpop.f32.mrb[22].mxu1  ;;  %8206 = vst [vmem:[#allocation11_spill] sm:$0xff] %v7649_v1  ;;  %v5783_v2 = vcombine.low %v3471_v21, %v3474_v23  ;;  %v3481_v36 = vsel %vm7001_vm8, %v3479_v18, %v3480_v58  ;;  %v3130_v10 = vshll.u32 %v2863_v14, 16  ;;  %v3134_v44 = vshrl.u32 %v2863_v14, 16  ;;  %v3366_v23 = vld [vmem:[#allocation2 + $0x70] sm:$0xf] }
 0x141   : > { %v7610_v0 = vpop.f32.mrb[23].mxu1  ;;  %6523 = vmatmul.mubr.bf16.gmra.mrb[116].mxu0 %v5782_v41  ;;  %v3119_v32 = vsel %vm6819_vm4, %v3114_v9, %v3118_v4  ;;  %v5784_v12 = vcombine.low %v3478_v53, %v3481_v36  ;;  %v3123_v49 = vrot.slane %v3121_v61, 4  ;;  %v3126_v1 = vrot.slane %v3124_v45, 5  ;;  %v2865_v18 = vld [vmem:[#allocation2 + $0x9c] sm:$0xf] }
 0x142   : > { %v5756_v25 = vcombine.low %v3109_v11, %v3119_v32  ;;  %6526 = vmatprep.mubr.bf16.mxu0 %v5783_v2  ;;  %v3132_v30 = vrot.slane %v3130_v10, 5  ;;  %v3136_v41 = vrot.slane %v3134_v44, 4  ;;  %v3140_v21 = vshll.u32 %v2864_v56, 16  ;;  %v3367_v11 = vld [vmem:[#allocation2 + $0x74] sm:$0x1] }
 0x143   : > { %v3127_v58 = vor.u32 %v3126_v1, %v3123_v49  ;;  %v7663_v14 = vadd.f32 %v7546_v22, %v7542_v37  ;;  %v7667_v4 = vadd.f32 %v7562_v38, %v7558_v26  ;;  %v6160_v53 = vadd.f32 %v7568_v62, %v7564_v63 }
 0x144   : > { %4939 = vmatprep.mubr.bf16.mxu1 %v5756_v25  ;;  %v3137_v61 = vor.u32 %v3136_v41, %v3132_v30  ;;  %v3142_v1 = vrot.slane %v3140_v21, 5  ;;  %v5769_v45 = vrot.slane %v3362_v35, 9  ;;  %v3484_v2 = vrot.slane %v3363_v59, 5 }
 0x145   : > { %4940 = vmatmul.mubr.bf16.gmra.mrb[116].mxu1 %v6704_v13  ;;  %v3128_v22 = vrot.slane %v3127_v58, 4  ;;  %v7678_v26 = vadd.f32 %v6160_v53, %v7471_v60  ;;  %v3487_v38 = vrot.slane %v3364_v24, 5  ;;  %v5770_v63 = vrot.slane %v3365_v20, 9  ;;  %v6705_v13 = vld [vmem:[#allocation2 + $0x90] sm:$0xff]   ;;  %v2866_v24 = vld [vmem:[#allocation2 + $0xa0] sm:$0xf] }
 0x146   : > { %v7631_v43 = vpop.f32.mrb[24].mxu1  ;;  %v3138_v36 = vrot.slane %v3137_v61, 4  ;;  %v3485_v10 = vsel %vm7001_vm8, %v5769_v45, %v3484_v2  ;;  %v3486_v44 = vrot.slane %v3484_v2, 4  ;;  %v3491_v32 = vrot.slane %v3366_v23, 5  ;;  %v2867_v20 = vld [vmem:[#allocation2 + $0xa4] sm:$0x1] }
 0x147   : > { %v7627_v34 = vpop.f32.mrb[20].mxu0  ;;  %v7635_v57 = vpop.f32.mrb[25].mxu1  ;;  %v3133_v35 = vsel %vm6819_vm4, %v3128_v22, %v3132_v30  ;;  %v3494_v59 = vrot.slane %v3367_v11, 5  ;;  %v6163_v60 = vadd.f32 %v7582_v5, %v7580_v48  ;;  %v3145_v25 = vshrl.u32 %v2865_v18, 16  ;;  %v3368_v30 = vld [vmem:[#allocation2 + $0x78] sm:$0xe] }
 0x148   : > { %v7629_v39 = vpop.f32.mrb[21].mxu0  ;;  %v7641_v52 = vpop.f32.mrb[26].mxu1  ;;  %v3143_v41 = vsel %vm6819_vm4, %v3138_v36, %v3142_v1  ;;  %v3488_v21 = vsel %vm7001_vm8, %v3486_v44, %v3487_v38  ;;  %v3492_v23 = vsel %vm7001_vm8, %v5770_v63, %v3491_v32  ;;  %v3493_v58 = vrot.slane %v3491_v32, 4  ;;  %v3369_v53 = vld [vmem:[#allocation2 + $0x7c] sm:$0xf] }
 0x149   : > { %v7633_v47 = vpop.f32.mrb[22].mxu0  ;;  %v7651_v29 = vpop.f32.mrb[27].mxu1  ;;  %6527 = vmatmul.mubr.bf16.gmra.mrb[120].mxu0 %v5784_v12  ;;  %v5757_v61 = vcombine.low %v3133_v35, %v3143_v41  ;;  %v5785_v48 = vcombine.low %v3485_v10, %v3488_v21  ;;  %v7699_v5 = vadd.f32 %v6163_v60, %v7475_v7  ;;  %v3147_v12 = vrot.slane %v3145_v25, 4  ;;  %v3370_v45 = vld [vmem:[#allocation2 + $0x80] sm:$0x1] }
 0x14a   : > { %v7639_v6 = vpop.f32.mrb[23].mxu0  ;;  %v3371_v2 = vld [vmem:[#allocation2 + $0x84] sm:$0xe]  ;;  %v3495_v22 = vsel %vm7001_vm8, %v3493_v58, %v3494_v59  ;;  %v3148_v38 = vshll.u32 %v2865_v18, 16  ;;  %v3154_v63 = vshll.u32 %v2866_v24, 16  ;;  %v3158_v36 = vshrl.u32 %v2866_v24, 16 }
 0x14b   : > { %8207 = vst [vmem:[#allocation12_spill] sm:$0xff] %v7699_v5  ;;  %v3372_v44 = vld [vmem:[#allocation2 + $0x88] sm:$0xf]  ;;  %v3373_v32 = vld [vmem:[#allocation2 + $0x8c] sm:$0x1]  ;;  %4947 = vmatprep.mubr.bf16.mxu1 %v5757_v61  ;;  %6530 = vmatprep.mubr.bf16.mxu0 %v5785_v48  ;;  %v5786_v10 = vcombine.low %v3492_v23, %v3495_v22  ;;  %v3164_v7 = vshll.u32 %v2867_v20, 16  ;;  %v7709_v35 = vadd.f32 %v7629_v39, %v7627_v34 }
 0x14c   : > { %v7713_v60 = vadd.f32 %v7639_v6, %v7633_v47  ;;  %v2868_v59 = vld [vmem:[#allocation2 + $0xa8] sm:$0xf]  ;;  %v3150_v24 = vrot.slane %v3148_v38, 5  ;;  %v3156_v25 = vrot.slane %v3154_v63, 5  ;;  %v3160_v41 = vrot.slane %v3158_v36, 4 }
 0x14d   : > { %v6166_v21 = vadd.f32 %v7592_v33, %v7588_v17  ;;  %4948 = vmatmul.mubr.bf16.gmra.mrb[120].mxu1 %v6705_v13  ;;  %v3166_v20 = vrot.slane %v3164_v7, 5  ;;  %v5771_v23 = vrot.slane %v3368_v30, 9  ;;  %v3498_v34 = vrot.slane %v3369_v53, 5  ;;  %v6706_v7 = vld [vmem:[#allocation2 + $0x9c] sm:$0xff]  }
 0x14e   : > { %v7673_v56 = vpop.f32.mrb[28].mxu1  ;;  %v3501_v39 = vrot.slane %v3370_v45, 5  ;;  %v3151_v6 = vor.u32 %v3150_v24, %v3147_v12  ;;  %v3161_v48 = vor.u32 %v3160_v41, %v3156_v25  ;;  %v5772_v38 = vrot.slane %v3371_v2, 9 }
 0x14f   : > { %v7659_v27 = vpop.f32.mrb[24].mxu0  ;;  %v7684_v49 = vpop.f32.mrb[29].mxu1  ;;  %v7726_v22 = vadd.f32 %v6166_v21, %v7516_v15  ;;  %v3499_v17 = vsel %vm7001_vm8, %v5771_v23, %v3498_v34  ;;  %v3500_v33 = vrot.slane %v3498_v34, 4  ;;  %v3505_v13 = vrot.slane %v3372_v44, 5  ;;  %v2870_v21 = vld [vmem:[#allocation2 + $0xb0] sm:$0x1] }
 0x150   : > { %v7671_v9 = vpop.f32.mrb[25].mxu0  ;;  %v7696_v11 = vpop.f32.mrb[30].mxu1  ;;  %v3508_v30 = vrot.slane %v3373_v32, 5  ;;  %v3152_v45 = vrot.slane %v3151_v6, 4  ;;  %v3162_v36 = vrot.slane %v3161_v48, 4  ;;  %v6169_v12 = vadd.f32 %v7610_v0, %v7598_v31 }
 0x151   : > { %v7675_v37 = vpop.f32.mrb[26].mxu0  ;;  %v7701_v1 = vpop.f32.mrb[31].mxu1  ;;  %8208 = vst [vmem:[#allocation13_spill] sm:$0xff] %v7726_v22  ;;  %6531 = vmatmul.mubr.bf16.gmra.mrb[124].mxu0 %v5786_v10  ;;  %v3169_v15 = vshrl.u32 %v2868_v59, 16  ;;  %v3502_v2 = vsel %vm7001_vm8, %v3500_v33, %v3501_v39  ;;  %v3506_v41 = vsel %vm7001_vm8, %v5772_v38, %v3505_v13  ;;  %v3507_v44 = vrot.slane %v3505_v13, 4 }
 0x152   : > { %v7680_v62 = vpop.f32.mrb[27].mxu0  ;;  %v2869_v32 = vld [vmem:[#allocation2 + $0xac] sm:$0xf]  ;;  %v3172_v23 = vshll.u32 %v2868_v59, 16  ;;  %v3157_v10 = vsel %vm6819_vm4, %v3152_v45, %v3156_v25  ;;  %v3167_v34 = vsel %vm6819_vm4, %v3162_v36, %v3166_v20  ;;  %v5787_v31 = vcombine.low %v3499_v17, %v3502_v2  ;;  %v3374_v6 = vld [vmem:[#allocation2 + $0x90] sm:$0xe] }
 0x153   : > { %v7747_v0 = vadd.f32 %v6169_v12, %v7525_v8  ;;  %v3375_v48 = vld [vmem:[#allocation2 + $0x94] sm:$0xf]  ;;  %v3376_v39 = vld [vmem:[#allocation2 + $0x98] sm:$0x1]  ;;  %v5758_v33 = vcombine.low %v3157_v10, %v3167_v34  ;;  %v3509_v38 = vsel %vm7001_vm8, %v3507_v44, %v3508_v30  ;;  %v3171_v13 = vrot.slane %v3169_v15, 4 }
 0x154   : > { %v3174_v50 = vrot.slane %v3172_v23, 5  ;;  %v3377_v59 = vld [vmem:[#allocation2 + $0x9c] sm:$0xe]  ;;  %6534 = vmatprep.mubr.bf16.mxu0 %v5787_v31  ;;  %v5788_v42 = vcombine.low %v3506_v41, %v3509_v38  ;;  %v3178_v25 = vshll.u32 %v2869_v32, 16  ;;  %v3182_v45 = vshrl.u32 %v2869_v32, 16 }
 0x155   : > { %8209 = vst [vmem:[#allocation14_spill] sm:$0xff] %v7747_v0  ;;  %v3188_v40 = vshll.u32 %v2870_v21, 16  ;;  %v3378_v20 = vld [vmem:[#allocation2 + $0xa0] sm:$0xf]  ;;  %4955 = vmatprep.mubr.bf16.mxu1 %v5758_v33  ;;  %v7755_v36 = vadd.f32 %v7671_v9, %v7659_v27  ;;  %v7759_v30 = vadd.f32 %v7680_v62, %v7675_v37  ;;  %v6172_v12 = vadd.f32 %v7635_v57, %v7631_v43  ;;  %v3379_v15 = vld [vmem:[#allocation2 + $0xa4] sm:$0x1] }
 0x156   : > { %v7705_v54 = vpop.f32.mrb[32].mxu1  ;;  %v3175_v8 = vor.u32 %v3174_v50, %v3171_v13  ;;  %v2871_v2 = vld [vmem:[#allocation2 + $0xb4] sm:$0xf]  ;;  %4956 = vmatmul.mubr.bf16.gmra.mrb[124].mxu1 %v6706_v7  ;;  %v3180_v32 = vrot.slane %v3178_v25, 5  ;;  %v3184_v50 = vrot.slane %v3182_v45, 4  ;;  %v5773_v23 = vrot.slane %v3374_v6, 9 }
 0x157   : > { %v7715_v18 = vpop.f32.mrb[28].mxu0  ;;  %v7723_v47 = vpop.f32.mrb[33].mxu1  ;;  %v3190_v21 = vrot.slane %v3188_v40, 5  ;;  %v7772_v62 = vadd.f32 %v6172_v12, %v7574_v46  ;;  %v3512_v43 = vrot.slane %v3375_v48, 5  ;;  %v3515_v57 = vrot.slane %v3376_v39, 5 }
 0x158   : > { %v7719_v58 = vpop.f32.mrb[29].mxu0  ;;  %v7732_v53 = vpop.f32.mrb[34].mxu1  ;;  %v3176_v37 = vrot.slane %v3175_v8, 4  ;;  %v3185_v7 = vor.u32 %v3184_v50, %v3180_v32  ;;  %v5774_v31 = vrot.slane %v3377_v59, 9  ;;  %v3519_v33 = vrot.slane %v3378_v20, 5 }
 0x159   : > { %v7721_v61 = vpop.f32.mrb[30].mxu0  ;;  %v7736_v24 = vpop.f32.mrb[35].mxu1  ;;  %8210 = vst [vmem:[#allocation15_spill] sm:$0xff] %v7772_v62  ;;  %6535 = vmatmul.mubr.bf16.gmra.mrb[128].mxu0 %v5788_v42  ;;  %v3522_v40 = vrot.slane %v3379_v15, 5  ;;  %v2872_v6 = vld [vmem:[#allocation2 + $0xb8] sm:$0xf]  ;;  %v3513_v46 = vsel %vm7001_vm8, %v5773_v23, %v3512_v43  ;;  %v6175_v39 = vadd.f32 %v7651_v29, %v7641_v52 }
 0x15a   : > { %v7728_v63 = vpop.f32.mrb[31].mxu0  ;;  %v3181_v13 = vsel %vm6819_vm4, %v3176_v37, %v3180_v32  ;;  %v3514_v48 = vrot.slane %v3512_v43, 4  ;;  %v2873_v25 = vld [vmem:[#allocation2 + $0xbc] sm:$0x1]  ;;  %v3186_v45 = vrot.slane %v3185_v7, 4  ;;  %v3520_v42 = vsel %vm7001_vm8, %v5774_v31, %v3519_v33  ;;  %v6707_v15 = vld [vmem:[#allocation2 + $0xa8] sm:$0xff]  }
 0x15b   : > { %v3521_v59 = vrot.slane %v3519_v33, 4  ;;  %v3193_v20 = vshrl.u32 %v2871_v2, 16  ;;  %v3380_v8 = vld [vmem:[#allocation2 + $0xa8] sm:$0xe]  ;;  %v7793_v50 = vadd.f32 %v6175_v39, %v7578_v55  ;;  %v3196_v23 = vshll.u32 %v2871_v2, 16 }
 0x15c   : > { %v3516_v32 = vsel %vm7001_vm8, %v3514_v48, %v3515_v57  ;;  %v3202_v37 = vshll.u32 %v2872_v6, 16  ;;  %v3381_v52 = vld [vmem:[#allocation2 + $0xac] sm:$0xf]  ;;  %v3191_v43 = vsel %vm6819_vm4, %v3186_v45, %v3190_v21  ;;  %v3383_v62 = vld [vmem:[#allocation2 + $0xb4] sm:$0xe]  ;;  %v3206_v21 = vshrl.u32 %v2872_v6, 16 }
 0x15d   : > { %8211 = vst [vmem:[#allocation16_spill] sm:$0xff] %v7793_v50  ;;  %v5789_v7 = vcombine.low %v3513_v46, %v3516_v32  ;;  %v3523_v31 = vsel %vm7001_vm8, %v3521_v59, %v3522_v40  ;;  %v3195_v33 = vrot.slane %v3193_v20, 4  ;;  %v5759_v57 = vcombine.low %v3181_v13, %v3191_v43  ;;  %v3384_v39 = vld [vmem:[#allocation2 + $0xb8] sm:$0xf]  ;;  %v3385_v13 = vld [vmem:[#allocation2 + $0xbc] sm:$0x1] }
 0x15e   : > { %v7751_v17 = vpop.f32.mrb[36].mxu1  ;;  %v5790_v55 = vcombine.low %v3520_v42, %v3523_v31  ;;  %v3198_v48 = vrot.slane %v3196_v23, 5  ;;  %v3204_v2 = vrot.slane %v3202_v37, 5  ;;  %v3212_v46 = vshll.u32 %v2873_v25, 16  ;;  %v2874_v6 = vld [vmem:[#allocation2 + $0xc0] sm:$0xf] }
 0x15f   : > { %v7763_v41 = vpop.f32.mrb[32].mxu0  ;;  %v7765_v44 = vpop.f32.mrb[37].mxu1  ;;  %6538 = vmatprep.mubr.bf16.mxu0 %v5789_v7  ;;  %v7809_v40 = vadd.f32 %v7719_v58, %v7715_v18  ;;  %v7813_v45 = vadd.f32 %v7728_v63, %v7721_v61  ;;  %4963 = vmatprep.mubr.bf16.mxu1 %v5759_v57  ;;  %v6178_v20 = vadd.f32 %v7684_v49, %v7673_v56  ;;  %v5775_v32 = vrot.slane %v3380_v8, 9 }
 0x160   : > { %v7767_v27 = vpop.f32.mrb[33].mxu0  ;;  %v7769_v9 = vpop.f32.mrb[38].mxu1  ;;  %v3199_v59 = vor.u32 %v3198_v48, %v3195_v33  ;;  %v3526_v23 = vrot.slane %v3381_v52, 5  ;;  %4964 = vmatmul.mubr.bf16.gmra.mrb[128].mxu1 %v6707_v15  ;;  %v3208_v18 = vrot.slane %v3206_v21, 4  ;;  %v3214_v58 = vrot.slane %v3212_v46, 5 }
 0x161   : > { %v7774_v10 = vpop.f32.mrb[34].mxu0  ;;  %v7776_v34 = vpop.f32.mrb[39].mxu1  ;;  %6539 = vmatmul.mubr.bf16.gmra.mrb[132].mxu0 %v5790_v55  ;;  %v3529_v37 = vrot.slane %v3382_v19, 5  ;;  %v5776_v61 = vrot.slane %v3383_v62, 9  ;;  %v7824_v7 = vadd.f32 %v6178_v20, %v7617_v16  ;;  %v3533_v52 = vrot.slane %v3384_v39, 5  ;;  %v6708_v39 = vld [vmem:[#allocation2 + $0xb4] sm:$0xff]  }
 0x162   : > { %v7778_v38 = vpop.f32.mrb[35].mxu0  ;;  %v3200_v43 = vrot.slane %v3199_v59, 4  ;;  %v3527_v56 = vsel %vm7001_vm8, %v5775_v32, %v3526_v23  ;;  %v3528_v49 = vrot.slane %v3526_v23, 4  ;;  %v3209_v8 = vor.u32 %v3208_v18, %v3204_v2  ;;  %v2875_v33 = vld [vmem:[#allocation2 + $0xc4] sm:$0xf] }
 0x163   : > { %8212 = vst [vmem:[#allocation17_spill] sm:$0xff] %v7824_v7  ;;  %v3536_v31 = vrot.slane %v3385_v13, 5  ;;  %v6181_v15 = vadd.f32 %v7701_v1, %v7696_v11  ;;  %v2876_v62 = vld [vmem:[#allocation2 + $0xc8] sm:$0x1]  ;;  %v3217_v55 = vshrl.u32 %v2874_v6, 16  ;;  %v3220_v48 = vshll.u32 %v2874_v6, 16 }
 0x164   : > { %v3205_v19 = vsel %vm6819_vm4, %v3200_v43, %v3204_v2  ;;  %v3530_v16 = vsel %vm7001_vm8, %v3528_v49, %v3529_v37  ;;  %v3210_v46 = vrot.slane %v3209_v8, 4  ;;  %v3534_v11 = vsel %vm7001_vm8, %v5776_v61, %v3533_v52  ;;  %v3386_v18 = vld [vmem:[#allocation2 + $0xc0] sm:$0xe]  ;;  %v3387_v49 = vld [vmem:[#allocation2 + $0xc4] sm:$0xf] }
 0x165   : > { %v5791_v13 = vcombine.low %v3527_v56, %v3530_v16  ;;  %v3535_v1 = vrot.slane %v3533_v52, 4  ;;  %v7843_v20 = vadd.f32 %v6181_v15, %v7621_v51  ;;  %v3219_v2 = vrot.slane %v3217_v55, 4  ;;  %v3388_v8 = vld [vmem:[#allocation2 + $0xc8] sm:$0x1]  ;;  %v3389_v55 = vld [vmem:[#allocation2 + $0xcc] sm:$0xe] }
 0x166   : > { %v7788_v12 = vpop.f32.mrb[40].mxu1  ;;  %v3222_v32 = vrot.slane %v3220_v48, 5  ;;  %v3226_v23 = vshll.u32 %v2875_v33, 16  ;;  %v3215_v6 = vsel %vm6819_vm4, %v3210_v46, %v3214_v58  ;;  %v3230_v61 = vshrl.u32 %v2875_v33, 16  ;;  %v3390_v48 = vld [vmem:[#allocation2 + $0xd0] sm:$0xf] }
 0x167   : > { %v7795_v29 = vpop.f32.mrb[41].mxu1  ;;  %v7803_v50 = vpop.f32.mrb[36].mxu0  ;;  %8213 = vst [vmem:[#allocation18_spill] sm:$0xff] %v7843_v20  ;;  %6542 = vmatprep.mubr.bf16.mxu0 %v5791_v13  ;;  %v3537_v43 = vsel %vm7001_vm8, %v3535_v1, %v3536_v31  ;;  %v3236_v56 = vshll.u32 %v2876_v62, 16  ;;  %v5760_v52 = vcombine.low %v3205_v19, %v3215_v6  ;;  %v7853_v5 = vadd.f32 %v7767_v27, %v7763_v41  ;;  %v3391_v13 = vld [vmem:[#allocation2 + $0xd4] sm:$0x1] }
 0x168   : > { %v7801_v0 = vpop.f32.mrb[42].mxu1  ;;  %v7815_v42 = vpop.f32.mrb[37].mxu0  ;;  %v5792_v51 = vcombine.low %v3534_v11, %v3537_v43  ;;  %v3223_v15 = vor.u32 %v3222_v32, %v3219_v2  ;;  %v3228_v16 = vrot.slane %v3226_v23, 5  ;;  %v3232_v20 = vrot.slane %v3230_v61, 4  ;;  %v2877_v32 = vld [vmem:[#allocation2 + $0xcc] sm:$0xf] }
 0x169   : > { %v7805_v22 = vpop.f32.mrb[43].mxu1  ;;  %v7819_v25 = vpop.f32.mrb[38].mxu0  ;;  %v3238_v7 = vrot.slane %v3236_v56, 5  ;;  %v7857_v58 = vadd.f32 %v7778_v38, %v7774_v10  ;;  %4971 = vmatprep.mubr.bf16.mxu1 %v5760_v52  ;;  %v6184_v19 = vadd.f32 %v7723_v47, %v7705_v54  ;;  %v5777_v62 = vrot.slane %v3386_v18, 9  ;;  %v2878_v18 = vld [vmem:[#allocation2 + $0xd0] sm:$0xf] }
 0x16a   : > { %v7821_v63 = vpop.f32.mrb[39].mxu0  ;;  %6543 = vmatmul.mubr.bf16.gmra.mrb[136].mxu0 %v5792_v51  ;;  %v3224_v33 = vrot.slane %v3223_v15, 4  ;;  %v3540_v46 = vrot.slane %v3387_v49, 5  ;;  %4972 = vmatmul.mubr.bf16.gmra.mrb[132].mxu1 %v6708_v39  ;;  %v3233_v1 = vor.u32 %v3232_v20, %v3228_v16  ;;  %v3543_v2 = vrot.slane %v3388_v8, 5  ;;  %v6709_v15 = vld [vmem:[#allocation2 + $0xc0] sm:$0xff]  }
 0x16b   : > { %v5778_v41 = vrot.slane %v3389_v55, 9  ;;  %v3547_v27 = vrot.slane %v3390_v48, 5  ;;  %v7864_v38 = vadd.f32 %v6184_v19, %v7663_v14  ;;  %v3550_v61 = vrot.slane %v3391_v13, 5  ;;  %v2879_v14 = vld [vmem:[#allocation2 + $0xd4] sm:$0x1] }
 0x16c   : > { %v3229_v10 = vsel %vm6819_vm4, %v3224_v33, %v3228_v16  ;;  %v3541_v54 = vsel %vm7001_vm8, %v5777_v62, %v3540_v46  ;;  %v3542_v47 = vrot.slane %v3540_v46, 4  ;;  %v3234_v43 = vrot.slane %v3233_v1, 4 }
 0x16d   : > { %v3548_v39 = vsel %vm7001_vm8, %v5778_v41, %v3547_v27  ;;  %v3549_v20 = vrot.slane %v3547_v27, 4  ;;  %v6187_v49 = vadd.f32 %v7736_v24, %v7732_v53  ;;  %v3241_v8 = vshrl.u32 %v2877_v32, 16 }
 0x16e   : > { %v7830_v57 = vpop.f32.mrb[44].mxu1  ;;  %v3544_v56 = vsel %vm7001_vm8, %v3542_v47, %v3543_v2  ;;  %v3244_v52 = vshll.u32 %v2877_v32, 16  ;;  %v3239_v51 = vsel %vm6819_vm4, %v3234_v43, %v3238_v7  ;;  %v3250_v48 = vshll.u32 %v2878_v18, 16 }
 0x16f   : > { %v7836_v21 = vpop.f32.mrb[45].mxu1  ;;  %v6106_v31 = vpop.f32.mrb[40].mxu0  ;;  %v5793_v16 = vcombine.low %v3541_v54, %v3544_v56  ;;  %v3551_v55 = vsel %vm7001_vm8, %v3549_v20, %v3550_v61  ;;  %v5761_v33 = vcombine.low %v3229_v10, %v3239_v51  ;;  %v7879_v62 = vadd.f32 %v6187_v49, %v7667_v4 }
 0x170   : > { %v7840_v59 = vpop.f32.mrb[46].mxu1  ;;  %v6107_v11 = vpop.f32.mrb[41].mxu0  ;;  %v5794_v19 = vcombine.low %v3548_v39, %v3551_v55  ;;  %v3243_v46 = vrot.slane %v3241_v8, 4  ;;  %v3246_v53 = vrot.slane %v3244_v52, 5  ;;  %v3252_v24 = vrot.slane %v3250_v48, 5 }
 0x171   : > { %v7845_v37 = vpop.f32.mrb[47].mxu1  ;;  %v6109_v23 = vpop.f32.mrb[42].mxu0  ;;  %6546 = vmatprep.mubr.bf16.mxu0 %v5793_v16  ;;  %v3254_v13 = vshrl.u32 %v2878_v18, 16  ;;  %v3260_v1 = vshll.u32 %v2879_v14, 16  ;;  %4979 = vmatprep.mubr.bf16.mxu1 %v5761_v33  ;;  %v6102_v7 = vadd.f32 %v7815_v42, %v7803_v50  ;;  %v6105_v3 = vadd.f32 %v7821_v63, %v7819_v25 }
 0x172   : > { %v6110_v6 = vpop.f32.mrb[43].mxu0  ;;  %6547 = vmatmul.mubr.bf16.gmra.mrb[140].mxu0 %v5794_v19  ;;  %v6190_v2 = vadd.f32 %v7765_v44, %v7751_v17  ;;  %4980 = vmatmul.mubr.bf16.gmra.mrb[136].mxu1 %v6709_v15  ;;  %v3247_v4 = vor.u32 %v3246_v53, %v3243_v46  ;;  %v6193_v10 = vadd.f32 %v7776_v34, %v7769_v9  ;;  %v8214_v19 = vld [vmem:[#allocation12_spill] sm:$0xff] }
 0x173   : > { %v3256_v27 = vrot.slane %v3254_v13, 4  ;;  %v3262_v32 = vrot.slane %v3260_v1, 5  ;;  %v6108_v50 = vadd.f32 %v6107_v11, %v6106_v31  ;;  %v6111_v42 = vadd.f32 %v6110_v6, %v6109_v23 }
 0x174   : > { %v7890_v18 = vadd.f32 %v6190_v2, %v7709_v35  ;;  %v6196_v25 = vadd.f32 %v7795_v29, %v7788_v12  ;;  %v3248_v44 = vrot.slane %v3247_v4, 4  ;;  %v7895_v39 = vadd.f32 %v6193_v10, %v7713_v60  ;;  %v8215_v10 = vld [vmem:[#allocation13_spill] sm:$0xff] }
 0x175   : > { %v3257_v43 = vor.u32 %v3256_v27, %v3252_v24  ;;  %v6199_v9 = vadd.f32 %v7805_v22, %v7801_v0  ;;  %v6202_v12 = vadd.f32 %v7836_v21, %v7830_v57  ;;  %v6205_v29 = vadd.f32 %v7845_v37, %v7840_v59  ;;  %v6710_v21 = vld [vmem:[#allocation2 + $0xcc] sm:$0xff]  }
 0x176   : > { %v6206_v41 = vpop.f32.mrb[48].mxu1  ;;  %v7900_v35 = vadd.f32 %v6196_v25, %v7755_v36  ;;  %v3253_v60 = vsel %vm6819_vm4, %v3248_v44, %v3252_v24  ;;  %v8216_v25 = vld [vmem:[#allocation14_spill] sm:$0xff] }
 0x177   : > { %v6112_v54 = vpop.f32.mrb[44].mxu0  ;;  %v6207_v47 = vpop.f32.mrb[49].mxu1  ;;  %v3258_v23 = vrot.slane %v3257_v43, 4  ;;  %v7911_v22 = vadd.f32 %v6199_v9, %v7759_v30  ;;  %v7914_v36 = vadd.f32 %v6202_v12, %v7809_v40  ;;  %v7917_v6 = vadd.f32 %v6205_v29, %v7813_v45 }
 0x178   : > { %v6113_v63 = vpop.f32.mrb[45].mxu0  ;;  %v6209_v17 = vpop.f32.mrb[50].mxu1  ;;  %v6208_v61 = vadd.f32 %v6207_v47, %v6206_v41 }
 0x179   : > { %v6115_v34 = vpop.f32.mrb[46].mxu0  ;;  %v6210_v20 = vpop.f32.mrb[51].mxu1  ;;  %v7902_v31 = vadd.f32 %v6113_v63, %v6112_v54  ;;  %v3263_v57 = vsel %vm6819_vm4, %v3258_v23, %v3262_v32  ;;  %v8217_v23 = vld [vmem:[#allocation15_spill] sm:$0xff] }
 0x17a   : > { %v6116_v11 = vpop.f32.mrb[47].mxu0  ;;  %v6211_v56 = vadd.f32 %v6210_v20, %v6209_v17  ;;  %v5762_v59 = vcombine.low %v3253_v60, %v3263_v57  ;;  %v7922_v37 = vadd.f32 %v6208_v61, %v7853_v5 }
 0x17b   : > { %v6117_v0 = vadd.f32 %v6116_v11, %v6115_v34 }
 0x17c   : > { %v7925_v30 = vadd.f32 %v6211_v56, %v7857_v58  ;;  %4987 = vmatprep.mubr.bf16.mxu1 %v5762_v59 }
 0x17d   : > { %4988 = vmatmul.mubr.bf16.gmra.mrb[140].mxu1 %v6710_v21 }
 0x17e   : > { %v6212_v49 = vpop.f32.mrb[52].mxu1 }
 0x17f   : > { %v6270_v14 = vpop.f32.mrb[48].mxu0  ;;  %v6213_v40 = vpop.f32.mrb[53].mxu1 }
 0x180   : > { %v6271_v8 = vpop.f32.mrb[49].mxu0  ;;  %v6214_v45 = vadd.f32 %v6213_v40, %v6212_v49  ;;  %v6215_v52 = vpop.f32.mrb[54].mxu1 }
 0x181   : > { %v6272_v51 = vadd.f32 %v6271_v8, %v6270_v14  ;;  %v6273_v15 = vpop.f32.mrb[50].mxu0  ;;  %v6216_v28 = vpop.f32.mrb[55].mxu1 }
 0x182   : > { %v6274_v16 = vpop.f32.mrb[51].mxu0  ;;  %v7927_v55 = vadd.f32 %v6214_v45, %v6102_v7  ;;  %v6217_v48 = vadd.f32 %v6216_v28, %v6215_v52 }
 0x183   : > { %v7930_v5 = vadd.f32 %v6272_v51, %v7678_v26  ;;  %v6275_v58 = vadd.f32 %v6274_v16, %v6273_v15 }
 0x184   : > { %v7932_v33 = vadd.f32 %v6217_v48, %v6105_v3  ;;  %v8219_v48 = vld [vmem:[#allocation17_spill] sm:$0xff] }
 0x185   : > { %v7935_v46 = vadd.f32 %v6275_v58, %v8214_v19 }
 0x186   : > { %v6218_v24 = vpop.f32.mrb[56].mxu1 }
 0x187   : > { %v6276_v53 = vpop.f32.mrb[52].mxu0  ;;  %v6219_v1 = vpop.f32.mrb[57].mxu1 }
 0x188   : > { %v6277_v13 = vpop.f32.mrb[53].mxu0  ;;  %v6220_v4 = vadd.f32 %v6219_v1, %v6218_v24  ;;  %v6221_v27 = vpop.f32.mrb[58].mxu1 }
 0x189   : > { %v6278_v2 = vadd.f32 %v6277_v13, %v6276_v53  ;;  %v6279_v41 = vpop.f32.mrb[54].mxu0  ;;  %v6222_v32 = vpop.f32.mrb[59].mxu1  ;;  %v8220_v53 = vld [vmem:[#allocation4_spill] sm:$0xff] }
 0x18a   : > { %v6280_v7 = vpop.f32.mrb[55].mxu0  ;;  %v7940_v47 = vadd.f32 %v6220_v4, %v6108_v50  ;;  %v6223_v3 = vadd.f32 %v6222_v32, %v6221_v27 }
 0x18b   : > { %v7938_v54 = vadd.f32 %v6278_v2, %v8215_v10  ;;  %v6281_v26 = vadd.f32 %v6280_v7, %v6279_v41  ;;  %v8222_v2 = vld [vmem:[#allocation5_spill] sm:$0xff] }
 0x18c   : > { %v7945_v17 = vadd.f32 %v6223_v3, %v6111_v42  ;;  %v8218_v42 = vld [vmem:[#allocation16_spill] sm:$0xff] }
 0x18d   : > { %v7943_v63 = vadd.f32 %v6281_v26, %v8216_v25 }
 0x18e   : > { %v6224_v9 = vpop.f32.mrb[60].mxu1 }
 0x18f   : > { %v6282_v44 = vpop.f32.mrb[56].mxu0  ;;  %v6225_v11 = vpop.f32.mrb[61].mxu1 }
 0x190   : > { %v6283_v43 = vpop.f32.mrb[57].mxu0  ;;  %v6226_v29 = vadd.f32 %v6225_v11, %v6224_v9  ;;  %v6227_v60 = vpop.f32.mrb[62].mxu1  ;;  %v8223_v11 = vld [vmem:[#allocation6_spill] sm:$0xff] }
 0x191   : > { %v6284_v34 = vadd.f32 %v6283_v43, %v6282_v44  ;;  %v6285_v20 = vpop.f32.mrb[58].mxu0  ;;  %v6228_v56 = vpop.f32.mrb[63].mxu1 }
 0x192   : > { %v6286_v12 = vpop.f32.mrb[59].mxu0  ;;  %v7951_v57 = vadd.f32 %v6226_v29, %v7902_v31  ;;  %v6229_v21 = vadd.f32 %v6228_v56, %v6227_v60 }
 0x193   : > { %v7948_v61 = vadd.f32 %v6284_v34, %v8217_v23  ;;  %v6287_v50 = vadd.f32 %v6286_v12, %v6285_v20  ;;  %v8224_v23 = vld [vmem:[#allocation7_spill] sm:$0xff] }
 0x194   : > { %v7956_v49 = vadd.f32 %v6229_v21, %v6117_v0  ;;  %v8221_v0 = vld [vmem:[#allocation18_spill] sm:$0xff] }
 0x195   : > { %v7954_v59 = vadd.f32 %v6287_v50, %v8218_v42 }
 0x196   : > { %v6230_v8 = vpop.f32.mrb[64].mxu1 }
 0x197   : > { %v6288_v14 = vpop.f32.mrb[60].mxu0  ;;  %v6231_v51 = vpop.f32.mrb[65].mxu1 }
 0x198   : > { %v6289_v40 = vpop.f32.mrb[61].mxu0  ;;  %v6232_v28 = vadd.f32 %v6231_v51, %v6230_v8  ;;  %v6233_v16 = vpop.f32.mrb[66].mxu1 }
 0x199   : > { %v6290_v45 = vadd.f32 %v6289_v40, %v6288_v14  ;;  %v6291_v52 = vpop.f32.mrb[62].mxu0  ;;  %v6234_v19 = vpop.f32.mrb[67].mxu1 }
 0x19a   : > { %v6292_v15 = vpop.f32.mrb[63].mxu0  ;;  %v7962_v24 = vadd.f32 %v6232_v28, %v8220_v53  ;;  %v6235_v13 = vadd.f32 %v6234_v19, %v6233_v16  ;;  %v8225_v28 = vld [vmem:[#allocation8_spill] sm:$0xff]  ;;  %v8226_v19 = vld [vmem:[#allocation9_spill] sm:$0xff] }
 0x19b   : > { %v7959_v58 = vadd.f32 %v6290_v45, %v8219_v48  ;;  %v6293_v31 = vadd.f32 %v6292_v15, %v6291_v52 }
 0x19c   : > { %v7968_v41 = vadd.f32 %v6235_v13, %v8222_v2 }
 0x19d   : > { %v7965_v1 = vadd.f32 %v6293_v31, %v8221_v0 }
 0x19e   : > { %v6236_v10 = vpop.f32.mrb[68].mxu1 }
 0x19f   : > { %v6294_v4 = vpop.f32.mrb[64].mxu0  ;;  %v6237_v3 = vpop.f32.mrb[69].mxu1 }
 0x1a0   : > { %v6295_v27 = vpop.f32.mrb[65].mxu0  ;;  %v6238_v43 = vadd.f32 %v6237_v3, %v6236_v10  ;;  %v6239_v9 = vpop.f32.mrb[70].mxu1 }
 0x1a1   : > { %v6296_v7 = vadd.f32 %v6295_v27, %v6294_v4  ;;  %v6297_v32 = vpop.f32.mrb[66].mxu0  ;;  %v6240_v34 = vpop.f32.mrb[71].mxu1 }
 0x1a2   : > { %v6298_v26 = vpop.f32.mrb[67].mxu0  ;;  %v7977_v12 = vadd.f32 %v6238_v43, %v8223_v11  ;;  %v6241_v29 = vadd.f32 %v6240_v34, %v6239_v9 }
 0x1a3   : > { %v7971_v25 = vadd.f32 %v6296_v7, %v7864_v38  ;;  %v6299_v44 = vadd.f32 %v6298_v26, %v6297_v32 }
 0x1a4   : > { %v7980_v50 = vadd.f32 %v6241_v29, %v8224_v23  ;;  %v8228_v29 = vld [vmem:[#allocation11_spill] sm:$0xff] }
 0x1a5   : > { %v7974_v20 = vadd.f32 %v6299_v44, %v7879_v62  ;;  %v8227_v44 = vld [vmem:[#allocation10_spill] sm:$0xff] }
 0x1a6   : > { %v6242_v38 = vpop.f32.mrb[72].mxu1 }
 0x1a7   : > { %v6300_v60 = vpop.f32.mrb[68].mxu0  ;;  %v6243_v40 = vpop.f32.mrb[73].mxu1 }
 0x1a8   : > { %v6301_v56 = vpop.f32.mrb[69].mxu0  ;;  %v6244_v62 = vadd.f32 %v6243_v40, %v6242_v38  ;;  %v6245_v52 = vpop.f32.mrb[74].mxu1 }
 0x1a9   : > { %v6302_v21 = vadd.f32 %v6301_v56, %v6300_v60  ;;  %v6303_v42 = vpop.f32.mrb[70].mxu0  ;;  %v6246_v51 = vpop.f32.mrb[75].mxu1 }
 0x1aa   : > { %v6304_v14 = vpop.f32.mrb[71].mxu0  ;;  %v7989_v16 = vadd.f32 %v6244_v62, %v8225_v28  ;;  %v6247_v48 = vadd.f32 %v6246_v51, %v6245_v52 }
 0x1ab   : > { %v7983_v8 = vadd.f32 %v6302_v21, %v7890_v18  ;;  %v6305_v45 = vadd.f32 %v6304_v14, %v6303_v42 }
 0x1ac   : > { %v7992_v53 = vadd.f32 %v6247_v48, %v8226_v19 }
 0x1ad   : > { %v7986_v15 = vadd.f32 %v6305_v45, %v7895_v39 }
 0x1ae   : > { %v6248_v4 = vpop.f32.mrb[76].mxu1 }
 0x1af   : > { %v6306_v31 = vpop.f32.mrb[72].mxu0  ;;  %v6249_v32 = vpop.f32.mrb[77].mxu1 }
 0x1b0   : > { %v6307_v13 = vpop.f32.mrb[73].mxu0  ;;  %v6250_v39 = vadd.f32 %v6249_v32, %v6248_v4  ;;  %v6251_v10 = vpop.f32.mrb[78].mxu1 }
 0x1b1   : > { %v6308_v0 = vadd.f32 %v6307_v13, %v6306_v31  ;;  %v6309_v2 = vpop.f32.mrb[74].mxu0  ;;  %v6252_v3 = vpop.f32.mrb[79].mxu1 }
 0x1b2   : > { %v6310_v18 = vpop.f32.mrb[75].mxu0  ;;  %v8001_v43 = vadd.f32 %v6250_v39, %v8227_v44  ;;  %v6253_v9 = vadd.f32 %v6252_v3, %v6251_v10 }
 0x1b3   : > { %v7995_v27 = vadd.f32 %v6308_v0, %v7900_v35  ;;  %v6311_v7 = vadd.f32 %v6310_v18, %v6309_v2 }
 0x1b4   : > { %v8004_v60 = vadd.f32 %v6253_v9, %v8228_v29 }
 0x1b5   : > { %v7998_v26 = vadd.f32 %v6311_v7, %v7911_v22 }
 0x1b7   : > { %v6312_v34 = vpop.f32.mrb[76].mxu0 }
 0x1b8   : > { %v6313_v11 = vpop.f32.mrb[77].mxu0 }
 0x1b9   : > { %v6314_v23 = vadd.f32 %v6313_v11, %v6312_v34  ;;  %v6315_v35 = vpop.f32.mrb[78].mxu0 }
 0x1ba   : > { %v6316_v56 = vpop.f32.mrb[79].mxu0 }
 0x1bb   : > { %v8007_v21 = vadd.f32 %v6314_v23, %v7914_v36  ;;  %v6317_v42 = vadd.f32 %v6316_v56, %v6315_v35  ;;  %v6382_v40 = vpop.f32.mrb[80].mxu1 }
 0x1bc   : > { %v6383_v52 = vpop.f32.mrb[81].mxu1 }
 0x1bd   : > { %v8010_v22 = vadd.f32 %v6317_v42, %v7917_v6  ;;  %v6384_v28 = vadd.f32 %v6383_v52, %v6382_v40  ;;  %v6385_v48 = vpop.f32.mrb[82].mxu1 }
 0x1be   : > { %v6386_v13 = vpop.f32.mrb[83].mxu1 }
 0x1bf   : > { %v6318_v38 = vpop.f32.mrb[80].mxu0  ;;  %v6387_v36 = vadd.f32 %v6386_v13, %v6385_v48  ;;  %v8016_v0 = vadd.f32 %v6384_v28, %v7930_v5 }
 0x1c0   : > { %v6319_v14 = vpop.f32.mrb[81].mxu0 }
 0x1c1   : > { %v6320_v45 = vadd.f32 %v6319_v14, %v6318_v38  ;;  %v6321_v62 = vpop.f32.mrb[82].mxu0  ;;  %v8022_v2 = vadd.f32 %v6387_v36, %v7935_v46 }
 0x1c2   : > { %v6322_v51 = vpop.f32.mrb[83].mxu0 }
 0x1c3   : > { %v8013_v31 = vadd.f32 %v6320_v45, %v7922_v37  ;;  %v6323_v19 = vadd.f32 %v6322_v51, %v6321_v62 }
 0x1c5   : > { %v8019_v6 = vadd.f32 %v6323_v19, %v7925_v30  ;;  %v6388_v10 = vpop.f32.mrb[84].mxu1 }
 0x1c6   : > { %v6389_v44 = vpop.f32.mrb[85].mxu1 }
 0x1c7   : > { %v6324_v18 = vpop.f32.mrb[84].mxu0  ;;  %v6390_v9 = vadd.f32 %v6389_v44, %v6388_v10  ;;  %v6391_v5 = vpop.f32.mrb[86].mxu1 }
 0x1c8   : > { %v6325_v4 = vpop.f32.mrb[85].mxu0  ;;  %v6392_v30 = vpop.f32.mrb[87].mxu1 }
 0x1c9   : > { %v6326_v7 = vadd.f32 %v6325_v4, %v6324_v18  ;;  %v6327_v32 = vpop.f32.mrb[86].mxu0  ;;  %v6393_v11 = vadd.f32 %v6392_v30, %v6391_v5  ;;  %v8031_v46 = vadd.f32 %v6390_v9, %v7938_v54 }
 0x1ca   : > { %v6328_v39 = vpop.f32.mrb[87].mxu0 }
 0x1cb   : > { %v8025_v37 = vadd.f32 %v6326_v7, %v7927_v55  ;;  %v6329_v3 = vadd.f32 %v6328_v39, %v6327_v32  ;;  %v8034_v29 = vadd.f32 %v6393_v11, %v7943_v63 }
 0x1cd   : > { %v8028_v34 = vadd.f32 %v6329_v3, %v7932_v33 }
 0x1cf   : > { %v6330_v23 = vpop.f32.mrb[88].mxu0  ;;  %v6394_v38 = vpop.f32.mrb[88].mxu1 }
 0x1d0   : > { %v6331_v35 = vpop.f32.mrb[89].mxu0  ;;  %v6395_v33 = vpop.f32.mrb[89].mxu1 }
 0x1d1   : > { %v6332_v56 = vadd.f32 %v6331_v35, %v6330_v23  ;;  %v6333_v55 = vpop.f32.mrb[90].mxu0  ;;  %v6396_v45 = vadd.f32 %v6395_v33, %v6394_v38  ;;  %v6397_v62 = vpop.f32.mrb[90].mxu1 }
 0x1d2   : > { %v6334_v42 = vpop.f32.mrb[91].mxu0  ;;  %v6398_v54 = vpop.f32.mrb[91].mxu1 }
 0x1d3   : > { %v8037_v14 = vadd.f32 %v6332_v56, %v7940_v47  ;;  %v6335_v40 = vadd.f32 %v6334_v42, %v6333_v55  ;;  %v6399_v51 = vadd.f32 %v6398_v54, %v6397_v62  ;;  %v8043_v63 = vadd.f32 %v6396_v45, %v7948_v61 }
 0x1d5   : > { %v8040_v52 = vadd.f32 %v6335_v40, %v7945_v17  ;;  %v8046_v28 = vadd.f32 %v6399_v51, %v7954_v59 }
 0x1d7   : > { %v6336_v48 = vpop.f32.mrb[92].mxu0 }
 0x1d8   : > { %v6337_v19 = vpop.f32.mrb[93].mxu0 }
 0x1d9   : > { %v6338_v13 = vadd.f32 %v6337_v19, %v6336_v48  ;;  %v6339_v47 = vpop.f32.mrb[94].mxu0  ;;  %v6400_v36 = vpop.f32.mrb[92].mxu1 }
 0x1da   : > { %v6340_v18 = vpop.f32.mrb[95].mxu0  ;;  %v6401_v4 = vpop.f32.mrb[93].mxu1 }
 0x1db   : > { %v8049_v7 = vadd.f32 %v6338_v13, %v7951_v57  ;;  %v6341_v17 = vadd.f32 %v6340_v18, %v6339_v47  ;;  %v6402_v32 = vadd.f32 %v6401_v4, %v6400_v36  ;;  %v6403_v39 = vpop.f32.mrb[94].mxu1 }
 0x1dc   : > { %v6404_v10 = vpop.f32.mrb[95].mxu1 }
 0x1dd   : > { %v8052_v61 = vadd.f32 %v6341_v17, %v7956_v49  ;;  %v6405_v3 = vadd.f32 %v6404_v10, %v6403_v39  ;;  %v8055_v59 = vadd.f32 %v6402_v32, %v7959_v58 }
 0x1df   : > { %v8058_v44 = vadd.f32 %v6405_v3, %v7965_v1 }
 0x1e0   : > { %v6342_v9 = vpop.f32.mrb[96].mxu0 }
 0x1e1   : > { %v6343_v5 = vpop.f32.mrb[97].mxu0 }
 0x1e2   : > { %v6344_v30 = vadd.f32 %v6343_v5, %v6342_v9  ;;  %v6345_v11 = vpop.f32.mrb[98].mxu0 }
 0x1e3   : > { %v6346_v57 = vpop.f32.mrb[99].mxu0 }
 0x1e4   : > { %v6406_v23 = vpop.f32.mrb[96].mxu1  ;;  %v8061_v35 = vadd.f32 %v6344_v30, %v7962_v24  ;;  %v6347_v56 = vadd.f32 %v6346_v57, %v6345_v11 }
 0x1e5   : > { %v6407_v55 = vpop.f32.mrb[97].mxu1 }
 0x1e6   : > { %v6408_v49 = vadd.f32 %v6407_v55, %v6406_v23  ;;  %v6409_v42 = vpop.f32.mrb[98].mxu1  ;;  %v8064_v38 = vadd.f32 %v6347_v56, %v7968_v41 }
 0x1e7   : > { %v6410_v58 = vpop.f32.mrb[99].mxu1 }
 0x1e8   : > { %v6411_v40 = vadd.f32 %v6410_v58, %v6409_v42  ;;  %v8067_v1 = vadd.f32 %v6408_v49, %v7971_v25 }
 0x1ea   : > { %v8070_v33 = vadd.f32 %v6411_v40, %v7974_v20  ;;  %v6348_v45 = vpop.f32.mrb[100].mxu0 }
 0x1eb   : > { %v6349_v62 = vpop.f32.mrb[101].mxu0 }
 0x1ec   : > { %v6350_v54 = vadd.f32 %v6349_v62, %v6348_v45  ;;  %v6351_v24 = vpop.f32.mrb[102].mxu0 }
 0x1ed   : > { %v6352_v51 = vpop.f32.mrb[103].mxu0 }
 0x1ee   : > { %v6412_v48 = vpop.f32.mrb[100].mxu1  ;;  %v8073_v19 = vadd.f32 %v6350_v54, %v7977_v12  ;;  %v6353_v13 = vadd.f32 %v6352_v51, %v6351_v24 }
 0x1ef   : > { %v6413_v41 = vpop.f32.mrb[101].mxu1 }
 0x1f0   : > { %v6414_v47 = vadd.f32 %v6413_v41, %v6412_v48  ;;  %v6415_v36 = vpop.f32.mrb[102].mxu1  ;;  %v8076_v18 = vadd.f32 %v6353_v13, %v7980_v50 }
 0x1f1   : > { %v6416_v25 = vpop.f32.mrb[103].mxu1 }
 0x1f2   : > { %v6417_v4 = vadd.f32 %v6416_v25, %v6415_v36  ;;  %v8079_v20 = vadd.f32 %v6414_v47, %v7983_v8 }
 0x1f4   : > { %v8082_v17 = vadd.f32 %v6417_v4, %v7986_v15  ;;  %v6354_v32 = vpop.f32.mrb[104].mxu0 }
 0x1f5   : > { %v6355_v39 = vpop.f32.mrb[105].mxu0 }
 0x1f6   : > { %v6356_v10 = vadd.f32 %v6355_v39, %v6354_v32  ;;  %v6357_v12 = vpop.f32.mrb[106].mxu0 }
 0x1f7   : > { %v6358_v3 = vpop.f32.mrb[107].mxu0 }
 0x1f8   : > { %v6418_v9 = vpop.f32.mrb[104].mxu1  ;;  %v8085_v5 = vadd.f32 %v6356_v10, %v7989_v16  ;;  %v6359_v30 = vadd.f32 %v6358_v3, %v6357_v12 }
 0x1f9   : > { %v6419_v50 = vpop.f32.mrb[105].mxu1 }
 0x1fa   : > { %v6420_v11 = vadd.f32 %v6419_v50, %v6418_v9  ;;  %v6421_v57 = vpop.f32.mrb[106].mxu1  ;;  %v8088_v23 = vadd.f32 %v6359_v30, %v7992_v53 }
 0x1fb   : > { %v6422_v8 = vpop.f32.mrb[107].mxu1 }
 0x1fc   : > { %v6423_v56 = vadd.f32 %v6422_v8, %v6421_v57  ;;  %v8091_v15 = vadd.f32 %v6420_v11, %v7995_v27 }
 0x1fe   : > { %v8094_v55 = vadd.f32 %v6423_v56, %v7998_v26 }
 0x203   : > { %v6424_v42 = vpop.f32.mrb[108].mxu1 }
 0x204   : > { %v6360_v49 = vpop.f32.mrb[108].mxu0  ;;  %v6425_v16 = vpop.f32.mrb[109].mxu1 }
 0x205   : > { %v6361_v58 = vpop.f32.mrb[109].mxu0  ;;  %v6426_v62 = vadd.f32 %v6425_v16, %v6424_v42  ;;  %v6427_v54 = vpop.f32.mrb[110].mxu1 }
 0x206   : > { %v6362_v40 = vadd.f32 %v6361_v58, %v6360_v49  ;;  %v6363_v45 = vpop.f32.mrb[110].mxu0  ;;  %v6428_v53 = vpop.f32.mrb[111].mxu1 }
 0x207   : > { %v6364_v24 = vpop.f32.mrb[111].mxu0  ;;  %v6429_v27 = vadd.f32 %v6428_v53, %v6427_v54  ;;  %v8100_v13 = vadd.f32 %v6426_v62, %v8007_v21 }
 0x208   : > { %v8097_v51 = vadd.f32 %v6362_v40, %v8001_v43  ;;  %v6365_v48 = vadd.f32 %v6364_v24, %v6363_v45 }
 0x209   : > { %v8106_v41 = vadd.f32 %v6429_v27, %v8010_v22 }
 0x20a   : > { %v8103_v26 = vadd.f32 %v6365_v48, %v8004_v60 }
 0x20c   : > { %v6520_v47 = vpop.f32.mrb[112].mxu0 }
 0x20d   : > { %v5039_v36 = vadd.f32 %v6520_v47, %v8031_v46  ;;  %v5030_v25 = vpop.f32.mrb[113].mxu0 }
 0x20e   : > { %v5031_v4 = vadd.f32 %v5030_v25, %v8016_v0  ;;  %v6521_v32 = vpop.f32.mrb[114].mxu0  ;;  %v6430_v39 = vpop.f32.mrb[112].mxu1 }
 0x20f   : > { %v5042_v43 = vadd.f32 %v6521_v32, %v8034_v29  ;;  %v5033_v10 = vpop.f32.mrb[115].mxu0  ;;  %v6431_v21 = vpop.f32.mrb[113].mxu1  ;;  %v5357_v57 = vmul.f32 %v5039_v36, %v5039_v36 }
 0x210   : > { %v5034_v60 = vadd.f32 %v5033_v10, %v8022_v2  ;;  %v6432_v46 = vadd.f32 %v6431_v21, %v6430_v39  ;;  %v6433_v12 = vpop.f32.mrb[114].mxu1  ;;  %v5355_v0 = vmul.f32 %v5031_v4, %v5031_v4 }
 0x211   : > { %v5943_v22 = vpack.c.bf16 %v5042_v43, %v5039_v36  ;;  %v6434_v30 = vpop.f32.mrb[115].mxu1  ;;  %v5358_v16 = vmul.f32 %v5042_v43, %v5042_v43 }
 0x212   : > { %v5938_v3 = vpack.c.bf16 %v5034_v60, %v5031_v4  ;;  %v5317_v9 = vadd.f32 %v5034_v60, %v5031_v4  ;;  %v5356_v29 = vmul.f32 %v5034_v60, %v5034_v60  ;;  %v6435_v50 = vadd.f32 %v6434_v30, %v6433_v12 }
 0x213   : > { %6015 = vst [vmem:[%s8116_s12 + $0x8] sm:$0xff] %v5943_v22   ;;  %v8121_v11 = vadd.f32 %v6432_v46, %v8013_v31 }
 0x214   : > { %5939 = vst [vmem:[%s8116_s12] sm:$0xff] %v5938_v3   ;;  %v5318_v8 = vadd.f32 %v5317_v9, %v5039_v36  ;;  %v5387_v56 = vadd.f32 %v5356_v29, %v5355_v0  ;;  %v6524_v49 = vpop.f32.mrb[116].mxu0  ;;  %v8126_v58 = vadd.f32 %v6435_v50, %v8019_v6 }
 0x215   : > { %v5055_v2 = vadd.f32 %v6524_v49, %v8055_v59  ;;  %v5046_v42 = vpop.f32.mrb[117].mxu0 }
 0x216   : > { %v5388_v40 = vadd.f32 %v5387_v56, %v5357_v57  ;;  %v5047_v45 = vadd.f32 %v5046_v42, %v8043_v63  ;;  %v5319_v62 = vadd.f32 %v5318_v8, %v5042_v43  ;;  %v6525_v54 = vpop.f32.mrb[118].mxu0 }
 0x217   : > { %v5058_v31 = vadd.f32 %v6525_v54, %v8058_v44  ;;  %v5049_v24 = vpop.f32.mrb[119].mxu0  ;;  %v5361_v10 = vmul.f32 %v5055_v2, %v5055_v2 }
 0x218   : > { %v5320_v53 = vadd.f32 %v5319_v62, %v5047_v45  ;;  %v5359_v48 = vmul.f32 %v5047_v45, %v5047_v45  ;;  %v5389_v27 = vadd.f32 %v5388_v40, %v5358_v16  ;;  %v5050_v59 = vadd.f32 %v5049_v24, %v8046_v28  ;;  %v6436_v36 = vpop.f32.mrb[116].mxu1 }
 0x219   : > { %v5953_v47 = vpack.c.bf16 %v5058_v31, %v5055_v2  ;;  %v6437_v39 = vpop.f32.mrb[117].mxu1  ;;  %v5362_v3 = vmul.f32 %v5058_v31, %v5058_v31 }
 0x21a   : > { %v5390_v6 = vadd.f32 %v5389_v27, %v5359_v48  ;;  %v5948_v25 = vpack.c.bf16 %v5050_v59, %v5047_v45  ;;  %v5321_v4 = vadd.f32 %v5320_v53, %v5050_v59  ;;  %v5360_v32 = vmul.f32 %v5050_v59, %v5050_v59  ;;  %v6439_v43 = vpop.f32.mrb[118].mxu1 }
 0x21b   : > { %6017 = vst [vmem:[%s8116_s12 + $0x18] sm:$0xff] %v5953_v47   ;;  %v6438_v63 = vadd.f32 %v6437_v39, %v6436_v36  ;;  %v6440_v21 = vpop.f32.mrb[119].mxu1 }
 0x21c   : > { %6016 = vst [vmem:[%s8116_s12 + $0x10] sm:$0xff] %v5948_v25   ;;  %v5322_v44 = vadd.f32 %v5321_v4, %v5055_v2  ;;  %v5391_v60 = vadd.f32 %v5390_v6, %v5360_v32  ;;  %v6528_v22 = vpop.f32.mrb[120].mxu0  ;;  %v6441_v46 = vadd.f32 %v6440_v21, %v6439_v43 }
 0x21d   : > { %v5071_v12 = vadd.f32 %v6528_v22, %v8079_v20  ;;  %v5062_v28 = vpop.f32.mrb[121].mxu0  ;;  %v4942_v0 = vadd.f32 %v6438_v63, %v8025_v37 }
 0x21e   : > { %v5392_v9 = vadd.f32 %v5391_v60, %v5361_v10  ;;  %v5063_v29 = vadd.f32 %v5062_v28, %v8067_v1  ;;  %v5323_v30 = vadd.f32 %v5322_v44, %v5058_v31  ;;  %v6529_v50 = vpop.f32.mrb[122].mxu0  ;;  %v4945_v56 = vadd.f32 %v6441_v46, %v8028_v34 }
 0x21f   : > { %v5074_v57 = vadd.f32 %v6529_v50, %v8082_v17  ;;  %v5065_v8 = vpop.f32.mrb[123].mxu0  ;;  %v5365_v17 = vmul.f32 %v5071_v12, %v5071_v12 }
 0x220   : > { %v5324_v49 = vadd.f32 %v5323_v30, %v5063_v29  ;;  %v5363_v2 = vmul.f32 %v5063_v29, %v5063_v29  ;;  %v5393_v42 = vadd.f32 %v5392_v9, %v5362_v3  ;;  %v5066_v20 = vadd.f32 %v5065_v8, %v8070_v33  ;;  %v6442_v37 = vpop.f32.mrb[120].mxu1 }
 0x221   : > { %v5963_v16 = vpack.c.bf16 %v5074_v57, %v5071_v12  ;;  %v6443_v54 = vpop.f32.mrb[121].mxu1  ;;  %v5366_v6 = vmul.f32 %v5074_v57, %v5074_v57 }
 0x222   : > { %v5394_v40 = vadd.f32 %v5393_v42, %v5363_v2  ;;  %v5958_v45 = vpack.c.bf16 %v5066_v20, %v5063_v29  ;;  %v5325_v62 = vadd.f32 %v5324_v49, %v5066_v20  ;;  %v5364_v1 = vmul.f32 %v5066_v20, %v5066_v20  ;;  %v6445_v24 = vpop.f32.mrb[122].mxu1 }
 0x223   : > { %6019 = vst [vmem:[%s8116_s12 + $0x28] sm:$0xff] %v5963_v16   ;;  %v6444_v31 = vadd.f32 %v6443_v54, %v6442_v37  ;;  %v6446_v48 = vpop.f32.mrb[123].mxu1 }
 0x224   : > { %6018 = vst [vmem:[%s8116_s12 + $0x20] sm:$0xff] %v5958_v45   ;;  %v5326_v53 = vadd.f32 %v5325_v62, %v5071_v12  ;;  %v5395_v34 = vadd.f32 %v5394_v40, %v5364_v1  ;;  %v6532_v27 = vpop.f32.mrb[124].mxu0  ;;  %v6447_v59 = vadd.f32 %v6446_v48, %v6445_v24 }
 0x225   : > { %v5087_v47 = vadd.f32 %v6532_v27, %v8100_v13  ;;  %v5078_v33 = vpop.f32.mrb[125].mxu0  ;;  %v8143_v36 = vadd.f32 %v6444_v31, %v8037_v14 }
 0x226   : > { %v5396_v25 = vadd.f32 %v5395_v34, %v5365_v17  ;;  %v5079_v4 = vadd.f32 %v5078_v33, %v8091_v15  ;;  %v5327_v32 = vadd.f32 %v5326_v53, %v5074_v57  ;;  %v6533_v39 = vpop.f32.mrb[126].mxu0  ;;  %v8148_v10 = vadd.f32 %v6447_v59, %v8040_v52 }
 0x227   : > { %v5090_v63 = vadd.f32 %v6533_v39, %v8106_v41  ;;  %v5081_v43 = vpop.f32.mrb[127].mxu0  ;;  %v5369_v9 = vmul.f32 %v5087_v47, %v5087_v47 }
 0x228   : > { %v5328_v44 = vadd.f32 %v5327_v32, %v5079_v4  ;;  %v5367_v13 = vmul.f32 %v5079_v4, %v5079_v4  ;;  %v5397_v60 = vadd.f32 %v5396_v25, %v5366_v6  ;;  %v5082_v14 = vadd.f32 %v5081_v43, %v8094_v55 }
 0x229   : > { %v5973_v21 = vpack.c.bf16 %v5090_v63, %v5087_v47  ;;  %v6448_v46 = vpop.f32.mrb[124].mxu1  ;;  %v5370_v57 = vmul.f32 %v5090_v63, %v5090_v63 }
 0x22a   : > { %v5398_v22 = vadd.f32 %v5397_v60, %v5367_v13  ;;  %v5968_v12 = vpack.c.bf16 %v5082_v14, %v5079_v4  ;;  %v5329_v15 = vadd.f32 %v5328_v44, %v5082_v14  ;;  %v5368_v28 = vmul.f32 %v5082_v14, %v5082_v14  ;;  %v6449_v3 = vpop.f32.mrb[125].mxu1 }
 0x22b   : > { %6021 = vst [vmem:[%s8116_s12 + $0x38] sm:$0xff] %v5973_v21   ;;  %v6450_v30 = vadd.f32 %v6449_v3, %v6448_v46  ;;  %v6451_v52 = vpop.f32.mrb[126].mxu1 }
 0x22c   : > { %6020 = vst [vmem:[%s8116_s12 + $0x30] sm:$0xff] %v5968_v12   ;;  %v5330_v41 = vadd.f32 %v5329_v15, %v5087_v47  ;;  %v5399_v29 = vadd.f32 %v5398_v22, %v5368_v28  ;;  %v6536_v50 = vpop.f32.mrb[128].mxu0  ;;  %v6452_v8 = vpop.f32.mrb[127].mxu1 }
 0x22d   : > { %v5103_v49 = vadd.f32 %v6536_v50, %v4942_v0  ;;  %v5094_v2 = vpop.f32.mrb[129].mxu0  ;;  %v6453_v42 = vadd.f32 %v6452_v8, %v6451_v52  ;;  %v4958_v62 = vadd.f32 %v6450_v30, %v8049_v7 }
 0x22e   : > { %v5400_v55 = vadd.f32 %v5399_v29, %v5369_v9  ;;  %v5095_v20 = vadd.f32 %v5094_v2, %v8121_v11  ;;  %v5331_v16 = vadd.f32 %v5330_v41, %v5090_v63  ;;  %v6537_v37 = vpop.f32.mrb[130].mxu0 }
 0x22f   : > { %v5106_v40 = vadd.f32 %v6537_v37, %v4945_v56  ;;  %v5097_v45 = vpop.f32.mrb[131].mxu0  ;;  %v4961_v0 = vadd.f32 %v6453_v42, %v8052_v61  ;;  %v5373_v27 = vmul.f32 %v5103_v49, %v5103_v49 }
 0x230   : > { %v5332_v1 = vadd.f32 %v5331_v16, %v5095_v20  ;;  %v5371_v54 = vmul.f32 %v5095_v20, %v5095_v20  ;;  %v5401_v31 = vadd.f32 %v5400_v55, %v5370_v57  ;;  %v5098_v24 = vadd.f32 %v5097_v45, %v8126_v58 }
 0x231   : > { %v5983_v17 = vpack.c.bf16 %v5106_v40, %v5103_v49  ;;  %v5374_v7 = vmul.f32 %v5106_v40, %v5106_v40 }
 0x232   : > { %v5402_v53 = vadd.f32 %v5401_v31, %v5371_v54  ;;  %v5978_v34 = vpack.c.bf16 %v5098_v24, %v5095_v20  ;;  %v5333_v48 = vadd.f32 %v5332_v1, %v5098_v24  ;;  %v5372_v11 = vmul.f32 %v5098_v24, %v5098_v24 }
 0x233   : > { %6023 = vst [vmem:[%s8116_s12 + $0x48] sm:$0xff] %v5983_v17   ;;  %v6454_v59 = vpop.f32.mrb[128].mxu1 }
 0x234   : > { %6022 = vst [vmem:[%s8116_s12 + $0x40] sm:$0xff] %v5978_v34   ;;  %v5334_v56 = vadd.f32 %v5333_v48, %v5103_v49  ;;  %v5403_v47 = vadd.f32 %v5402_v53, %v5372_v11  ;;  %v6540_v33 = vpop.f32.mrb[132].mxu0  ;;  %v6455_v6 = vpop.f32.mrb[129].mxu1 }
 0x235   : > { %v5119_v25 = vadd.f32 %v6540_v33, %v4958_v62  ;;  %v5110_v4 = vpop.f32.mrb[133].mxu0  ;;  %v6456_v58 = vadd.f32 %v6455_v6, %v6454_v59  ;;  %v6457_v39 = vpop.f32.mrb[130].mxu1 }
 0x236   : > { %v5404_v32 = vadd.f32 %v5403_v47, %v5373_v27  ;;  %v5111_v61 = vadd.f32 %v5110_v4, %v8143_v36  ;;  %v5335_v63 = vadd.f32 %v5334_v56, %v5106_v40  ;;  %v6541_v43 = vpop.f32.mrb[134].mxu0  ;;  %v6458_v44 = vpop.f32.mrb[131].mxu1 }
 0x237   : > { %v5122_v13 = vadd.f32 %v6541_v43, %v4961_v0  ;;  %v5113_v60 = vpop.f32.mrb[135].mxu0  ;;  %v6459_v14 = vadd.f32 %v6458_v44, %v6457_v39  ;;  %v4966_v28 = vadd.f32 %v6456_v58, %v8061_v35  ;;  %v5377_v30 = vmul.f32 %v5119_v25, %v5119_v25 }
 0x238   : > { %v5336_v21 = vadd.f32 %v5335_v63, %v5111_v61  ;;  %v5375_v22 = vmul.f32 %v5111_v61, %v5111_v61  ;;  %v5405_v46 = vadd.f32 %v5404_v32, %v5374_v7  ;;  %v5114_v15 = vadd.f32 %v5113_v60, %v8148_v10 }
 0x239   : > { %v5993_v12 = vpack.c.bf16 %v5122_v13, %v5119_v25  ;;  %v4969_v9 = vadd.f32 %v6459_v14, %v8064_v38  ;;  %v5378_v2 = vmul.f32 %v5122_v13, %v5122_v13 }
 0x23a   : > { %v5406_v3 = vadd.f32 %v5405_v46, %v5375_v22  ;;  %v5988_v36 = vpack.c.bf16 %v5114_v15, %v5111_v61  ;;  %v5337_v41 = vadd.f32 %v5336_v21, %v5114_v15  ;;  %v5376_v29 = vmul.f32 %v5114_v15, %v5114_v15 }
 0x23b   : > { %6025 = vst [vmem:[%s8116_s12 + $0x58] sm:$0xff] %v5993_v12  }
 0x23c   : > { %6024 = vst [vmem:[%s8116_s12 + $0x50] sm:$0xff] %v5988_v36   ;;  %v5338_v52 = vadd.f32 %v5337_v41, %v5119_v25  ;;  %v5407_v50 = vadd.f32 %v5406_v3, %v5376_v29 }
 0x23d   : > { %v6544_v57 = vpop.f32.mrb[136].mxu0  ;;  %v6460_v8 = vpop.f32.mrb[132].mxu1 }
 0x23e   : > { %v5126_v49 = vpop.f32.mrb[137].mxu0  ;;  %v5408_v55 = vadd.f32 %v5407_v50, %v5377_v30  ;;  %v6461_v42 = vpop.f32.mrb[133].mxu1  ;;  %v5339_v20 = vadd.f32 %v5338_v52, %v5122_v13 }
 0x23f   : > { %v5127_v10 = vadd.f32 %v5126_v49, %v4966_v28  ;;  %v6545_v35 = vpop.f32.mrb[138].mxu0  ;;  %v6462_v16 = vadd.f32 %v6461_v42, %v6460_v8  ;;  %v6463_v38 = vpop.f32.mrb[134].mxu1 }
 0x240   : > { %v5129_v37 = vpop.f32.mrb[139].mxu0  ;;  %v6464_v40 = vpop.f32.mrb[135].mxu1  ;;  %v5409_v1 = vadd.f32 %v5408_v55, %v5378_v2 }
 0x241   : > { %v5340_v45 = vadd.f32 %v5339_v20, %v5127_v10  ;;  %v5379_v62 = vmul.f32 %v5127_v10, %v5127_v10  ;;  %v5130_v54 = vadd.f32 %v5129_v37, %v4969_v9  ;;  %v6465_v31 = vadd.f32 %v6464_v40, %v6463_v38 }
 0x242   : > { %v4974_v24 = vadd.f32 %v6462_v16, %v8073_v19 }
 0x243   : > { %v5410_v17 = vadd.f32 %v5409_v1, %v5379_v62  ;;  %v5998_v0 = vpack.c.bf16 %v5130_v54, %v5127_v10  ;;  %v5341_v53 = vadd.f32 %v5340_v45, %v5130_v54  ;;  %v5380_v34 = vmul.f32 %v5130_v54, %v5130_v54 }
 0x244   : > { %v5135_v48 = vadd.f32 %v6544_v57, %v4974_v24  ;;  %v4977_v11 = vadd.f32 %v6465_v31, %v8076_v18 }
 0x245   : > { %6026 = vst [vmem:[%s8116_s12 + $0x60] sm:$0xff] %v5998_v0   ;;  %v5411_v27 = vadd.f32 %v5410_v17, %v5380_v34  ;;  %v6548_v59 = vpop.f32.mrb[140].mxu0  ;;  %v6466_v33 = vpop.f32.mrb[136].mxu1 }
 0x246   : > { %v5381_v56 = vmul.f32 %v5135_v48, %v5135_v48  ;;  %v5138_v47 = vadd.f32 %v6545_v35, %v4977_v11  ;;  %v5342_v7 = vadd.f32 %v5341_v53, %v5135_v48  ;;  %v5142_v6 = vpop.f32.mrb[141].mxu0  ;;  %v6467_v25 = vpop.f32.mrb[137].mxu1 }
 0x247   : > { %v6549_v4 = vpop.f32.mrb[142].mxu0  ;;  %v6468_v39 = vadd.f32 %v6467_v25, %v6466_v33  ;;  %v6469_v61 = vpop.f32.mrb[138].mxu1 }
 0x248   : > { %v6003_v32 = vpack.c.bf16 %v5138_v47, %v5135_v48  ;;  %v5382_v19 = vmul.f32 %v5138_v47, %v5138_v47  ;;  %v5412_v58 = vadd.f32 %v5411_v27, %v5381_v56  ;;  %v5145_v63 = vpop.f32.mrb[143].mxu0  ;;  %v6470_v43 = vpop.f32.mrb[139].mxu1  ;;  %v5343_v44 = vadd.f32 %v5342_v7, %v5138_v47 }
 0x249   : > { %v6471_v18 = vadd.f32 %v6470_v43, %v6469_v61  ;;  %v4982_v13 = vadd.f32 %v6468_v39, %v8085_v5 }
 0x24a   : > { %6027 = vst [vmem:[%s8116_s12 + $0x68] sm:$0xff] %v6003_v32   ;;  %v5413_v60 = vadd.f32 %v5412_v58, %v5382_v19 }
 0x24b   : > { %v5143_v14 = vadd.f32 %v5142_v6, %v4982_v13  ;;  %v4985_v21 = vadd.f32 %v6471_v18, %v8088_v23 }
 0x24d   : > { %v5344_v22 = vadd.f32 %v5343_v44, %v5143_v14  ;;  %v5383_v46 = vmul.f32 %v5143_v14, %v5143_v14  ;;  %v5146_v12 = vadd.f32 %v5145_v63, %v4985_v21 }
 0x24f   : > { %v5414_v15 = vadd.f32 %v5413_v60, %v5383_v46  ;;  %v6008_v3 = vpack.c.bf16 %v5146_v12, %v5143_v14  ;;  %v5345_v9 = vadd.f32 %v5344_v22, %v5146_v12  ;;  %v5384_v36 = vmul.f32 %v5146_v12, %v5146_v12 }
 0x250   : > { %v6472_v28 = vpop.f32.mrb[140].mxu1 }
 0x251   : > { %v6473_v41 = vpop.f32.mrb[141].mxu1  ;;  %6028 = vst [vmem:[%s8116_s12 + $0x70] sm:$0xff] %v6008_v3   ;;  %v5415_v29 = vadd.f32 %v5414_v15, %v5384_v36 }
 0x252   : > { %v6474_v30 = vadd.f32 %v6473_v41, %v6472_v28  ;;  %v6475_v52 = vpop.f32.mrb[142].mxu1 }
 0x253   : > { %v6476_v50 = vpop.f32.mrb[143].mxu1 }
 0x254   : > { %v4990_v5 = vadd.f32 %v6474_v30, %v8097_v51  ;;  %v6477_v57 = vadd.f32 %v6476_v50, %v6475_v52 }
 0x256   : > { %v5151_v8 = vadd.f32 %v6548_v59, %v4990_v5  ;;  %v4993_v23 = vadd.f32 %v6477_v57, %v8103_v26 }
 0x258   : > { %v5346_v49 = vadd.f32 %v5345_v9, %v5151_v8  ;;  %v5385_v2 = vmul.f32 %v5151_v8, %v5151_v8  ;;  %v5154_v55 = vadd.f32 %v6549_v4, %v4993_v23 }
 0x25a   : > { %v5416_v42 = vadd.f32 %v5415_v29, %v5385_v2  ;;  %v6013_v10 = vpack.c.bf16 %v5154_v55, %v5151_v8  ;;  %v5347_v20 = vadd.f32 %v5346_v49, %v5154_v55  ;;  %v5386_v35 = vmul.f32 %v5154_v55, %v5154_v55 }
 0x25c   : > { %6029 = vst [vmem:[%s8116_s12 + $0x78] sm:$0xff] %v6013_v10   ;;  %v5348_v16 = vrot.slane %v5347_v20, 4  ;;  %v5417_v38 = vadd.f32 %v5416_v42, %v5386_v35 }
 0x25e   : > { %v5349_v37 = vadd.f32 %v5348_v16, %v5347_v20  ;;  %v5418_v40 = vrot.slane %v5417_v38, 4 }
 0x260   : > { %v5350_v45 = vrot.slane %v5349_v37, 2  ;;  %v5419_v51 = vadd.f32 %v5418_v40, %v5417_v38 }
 0x262   : > { %v5351_v62 = vadd.f32 %v5350_v45, %v5349_v37  ;;  %v5420_v1 = vrot.slane %v5419_v51, 2 }
 0x264   : > { %v5352_v54 = vrot.slane %v5351_v62, 1  ;;  %v5421_v26 = vadd.f32 %v5420_v1, %v5419_v51 }
 0x266   : > { %v5353_v31 = vadd.f32 %v5352_v54, %v5351_v62  ;;  %v5422_v24 = vrot.slane %v5421_v26, 1 }
 0x268   : > { %5354 = vst [vmem:[%s265_s14] sm:$0x1] %v5353_v31  ;;  %v5423_v17 = vadd.f32 %v5422_v24, %v5421_v26 }
 0x26a   : > { %5424 = vst [vmem:[%s268_s18] sm:$0x1] %v5423_v17 }
 0x26b PF: > { %s17_s21 = sadd.s32 1, %s6717_s21  }
 0x26c   : > { %p14_p4 = scmp.ge.s32.totalorder %s17_s21, 6  }
 0x26e   :  { %16 = sbr.rel (!%p14_p4) target bundleno = 1 (0x1), region = 93 }

// kernel: build_block_with_se.4
= control target key start
LH: loop header
LB: loop body
LE: loop exit
PB: predicated region body
PF: predicated region fallthrough
CT: control target
= control target key end

     0   :  { %s6887_s21 = smov 0   ;;  %s8688_s0 = inlined_call_operand.vmem [shape: bf16[4,16,16,128], index: 0, kind: input, shape index: {}]   ;;  %s8689_s1 = inlined_call_operand.vmem [shape: f32[1,128], index: 1, kind: input, shape index: {}]   ;;  %s8690_s2 = inlined_call_operand.vmem [shape: f32[1,128], index: 2, kind: input, shape index: {}]   ;;  %s8691_s3 = inlined_call_operand.vmem [shape: bf16[1152,128], index: 3, kind: input, shape index: {}]   ;;  %s8692_s4 = inlined_call_operand.vmem [shape: bf16[4,16,16,128], index: 4, kind: output, shape index: {0}]   ;;  %s8693_s5 = inlined_call_operand.vmem [shape: f32[4,1,128], index: 5, kind: output, shape index: {1}]   ;;  %s8694_s6 = inlined_call_operand.vmem [shape: f32[4,1,128], index: 6, kind: output, shape index: {2}]  }
   0x1 LB: > { %s5608_s22 = sadd.s32 4294967295, %s6849_s21   ;;  %p5612_p0 = scmp.ge.s32.totalorder %s6849_s21, 1  ;;  %s6849_s21 = sphi %s6887_s21, %s17_s21  }
   0x2   : > { %p217_p1 = scmp.lt.s32.totalorder %s6849_s21, 5 }
   0x4   : > { %p218_p2 = pnand %p5612_p0, %p217_p1 }
   0x6   : > { %221 = sbr.rel (%p218_p2) target bundleno = 643 (0x283), region = 36 }
   0xd   : > { %v6718_v0 = vld [vmem:[%s8691_s3 + $0x40] sm:$0xff]   ;;  %v6851_v2 = vmov 0   ;;  %v6720_v3 = vld [vmem:[%s8691_s3 + $0x48] sm:$0xff]   ;;  %v6722_v5 = vld [vmem:[%s8691_s3 + $0x50] sm:$0xff]   ;;  %p253_p3 = scmp.lt.s32.totalorder %s5608_s22, 3  ;;  %vm611_vm3 = vcmask 1040384  }
   0xe   : > { %v6719_v1 = vld [vmem:[%s8691_s3] sm:$0xff]   ;;  %460 = vst [vmem:[#allocation2] sm:$0xf] %v6851_v2  ;;  %461 = vst [vmem:[#allocation2 + $0x4] sm:$0xf] %v6851_v2  ;;  %6173 = vmatprep.subr.bf16.mxu0 %v6718_v0  ;;  %6693 = vmatprep.subr.bf16.mxu1 %v6718_v0  ;;  %v6721_v4 = vld [vmem:[%s8691_s3 + $0x8] sm:$0xff]  }
   0xf   : > { %462 = vst [vmem:[#allocation2 + $0x8] sm:$0x1] %v6851_v2  ;;  %464 = vst [vmem:[#allocation2 + $0xcc] sm:$0xf] %v6851_v2  ;;  %6174 = vmatpush3.bf16.msra.mxu0 %v6719_v1  ;;  %6701 = vmatpush3.bf16.msra.mxu1 %v6719_v1  ;;  %v6723_v6 = vld [vmem:[%s8691_s3 + $0x10] sm:$0xff]   ;;  %v6724_v7 = vld [vmem:[%s8691_s3 + $0x58] sm:$0xff]  }
  0x10   : > { %465 = vst [vmem:[#allocation2 + $0xd0] sm:$0xf] %v6851_v2  ;;  %466 = vst [vmem:[#allocation2 + $0xd4] sm:$0x1] %v6851_v2  ;;  %6175 = vmatprep.subr.bf16.mxu0 %v6720_v3  ;;  %6694 = vmatprep.subr.bf16.mxu1 %v6720_v3  ;;  %s8716_s22 = smov (!%p253_p3, %s5608_s22), 3  ;;  %v6725_v8 = vld [vmem:[%s8691_s3 + $0x18] sm:$0xff]  }
  0x11   : > { %v6726_v9 = vld [vmem:[%s8691_s3 + $0x60] sm:$0xff]   ;;  %s5965_s17 = sshll.u32 %s8716_s22, 7  ;;  %v6728_v11 = vld [vmem:[%s8691_s3 + $0x68] sm:$0xff]   ;;  %vm1063_vm0 = vsmask.f32 3328  ;;  %v6730_v25 = vld [vmem:[%s8691_s3 + $0x70] sm:$0xff]   ;;  %s265_s24 = scalar_lea.vmem %s8693_s5, %s8716_s22 }
  0x12   : > { %v6727_v10 = vld [vmem:[%s8691_s3 + $0x20] sm:$0xff]   ;;  %s6940_s26 = scalar_lea.vmem %s8688_s0, %s5965_s17  ;;  %vm1064_vm1 = vsmask.f32 7440  ;;  %v6729_v17 = vld [vmem:[%s8691_s3 + $0x28] sm:$0xff]   ;;  %v6731_v39 = vld [vmem:[%s8691_s3 + $0x30] sm:$0xff]   ;;  %vm1626_vm6 = vcmask 1042432   ;;  %s8618_s20 = scalar_lea.vmem %s8692_s4, %s5965_s17 }
  0x13   : > { %6176 = vmatpush3.bf16.msra.mxu0 %v6721_v4  ;;  %6702 = vmatpush3.bf16.msra.mxu1 %v6721_v4  ;;  %v6000_v23 = vld [vmem:[%s6940_s26] sm:$0xff]   ;;  %v6153_v24 = vld [vmem:[%s6940_s26 + $0x58] sm:$0xff]   ;;  %vm6962_vm2 = vmor %vm1063_vm0, %vm1064_vm1  ;;  %vm612_vm4 = vsmask.f32 256  ;;  %vm1627_vm7 = vcmask 1046532   ;;  %s268_s28 = scalar_lea.vmem %s8694_s6, %s8716_s22 }
  0x14   : > { %6177 = vmatprep.subr.bf16.mxu0 %v6722_v5  ;;  %6695 = vmatprep.subr.bf16.mxu1 %v6722_v5  ;;  %v6001_v28 = vunpack.c.l.bf16 %v6000_v23  ;;  %v6953_v29 = vld [vmem:[%s8689_s1] ss:$0 sm:$0xff]  ;;  %v6002_v31 = vunpack.c.h.bf16 %v6000_v23  ;;  %v6045_v33 = vunpack.c.l.bf16 %v6153_v24  ;;  %v6046_v38 = vunpack.c.h.bf16 %v6153_v24  ;;  %v6732_v43 = vld [vmem:[%s8691_s3 + $0x78] sm:$0xff]   ;;  %v6143_v59 = vld [vmem:[%s6940_s26 + $0x8] sm:$0xff]  }
  0x15   : > { %v1015_v12 = vld [vmem:[#allocation2] sm:$0xf]  ;;  %v1016_v13 = vld [vmem:[#allocation2 + $0x4] sm:$0xf]  ;;  %v6733_v47 = vld [vmem:[%s8691_s3 + $0x38] sm:$0xff]   ;;  %v6005_v61 = vunpack.c.l.bf16 %v6143_v59  ;;  %v6006_v62 = vunpack.c.h.bf16 %v6143_v59 }
  0x16   : > { %v1017_v14 = vld [vmem:[#allocation2 + $0x8] sm:$0x1]  ;;  %v1067_v15 = vshrl.u32 %v1015_v12, 16  ;;  %v1070_v16 = vshll.u32 %v1015_v12, 16  ;;  %v1076_v18 = vshll.u32 %v1016_v13, 16  ;;  %v1080_v19 = vshrl.u32 %v1016_v13, 16  ;;  %vm7011_vm5 = vmand %vm611_vm3, %vm612_vm4 }
  0x17   : > { %6178 = vmatpush3.bf16.msra.mxu0 %v6723_v6  ;;  %6703 = vmatpush3.bf16.msra.mxu1 %v6723_v6  ;;  %v1086_v20 = vshll.u32 %v1017_v14, 16  ;;  %v6958_v32 = vld [vmem:[%s8690_s2] ss:$0 sm:$0xff]  ;;  %v342_v37 = vmul.f32 %v6001_v28, %v6953_v29  ;;  %v343_v41 = vmul.f32 %v6002_v31, %v6953_v29  ;;  %v364_v42 = vmul.f32 %v6045_v33, %v6953_v29  ;;  %v6748_v12 = vld [vmem:[%s8691_s3 + $0x148] sm:$0xff]   ;;  %vm7199_vm8 = vmor %vm1626_vm6, %vm1627_vm7 }
  0x18   : > { %6179 = vmatprep.subr.bf16.mxu0 %v6724_v7  ;;  %6696 = vmatprep.subr.bf16.mxu1 %v6724_v7  ;;  %v1069_v21 = vrot.slane %v1067_v15, 4  ;;  %v1072_v22 = vrot.slane %v1070_v16, 5  ;;  %v1078_v26 = vrot.slane %v1076_v18, 5  ;;  %v1082_v27 = vrot.slane %v1080_v19, 4  ;;  %v6735_v54 = vld [vmem:[%s8691_s3 + $0xc0] sm:$0xff]   ;;  %v6750_v28 = vld [vmem:[%s8691_s3 + $0x108] sm:$0xff]  }
  0x19   : > { %v1088_v36 = vrot.slane %v1086_v20, 5  ;;  %v380_v45 = vadd.f32 %v6958_v32, %v342_v37  ;;  %v365_v46 = vmul.f32 %v6046_v38, %v6953_v29  ;;  %v381_v49 = vadd.f32 %v6958_v32, %v343_v41  ;;  %v6736_v58 = vld [vmem:[%s8691_s3 + $0x140] sm:$0xff]   ;;  %v6155_v41 = vld [vmem:[%s6940_s26 + $0x68] sm:$0xff]  }
  0x1a   : > { %v1073_v30 = vor.u32 %v1072_v22, %v1069_v21  ;;  %v1083_v35 = vor.u32 %v1082_v27, %v1078_v26  ;;  %v402_v50 = vadd.f32 %v6958_v32, %v364_v42  ;;  %v6154_v63 = vld [vmem:[%s6940_s26 + $0x60] sm:$0xff]   ;;  %v344_v5 = vmul.f32 %v6005_v61, %v6953_v29 }
  0x1b   : > { %6180 = vmatpush3.bf16.msra.mxu0 %v6725_v8  ;;  %6704 = vmatpush3.bf16.msra.mxu1 %v6725_v8  ;;  %v412_v52 = vmax.f32 %v380_v45, 0.0  ;;  %v403_v53 = vadd.f32 %v6958_v32, %v365_v46  ;;  %v413_v56 = vmax.f32 %v381_v49, 0.0  ;;  %v6734_v0 = vld [vmem:[#allocation2] sm:$0xff]   ;;  %v6049_v2 = vunpack.c.l.bf16 %v6154_v63 }
  0x1c   : > { %6181 = vmatprep.subr.bf16.mxu0 %v6726_v9  ;;  %6697 = vmatprep.subr.bf16.mxu1 %v6726_v9  ;;  %v1074_v40 = vrot.slane %v1073_v30, 4  ;;  %v1084_v44 = vrot.slane %v1083_v35, 4  ;;  %v434_v57 = vmax.f32 %v402_v50, 0.0  ;;  %v6050_v3 = vunpack.c.h.bf16 %v6154_v63  ;;  %v6740_v9 = vld [vmem:[%s8691_s3 + $0x100] sm:$0xff]   ;;  %v6144_v30 = vld [vmem:[%s6940_s26 + $0x10] sm:$0xff]  }
  0x1d   : > { %v435_v60 = vmax.f32 %v403_v53, 0.0  ;;  %v444_v1 = vpack.c.bf16 %v413_v56, %v412_v52  ;;  %v345_v6 = vmul.f32 %v6006_v62, %v6953_v29  ;;  %v382_v15 = vadd.f32 %v6958_v32, %v344_v5  ;;  %v6758_v63 = vld [vmem:[%s8691_s3 + $0x150] sm:$0xff]  }
  0x1e   : > { %v1079_v48 = vsel %vm6962_vm2, %v1074_v40, %v1078_v26  ;;  %v1089_v51 = vsel %vm6962_vm2, %v1084_v44, %v1088_v36  ;;  %v6009_v40 = vunpack.c.l.bf16 %v6144_v30  ;;  %v6010_v52 = vunpack.c.h.bf16 %v6144_v30 }
  0x1f   : > { %6182 = vmatpush3.bf16.msra.mxu0 %v6727_v10  ;;  %6705 = vmatpush3.bf16.msra.mxu1 %v6727_v10  ;;  %v5683_v55 = vcombine.low %v1079_v48, %v1089_v51  ;;  %v455_v4 = vpack.c.bf16 %v435_v60, %v434_v57  ;;  %v468_v7 = vshrl.u32 %v444_v1, 16  ;;  %v471_v8 = vshll.u32 %v444_v1, 16 }
  0x20   : > { %6183 = vmatprep.subr.bf16.mxu0 %v6728_v11  ;;  %6698 = vmatprep.subr.bf16.mxu1 %v6728_v11  ;;  %v366_v10 = vmul.f32 %v6049_v2, %v6953_v29  ;;  %v367_v11 = vmul.f32 %v6050_v3, %v6953_v29  ;;  %v383_v16 = vadd.f32 %v6958_v32, %v345_v6  ;;  %v414_v22 = vmax.f32 %v382_v15, 0.0 }
  0x21   : > { %4462 = vmatprep.mubr.bf16.mxu0 %v5683_v55  ;;  %v545_v13 = vshrl.u32 %v455_v4, 16  ;;  %v548_v14 = vshll.u32 %v455_v4, 16  ;;  %v346_v53 = vmul.f32 %v6009_v40, %v6953_v29  ;;  %v6053_v56 = vunpack.c.l.bf16 %v6155_v41 }
  0x22   : > { %v404_v18 = vadd.f32 %v6958_v32, %v366_v10  ;;  %v405_v19 = vadd.f32 %v6958_v32, %v367_v11  ;;  %v415_v23 = vmax.f32 %v383_v16, 0.0  ;;  %v6054_v57 = vunpack.c.h.bf16 %v6155_v41 }
  0x23   : > { %6184 = vmatpush3.bf16.msra.mxu0 %v6729_v17  ;;  %6706 = vmatpush3.bf16.msra.mxu1 %v6729_v17  ;;  %v470_v17 = vrot.slane %v468_v7, 7  ;;  %v547_v21 = vrot.slane %v545_v13, 7  ;;  %v347_v61 = vmul.f32 %v6010_v52, %v6953_v29  ;;  %v384_v62 = vadd.f32 %v6958_v32, %v346_v53  ;;  %v6762_v13 = vld [vmem:[%s8691_s3 + $0x110] sm:$0xff]  }
  0x24   : > { %6185 = vmatprep.subr.bf16.mxu0 %v6730_v25  ;;  %6699 = vmatprep.subr.bf16.mxu1 %v6730_v25  ;;  %v436_v26 = vmax.f32 %v404_v18, 0.0  ;;  %v437_v27 = vmax.f32 %v405_v19, 0.0  ;;  %v445_v36 = vpack.c.bf16 %v415_v23, %v414_v22  ;;  %v368_v3 = vmul.f32 %v6053_v56, %v6953_v29 }
  0x25   : > { %v473_v24 = vor.u32 %v471_v8, %v470_v17  ;;  %v630_v25 = vsel %vm7011_vm5, %v470_v17, 0  ;;  %v550_v33 = vor.u32 %v548_v14, %v547_v21  ;;  %v641_v35 = vsel %vm7011_vm5, %v547_v21, 0 }
  0x26   : > { %v5621_v31 = vcombine.low %v630_v25, %v630_v25  ;;  %v5654_v38 = vcombine.low %v641_v35, %v641_v35  ;;  %v475_v45 = vshrl.u32 %v445_v36, 16  ;;  %v478_v48 = vshll.u32 %v445_v36, 16 }
  0x27   : > { %6186 = vmatpush3.bf16.msra.mxu0 %v6731_v39  ;;  %6707 = vmatpush3.bf16.msra.mxu1 %v6731_v39  ;;  %v614_v37 = vsel %vm7011_vm5, 0, %v473_v24  ;;  %v456_v39 = vpack.c.bf16 %v437_v27, %v436_v26  ;;  %v625_v44 = vsel %vm7011_vm5, 0, %v550_v33  ;;  %v385_v6 = vadd.f32 %v6958_v32, %v347_v61 }
  0x28   : > { %6187 = vmatprep.subr.bf16.mxu0 %v6732_v43  ;;  %6700 = vmatprep.subr.bf16.mxu1 %v6732_v43  ;;  %v5619_v42 = vcombine.low %v614_v37, %v614_v37  ;;  %v5620_v43 = vcombine.high %v614_v37, %v614_v37  ;;  %825 = vst [vmem:[#allocation2 + $0x14] sm:$0x1] %v5621_v31  ;;  %858 = vst [vmem:[#allocation2 + $0x98] sm:$0x1] %v5654_v38  ;;  %v477_v50 = vrot.slane %v475_v45, 7 }
  0x29   : > { %v5652_v46 = vcombine.low %v625_v44, %v625_v44  ;;  %v552_v49 = vshrl.u32 %v456_v39, 16  ;;  %v555_v51 = vshll.u32 %v456_v39, 16  ;;  %v416_v7 = vmax.f32 %v384_v62, 0.0  ;;  %v7060_v39 = vld [vmem:[%s6940_s26 + $0x70] sm:$0xff]  }
  0x2a   : > { %823 = vst [vmem:[#allocation2 + $0xc] sm:$0xf] %v5619_v42  ;;  %824 = vst [vmem:[#allocation2 + $0x10] sm:$0xf] %v5620_v43  ;;  %v480_v59 = vor.u32 %v478_v48, %v477_v50  ;;  %v631_v60 = vsel %vm7011_vm5, %v477_v50, 0  ;;  %v417_v18 = vmax.f32 %v385_v6, 0.0  ;;  %v7053_v23 = vadd.f32 %v6958_v32, %v368_v3 }
  0x2b   : > { %6188 = vmatpush3.bf16.msra.mxu0 %v6733_v47  ;;  %6708 = vmatpush3.bf16.msra.mxu1 %v6733_v47  ;;  %v5653_v47 = vcombine.high %v625_v44, %v625_v44  ;;  %856 = vst [vmem:[#allocation2 + $0x90] sm:$0xf] %v5652_v46  ;;  %v554_v55 = vrot.slane %v552_v49, 7 }
  0x2c   : > { %6285 = vmatprep.subr.bf16.mxu1 %v6735_v54  ;;  %6397 = vmatprep.subr.bf16.mxu0 %v6736_v58  ;;  %v7030_v54 = vld [vmem:[%s6940_s26 + $0x18] sm:$0xff]   ;;  %v615_v4 = vsel %vm7011_vm5, 0, %v480_v59  ;;  %v7062_v50 = vpack.c.bf16 %v417_v18, %v416_v7 }
  0x2d   : > { %857 = vst [vmem:[#allocation2 + $0x94] sm:$0xf] %v5653_v47  ;;  %v6013_v58 = vunpack.c.l.bf16 %v7030_v54  ;;  %v557_v1 = vor.u32 %v555_v51, %v554_v55  ;;  %v642_v2 = vsel %vm7011_vm5, %v554_v55, 0  ;;  %v5623_v10 = vcombine.high %v615_v4, %v615_v4 }
  0x2e   : > { %4463 = vmatmul.mubr.bf16.vlgmr.msra.gmra.mrb[0].mxu0 %v6734_v0  ;;  %v5624_v0 = vcombine.low %v631_v60, %v631_v60  ;;  %v5657_v5 = vcombine.low %v642_v2, %v642_v2  ;;  %v6014_v25 = vunpack.c.h.bf16 %v7030_v54  ;;  %v438_v51 = vmax.f32 %v7053_v23, 0.0  ;;  %v6146_v23 = vld [vmem:[%s6940_s26 + $0x20] sm:$0xff]  }
  0x2f   : > { %6398 = vmatpush3.bf16.msra.mxu0 %v6740_v9  ;;  %v1020_v8 = vld [vmem:[#allocation2 + $0x14] sm:$0x1]  ;;  %v5622_v9 = vcombine.low %v615_v4, %v615_v4  ;;  %v626_v11 = vsel %vm7011_vm5, 0, %v557_v1  ;;  %v1053_v15 = vld [vmem:[#allocation2 + $0x98] sm:$0x1] }
  0x30   : > { %6399 = vmatprep.subr.bf16.mxu0 %v6748_v12  ;;  %828 = vst [vmem:[#allocation2 + $0x20] sm:$0x1] %v5624_v0  ;;  %v369_v12 = vmul.f32 %v6054_v57, %v6953_v29  ;;  %v1110_v14 = vshll.u32 %v1020_v8, 16  ;;  %v5655_v16 = vcombine.low %v626_v11, %v626_v11  ;;  %v5656_v17 = vcombine.high %v626_v11, %v626_v11 }
  0x31   : > { %861 = vst [vmem:[#allocation2 + $0xa4] sm:$0x1] %v5657_v5  ;;  %v1018_v19 = vld [vmem:[#allocation2 + $0xc] sm:$0xf]  ;;  %v1019_v21 = vld [vmem:[#allocation2 + $0x10] sm:$0xf]  ;;  %v7068_v57 = vmul.f32 %v6013_v58, %v6953_v29  ;;  %v6057_v0 = vunpack.c.l.bf16 %v7060_v39 }
  0x32   : > { %v1374_v22 = vshll.u32 %v1053_v15, 16  ;;  %826 = vst [vmem:[#allocation2 + $0x18] sm:$0xf] %v5622_v9  ;;  %827 = vst [vmem:[#allocation2 + $0x1c] sm:$0xf] %v5623_v10  ;;  %v7056_v24 = vadd.f32 %v6958_v32, %v369_v12  ;;  %v1091_v26 = vshrl.u32 %v1018_v19, 16 }
  0x33   : > { %6400 = vmatpush3.bf16.msra.mxu0 %v6750_v28  ;;  %v1094_v27 = vshll.u32 %v1018_v19, 16  ;;  %v1100_v28 = vshll.u32 %v1019_v21, 16  ;;  %v1104_v30 = vshrl.u32 %v1019_v21, 16  ;;  %v1051_v31 = vld [vmem:[#allocation2 + $0x90] sm:$0xf]  ;;  %v1112_v33 = vrot.slane %v1110_v14, 5 }
  0x34   : > { %6401 = vmatprep.subr.bf16.mxu0 %v6758_v63  ;;  %859 = vst [vmem:[#allocation2 + $0x9c] sm:$0xf] %v5655_v16  ;;  %860 = vst [vmem:[#allocation2 + $0xa0] sm:$0xf] %v5656_v17  ;;  %v1052_v35 = vld [vmem:[#allocation2 + $0x94] sm:$0xf]  ;;  %v7071_v63 = vmul.f32 %v6014_v25, %v6953_v29 }
  0x35   : > { %v1355_v36 = vshrl.u32 %v1051_v31, 16  ;;  %v1358_v37 = vshll.u32 %v1051_v31, 16  ;;  %v1376_v38 = vrot.slane %v1374_v22, 5  ;;  %v1093_v40 = vrot.slane %v1091_v26, 4  ;;  %v6737_v3 = vld [vmem:[#allocation2 + $0xc] sm:$0xff]   ;;  %v6739_v14 = vld [vmem:[%s8691_s3 + $0x80] sm:$0xff]  }
  0x36   : > { %v1096_v41 = vrot.slane %v1094_v27, 5  ;;  %v1102_v42 = vrot.slane %v1100_v28, 5  ;;  %v1106_v43 = vrot.slane %v1104_v30, 4  ;;  %v1364_v46 = vshll.u32 %v1052_v35, 16  ;;  %v6738_v21 = vld [vmem:[#allocation2 + $0x90] sm:$0xff]   ;;  %v6741_v30 = vld [vmem:[%s8691_s3 + $0xc8] sm:$0xff]  }
  0x37   : > { %6402 = vmatpush3.bf16.msra.mxu0 %v6762_v13  ;;  %v1357_v44 = vrot.slane %v1355_v36, 4  ;;  %v1360_v45 = vrot.slane %v1358_v37, 5  ;;  %v1368_v47 = vshrl.u32 %v1052_v35, 16  ;;  %v1023_v56 = vld [vmem:[#allocation2 + $0x20] sm:$0x1] }
  0x38   : > { %v1097_v48 = vor.u32 %v1096_v41, %v1093_v40  ;;  %v1107_v49 = vor.u32 %v1106_v43, %v1102_v42  ;;  %v1366_v53 = vrot.slane %v1364_v46, 5  ;;  %v1134_v18 = vshll.u32 %v1023_v56, 16  ;;  %v1056_v22 = vld [vmem:[#allocation2 + $0xa4] sm:$0x1] }
  0x39   : > { %v1361_v52 = vor.u32 %v1360_v45, %v1357_v44  ;;  %v1370_v55 = vrot.slane %v1368_v47, 4  ;;  %v1021_v61 = vld [vmem:[#allocation2 + $0x18] sm:$0xf]  ;;  %v1022_v62 = vld [vmem:[#allocation2 + $0x1c] sm:$0xf]  ;;  %v1398_v43 = vshll.u32 %v1056_v22, 16 }
  0x3a   : > { %v1098_v59 = vrot.slane %v1097_v48, 4  ;;  %v1108_v60 = vrot.slane %v1107_v49, 4  ;;  %v1115_v4 = vshrl.u32 %v1021_v61, 16  ;;  %v1118_v5 = vshll.u32 %v1021_v61, 16  ;;  %v6742_v49 = vld [vmem:[%s8691_s3 + $0x88] sm:$0xff]   ;;  %v6744_v56 = vld [vmem:[#allocation2 + $0x18] sm:$0xff]  }
  0x3b   : > { %v1362_v1 = vrot.slane %v1361_v52, 4  ;;  %v1371_v2 = vor.u32 %v1370_v55, %v1366_v53  ;;  %v1054_v6 = vld [vmem:[#allocation2 + $0x9c] sm:$0xf]  ;;  %v1124_v7 = vshll.u32 %v1022_v62, 16  ;;  %v1128_v8 = vshrl.u32 %v1022_v62, 16 }
  0x3c   : > { %v1103_v54 = vsel %vm6962_vm2, %v1098_v59, %v1102_v42  ;;  %v1113_v58 = vsel %vm6962_vm2, %v1108_v60, %v1112_v33  ;;  %v1055_v9 = vld [vmem:[#allocation2 + $0xa0] sm:$0xf]  ;;  %v1117_v13 = vrot.slane %v1115_v4, 4  ;;  %v1120_v15 = vrot.slane %v1118_v5, 5  ;;  %v6749_v22 = vld [vmem:[%s8691_s3 + $0x98] sm:$0xff]  }
  0x3d   : > { %v5684_v10 = vcombine.low %v1103_v54, %v1113_v58  ;;  %v1367_v11 = vsel %vm6962_vm2, %v1362_v1, %v1366_v53  ;;  %v1372_v12 = vrot.slane %v1371_v2, 4  ;;  %v1126_v16 = vrot.slane %v1124_v7, 5  ;;  %v6769_v1 = vld [vmem:[%s8691_s3 + $0x158] sm:$0xff]   ;;  %v6746_v2 = vld [vmem:[%s8691_s3 + $0x90] sm:$0xff]  }
  0x3e   : > { %v1130_v17 = vrot.slane %v1128_v8, 4  ;;  %v1379_v25 = vshrl.u32 %v1054_v6, 16  ;;  %v1382_v26 = vshll.u32 %v1054_v6, 16  ;;  %v1388_v27 = vshll.u32 %v1055_v9, 16  ;;  %v6747_v7 = vld [vmem:[%s8691_s3 + $0xd8] sm:$0xff]   ;;  %6403 = vmatprep.subr.bf16.mxu0 %v6769_v1  ;;  %v6755_v1 = vld [vmem:[%s8691_s3 + $0xe8] sm:$0xff]  }
  0x3f   : > { %4470 = vmatprep.mubr.bf16.mxu0 %v5684_v10  ;;  %v1377_v19 = vsel %vm6962_vm2, %v1372_v12, %v1376_v38  ;;  %v1121_v31 = vor.u32 %v1120_v15, %v1117_v13  ;;  %v1136_v35 = vrot.slane %v1134_v18, 5  ;;  %v1392_v41 = vshrl.u32 %v1055_v9, 16  ;;  %v6745_v13 = vld [vmem:[#allocation2 + $0x9c] sm:$0xff]  }
  0x40   : > { %v5695_v28 = vcombine.low %v1367_v11, %v1377_v19  ;;  %4471 = vmatmul.mubr.bf16.gmra.mrb[4].mxu0 %v6737_v3  ;;  %v1131_v33 = vor.u32 %v1130_v17, %v1126_v16  ;;  %v1381_v36 = vrot.slane %v1379_v25, 4  ;;  %v1384_v37 = vrot.slane %v1382_v26, 5 }
  0x41   : > { %v1390_v40 = vrot.slane %v1388_v27, 5  ;;  %v1122_v38 = vrot.slane %v1121_v31, 4  ;;  %v482_v44 = vshrl.u32 %v7062_v50, 16  ;;  %v1394_v46 = vrot.slane %v1392_v41, 4  ;;  %v6751_v27 = vld [vmem:[%s8691_s3 + $0xe0] sm:$0xff]  }
  0x42   : > { %4558 = vmatprep.mubr.bf16.mxu1 %v5695_v28  ;;  %v1132_v42 = vrot.slane %v1131_v33, 4  ;;  %v1385_v45 = vor.u32 %v1384_v37, %v1381_v36  ;;  %v485_v47 = vshll.u32 %v7062_v50, 16  ;;  %v439_v48 = vmax.f32 %v7056_v24, 0.0  ;;  %v6743_v24 = vld [vmem:[%s8691_s3 + $0xd0] sm:$0xff]   ;;  %v7140_v31 = vld [vmem:[#allocation2] sm:$0xe] }
  0x43   : > { %4559 = vmatmul.mubr.bf16.vlgmr.msra.gmra.mrb[0].mxu1 %v6738_v21  ;;  %v1127_v52 = vsel %vm6962_vm2, %v1122_v38, %v1126_v16  ;;  %v1400_v55 = vrot.slane %v1398_v43, 5  ;;  %v484_v59 = vrot.slane %v482_v44, 7  ;;  %v1395_v61 = vor.u32 %v1394_v46, %v1390_v40  ;;  %v7143_v36 = vld [vmem:[#allocation2 + $0x4] sm:$0xf] }
  0x44   : > { %6286 = vmatpush3.bf16.msra.mxu1 %v6739_v14  ;;  %v1137_v53 = vsel %vm6962_vm2, %v1132_v42, %v1136_v35  ;;  %v1386_v50 = vrot.slane %v1385_v45, 4  ;;  %v457_v62 = vpack.c.bf16 %v439_v48, %v438_v51  ;;  %v386_v5 = vadd.f32 %v6958_v32, %v7068_v57  ;;  %v6770_v51 = vld [vmem:[%s8691_s3 + $0x118] sm:$0xff]   ;;  %v6774_v42 = vld [vmem:[%s8691_s3 + $0x160] sm:$0xff]  }
  0x45   : > { %6287 = vmatprep.subr.bf16.mxu1 %v6741_v30  ;;  %v5685_v60 = vcombine.low %v1127_v52, %v1137_v53  ;;  %v487_v3 = vor.u32 %v485_v47, %v484_v59  ;;  %v632_v4 = vsel %vm7011_vm5, %v484_v59, 0  ;;  %v387_v6 = vadd.f32 %v6958_v32, %v7071_v63  ;;  %6404 = vmatpush3.bf16.msra.mxu0 %v6770_v51  ;;  %v6754_v47 = vld [vmem:[%s8691_s3 + $0xa0] sm:$0xff]  }
  0x46   : > { %v1391_v54 = vsel %vm6962_vm2, %v1386_v50, %v1390_v40  ;;  %v1396_v58 = vrot.slane %v1395_v61, 4  ;;  %v5627_v8 = vcombine.low %v632_v4, %v632_v4  ;;  %v559_v9 = vshrl.u32 %v457_v62, 16  ;;  %6405 = vmatprep.subr.bf16.mxu0 %v6774_v42 }
  0x47   : > { %4478 = vmatprep.mubr.bf16.mxu0 %v5685_v60  ;;  %v616_v57 = vsel %vm7011_vm5, 0, %v487_v3  ;;  %v562_v63 = vshll.u32 %v457_v62, 16  ;;  %v418_v10 = vmax.f32 %v386_v5, 0.0  ;;  %v419_v11 = vmax.f32 %v387_v6, 0.0 }
  0x48   : > { %6288 = vmatpush3.bf16.msra.mxu1 %v6742_v49  ;;  %4479 = vmatmul.mubr.bf16.gmra.mrb[8].mxu0 %v6744_v56  ;;  %v1401_v12 = vsel %vm6962_vm2, %v1396_v58, %v1400_v55  ;;  %v5625_v14 = vcombine.low %v616_v57, %v616_v57  ;;  %v5626_v15 = vcombine.high %v616_v57, %v616_v57  ;;  %v561_v16 = vrot.slane %v559_v9, 7  ;;  %v7161_v55 = vld [vmem:[%s6940_s26 + $0x28] sm:$0xff]  }
  0x49   : > { %6289 = vmatprep.subr.bf16.mxu1 %v6743_v24  ;;  %831 = vst [vmem:[#allocation2 + $0x2c] sm:$0x1] %v5627_v8  ;;  %v5696_v17 = vcombine.low %v1391_v54, %v1401_v12  ;;  %v447_v18 = vpack.c.bf16 %v419_v11, %v418_v10  ;;  %v6058_v19 = vunpack.c.h.bf16 %v7060_v39  ;;  %v370_v21 = vmul.f32 %v6057_v0, %v6953_v29  ;;  %v6777_v24 = vld [vmem:[%s8691_s3 + $0x120] sm:$0xff]  }
  0x4a   : > { %829 = vst [vmem:[#allocation2 + $0x24] sm:$0xf] %v5625_v14  ;;  %830 = vst [vmem:[#allocation2 + $0x28] sm:$0xf] %v5626_v15  ;;  %v564_v25 = vor.u32 %v562_v63, %v561_v16  ;;  %v643_v26 = vsel %vm7011_vm5, %v561_v16, 0  ;;  %v6017_v28 = vunpack.c.l.bf16 %v6146_v23  ;;  %v6018_v30 = vunpack.c.h.bf16 %v6146_v23  ;;  %6406 = vmatpush3.bf16.msra.mxu0 %v6777_v24  ;;  %v6756_v63 = vld [vmem:[%s8691_s3 + $0xa8] sm:$0xff]  }
  0x4b   : > { %4566 = vmatprep.mubr.bf16.mxu1 %v5696_v17  ;;  %v5660_v39 = vcombine.low %v643_v26, %v643_v26  ;;  %v489_v0 = vshrl.u32 %v447_v18, 16  ;;  %v492_v33 = vshll.u32 %v447_v18, 16  ;;  %v371_v35 = vmul.f32 %v6058_v19, %v6953_v29  ;;  %v6761_v26 = vld [vmem:[%s8691_s3 + $0xb0] sm:$0xff]  }
  0x4c   : > { %6290 = vmatpush3.bf16.msra.mxu1 %v6746_v2  ;;  %v627_v37 = vsel %vm7011_vm5, 0, %v564_v25  ;;  %v408_v40 = vadd.f32 %v6958_v32, %v370_v21  ;;  %v350_v41 = vmul.f32 %v6017_v28, %v6953_v29  ;;  %v351_v38 = vmul.f32 %v6018_v30, %v6953_v29 }
  0x4d   : > { %4567 = vmatmul.mubr.bf16.gmra.mrb[4].mxu1 %v6745_v13  ;;  %6291 = vmatprep.subr.bf16.mxu1 %v6747_v7  ;;  %v5658_v43 = vcombine.low %v627_v37, %v627_v37  ;;  %v5659_v44 = vcombine.high %v627_v37, %v627_v37  ;;  %864 = vst [vmem:[#allocation2 + $0xb0] sm:$0x1] %v5660_v39  ;;  %v491_v45 = vrot.slane %v489_v0, 7  ;;  %v5699_v53 = vrot.slane %v7140_v31, 9  ;;  %v6757_v13 = vld [vmem:[%s8691_s3 + $0xf0] sm:$0xff]   ;;  %v6763_v0 = vld [vmem:[%s8691_s3 + $0xf8] sm:$0xff]  }
  0x4e   : > { %v409_v46 = vadd.f32 %v6958_v32, %v371_v35  ;;  %v440_v48 = vmax.f32 %v408_v40, 0.0  ;;  %v388_v49 = vadd.f32 %v6958_v32, %v350_v41  ;;  %v389_v52 = vadd.f32 %v6958_v32, %v351_v38 }
  0x4f   : > { %862 = vst [vmem:[#allocation2 + $0xa8] sm:$0xf] %v5658_v43  ;;  %863 = vst [vmem:[#allocation2 + $0xac] sm:$0xf] %v5659_v44  ;;  %v494_v59 = vor.u32 %v492_v33, %v491_v45  ;;  %v633_v60 = vsel %vm7011_vm5, %v491_v45, 0  ;;  %v1631_v61 = vrot.slane %v7143_v36, 5  ;;  %v6021_v51 = vunpack.c.l.bf16 %v7161_v55 }
  0x50   : > { %6292 = vmatpush3.bf16.msra.mxu1 %v6749_v22  ;;  %v1026_v56 = vld [vmem:[#allocation2 + $0x2c] sm:$0x1]  ;;  %v441_v50 = vmax.f32 %v409_v46, 0.0  ;;  %v5630_v2 = vcombine.low %v633_v60, %v633_v60  ;;  %v420_v3 = vmax.f32 %v388_v49, 0.0  ;;  %v421_v4 = vmax.f32 %v389_v52, 0.0 }
  0x51   : > { %v1158_v62 = vshll.u32 %v1026_v56, 16  ;;  %6293 = vmatprep.subr.bf16.mxu1 %v6751_v27  ;;  %v1024_v5 = vld [vmem:[#allocation2 + $0x24] sm:$0xf]  ;;  %v1025_v6 = vld [vmem:[#allocation2 + $0x28] sm:$0xf]  ;;  %v6022_v54 = vunpack.c.h.bf16 %v7161_v55  ;;  %v617_v10 = vsel %vm7011_vm5, 0, %v494_v59  ;;  %v352_v35 = vmul.f32 %v6021_v51, %v6953_v29 }
  0x52   : > { %v458_v23 = vpack.c.bf16 %v441_v50, %v440_v48  ;;  %v1139_v58 = vshrl.u32 %v1024_v5, 16  ;;  %v1142_v7 = vshll.u32 %v1024_v5, 16  ;;  %v1148_v8 = vshll.u32 %v1025_v6, 16  ;;  %834 = vst [vmem:[#allocation2 + $0x38] sm:$0x1] %v5630_v2  ;;  %v6752_v45 = vld [vmem:[#allocation2 + $0x24] sm:$0xff]  }
  0x53   : > { %v1152_v9 = vshrl.u32 %v1025_v6, 16  ;;  %v1160_v57 = vrot.slane %v1158_v62, 5  ;;  %v5628_v21 = vcombine.low %v617_v10, %v617_v10  ;;  %v5629_v22 = vcombine.high %v617_v10, %v617_v10  ;;  %v6764_v5 = vld [vmem:[%s8691_s3 + $0xb8] sm:$0xff]   ;;  %v6766_v6 = vld [vmem:[%s8691_s3 + $0x1c0] sm:$0xff]  }
  0x54   : > { %6294 = vmatpush3.bf16.msra.mxu1 %v6754_v47  ;;  %v566_v11 = vshrl.u32 %v458_v23, 16  ;;  %v569_v12 = vshll.u32 %v458_v23, 16  ;;  %v1141_v14 = vrot.slane %v1139_v58, 4  ;;  %v1144_v15 = vrot.slane %v1142_v7, 5  ;;  %v1059_v18 = vld [vmem:[#allocation2 + $0xb0] sm:$0x1] }
  0x55   : > { %v1150_v16 = vrot.slane %v1148_v8, 5  ;;  %v1154_v17 = vrot.slane %v1152_v9, 4  ;;  %6295 = vmatprep.subr.bf16.mxu1 %v6755_v1  ;;  %v1422_v19 = vshll.u32 %v1059_v18, 16  ;;  %v7188_v33 = vpack.c.bf16 %v421_v4, %v420_v3  ;;  %832 = vst [vmem:[#allocation2 + $0x30] sm:$0xf] %v5628_v21  ;;  %v7212_v23 = vld [vmem:[%s6940_s26 + $0x30] sm:$0xff]  }
  0x56   : > { %v568_v25 = vrot.slane %v566_v11, 7  ;;  %v1145_v27 = vor.u32 %v1144_v15, %v1141_v14  ;;  %v1057_v30 = vld [vmem:[#allocation2 + $0xa8] sm:$0xf]  ;;  %v1058_v39 = vld [vmem:[#allocation2 + $0xac] sm:$0xf]  ;;  %v7227_v15 = vsel %vm7199_vm8, %v5699_v53, %v1631_v61  ;;  %v6025_v18 = vunpack.c.l.bf16 %v7212_v23 }
  0x57   : > { %v1155_v28 = vor.u32 %v1154_v17, %v1150_v16  ;;  %v1403_v37 = vshrl.u32 %v1057_v30, 16  ;;  %v1406_v40 = vshll.u32 %v1057_v30, 16  ;;  %v1412_v41 = vshll.u32 %v1058_v39, 16  ;;  %833 = vst [vmem:[#allocation2 + $0x34] sm:$0xf] %v5629_v22  ;;  %v6753_v21 = vld [vmem:[#allocation2 + $0xa8] sm:$0xff]  }
  0x58   : > { %v1416_v38 = vshrl.u32 %v1058_v39, 16  ;;  %6296 = vmatpush3.bf16.msra.mxu1 %v6756_v63  ;;  %v1146_v42 = vrot.slane %v1145_v27, 4  ;;  %v1424_v44 = vrot.slane %v1422_v19, 5  ;;  %v571_v46 = vor.u32 %v569_v12, %v568_v25  ;;  %v1532_v9 = vld [vmem:[#allocation2 + $0x8] sm:$0x1] }
  0x59   : > { %v1156_v43 = vrot.slane %v1155_v28, 4  ;;  %6297 = vmatprep.subr.bf16.mxu1 %v6757_v13  ;;  %v1405_v47 = vrot.slane %v1403_v37, 4  ;;  %v1408_v48 = vrot.slane %v1406_v40, 5  ;;  %v1414_v49 = vrot.slane %v1412_v41, 5  ;;  %v1029_v56 = vld [vmem:[#allocation2 + $0x38] sm:$0x1] }
  0x5a   : > { %v1418_v52 = vrot.slane %v1416_v38, 4  ;;  %v1151_v59 = vsel %vm6962_vm2, %v1146_v42, %v1150_v16  ;;  %v1182_v50 = vshll.u32 %v1029_v56, 16  ;;  %v628_v24 = vsel %vm7011_vm5, 0, %v571_v46  ;;  %v7257_v42 = vld [vmem:[%s8690_s2] ss:$0 sm:$0xff] }
  0x5b   : > { %v1161_v60 = vsel %vm6962_vm2, %v1156_v43, %v1160_v57  ;;  %v1409_v2 = vor.u32 %v1408_v48, %v1405_v47  ;;  %v644_v4 = vsel %vm7011_vm5, %v568_v25, 0  ;;  %v5661_v58 = vcombine.low %v628_v24, %v628_v24  ;;  %v6781_v57 = vld [vmem:[%s8691_s3 + $0x168] sm:$0xff]   ;;  %v1534_v56 = vld [vmem:[#allocation2 + $0x10] sm:$0xf] }
  0x5c   : > { %v5686_v1 = vcombine.low %v1151_v59, %v1161_v60  ;;  %v1419_v3 = vor.u32 %v1418_v52, %v1414_v49  ;;  %6298 = vmatpush3.bf16.msra.mxu1 %v6761_v26  ;;  %v7214_v51 = vrot.slane %v1182_v50, 5  ;;  %v5662_v7 = vcombine.high %v628_v24, %v628_v24  ;;  %v1027_v13 = vld [vmem:[#allocation2 + $0x30] sm:$0xf]  ;;  %6407 = vmatprep.subr.bf16.mxu0 %v6781_v57  ;;  %v1533_v52 = vld [vmem:[#allocation2 + $0xc] sm:$0xe] }
  0x5d   : > { %v5663_v8 = vcombine.low %v644_v4, %v644_v4  ;;  %6299 = vmatprep.subr.bf16.mxu1 %v6763_v0  ;;  %v1410_v63 = vrot.slane %v1409_v2, 4  ;;  %v496_v11 = vshrl.u32 %v7188_v33, 16  ;;  %v499_v12 = vshll.u32 %v7188_v33, 16  ;;  %865 = vst [vmem:[#allocation2 + $0xb4] sm:$0xf] %v5661_v58 }
  0x5e   : > { %4486 = vmatprep.mubr.bf16.mxu0 %v5686_v1  ;;  %v1420_v10 = vrot.slane %v1419_v3, 4  ;;  %v1028_v14 = vld [vmem:[#allocation2 + $0x34] sm:$0xf]  ;;  %866 = vst [vmem:[#allocation2 + $0xb8] sm:$0xf] %v5662_v7  ;;  %v353_v16 = vmul.f32 %v6022_v54, %v6953_v29  ;;  %v7233_v17 = vadd.f32 %v6958_v32, %v352_v35  ;;  %v1163_v22 = vshrl.u32 %v1027_v13, 16 }
  0x5f   : > { %4487 = vmatmul.mubr.bf16.gmra.mrb[12].mxu0 %v6752_v45  ;;  %867 = vst [vmem:[#allocation2 + $0xbc] sm:$0x1] %v5663_v8  ;;  %v1415_v19 = vsel %vm6962_vm2, %v1410_v63, %v1414_v49  ;;  %v1166_v53 = vshll.u32 %v1027_v13, 16  ;;  %v1172_v26 = vshll.u32 %v1028_v14, 16  ;;  %v1176_v55 = vshrl.u32 %v1028_v14, 16  ;;  %v6782_v32 = vld [vmem:[%s8691_s3 + $0x128] sm:$0xff]  }
  0x60   : > { %v1425_v31 = vsel %vm6962_vm2, %v1420_v10, %v1424_v44  ;;  %6300 = vmatpush3.bf16.msra.mxu1 %v6764_v5  ;;  %v498_v29 = vrot.slane %v496_v11, 7  ;;  %v1165_v54 = vrot.slane %v1163_v22, 4  ;;  %v1633_v28 = vrot.slane %v1631_v61, 4  ;;  %6408 = vmatpush3.bf16.msra.mxu0 %v6782_v32  ;;  %v7261_v59 = vld [vmem:[#allocation2 + $0x14] sm:$0x1] }
  0x61   : > { %v5697_v25 = vcombine.low %v1415_v19, %v1425_v31  ;;  %6509 = vmatprep.subr.bf16.mxu1 %v6766_v6  ;;  %v1168_v27 = vrot.slane %v1166_v53, 5  ;;  %v1634_v30 = vrot.slane %v1532_v9, 5  ;;  %v1174_v39 = vrot.slane %v1172_v26, 5  ;;  %v7266_v60 = vld [vmem:[%s8689_s1] ss:$0 sm:$0xff]  ;;  %v6759_v63 = vld [vmem:[#allocation2 + $0x30] sm:$0xff]  }
  0x62   : > { %v1178_v0 = vrot.slane %v1176_v55, 4  ;;  %v501_v33 = vor.u32 %v499_v12, %v498_v29  ;;  %v634_v35 = vsel %vm7011_vm5, %v498_v29, 0  ;;  %v6026_v38 = vunpack.c.h.bf16 %v7212_v23  ;;  %v7275_v10 = vld [vmem:[#allocation2 + $0x18] sm:$0xe] }
  0x63   : > { %4574 = vmatprep.mubr.bf16.mxu1 %v5697_v25  ;;  %v1169_v37 = vor.u32 %v1168_v27, %v1165_v54  ;;  %v5633_v40 = vcombine.low %v634_v35, %v634_v35  ;;  %v7249_v41 = vsel %vm7199_vm8, %v1633_v28, %v1634_v30  ;;  %v391_v43 = vadd.f32 %v7257_v42, %v353_v16  ;;  %v7278_v16 = vld [vmem:[%s6940_s26 + $0x38] sm:$0xff]  }
  0x64   : > { %4575 = vmatmul.mubr.bf16.gmra.mrb[8].mxu1 %v6753_v21  ;;  %v1179_v36 = vor.u32 %v1178_v0, %v1174_v39  ;;  %v618_v61 = vsel %vm7011_vm5, 0, %v501_v33  ;;  %v422_v44 = vmax.f32 %v7233_v17, 0.0  ;;  %v1060_v46 = vld [vmem:[#allocation2 + $0xb4] sm:$0xf]  ;;  %v354_v50 = vmul.f32 %v7266_v60, %v6025_v18 }
  0x65   : > { %v1170_v45 = vrot.slane %v1169_v37, 4  ;;  %v1061_v47 = vld [vmem:[#allocation2 + $0xb8] sm:$0xf]  ;;  %v5631_v48 = vcombine.low %v618_v61, %v618_v61  ;;  %v5632_v49 = vcombine.high %v618_v61, %v618_v61  ;;  %837 = vst [vmem:[#allocation2 + $0x44] sm:$0x1] %v5633_v40  ;;  %v1427_v2 = vshrl.u32 %v1060_v46, 16 }
  0x66   : > { %v1180_v24 = vrot.slane %v1179_v36, 4  ;;  %v1062_v1 = vld [vmem:[#allocation2 + $0xbc] sm:$0x1]  ;;  %v1430_v3 = vshll.u32 %v1060_v46, 16  ;;  %v1436_v4 = vshll.u32 %v1061_v47, 16  ;;  %v1440_v6 = vshrl.u32 %v1061_v47, 16 }
  0x67   : > { %v1175_v5 = vsel %vm6962_vm2, %v1170_v45, %v1174_v39  ;;  %v1446_v23 = vshll.u32 %v1062_v1, 16  ;;  %835 = vst [vmem:[#allocation2 + $0x3c] sm:$0xf] %v5631_v48  ;;  %836 = vst [vmem:[#allocation2 + $0x40] sm:$0xf] %v5632_v49  ;;  %v355_v58 = vmul.f32 %v7266_v60, %v6026_v38  ;;  %v1429_v8 = vrot.slane %v1427_v2, 4 }
  0x68   : > { %v1185_v7 = vsel %vm6962_vm2, %v1180_v24, %v7214_v51  ;;  %v1432_v9 = vrot.slane %v1430_v3, 5  ;;  %v1438_v57 = vrot.slane %v1436_v4, 5  ;;  %v1442_v12 = vrot.slane %v1440_v6, 4  ;;  %v6788_v17 = vld [vmem:[%s8691_s3 + $0x170] sm:$0xff]   ;;  %v1537_v36 = vld [vmem:[#allocation2 + $0x1c] sm:$0xf] }
  0x69   : > { %v5687_v11 = vcombine.low %v1175_v5, %v1185_v7  ;;  %v1448_v13 = vrot.slane %v1446_v23, 5  ;;  %v423_v14 = vmax.f32 %v391_v43, 0.0  ;;  %v5700_v19 = vrot.slane %v1533_v52, 9  ;;  %v6790_v21 = vld [vmem:[%s8691_s3 + $0x130] sm:$0xff]   ;;  %6409 = vmatprep.subr.bf16.mxu0 %v6788_v17 }
  0x6a   : > { %v1433_v18 = vor.u32 %v1432_v9, %v1429_v8  ;;  %v1638_v31 = vrot.slane %v1534_v56, 5  ;;  %v1641_v51 = vrot.slane %v7261_v59, 5  ;;  %v1443_v22 = vor.u32 %v1442_v12, %v1438_v57  ;;  %6410 = vmatpush3.bf16.msra.mxu0 %v6790_v21  ;;  %v6765_v37 = vld [vmem:[#allocation2 + $0xc] sm:$0xff]   ;;  %v1538_v56 = vld [vmem:[#allocation2 + $0x20] sm:$0x1]  ;;  %v6795_v21 = vld [vmem:[%s8691_s3 + $0x178] sm:$0xff]  }
  0x6b   : > { %4494 = vmatprep.mubr.bf16.mxu0 %v5687_v11  ;;  %v5715_v53 = vcombine.low %v7227_v15, %v7249_v41  ;;  %v449_v25 = vpack.c.bf16 %v423_v14, %v422_v44  ;;  %v392_v32 = vadd.f32 %v7257_v42, %v354_v50  ;;  %v5701_v54 = vrot.slane %v7275_v10, 9  ;;  %v6760_v44 = vld [vmem:[#allocation2 + $0xb4] sm:$0xff]   ;;  %6411 = vmatprep.subr.bf16.mxu0 %v6795_v21  ;;  %v6775_v10 = vld [vmem:[%s8691_s3 + $0x1c8] sm:$0xff]  }
  0x6c   : > { %v1434_v26 = vrot.slane %v1433_v18, 4  ;;  %4495 = vmatmul.mubr.bf16.gmra.mrb[16].mxu0 %v6759_v63  ;;  %v1032_v55 = vld [vmem:[#allocation2 + $0x44] sm:$0x1]  ;;  %v1640_v29 = vrot.slane %v1638_v31, 4  ;;  %v1444_v27 = vrot.slane %v1443_v22, 4  ;;  %v7295_v40 = vsel %vm7199_vm8, %v5700_v19, %v1638_v31 }
  0x6d   : > { %v1206_v28 = vshll.u32 %v1032_v55, 16  ;;  %v503_v30 = vshrl.u32 %v449_v25, 16  ;;  %v506_v39 = vshll.u32 %v449_v25, 16  ;;  %v393_v38 = vadd.f32 %v7257_v42, %v355_v58  ;;  %v1540_v19 = vld [vmem:[#allocation2 + $0x28] sm:$0xf]  ;;  %v7308_v31 = vld [vmem:[%s6940_s26 + $0x40] sm:$0xff]  }
  0x6e   : > { %v1439_v0 = vsel %vm6962_vm2, %v1434_v26, %v1438_v57  ;;  %v1030_v33 = vld [vmem:[#allocation2 + $0x3c] sm:$0xf]  ;;  %v1031_v35 = vld [vmem:[#allocation2 + $0x40] sm:$0xf]  ;;  %v6029_v61 = vunpack.c.l.bf16 %v7278_v16  ;;  %v1449_v43 = vsel %vm6962_vm2, %v1444_v27, %v1448_v13  ;;  %v6030_v50 = vunpack.c.h.bf16 %v7278_v16  ;;  %v1539_v13 = vld [vmem:[#allocation2 + $0x24] sm:$0xe] }
  0x6f   : > { %v1187_v45 = vshrl.u32 %v1030_v33, 16  ;;  %v1190_v46 = vshll.u32 %v1030_v33, 16  ;;  %v1196_v47 = vshll.u32 %v1031_v35, 16  ;;  %v5698_v48 = vcombine.low %v1439_v0, %v1449_v43  ;;  %v6768_v25 = vld [vmem:[%s8691_s3 + $0x180] sm:$0xff]   ;;  %v1541_v43 = vld [vmem:[#allocation2 + $0x2c] sm:$0x1] }
  0x70   : > { %v1200_v49 = vshrl.u32 %v1031_v35, 16  ;;  %v505_v52 = vrot.slane %v503_v30, 7  ;;  %v1208_v3 = vrot.slane %v1206_v28, 5  ;;  %v424_v23 = vmax.f32 %v392_v32, 0.0  ;;  %v6771_v28 = vld [vmem:[#allocation2 + $0x18] sm:$0xff]  }
  0x71   : > { %v1189_v24 = vrot.slane %v1187_v45, 4  ;;  %v1192_v1 = vrot.slane %v1190_v46, 5  ;;  %v1198_v2 = vrot.slane %v1196_v47, 5  ;;  %4582 = vmatprep.mubr.bf16.mxu1 %v5698_v48  ;;  %v425_v8 = vmax.f32 %v393_v38, 0.0  ;;  %v6767_v33 = vld [vmem:[#allocation2 + $0x3c] sm:$0xff]  }
  0x72   : > { %v1202_v4 = vrot.slane %v1200_v49, 4  ;;  %v508_v5 = vor.u32 %v506_v39, %v505_v52  ;;  %v635_v6 = vsel %vm7011_vm5, %v505_v52, 0  ;;  %4583 = vmatmul.mubr.bf16.gmra.mrb[12].mxu1 %v6760_v44  ;;  %v1645_v9 = vrot.slane %v1537_v36, 5  ;;  %v7348_v48 = vld [vmem:[#allocation2 + $0x30] sm:$0xe] }
  0x73   : > { %v1193_v58 = vor.u32 %v1192_v1, %v1189_v24  ;;  %v5636_v7 = vcombine.low %v635_v6, %v635_v6  ;;  %4623 = vmatprep.mubr.bf16.mxu1 %v6765_v37  ;;  %v1648_v11 = vrot.slane %v1538_v56, 5  ;;  %v356_v12 = vmul.f32 %v7266_v60, %v6029_v61  ;;  %v6796_v37 = vld [vmem:[%s8691_s3 + $0x138] sm:$0xff]  }
  0x74   : > { %v1203_v57 = vor.u32 %v1202_v4, %v1198_v2  ;;  %v619_v63 = vsel %vm7011_vm5, 0, %v508_v5  ;;  %v450_v18 = vpack.c.bf16 %v425_v8, %v424_v23  ;;  %v7320_v26 = vsel %vm7199_vm8, %v1640_v29, %v1641_v51  ;;  %6412 = vmatpush3.bf16.msra.mxu0 %v6796_v37  ;;  %v6800_v4 = vld [vmem:[%s8691_s3 + $0x200] sm:$0xff]   ;;  %v7377_v8 = vld [vmem:[%s6940_s26 + $0x48] sm:$0xff]  }
  0x75   : > { %v1194_v14 = vrot.slane %v1193_v58, 4  ;;  %v5634_v16 = vcombine.low %v619_v63, %v619_v63  ;;  %v5635_v17 = vcombine.high %v619_v63, %v619_v63  ;;  %840 = vst [vmem:[#allocation2 + $0x50] sm:$0x1] %v5636_v7  ;;  %v1647_v55 = vrot.slane %v1645_v9, 4  ;;  %v7373_v58 = vld [vmem:[#allocation2 + $0x34] sm:$0xf]  ;;  %6645 = vmatprep.subr.bf16.mxu0 %v6800_v4 }
  0x76   : > { %v1204_v22 = vrot.slane %v1203_v57, 4  ;;  %v357_v32 = vmul.f32 %v7266_v60, %v6030_v50  ;;  %v510_v30 = vshrl.u32 %v450_v18, 16  ;;  %v513_v39 = vshll.u32 %v450_v18, 16  ;;  %v6778_v50 = vld [vmem:[%s8691_s3 + $0x188] sm:$0xff]  }
  0x77   : > { %v1199_v27 = vsel %vm6962_vm2, %v1194_v14, %v1198_v2  ;;  %838 = vst [vmem:[#allocation2 + $0x48] sm:$0xf] %v5634_v16  ;;  %839 = vst [vmem:[#allocation2 + $0x4c] sm:$0xf] %v5635_v17  ;;  %v394_v0 = vadd.f32 %v7257_v42, %v356_v12  ;;  %v7332_v51 = vsel %vm7199_vm8, %v5701_v54, %v1645_v9  ;;  %v5702_v54 = vrot.slane %v1539_v13, 9  ;;  %v6773_v12 = vld [vmem:[#allocation2 + $0x24] sm:$0xff]  }
  0x78   : > { %v1209_v59 = vsel %vm6962_vm2, %v1204_v22, %v1208_v3  ;;  %v7336_v29 = vsel %vm7199_vm8, %v1647_v55, %v1648_v11  ;;  %v395_v35 = vadd.f32 %v7257_v42, %v357_v32  ;;  %v512_v36 = vrot.slane %v510_v30, 7  ;;  %v6784_v3 = vld [vmem:[%s8691_s3 + $0x1d0] sm:$0xff]   ;;  %v7381_v16 = vld [vmem:[#allocation2 + $0x38] sm:$0x1] }
  0x79   : > { %v5688_v38 = vcombine.low %v1199_v27, %v1209_v59  ;;  %v426_v61 = vmax.f32 %v394_v0, 0.0  ;;  %v5716_v44 = vcombine.low %v7295_v40, %v7320_v26  ;;  %v1652_v46 = vrot.slane %v1540_v19, 5  ;;  %v6786_v55 = vld [vmem:[%s8691_s3 + $0x190] sm:$0xff]   ;;  %v6792_v27 = vld [vmem:[%s8691_s3 + $0x1d8] sm:$0xff]   ;;  %v6799_v26 = vld [vmem:[%s8691_s3 + $0x1e0] sm:$0xff]  }
  0x7a   : > { %v427_v45 = vmax.f32 %v395_v35, 0.0  ;;  %v6033_v47 = vunpack.c.l.bf16 %v7308_v31  ;;  %4624 = vmatmul.mubr.bf16.vlgmr.msra.gmra.mrb[16].mxu1 %v5715_v53  ;;  %v515_v49 = vor.u32 %v513_v39, %v512_v36  ;;  %v636_v52 = vsel %vm7011_vm5, %v512_v36, 0 }
  0x7b   : > { %4502 = vmatprep.mubr.bf16.mxu0 %v5688_v38  ;;  %v5717_v56 = vcombine.low %v7332_v51, %v7336_v29  ;;  %v6034_v24 = vunpack.c.h.bf16 %v7308_v31  ;;  %6510 = vmatpush3.bf16.msra.mxu1 %v6768_v25  ;;  %v5639_v2 = vcombine.low %v636_v52, %v636_v52  ;;  %v1654_v41 = vrot.slane %v1652_v46, 4 }
  0x7c   : > { %4503 = vmatmul.mubr.bf16.gmra.mrb[20].mxu0 %v6767_v33  ;;  %v1035_v1 = vld [vmem:[#allocation2 + $0x50] sm:$0x1]  ;;  %v451_v15 = vpack.c.bf16 %v427_v45, %v426_v61  ;;  %v1655_v53 = vrot.slane %v1541_v43, 5  ;;  %4631 = vmatprep.mubr.bf16.mxu1 %v6771_v28  ;;  %v620_v6 = vsel %vm7011_vm5, 0, %v515_v49  ;;  %v7371_v23 = vsel %vm7199_vm8, %v5702_v54, %v1652_v46 }
  0x7d   : > { %v1230_v5 = vshll.u32 %v1035_v1, 16  ;;  %6511 = vmatprep.subr.bf16.mxu1 %v6775_v10  ;;  %v5703_v7 = vrot.slane %v7348_v48, 9  ;;  %v5637_v63 = vcombine.low %v620_v6, %v620_v6  ;;  %v5638_v11 = vcombine.high %v620_v6, %v620_v6  ;;  %843 = vst [vmem:[#allocation2 + $0x5c] sm:$0x1] %v5639_v2  ;;  %v6806_v48 = vld [vmem:[%s8691_s3 + $0x1a8] sm:$0xff]  }
  0x7e   : > { %v1033_v9 = vld [vmem:[#allocation2 + $0x48] sm:$0xf]  ;;  %v1034_v57 = vld [vmem:[#allocation2 + $0x4c] sm:$0xf]  ;;  %v358_v13 = vmul.f32 %v7266_v60, %v6033_v47  ;;  %v359_v14 = vmul.f32 %v7266_v60, %v6034_v24  ;;  %v517_v21 = vshrl.u32 %v451_v15, 16  ;;  %v520_v22 = vshll.u32 %v451_v15, 16 }
  0x7f   : > { %v1211_v17 = vshrl.u32 %v1033_v9, 16  ;;  %v1214_v18 = vshll.u32 %v1033_v9, 16  ;;  %v1220_v19 = vshll.u32 %v1034_v57, 16  ;;  %v1224_v31 = vshrl.u32 %v1034_v57, 16  ;;  %841 = vst [vmem:[#allocation2 + $0x54] sm:$0xf] %v5637_v63  ;;  %6512 = vmatpush3.bf16.msra.mxu1 %v6778_v50 }
  0x80   : > { %842 = vst [vmem:[#allocation2 + $0x58] sm:$0xf] %v5638_v11  ;;  %v7385_v25 = vsel %vm7199_vm8, %v1654_v41, %v1655_v53  ;;  %v6037_v32 = vunpack.c.l.bf16 %v7377_v8  ;;  %6513 = vmatprep.subr.bf16.mxu1 %v6784_v3  ;;  %v519_v59 = vrot.slane %v517_v21, 7  ;;  %v396_v33 = vadd.f32 %v7257_v42, %v358_v13  ;;  %v6794_v47 = vld [vmem:[%s8691_s3 + $0x198] sm:$0xff]   ;;  %v6779_v15 = vld [vmem:[#allocation2 + $0x30] sm:$0xff]   ;;  %v6801_v13 = vld [vmem:[%s8691_s3 + $0x1a0] sm:$0xff]  }
  0x81   : > { %v1213_v28 = vrot.slane %v1211_v17, 4  ;;  %v1216_v30 = vrot.slane %v1214_v18, 5  ;;  %v1222_v39 = vrot.slane %v1220_v19, 5  ;;  %v1226_v0 = vrot.slane %v1224_v31, 4  ;;  %v6804_v18 = vld [vmem:[%s8691_s3 + $0x1e8] sm:$0xff]  }
  0x82   : > { %v397_v35 = vadd.f32 %v7257_v42, %v359_v14  ;;  %v1659_v37 = vrot.slane %v7373_v58, 5  ;;  %v1232_v10 = vrot.slane %v1230_v5, 5  ;;  %4632 = vmatmul.mubr.bf16.gmra.mrb[20].mxu1 %v5716_v44  ;;  %v1662_v61 = vrot.slane %v7381_v16, 5  ;;  %v6772_v44 = vld [vmem:[#allocation2 + $0x48] sm:$0xff]  }
  0x83   : > { %v1217_v38 = vor.u32 %v1216_v30, %v1213_v28  ;;  %v1227_v36 = vor.u32 %v1226_v0, %v1222_v39  ;;  %4639 = vmatprep.mubr.bf16.mxu1 %v6773_v12  ;;  %v522_v43 = vor.u32 %v520_v22, %v519_v59  ;;  %v637_v54 = vsel %vm7011_vm5, %v519_v59, 0  ;;  %6514 = vmatpush3.bf16.msra.mxu1 %v6786_v55  ;;  %v6152_v59 = vld [vmem:[%s6940_s26 + $0x50] sm:$0xff]  }
  0x84   : > { %v428_v45 = vmax.f32 %v396_v33, 0.0  ;;  %v429_v46 = vmax.f32 %v397_v35, 0.0  ;;  %v1038_v50 = vld [vmem:[#allocation2 + $0x5c] sm:$0x1]  ;;  %v5642_v24 = vcombine.low %v637_v54, %v637_v54  ;;  %v6038_v40 = vunpack.c.h.bf16 %v7377_v8  ;;  %6515 = vmatprep.subr.bf16.mxu1 %v6792_v27 }
  0x85   : > { %v1218_v49 = vrot.slane %v1217_v38, 4  ;;  %v1228_v52 = vrot.slane %v1227_v36, 4  ;;  %v1254_v1 = vshll.u32 %v1038_v50, 16  ;;  %v621_v2 = vsel %vm7011_vm5, 0, %v522_v43 }
  0x86   : > { %v452_v41 = vpack.c.bf16 %v429_v46, %v428_v45  ;;  %v1661_v53 = vrot.slane %v1659_v37, 4  ;;  %v1036_v5 = vld [vmem:[#allocation2 + $0x54] sm:$0xf]  ;;  %v5640_v58 = vcombine.low %v621_v2, %v621_v2  ;;  %v5641_v9 = vcombine.high %v621_v2, %v621_v2  ;;  %846 = vst [vmem:[#allocation2 + $0x68] sm:$0x1] %v5642_v24 }
  0x87   : > { %v1223_v3 = vsel %vm6962_vm2, %v1218_v49, %v1222_v39  ;;  %v1233_v4 = vsel %vm6962_vm2, %v1228_v52, %v1232_v10  ;;  %v1037_v6 = vld [vmem:[#allocation2 + $0x58] sm:$0xf]  ;;  %v1235_v63 = vshrl.u32 %v1036_v5, 16  ;;  %v1238_v11 = vshll.u32 %v1036_v5, 16  ;;  %6516 = vmatpush3.bf16.msra.mxu1 %v6794_v47  ;;  %v1545_v39 = vld [vmem:[#allocation2 + $0x3c] sm:$0xe] }
  0x88   : > { %v5689_v57 = vcombine.low %v1223_v3, %v1233_v4  ;;  %v1244_v12 = vshll.u32 %v1037_v6, 16  ;;  %v1248_v14 = vshrl.u32 %v1037_v6, 16  ;;  %844 = vst [vmem:[#allocation2 + $0x60] sm:$0xf] %v5640_v58  ;;  %845 = vst [vmem:[#allocation2 + $0x64] sm:$0xf] %v5641_v9  ;;  %6517 = vmatprep.subr.bf16.mxu1 %v6799_v26  ;;  %v5718_v22 = vcombine.low %v7371_v23, %v7385_v25 }
  0x89   : > { %v524_v16 = vshrl.u32 %v452_v41, 16  ;;  %v527_v17 = vshll.u32 %v452_v41, 16  ;;  %v1237_v19 = vrot.slane %v1235_v63, 4  ;;  %v1240_v31 = vrot.slane %v1238_v11, 5  ;;  %v1546_v23 = vld [vmem:[#allocation2 + $0x40] sm:$0xf] }
  0x8a   : > { %4510 = vmatprep.mubr.bf16.mxu0 %v5689_v57  ;;  %v1246_v21 = vrot.slane %v1244_v12, 5  ;;  %v1250_v55 = vrot.slane %v1248_v14, 4  ;;  %4640 = vmatmul.mubr.bf16.gmra.mrb[24].mxu1 %v5717_v56  ;;  %v7431_v28 = vsel %vm7199_vm8, %v5703_v7, %v1659_v37  ;;  %v360_v30 = vmul.f32 %v7266_v60, %v6037_v32  ;;  %v6783_v37 = vld [vmem:[#allocation2 + $0x3c] sm:$0xff]   ;;  %v1547_v45 = vld [vmem:[#allocation2 + $0x44] sm:$0x1] }
  0x8b   : > { %4511 = vmatmul.mubr.bf16.gmra.mrb[24].mxu0 %v6772_v44  ;;  %v526_v27 = vrot.slane %v524_v16, 7  ;;  %v1241_v25 = vor.u32 %v1240_v31, %v1237_v19  ;;  %v1256_v0 = vrot.slane %v1254_v1, 5  ;;  %4647 = vmatprep.mubr.bf16.mxu1 %v6779_v15  ;;  %v7438_v51 = vsel %vm7199_vm8, %v1661_v53, %v1662_v61  ;;  %v6776_v44 = vld [vmem:[#allocation2 + $0x54] sm:$0xff]   ;;  %v7464_v19 = vld [vmem:[#allocation2 + $0x4c] sm:$0xf] }
  0x8c   : > { %v361_v29 = vmul.f32 %v7266_v60, %v6038_v40  ;;  %6518 = vmatpush3.bf16.msra.mxu1 %v6801_v13  ;;  %v1251_v56 = vor.u32 %v1250_v55, %v1246_v21  ;;  %v398_v32 = vadd.f32 %v7257_v42, %v360_v30  ;;  %v5704_v36 = vrot.slane %v1545_v39, 9  ;;  %v7455_v13 = vld [vmem:[#allocation2 + $0x48] sm:$0xe] }
  0x8d   : > { %v529_v7 = vor.u32 %v527_v17, %v526_v27  ;;  %v638_v8 = vsel %vm7011_vm5, %v526_v27, 0  ;;  %6519 = vmatprep.subr.bf16.mxu1 %v6804_v18  ;;  %v1242_v33 = vrot.slane %v1241_v25, 4  ;;  %v1041_v61 = vld [vmem:[#allocation2 + $0x68] sm:$0x1]  ;;  %v1666_v46 = vrot.slane %v1546_v23, 5  ;;  %v6809_v25 = vld [vmem:[%s8691_s3 + $0x1f0] sm:$0xff]  }
  0x8e   : > { %v5645_v35 = vcombine.low %v638_v8, %v638_v8  ;;  %v399_v38 = vadd.f32 %v7257_v42, %v361_v29  ;;  %v1252_v10 = vrot.slane %v1251_v56, 4  ;;  %v430_v54 = vmax.f32 %v398_v32, 0.0 }
  0x8f   : > { %v622_v43 = vsel %vm7011_vm5, 0, %v529_v7  ;;  %v1247_v47 = vsel %vm6962_vm2, %v1242_v33, %v1246_v21  ;;  %v1039_v49 = vld [vmem:[#allocation2 + $0x60] sm:$0xf]  ;;  %v1040_v52 = vld [vmem:[#allocation2 + $0x64] sm:$0xf]  ;;  %v6041_v40 = vunpack.c.l.bf16 %v6152_v59  ;;  %v1278_v3 = vshll.u32 %v1041_v61, 16 }
  0x90   : > { %v5643_v50 = vcombine.low %v622_v43, %v622_v43  ;;  %v5644_v24 = vcombine.high %v622_v43, %v622_v43  ;;  %849 = vst [vmem:[#allocation2 + $0x74] sm:$0x1] %v5645_v35  ;;  %6520 = vmatpush3.bf16.msra.mxu1 %v6806_v48  ;;  %v1257_v26 = vsel %vm6962_vm2, %v1252_v10, %v1256_v0  ;;  %v1259_v1 = vshrl.u32 %v1039_v49, 16  ;;  %v6787_v48 = vld [vmem:[#allocation2 + $0x48] sm:$0xff]   ;;  %v1550_v61 = vld [vmem:[#allocation2 + $0x50] sm:$0x1] }
  0x91   : > { %v1262_v2 = vshll.u32 %v1039_v49, 16  ;;  %v1268_v15 = vshll.u32 %v1040_v52, 16  ;;  %v5690_v41 = vcombine.low %v1247_v47, %v1257_v26  ;;  %v1272_v53 = vshrl.u32 %v1040_v52, 16  ;;  %6521 = vmatprep.subr.bf16.mxu1 %v6809_v25  ;;  %v2477_v43 = vld [vmem:[#allocation2 + $0xc] sm:$0xe] }
  0x92   : > { %847 = vst [vmem:[#allocation2 + $0x6c] sm:$0xf] %v5643_v50  ;;  %848 = vst [vmem:[#allocation2 + $0x70] sm:$0xf] %v5644_v24  ;;  %v431_v4 = vmax.f32 %v399_v38, 0.0  ;;  %v1261_v5 = vrot.slane %v1259_v1, 4  ;;  %4648 = vmatmul.mubr.bf16.gmra.mrb[28].mxu1 %v5718_v22  ;;  %v6042_v12 = vunpack.c.h.bf16 %v6152_v59  ;;  %v5719_v16 = vcombine.low %v7431_v28, %v7438_v51 }
  0x93   : > { %v1264_v6 = vrot.slane %v1262_v2, 5  ;;  %v1270_v58 = vrot.slane %v1268_v15, 5  ;;  %v1668_v9 = vrot.slane %v1666_v46, 4  ;;  %4518 = vmatprep.mubr.bf16.mxu0 %v5690_v41  ;;  %v1274_v57 = vrot.slane %v1272_v53, 4  ;;  %4655 = vmatprep.mubr.bf16.mxu1 %v6783_v37  ;;  %v6780_v37 = vld [vmem:[#allocation2 + $0x60] sm:$0xff]  }
  0x94   : > { %v453_v63 = vpack.c.bf16 %v431_v4, %v430_v54  ;;  %v1669_v11 = vrot.slane %v1547_v45, 5  ;;  %4519 = vmatmul.mubr.bf16.gmra.mrb[28].mxu0 %v6776_v44  ;;  %v7461_v17 = vsel %vm7199_vm8, %v5704_v36, %v1666_v46  ;;  %v362_v18 = vmul.f32 %v7266_v60, %v6041_v40  ;;  %v2478_v49 = vld [vmem:[#allocation2 + $0x10] sm:$0xf]  ;;  %v2479_v15 = vld [vmem:[#allocation2 + $0x14] sm:$0x1] }
  0x95   : > { %v1265_v14 = vor.u32 %v1264_v6, %v1261_v5  ;;  %v1275_v31 = vor.u32 %v1274_v57, %v1270_v58  ;;  %v1280_v21 = vrot.slane %v1278_v3, 5  ;;  %v363_v28 = vmul.f32 %v7266_v60, %v6042_v12  ;;  %v6811_v40 = vld [vmem:[%s8691_s3 + $0x1b0] sm:$0xff]   ;;  %v1552_v6 = vld [vmem:[#allocation2 + $0x58] sm:$0xf] }
  0x96   : > { %v531_v22 = vshrl.u32 %v453_v63, 16  ;;  %v7468_v55 = vsel %vm7199_vm8, %v1668_v9, %v1669_v11  ;;  %v534_v39 = vshll.u32 %v453_v63, 16  ;;  %v5705_v23 = vrot.slane %v7455_v13, 9  ;;  %v1551_v5 = vld [vmem:[#allocation2 + $0x54] sm:$0xe]  ;;  %6522 = vmatpush3.bf16.msra.mxu1 %v6811_v40  ;;  %v6814_v11 = vld [vmem:[%s8691_s3 + $0x1f8] sm:$0xff]  }
  0x97   : > { %v1266_v27 = vrot.slane %v1265_v14, 4  ;;  %v1044_v30 = vld [vmem:[#allocation2 + $0x74] sm:$0x1]  ;;  %v1276_v0 = vrot.slane %v1275_v31, 4  ;;  %v1673_v56 = vrot.slane %v7464_v19, 5  ;;  %v5720_v60 = vcombine.low %v7461_v17, %v7468_v55  ;;  %6523 = vmatprep.subr.bf16.mxu1 %v6814_v11 }
  0x98   : > { %v1302_v51 = vshll.u32 %v1044_v30, 16  ;;  %v533_v29 = vrot.slane %v531_v22, 7  ;;  %v400_v59 = vadd.f32 %v7257_v42, %v362_v18  ;;  %v401_v33 = vadd.f32 %v7257_v42, %v363_v28  ;;  %v6791_v14 = vld [vmem:[#allocation2 + $0x54] sm:$0xff]   ;;  %v1553_v19 = vld [vmem:[#allocation2 + $0x5c] sm:$0x1] }
  0x99   : > { %v1271_v7 = vsel %vm6962_vm2, %v1266_v27, %v1270_v58  ;;  %v1042_v8 = vld [vmem:[#allocation2 + $0x6c] sm:$0xf]  ;;  %v1043_v32 = vld [vmem:[#allocation2 + $0x70] sm:$0xf]  ;;  %v1281_v35 = vsel %vm6962_vm2, %v1276_v0, %v1280_v21  ;;  %v1675_v9 = vrot.slane %v1673_v56, 4  ;;  %v1676_v57 = vrot.slane %v1550_v61, 5 }
  0x9a   : > { %v1283_v38 = vshrl.u32 %v1042_v8, 16  ;;  %v1286_v36 = vshll.u32 %v1042_v8, 16  ;;  %v1292_v10 = vshll.u32 %v1043_v32, 16  ;;  %v5691_v54 = vcombine.low %v1271_v7, %v1281_v35  ;;  %4656 = vmatmul.mubr.bf16.gmra.mrb[32].mxu1 %v5719_v16  ;;  %v6816_v30 = vld [vmem:[%s8691_s3 + $0x1b8] sm:$0xff]   ;;  %v1965_v0 = vld [vmem:[#allocation2 + $0xc] sm:$0xf] }
  0x9b   : > { %v1296_v45 = vshrl.u32 %v1043_v32, 16  ;;  %v1304_v46 = vrot.slane %v1302_v51, 5  ;;  %v536_v47 = vor.u32 %v534_v39, %v533_v29  ;;  %v639_v42 = vsel %vm7011_vm5, %v533_v29, 0  ;;  %4663 = vmatprep.mubr.bf16.mxu1 %v6787_v48  ;;  %v7505_v51 = vld [vmem:[#allocation2 + $0x10] sm:$0xf]  ;;  %6524 = vmatpush3.bf16.msra.mxu1 %v6816_v30 }
  0x9c   : > { %v1285_v52 = vrot.slane %v1283_v38, 4  ;;  %v1288_v50 = vrot.slane %v1286_v36, 5  ;;  %v1294_v24 = vrot.slane %v1292_v10, 5  ;;  %4526 = vmatprep.mubr.bf16.mxu0 %v5691_v54  ;;  %v5648_v1 = vcombine.low %v639_v42, %v639_v42  ;;  %v6785_v48 = vld [vmem:[#allocation2 + $0x6c] sm:$0xff]  }
  0x9d   : > { %v1298_v26 = vrot.slane %v1296_v45, 4  ;;  %v623_v44 = vsel %vm7011_vm5, 0, %v536_v47  ;;  %v432_v2 = vmax.f32 %v400_v59, 0.0  ;;  %4527 = vmatmul.mubr.bf16.gmra.mrb[32].mxu0 %v6780_v37  ;;  %v433_v4 = vmax.f32 %v401_v33, 0.0 }
  0x9e   : > { %v1289_v41 = vor.u32 %v1288_v50, %v1285_v52  ;;  %v5646_v53 = vcombine.low %v623_v44, %v623_v44  ;;  %v5647_v3 = vcombine.high %v623_v44, %v623_v44  ;;  %852 = vst [vmem:[#allocation2 + $0x80] sm:$0x1] %v5648_v1  ;;  %v5763_v63 = vrot.slane %v2477_v43, 9  ;;  %v2480_v1 = vld [vmem:[#allocation2 + $0x18] sm:$0xe] }
  0x9f   : > { %v1299_v58 = vor.u32 %v1298_v26, %v1294_v24  ;;  %v454_v13 = vpack.c.bf16 %v433_v4, %v432_v2  ;;  %v7496_v16 = vsel %vm7199_vm8, %v5705_v23, %v1673_v56  ;;  %v2575_v18 = vrot.slane %v2478_v49, 5  ;;  %v6797_v49 = vld [vmem:[#allocation2 + $0x60] sm:$0xff]   ;;  %v2481_v2 = vld [vmem:[#allocation2 + $0x1c] sm:$0xf] }
  0xa0   : > { %v1290_v12 = vrot.slane %v1289_v41, 4  ;;  %850 = vst [vmem:[#allocation2 + $0x78] sm:$0xf] %v5646_v53  ;;  %851 = vst [vmem:[#allocation2 + $0x7c] sm:$0xf] %v5647_v3  ;;  %v2578_v21 = vrot.slane %v2479_v15, 5  ;;  %v1677_v23 = vsel %vm7199_vm8, %v1675_v9, %v1676_v57 }
  0xa1   : > { %v1300_v31 = vrot.slane %v1299_v58, 4  ;;  %v5706_v22 = vrot.slane %v1551_v5, 9  ;;  %v1680_v27 = vrot.slane %v1552_v6, 5  ;;  %v538_v28 = vshrl.u32 %v454_v13, 16  ;;  %v2482_v15 = vld [vmem:[#allocation2 + $0x20] sm:$0x1] }
  0xa2   : > { %v1295_v39 = vsel %vm6962_vm2, %v1290_v12, %v1294_v24  ;;  %v541_v25 = vshll.u32 %v454_v13, 16  ;;  %4664 = vmatmul.mubr.bf16.gmra.mrb[36].mxu1 %v5720_v60  ;;  %v7514_v56 = vsel %vm7199_vm8, %v5763_v63, %v2575_v18  ;;  %v2577_v7 = vrot.slane %v2575_v18, 4  ;;  %v1967_v24 = vld [vmem:[#allocation2 + $0x14] sm:$0x1] }
  0xa3   : > { %v1305_v29 = vsel %vm6962_vm2, %v1300_v31, %v1304_v46  ;;  %v7518_v8 = vsel %vm7199_vm8, %v5706_v22, %v1680_v27  ;;  %v540_v59 = vrot.slane %v538_v28, 7  ;;  %4671 = vmatprep.mubr.bf16.mxu1 %v6791_v14  ;;  %v1682_v33 = vrot.slane %v1680_v27, 4  ;;  %v1556_v31 = vld [vmem:[#allocation2 + $0x68] sm:$0x1]  ;;  %v1555_v28 = vld [vmem:[#allocation2 + $0x64] sm:$0xf] }
  0xa4   : > { %v5692_v32 = vcombine.low %v1295_v39, %v1305_v29  ;;  %v1683_v35 = vrot.slane %v1553_v19, 5  ;;  %v5721_v37 = vcombine.low %v7496_v16, %v1677_v23  ;;  %v7523_v17 = vsel %vm7199_vm8, %v2577_v7, %v2578_v21  ;;  %v1554_v19 = vld [vmem:[#allocation2 + $0x60] sm:$0xe]  ;;  %v7542_v21 = vld [vmem:[%s6940_s26 + $0x78] sm:$0xff]  }
  0xa5   : > { %v2014_v55 = vshrl.u32 %v1965_v0, 16  ;;  %v2017_v60 = vshll.u32 %v1965_v0, 16  ;;  %v1047_v38 = vld [vmem:[#allocation2 + $0x80] sm:$0x1]  ;;  %v543_v36 = vor.u32 %v541_v25, %v540_v59  ;;  %v640_v10 = vsel %vm7011_vm5, %v540_v59, 0 }
  0xa6   : > { %4534 = vmatprep.mubr.bf16.mxu0 %v5692_v32  ;;  %v7529_v61 = vsel %vm7199_vm8, %v1682_v33, %v1683_v35  ;;  %v2023_v43 = vshll.u32 %v7505_v51, 16  ;;  %v1326_v46 = vshll.u32 %v1047_v38, 16  ;;  %v5651_v47 = vcombine.low %v640_v10, %v640_v10  ;;  %v7548_v7 = vld [vmem:[#allocation2 + $0x1c] sm:$0xf] }
  0xa7   : > { %4535 = vmatmul.mubr.bf16.gmra.mrb[36].mxu0 %v6785_v48  ;;  %v1045_v54 = vld [vmem:[#allocation2 + $0x78] sm:$0xf]  ;;  %v1046_v45 = vld [vmem:[#allocation2 + $0x7c] sm:$0xf]  ;;  %v5779_v52 = vcombine.low %v7514_v56, %v7523_v17  ;;  %v5722_v50 = vcombine.low %v7518_v8, %v7529_v61  ;;  %v624_v53 = vsel %vm7011_vm5, 0, %v543_v36  ;;  %v2016_v3 = vrot.slane %v2014_v55, 4 }
  0xa8   : > { %v1307_v42 = vshrl.u32 %v1045_v54, 16  ;;  %v1310_v40 = vshll.u32 %v1045_v54, 16  ;;  %v1316_v26 = vshll.u32 %v1046_v45, 16  ;;  %v1320_v44 = vshrl.u32 %v1046_v45, 16  ;;  %855 = vst [vmem:[#allocation2 + $0x8c] sm:$0x1] %v5651_v47 }
  0xa9   : > { %v1328_v41 = vrot.slane %v1326_v46, 5  ;;  %v2019_v4 = vrot.slane %v2017_v60, 5  ;;  %v5649_v57 = vcombine.low %v624_v53, %v624_v53  ;;  %v5650_v63 = vcombine.high %v624_v53, %v624_v53  ;;  %v6798_v48 = vld [vmem:[#allocation2 + $0x6c] sm:$0xff]   ;;  %v6789_v60 = vld [vmem:[#allocation2 + $0x78] sm:$0xff]   ;;  %v2483_v61 = vld [vmem:[#allocation2 + $0x24] sm:$0xe] }
  0xaa   : > { %v1309_v5 = vrot.slane %v1307_v42, 4  ;;  %v1312_v6 = vrot.slane %v1310_v40, 5  ;;  %v1318_v58 = vrot.slane %v1316_v26, 5  ;;  %v1322_v9 = vrot.slane %v1320_v44, 4  ;;  %4672 = vmatmul.mubr.bf16.gmra.mrb[40].mxu1 %v5721_v37  ;;  %v1970_v26 = vld [vmem:[#allocation2 + $0x20] sm:$0x1] }
  0xab   : > { %v2020_v11 = vor.u32 %v2019_v4, %v2016_v3  ;;  %v7538_v12 = vrot.slane %v2023_v43, 5  ;;  %4679 = vmatprep.mubr.bf16.mxu1 %v6797_v49  ;;  %v2027_v16 = vshrl.u32 %v7505_v51, 16  ;;  %v2033_v18 = vshll.u32 %v1967_v24, 16  ;;  %853 = vst [vmem:[#allocation2 + $0x84] sm:$0xf] %v5649_v57 }
  0xac   : > { %v1313_v13 = vor.u32 %v1312_v6, %v1309_v5  ;;  %v1323_v14 = vor.u32 %v1322_v9, %v1318_v58  ;;  %854 = vst [vmem:[#allocation2 + $0x88] sm:$0xf] %v5650_v63  ;;  %v5764_v27 = vrot.slane %v2480_v1, 9  ;;  %v2582_v30 = vrot.slane %v2481_v2, 5  ;;  %v1968_v51 = vld [vmem:[#allocation2 + $0x18] sm:$0xf] }
  0xad   : > { %v7544_v22 = vrot.slane %v2020_v11, 4  ;;  %v2585_v39 = vrot.slane %v2482_v15, 5  ;;  %v2029_v0 = vrot.slane %v2027_v16, 4  ;;  %v7546_v29 = vrot.slane %v2033_v18, 5 }
  0xae   : > { %v1314_v25 = vrot.slane %v1313_v13, 4  ;;  %v1324_v23 = vrot.slane %v1323_v14, 4  ;;  %v7552_v32 = vsel %vm7199_vm8, %v5764_v27, %v2582_v30  ;;  %v2584_v59 = vrot.slane %v2582_v30, 4  ;;  %v7587_v13 = vld [vmem:[%s8689_s1] ss:$0 sm:$0xff] }
  0xaf   : > { %v5707_v33 = vrot.slane %v1554_v19, 9  ;;  %v6061_v35 = vunpack.c.l.bf16 %v7542_v21  ;;  %v1050_v38 = vld [vmem:[#allocation2 + $0x8c] sm:$0x1]  ;;  %v2030_v36 = vor.u32 %v2029_v0, %v7538_v12  ;;  %v1687_v10 = vrot.slane %v1555_v28, 5  ;;  %v6802_v28 = vld [vmem:[#allocation2 + $0x78] sm:$0xff]  }
  0xb0   : > { %v1319_v37 = vsel %vm6962_vm2, %v1314_v25, %v1318_v58  ;;  %v1329_v55 = vsel %vm6962_vm2, %v1324_v23, %v1328_v41  ;;  %v1350_v54 = vshll.u32 %v1050_v38, 16  ;;  %v7562_v45 = vsel %vm7199_vm8, %v2584_v59, %v2585_v39  ;;  %v1559_v25 = vld [vmem:[#allocation2 + $0x74] sm:$0x1]  ;;  %v1558_v59 = vld [vmem:[#allocation2 + $0x70] sm:$0xf] }
  0xb1   : > { %v5693_v43 = vcombine.low %v1319_v37, %v1329_v55  ;;  %v1690_v46 = vrot.slane %v1556_v31, 5  ;;  %v2026_v47 = vsel %vm6962_vm2, %v7544_v22, %v7538_v12  ;;  %v2031_v49 = vrot.slane %v2030_v36, 4  ;;  %v2485_v12 = vld [vmem:[#allocation2 + $0x2c] sm:$0x1] }
  0xb2   : > { %v1688_v24 = vsel %vm7199_vm8, %v5707_v33, %v1687_v10  ;;  %v1689_v42 = vrot.slane %v1687_v10, 4  ;;  %v7570_v40 = vrot.slane %v1350_v54, 5  ;;  %4680 = vmatmul.mubr.bf16.gmra.mrb[44].mxu1 %v5722_v50  ;;  %v2038_v44 = vshrl.u32 %v1968_v51, 16  ;;  %v1048_v15 = vld [vmem:[#allocation2 + $0x84] sm:$0xf] }
  0xb3   : > { %4542 = vmatprep.mubr.bf16.mxu0 %v5693_v43  ;;  %v2041_v1 = vshll.u32 %v1968_v51, 16  ;;  %v2047_v2 = vshll.u32 %v7548_v7, 16  ;;  %v1049_v41 = vld [vmem:[#allocation2 + $0x88] sm:$0xf]  ;;  %v2036_v53 = vsel %vm6962_vm2, %v2031_v49, %v7546_v29  ;;  %4687 = vmatprep.mubr.bf16.mxu1 %v6798_v48  ;;  %v5780_v3 = vcombine.low %v7552_v32, %v7562_v45  ;;  %v1557_v51 = vld [vmem:[#allocation2 + $0x6c] sm:$0xe] }
  0xb4   : > { %4543 = vmatmul.mubr.bf16.gmra.mrb[40].mxu0 %v6789_v60  ;;  %v1691_v8 = vsel %vm7199_vm8, %v1689_v42, %v1690_v46  ;;  %v2484_v50 = vld [vmem:[#allocation2 + $0x28] sm:$0xf]  ;;  %v6062_v4 = vunpack.c.h.bf16 %v7542_v21  ;;  %v1331_v5 = vshrl.u32 %v1048_v15, 16  ;;  %v1334_v6 = vshll.u32 %v1048_v15, 16  ;;  %v1971_v60 = vld [vmem:[#allocation2 + $0x24] sm:$0xf] }
  0xb5   : > { %v1340_v58 = vshll.u32 %v1049_v41, 16  ;;  %v1344_v9 = vshrl.u32 %v1049_v41, 16  ;;  %v5723_v57 = vcombine.low %v1688_v24, %v1691_v8  ;;  %v2040_v63 = vrot.slane %v2038_v44, 4  ;;  %v1972_v43 = vld [vmem:[#allocation2 + $0x28] sm:$0xf] }
  0xb6   : > { %v2043_v11 = vrot.slane %v2041_v1, 5  ;;  %v7590_v14 = vmul.f32 %v7587_v13, %v6061_v35  ;;  %v1333_v16 = vrot.slane %v1331_v5, 4  ;;  %v1336_v18 = vrot.slane %v1334_v6, 5  ;;  %v2486_v15 = vld [vmem:[#allocation2 + $0x30] sm:$0xe] }
  0xb7   : > { %v1342_v19 = vrot.slane %v1340_v58, 5  ;;  %v1346_v31 = vrot.slane %v1344_v9, 4  ;;  %v7592_v27 = vrot.slane %v2047_v2, 5  ;;  %v2051_v30 = vshrl.u32 %v7548_v7, 16  ;;  %v1973_v2 = vld [vmem:[#allocation2 + $0x2c] sm:$0x1] }
  0xb8   : > { %v2044_v22 = vor.u32 %v2043_v11, %v2040_v63  ;;  %v2057_v39 = vshll.u32 %v1970_v26, 16  ;;  %v1337_v23 = vor.u32 %v1336_v18, %v1333_v16  ;;  %v5765_v29 = vrot.slane %v2483_v61, 9  ;;  %v6793_v26 = vld [vmem:[#allocation2 + $0x84] sm:$0xff]   ;;  %v1560_v5 = vld [vmem:[#allocation2 + $0x78] sm:$0xe] }
  0xb9   : > { %v1347_v0 = vor.u32 %v1346_v31, %v1342_v19  ;;  %v2589_v48 = vrot.slane %v2484_v50, 5  ;;  %v7595_v33 = vcombine.low %v2026_v47, %v2036_v53  ;;  %v2053_v37 = vrot.slane %v2051_v30, 4  ;;  %v2487_v50 = vld [vmem:[#allocation2 + $0x34] sm:$0xf]  ;;  %v1561_v63 = vld [vmem:[#allocation2 + $0x7c] sm:$0xf] }
  0xba   : > { %v7597_v35 = vrot.slane %v2044_v22, 4  ;;  %v2592_v55 = vrot.slane %v2485_v12, 5  ;;  %v1338_v38 = vrot.slane %v1337_v23, 4  ;;  %4688 = vmatmul.mubr.bf16.gmra.mrb[48].mxu1 %v5723_v57  ;;  %v7599_v7 = vrot.slane %v2057_v39, 5  ;;  %v1562_v11 = vld [vmem:[#allocation2 + $0x80] sm:$0x1] }
  0xbb   : > { %v1348_v36 = vrot.slane %v1347_v0, 4  ;;  %v2591_v10 = vrot.slane %v2589_v48, 4  ;;  %v2054_v54 = vor.u32 %v2053_v37, %v7592_v27  ;;  %4695 = vmatprep.mubr.bf16.mxu1 %v6802_v28  ;;  %v7604_v46 = vsel %vm7199_vm8, %v5765_v29, %v2589_v48  ;;  %v1974_v31 = vld [vmem:[#allocation2 + $0x30] sm:$0xf]  ;;  %v6803_v39 = vld [vmem:[#allocation2 + $0x84] sm:$0xff]  }
  0xbc   : > { %v5708_v47 = vrot.slane %v1557_v51, 9  ;;  %v1694_v49 = vrot.slane %v1558_v59, 5  ;;  %v1343_v24 = vsel %vm6962_vm2, %v1338_v38, %v1342_v19  ;;  %v1697_v1 = vrot.slane %v1559_v25, 5  ;;  %v1975_v38 = vld [vmem:[#allocation2 + $0x34] sm:$0xf] }
  0xbd   : > { %v1353_v42 = vsel %vm6962_vm2, %v1348_v36, %v7570_v40  ;;  %v7613_v44 = vsel %vm7199_vm8, %v2591_v10, %v2592_v55  ;;  %v2050_v53 = vsel %vm6962_vm2, %v7597_v35, %v7592_v27  ;;  %v2055_v8 = vrot.slane %v2054_v54, 4  ;;  %v2488_v40 = vld [vmem:[#allocation2 + $0x38] sm:$0x1]  ;;  %v2490_v54 = vld [vmem:[#allocation2 + $0x40] sm:$0xf] }
  0xbe   : > { %v5694_v41 = vcombine.low %v1343_v24, %v1353_v42  ;;  %v1695_v61 = vsel %vm7199_vm8, %v5708_v47, %v1694_v49  ;;  %v1696_v6 = vrot.slane %v1694_v49, 4  ;;  %v2062_v58 = vshrl.u32 %v1971_v60, 16  ;;  %v6805_v49 = vld [vmem:[%s8691_s3 + $0x208] sm:$0xff]  }
  0xbf   : > { %v2065_v9 = vshll.u32 %v1971_v60, 16  ;;  %v2071_v57 = vshll.u32 %v1972_v43, 16  ;;  %v2060_v12 = vsel %vm6962_vm2, %v2055_v8, %v7599_v7  ;;  %v5781_v16 = vcombine.low %v7604_v46, %v7613_v44 }
  0xc0   : > { %4550 = vmatprep.mubr.bf16.mxu0 %v5694_v41  ;;  %v2075_v18 = vshrl.u32 %v1972_v43, 16  ;;  %v2081_v19 = vshll.u32 %v1973_v2, 16  ;;  %v1698_v22 = vsel %vm7199_vm8, %v1696_v6, %v1697_v1  ;;  %v2064_v27 = vrot.slane %v2062_v58, 4  ;;  %v2489_v43 = vld [vmem:[#allocation2 + $0x3c] sm:$0xe] }
  0xc1   : > { %4551 = vmatmul.mubr.bf16.gmra.mrb[44].mxu0 %v6793_v26  ;;  %v2067_v30 = vrot.slane %v2065_v9, 5  ;;  %v5766_v28 = vrot.slane %v2486_v15, 9  ;;  %v5724_v25 = vcombine.low %v1695_v61, %v1698_v22  ;;  %v2073_v23 = vrot.slane %v2071_v57, 5  ;;  %v2491_v1 = vld [vmem:[#allocation2 + $0x44] sm:$0x1] }
  0xc2   : > { %4784 = vmatprep.mubr.bf16.mxu0 %v5779_v52  ;;  %v2077_v0 = vrot.slane %v2075_v18, 4  ;;  %v2083_v29 = vrot.slane %v2081_v19, 5  ;;  %v2596_v51 = vrot.slane %v2487_v50, 5  ;;  %v2599_v59 = vrot.slane %v2488_v40, 5  ;;  %v1976_v52 = vld [vmem:[#allocation2 + $0x38] sm:$0x1] }
  0xc3   : > { %v2068_v48 = vor.u32 %v2067_v30, %v2064_v27  ;;  %v5709_v35 = vrot.slane %v1560_v5, 9  ;;  %4696 = vmatmul.mubr.bf16.gmra.mrb[52].mxu1 %v5724_v25  ;;  %v1701_v55 = vrot.slane %v1561_v63, 5  ;;  %v1704_v60 = vrot.slane %v1562_v11, 5  ;;  %v1563_v2 = vld [vmem:[#allocation2 + $0x84] sm:$0xe]  ;;  %v6807_v11 = vld [vmem:[#allocation2 + $0x90] sm:$0xff]  }
  0xc4   : > { %v2078_v37 = vor.u32 %v2077_v0, %v2073_v23  ;;  %v2086_v36 = vshrl.u32 %v1974_v31, 16  ;;  %4703 = vmatprep.mubr.bf16.mxu1 %v6803_v39  ;;  %v7633_v56 = vsel %vm7199_vm8, %v5766_v28, %v2596_v51  ;;  %v2598_v17 = vrot.slane %v2596_v51, 4  ;;  %v1564_v15 = vld [vmem:[#allocation2 + $0x88] sm:$0xf]  ;;  %v1565_v27 = vld [vmem:[#allocation2 + $0x8c] sm:$0x1] }
  0xc5   : > { %v2069_v7 = vrot.slane %v2068_v48, 4  ;;  %v2089_v10 = vshll.u32 %v1974_v31, 16  ;;  %v1702_v24 = vsel %vm7199_vm8, %v5709_v35, %v1701_v55  ;;  %v1703_v42 = vrot.slane %v1701_v55, 4  ;;  %v1979_v48 = vld [vmem:[#allocation2 + $0x44] sm:$0x1] }
  0xc6   : > { %v2079_v47 = vrot.slane %v2078_v37, 4  ;;  %v2088_v26 = vrot.slane %v2086_v36, 4  ;;  %v5748_v41 = vcombine.low %v2050_v53, %v2060_v12  ;;  %v7642_v8 = vsel %vm7199_vm8, %v2598_v17, %v2599_v59  ;;  %v6810_v12 = vld [vmem:[%s8691_s3 + $0x210] sm:$0xff]   ;;  %v2492_v55 = vld [vmem:[#allocation2 + $0x48] sm:$0xe] }
  0xc7   : > { %v2091_v61 = vrot.slane %v2089_v10, 5  ;;  %v2095_v50 = vshll.u32 %v1975_v38, 16  ;;  %v2074_v40 = vsel %vm6962_vm2, %v2069_v7, %v2073_v23  ;;  %v1705_v6 = vsel %vm7199_vm8, %v1703_v42, %v1704_v60  ;;  %v1977_v23 = vld [vmem:[#allocation2 + $0x3c] sm:$0xf]  ;;  %v2493_v60 = vld [vmem:[#allocation2 + $0x4c] sm:$0xf] }
  0xc8   : > { %v2084_v5 = vsel %vm6962_vm2, %v2079_v47, %v2083_v29  ;;  %v2099_v58 = vshrl.u32 %v1975_v38, 16  ;;  %v5782_v53 = vcombine.low %v7633_v56, %v7642_v8  ;;  %v5725_v9 = vcombine.low %v1702_v24, %v1705_v6  ;;  %v1978_v29 = vld [vmem:[#allocation2 + $0x40] sm:$0xf]  ;;  %v2494_v38 = vld [vmem:[#allocation2 + $0x50] sm:$0x1] }
  0xc9   : > { %4785 = vmatmul.mubr.bf16.vlgmr.msra.gmra.mrb[48].mxu0 %v7595_v33  ;;  %v2092_v57 = vor.u32 %v2091_v61, %v2088_v26  ;;  %v7653_v63 = vrot.slane %v2095_v50, 5  ;;  %v6841_v33 = vld [vmem:[%s8691_s3 + $0x200] sm:$0xff]   ;;  %v2105_v19 = vshll.u32 %v1976_v52, 16  ;;  %v5767_v31 = vrot.slane %v2489_v43, 9  ;;  %v1566_v10 = vld [vmem:[#allocation2 + $0x90] sm:$0xe] }
  0xca   : > { %4792 = vmatprep.mubr.bf16.mxu0 %v5780_v3  ;;  %6646 = vmatpush3.bf16.msra.mxu0 %v6841_v33  ;;  %v2101_v18 = vrot.slane %v2099_v58, 4  ;;  %v2603_v22 = vrot.slane %v2490_v54, 5  ;;  %v2606_v39 = vrot.slane %v2491_v1, 5  ;;  %v5710_v28 = vrot.slane %v1563_v2, 9  ;;  %v1567_v43 = vld [vmem:[#allocation2 + $0x94] sm:$0xf] }
  0xcb   : > { %6647 = vmatprep.subr.bf16.mxu0 %v6805_v49  ;;  %v7664_v30 = vrot.slane %v2092_v57, 4  ;;  %v1708_v25 = vrot.slane %v1564_v15, 5  ;;  %v7666_v0 = vcombine.low %v2074_v40, %v2084_v5  ;;  %4704 = vmatmul.mubr.bf16.gmra.mrb[56].mxu1 %v5725_v9  ;;  %v7669_v45 = vrot.slane %v2105_v19, 5  ;;  %v6815_v54 = vld [vmem:[%s8691_s3 + $0x218] sm:$0xff]   ;;  %v1980_v50 = vld [vmem:[#allocation2 + $0x48] sm:$0xf] }
  0xcc   : > { %v2102_v32 = vor.u32 %v2101_v18, %v7653_v63  ;;  %v2605_v3 = vrot.slane %v2603_v22, 4  ;;  %4711 = vmatprep.mubr.bf16.mxu1 %v6807_v11  ;;  %v7673_v51 = vsel %vm7199_vm8, %v5767_v31, %v2603_v22  ;;  %v1711_v37 = vrot.slane %v1565_v27, 5  ;;  %v1568_v61 = vld [vmem:[#allocation2 + $0x98] sm:$0x1]  ;;  %v6808_v9 = vld [vmem:[#allocation2 + $0x9c] sm:$0xff]  }
  0xcd   : > { %v1709_v59 = vsel %vm7199_vm8, %v5710_v28, %v1708_v25  ;;  %v1710_v35 = vrot.slane %v1708_v25, 4  ;;  %v2110_v17 = vshrl.u32 %v1977_v23, 16  ;;  %v2113_v52 = vshll.u32 %v1977_v23, 16  ;;  %v1981_v57 = vld [vmem:[#allocation2 + $0x4c] sm:$0xf]  ;;  %v6818_v27 = vld [vmem:[%s8691_s3 + $0x220] sm:$0xff]  }
  0xce   : > { %v2103_v36 = vrot.slane %v2102_v32, 4  ;;  %6648 = vmatpush3.bf16.msra.mxu0 %v6805_v49  ;;  %v7679_v7 = vsel %vm7199_vm8, %v2605_v3, %v2606_v39  ;;  %v2098_v47 = vsel %vm6962_vm2, %v7664_v30, %v7653_v63  ;;  %v2119_v24 = vshll.u32 %v1978_v29, 16  ;;  %v2495_v39 = vld [vmem:[#allocation2 + $0x54] sm:$0xe] }
  0xcf   : > { %v1712_v49 = vsel %vm7199_vm8, %v1710_v35, %v1711_v37  ;;  %v2123_v42 = vshrl.u32 %v1978_v29, 16  ;;  %6649 = vmatprep.subr.bf16.mxu0 %v6810_v12  ;;  %v5783_v26 = vcombine.low %v7673_v51, %v7679_v7  ;;  %v2112_v2 = vrot.slane %v2110_v17, 4  ;;  %v2497_v35 = vld [vmem:[#allocation2 + $0x5c] sm:$0x1]  ;;  %v1569_v17 = vld [vmem:[#allocation2 + $0x9c] sm:$0xe] }
  0xd0   : > { %v5726_v1 = vcombine.low %v1709_v59, %v1712_v49  ;;  %v2115_v15 = vrot.slane %v2113_v52, 5  ;;  %v2108_v40 = vsel %vm6962_vm2, %v2103_v36, %v7669_v45  ;;  %v7695_v5 = vrot.slane %v2119_v24, 5  ;;  %v2496_v59 = vld [vmem:[#allocation2 + $0x58] sm:$0xf]  ;;  %v6812_v36 = vld [vmem:[#allocation2 + $0xa8] sm:$0xff]  }
  0xd1   : > { %4793 = vmatmul.mubr.bf16.gmra.mrb[52].mxu0 %v5748_v41  ;;  %v2125_v6 = vrot.slane %v2123_v42, 4  ;;  %v2129_v58 = vshll.u32 %v1979_v48, 16  ;;  %v5768_v11 = vrot.slane %v2492_v55, 9  ;;  %v2610_v33 = vrot.slane %v2493_v60, 5  ;;  %v1570_v52 = vld [vmem:[#allocation2 + $0xa0] sm:$0xf] }
  0xd2   : > { %4800 = vmatprep.mubr.bf16.mxu0 %v5781_v16  ;;  %v2116_v63 = vor.u32 %v2115_v15, %v2112_v2  ;;  %v2613_v18 = vrot.slane %v2494_v38, 5  ;;  %6650 = vmatpush3.bf16.msra.mxu0 %v6810_v12  ;;  %v5711_v31 = vrot.slane %v1566_v10, 9  ;;  %v1715_v22 = vrot.slane %v1567_v43, 5  ;;  %v1982_v12 = vld [vmem:[#allocation2 + $0x50] sm:$0x1]  ;;  %v6821_v10 = vld [vmem:[%s8691_s3 + $0x228] sm:$0xff]  }
  0xd3   : > { %v2126_v41 = vor.u32 %v2125_v6, %v7695_v5  ;;  %v7701_v19 = vrot.slane %v2129_v58, 5  ;;  %6651 = vmatprep.subr.bf16.mxu0 %v6815_v54  ;;  %4712 = vmatmul.mubr.bf16.gmra.mrb[60].mxu1 %v5726_v1  ;;  %v7710_v46 = vsel %vm7199_vm8, %v5768_v11, %v2610_v33  ;;  %v2612_v44 = vrot.slane %v2610_v33, 4  ;;  %v1571_v24 = vld [vmem:[#allocation2 + $0xa4] sm:$0x1]  ;;  %v1983_v42 = vld [vmem:[#allocation2 + $0x54] sm:$0xf] }
  0xd4   : > { %v7706_v30 = vrot.slane %v2116_v63, 4  ;;  %v1718_v16 = vrot.slane %v1568_v61, 5  ;;  %4719 = vmatprep.mubr.bf16.mxu1 %v6808_v9  ;;  %v1716_v25 = vsel %vm7199_vm8, %v5711_v31, %v1715_v22  ;;  %v1717_v23 = vrot.slane %v1715_v22, 4  ;;  %v6824_v11 = vld [vmem:[%s8691_s3 + $0x230] sm:$0xff]  }
  0xd5   : > { %v2127_v28 = vrot.slane %v2126_v41, 4  ;;  %v2134_v32 = vshrl.u32 %v1980_v50, 16  ;;  %v7714_v45 = vcombine.low %v2098_v47, %v2108_v40  ;;  %v7718_v3 = vsel %vm7199_vm8, %v2612_v44, %v2613_v18 }
  0xd6   : > { %v2137_v29 = vshll.u32 %v1980_v50, 16  ;;  %v2143_v48 = vshll.u32 %v1981_v57, 16  ;;  %6652 = vmatpush3.bf16.msra.mxu0 %v6815_v54  ;;  %v2122_v37 = vsel %vm6962_vm2, %v7706_v30, %v7695_v5  ;;  %v1719_v60 = vsel %vm7199_vm8, %v1717_v23, %v1718_v16 }
  0xd7   : > { %v2132_v55 = vsel %vm6962_vm2, %v2127_v28, %v7701_v19  ;;  %v2136_v38 = vrot.slane %v2134_v32, 4  ;;  %6653 = vmatprep.subr.bf16.mxu0 %v6818_v27  ;;  %v5784_v43 = vcombine.low %v7710_v46, %v7718_v3  ;;  %v5727_v54 = vcombine.low %v1716_v25, %v1719_v60  ;;  %v1985_v19 = vld [vmem:[#allocation2 + $0x5c] sm:$0x1]  ;;  %v2500_v28 = vld [vmem:[#allocation2 + $0x68] sm:$0x1] }
  0xd8   : > { %v2139_v47 = vrot.slane %v2137_v29, 5  ;;  %v2145_v49 = vrot.slane %v2143_v48, 5  ;;  %v2147_v1 = vshrl.u32 %v1981_v57, 16  ;;  %v2153_v2 = vshll.u32 %v1982_v12, 16  ;;  %v1984_v57 = vld [vmem:[#allocation2 + $0x58] sm:$0xf] }
  0xd9   : > { %4801 = vmatmul.mubr.bf16.gmra.mrb[56].mxu0 %v7666_v0  ;;  %v5769_v15 = vrot.slane %v2495_v39, 9  ;;  %v2617_v61 = vrot.slane %v2496_v59, 5  ;;  %v2620_v40 = vrot.slane %v2497_v35, 5  ;;  %v5712_v5 = vrot.slane %v1569_v17, 9  ;;  %v2499_v39 = vld [vmem:[#allocation2 + $0x64] sm:$0xf] }
  0xda   : > { %4808 = vmatprep.mubr.bf16.mxu0 %v5782_v53  ;;  %v2140_v50 = vor.u32 %v2139_v47, %v2136_v38  ;;  %v1722_v6 = vrot.slane %v1570_v52, 5  ;;  %6654 = vmatpush3.bf16.msra.mxu0 %v6818_v27  ;;  %v2149_v58 = vrot.slane %v2147_v1, 4  ;;  %v2155_v9 = vrot.slane %v2153_v2, 5  ;;  %v2498_v27 = vld [vmem:[#allocation2 + $0x60] sm:$0xe]  ;;  %v6827_v59 = vld [vmem:[%s8691_s3 + $0x238] sm:$0xff]  }
  0xdb   : > { %v7740_v63 = vsel %vm7199_vm8, %v5769_v15, %v2617_v61  ;;  %v2619_v0 = vrot.slane %v2617_v61, 4  ;;  %6655 = vmatprep.subr.bf16.mxu0 %v6821_v10  ;;  %4720 = vmatmul.mubr.bf16.gmra.mrb[64].mxu1 %v5727_v54  ;;  %v1725_v33 = vrot.slane %v1571_v24, 5  ;;  %v2158_v31 = vshrl.u32 %v1983_v42, 16  ;;  %v1572_v48 = vld [vmem:[#allocation2 + $0xa8] sm:$0xe]  ;;  %v6813_v38 = vld [vmem:[#allocation2 + $0xb4] sm:$0xff]  }
  0xdc   : > { %v2141_v56 = vrot.slane %v2140_v50, 4  ;;  %v1723_v8 = vsel %vm7199_vm8, %v5712_v5, %v1722_v6  ;;  %v1724_v53 = vrot.slane %v1722_v6, 4  ;;  %v2150_v18 = vor.u32 %v2149_v58, %v2145_v49  ;;  %4727 = vmatprep.mubr.bf16.mxu1 %v6812_v36  ;;  %v1573_v36 = vld [vmem:[#allocation2 + $0xac] sm:$0xf]  ;;  %v1574_v47 = vld [vmem:[#allocation2 + $0xb0] sm:$0x1] }
  0xdd   : > { %v7749_v41 = vsel %vm7199_vm8, %v2619_v0, %v2620_v40  ;;  %v2161_v22 = vshll.u32 %v1983_v42, 16  ;;  %v7751_v30 = vcombine.low %v2122_v37, %v2132_v55  ;;  %v2167_v12 = vshll.u32 %v1984_v57, 16  ;;  %v1987_v40 = vld [vmem:[#allocation2 + $0x64] sm:$0xf]  ;;  %v1988_v58 = vld [vmem:[#allocation2 + $0x68] sm:$0x1] }
  0xde   : > { %v2146_v44 = vsel %vm6962_vm2, %v2141_v56, %v2145_v49  ;;  %v1726_v16 = vsel %vm7199_vm8, %v1724_v53, %v1725_v33  ;;  %6656 = vmatpush3.bf16.msra.mxu0 %v6821_v10  ;;  %v2151_v25 = vrot.slane %v2150_v18, 4  ;;  %v5785_v23 = vcombine.low %v7740_v63, %v7749_v41  ;;  %v1986_v49 = vld [vmem:[#allocation2 + $0x60] sm:$0xf] }
  0xdf   : > { %v2160_v32 = vrot.slane %v2158_v31, 4  ;;  %v2163_v29 = vrot.slane %v2161_v22, 5  ;;  %6657 = vmatprep.subr.bf16.mxu0 %v6824_v11  ;;  %v5728_v35 = vcombine.low %v1723_v8, %v1726_v16  ;;  %v2169_v37 = vrot.slane %v2167_v12, 5 }
  0xe0   : > { %v2171_v55 = vshrl.u32 %v1984_v57, 16  ;;  %v2177_v60 = vshll.u32 %v1985_v19, 16  ;;  %v2156_v17 = vsel %vm6962_vm2, %v2151_v25, %v2155_v9  ;;  %v5770_v10 = vrot.slane %v2498_v27, 9  ;;  %v1575_v25 = vld [vmem:[#allocation2 + $0xb4] sm:$0xe] }
  0xe1   : > { %4809 = vmatmul.mubr.bf16.gmra.mrb[60].mxu0 %v7714_v45  ;;  %v2164_v52 = vor.u32 %v2163_v29, %v2160_v32  ;;  %v2624_v54 = vrot.slane %v2499_v39, 5  ;;  %v7768_v24 = vcombine.low %v2146_v44, %v2156_v17  ;;  %v2627_v1 = vrot.slane %v2500_v28, 5  ;;  %v2502_v39 = vld [vmem:[#allocation2 + $0x70] sm:$0xf]  ;;  %v2503_v28 = vld [vmem:[#allocation2 + $0x74] sm:$0x1] }
  0xe2   : > { %4816 = vmatprep.mubr.bf16.mxu0 %v5783_v26  ;;  %v2173_v42 = vrot.slane %v2171_v55, 4  ;;  %v5713_v2 = vrot.slane %v1572_v48, 9  ;;  %6658 = vmatpush3.bf16.msra.mxu0 %v6824_v11  ;;  %v2179_v45 = vrot.slane %v2177_v60, 5  ;;  %v1729_v50 = vrot.slane %v1573_v36, 5  ;;  %v2501_v11 = vld [vmem:[#allocation2 + $0x6c] sm:$0xe] }
  0xe3   : > { %v2165_v15 = vrot.slane %v2164_v52, 4  ;;  %v2626_v61 = vrot.slane %v2624_v54, 4  ;;  %6659 = vmatprep.subr.bf16.mxu0 %v6827_v59  ;;  %4728 = vmatmul.mubr.bf16.gmra.mrb[68].mxu1 %v5728_v35  ;;  %v1732_v6 = vrot.slane %v1574_v47, 5  ;;  %v2182_v9 = vshrl.u32 %v1986_v49, 16  ;;  %v1576_v35 = vld [vmem:[#allocation2 + $0xb8] sm:$0xf] }
  0xe4   : > { %v2174_v5 = vor.u32 %v2173_v42, %v2169_v37  ;;  %v2185_v0 = vshll.u32 %v1986_v49, 16  ;;  %4735 = vmatprep.mubr.bf16.mxu1 %v6813_v38  ;;  %v7774_v7 = vsel %vm7199_vm8, %v5770_v10, %v2624_v54  ;;  %v1730_v26 = vsel %vm7199_vm8, %v5713_v2, %v1729_v50  ;;  %v1577_v55 = vld [vmem:[#allocation2 + $0xbc] sm:$0x1]  ;;  %v1989_v52 = vld [vmem:[#allocation2 + $0x6c] sm:$0xf] }
  0xe5   : > { %v2170_v51 = vsel %vm6962_vm2, %v2165_v15, %v2169_v37  ;;  %v1731_v57 = vrot.slane %v1729_v50, 4  ;;  %v7780_v8 = vsel %vm7199_vm8, %v2626_v61, %v2627_v1  ;;  %v2184_v53 = vrot.slane %v2182_v9, 4  ;;  %v2505_v9 = vld [vmem:[#allocation2 + $0x7c] sm:$0xf] }
  0xe6   : > { %v2175_v56 = vrot.slane %v2174_v5, 4  ;;  %v2187_v33 = vrot.slane %v2185_v0, 5  ;;  %6660 = vmatpush3.bf16.msra.mxu0 %v6827_v59  ;;  %v2191_v19 = vshll.u32 %v1987_v40, 16  ;;  %v2195_v31 = vshrl.u32 %v1987_v40, 16 }
  0xe7   : > { %v1733_v18 = vsel %vm7199_vm8, %v1731_v57, %v1732_v6  ;;  %v2201_v22 = vshll.u32 %v1988_v58, 16  ;;  %v373_v12 = vmul.f32 %v7587_v13, %v6062_v4  ;;  %v5786_v29 = vcombine.low %v7774_v7, %v7780_v8  ;;  %v6842_v4 = vld [vmem:[%s8690_s2] ss:$0 sm:$0xff]  ;;  %v2504_v58 = vld [vmem:[#allocation2 + $0x78] sm:$0xe] }
  0xe8   : > { %v2180_v27 = vsel %vm6962_vm2, %v2175_v56, %v2179_v45  ;;  %v5729_v44 = vcombine.low %v1730_v26, %v1733_v18  ;;  %v2188_v16 = vor.u32 %v2187_v33, %v2184_v53  ;;  %v2193_v48 = vrot.slane %v2191_v19, 5  ;;  %v1991_v45 = vld [vmem:[#allocation2 + $0x74] sm:$0x1]  ;;  %v2910_v19 = vld [vmem:[#allocation2 + $0x18] sm:$0xf] }
  0xe9   : > { %4817 = vmatmul.mubr.bf16.gmra.mrb[64].mxu0 %v7751_v30  ;;  %v7790_v32 = vcombine.low %v2170_v51, %v2180_v27  ;;  %v2197_v59 = vrot.slane %v2195_v31, 4  ;;  %v410_v13 = vadd.f32 %v6842_v4, %v7590_v14  ;;  %v411_v30 = vadd.f32 %v6842_v4, %v373_v12 }
  0xea   : > { %4824 = vmatprep.mubr.bf16.mxu0 %v5784_v43  ;;  %v2189_v21 = vrot.slane %v2188_v16, 4  ;;  %v5771_v37 = vrot.slane %v2501_v11, 9  ;;  %v2203_v38 = vrot.slane %v2201_v22, 5  ;;  %v2631_v36 = vrot.slane %v2502_v39, 5  ;;  %v1990_v43 = vld [vmem:[#allocation2 + $0x70] sm:$0xf] }
  0xeb   : > { %v2198_v60 = vor.u32 %v2197_v59, %v2193_v48  ;;  %v2634_v17 = vrot.slane %v2503_v28, 5  ;;  %4736 = vmatmul.mubr.bf16.gmra.mrb[72].mxu1 %v5729_v44  ;;  %v442_v10 = vmax.f32 %v410_v13, 0.0  ;;  %v443_v54 = vmax.f32 %v411_v30, 0.0  ;;  %v2506_v11 = vld [vmem:[#allocation2 + $0x80] sm:$0x1] }
  0xec   : > { %v5714_v46 = vrot.slane %v1575_v25, 9  ;;  %v1736_v3 = vrot.slane %v1576_v35, 5  ;;  %v2194_v47 = vsel %vm6962_vm2, %v2189_v21, %v2193_v48  ;;  %v2633_v42 = vrot.slane %v2631_v36, 4  ;;  %v2911_v28 = vld [vmem:[#allocation2 + $0x1c] sm:$0xf] }
  0xed   : > { %v2199_v49 = vrot.slane %v2198_v60, 4  ;;  %v1739_v14 = vrot.slane %v1577_v55, 5  ;;  %v459_v1 = vpack.c.bf16 %v443_v54, %v442_v10  ;;  %v7805_v2 = vsel %vm7199_vm8, %v5771_v37, %v2631_v36  ;;  %v2912_v21 = vld [vmem:[#allocation2 + $0x20] sm:$0x1]  ;;  %v1992_v60 = vld [vmem:[#allocation2 + $0x78] sm:$0xf] }
  0xee   : > { %v1738_v15 = vrot.slane %v1736_v3, 4  ;;  %v2206_v61 = vshrl.u32 %v1989_v52, 16  ;;  %v7811_v40 = vsel %vm7199_vm8, %v2633_v42, %v2634_v17  ;;  %v2209_v5 = vshll.u32 %v1989_v52, 16  ;;  %v1993_v10 = vld [vmem:[#allocation2 + $0x7c] sm:$0xf] }
  0xef   : > { %v2204_v50 = vsel %vm6962_vm2, %v2199_v49, %v2203_v38  ;;  %v2215_v6 = vshll.u32 %v1990_v43, 16  ;;  %v573_v51 = vshrl.u32 %v459_v1, 16  ;;  %v576_v26 = vshll.u32 %v459_v1, 16  ;;  %v2507_v49 = vld [vmem:[#allocation2 + $0x84] sm:$0xe] }
  0xf0   : > { %v7813_v0 = vcombine.low %v2194_v47, %v2204_v50  ;;  %v7817_v57 = vsel %vm7199_vm8, %v5714_v46, %v1736_v3  ;;  %v5787_v56 = vcombine.low %v7805_v2, %v7811_v40  ;;  %v7824_v53 = vsel %vm7199_vm8, %v1738_v15, %v1739_v14  ;;  %v1994_v47 = vld [vmem:[#allocation2 + $0x80] sm:$0x1] }
  0xf1   : > { %4825 = vmatmul.mubr.bf16.gmra.mrb[68].mxu0 %v7768_v24  ;;  %v2208_v33 = vrot.slane %v2206_v61, 4  ;;  %v2211_v18 = vrot.slane %v2209_v5, 5  ;;  %v7829_v31 = vrot.slane %v573_v51, 7  ;;  %v7831_v22 = vrot.slane %v2215_v6, 5  ;;  %v2508_v61 = vld [vmem:[#allocation2 + $0x88] sm:$0xf] }
  0xf2   : > { %4832 = vmatprep.mubr.bf16.mxu0 %v5785_v23  ;;  %v2219_v27 = vshrl.u32 %v1990_v43, 16  ;;  %v2225_v24 = vshll.u32 %v1991_v45, 16  ;;  %v5772_v16 = vrot.slane %v2504_v58, 9  ;;  %v2638_v12 = vrot.slane %v2505_v9, 5  ;;  %v2509_v9 = vld [vmem:[#allocation2 + $0x8c] sm:$0x1] }
  0xf3   : > { %v2212_v44 = vor.u32 %v2211_v18, %v2208_v33  ;;  %v2641_v39 = vrot.slane %v2506_v11, 5  ;;  %v578_v25 = vor.u32 %v576_v26, %v7829_v31  ;;  %v5730_v48 = vcombine.low %v7817_v57, %v7824_v53 }
  0xf4   : > { %v2221_v59 = vrot.slane %v2219_v27, 4  ;;  %v2959_v35 = vshrl.u32 %v2910_v19, 16  ;;  %v2227_v41 = vrot.slane %v2225_v24, 5  ;;  %v2640_v23 = vrot.slane %v2638_v12, 4 }
  0xf5   : > { %v7836_v63 = vrot.slane %v2212_v44, 4  ;;  %v2962_v4 = vshll.u32 %v2910_v19, 16  ;;  %v629_v13 = vsel %vm7011_vm5, 0, %v578_v25  ;;  %v2968_v55 = vshll.u32 %v2911_v28, 16  ;;  %v2913_v25 = vld [vmem:[#allocation2 + $0x24] sm:$0xf] }
  0xf6   : > { %v2222_v30 = vor.u32 %v2221_v59, %v7831_v22  ;;  %v2961_v37 = vrot.slane %v2959_v35, 4  ;;  %v5664_v38 = vcombine.low %v629_v13, %v629_v13  ;;  %v5665_v36 = vcombine.high %v629_v13, %v629_v13 }
  0xf7   : > { %v7843_v17 = vsel %vm7199_vm8, %v5772_v16, %v2638_v12  ;;  %v7847_v52 = vsel %vm7199_vm8, %v2640_v23, %v2641_v39  ;;  %v2218_v54 = vsel %vm6962_vm2, %v7836_v63, %v7831_v22  ;;  %v2964_v3 = vrot.slane %v2962_v4, 5 }
  0xf8   : > { %v2223_v46 = vrot.slane %v2222_v30, 4  ;;  %v2970_v43 = vrot.slane %v2968_v55, 5  ;;  %868 = vst [vmem:[#allocation2 + $0xc0] sm:$0xf] %v5664_v38  ;;  %869 = vst [vmem:[#allocation2 + $0xc4] sm:$0xf] %v5665_v36  ;;  %v5788_v50 = vcombine.low %v7843_v17, %v7847_v52 }
  0xf9   : > { %4833 = vmatmul.mubr.bf16.gmra.mrb[72].mxu0 %v7790_v32  ;;  %v2972_v14 = vshrl.u32 %v2911_v28, 16  ;;  %v2978_v1 = vshll.u32 %v2912_v21, 16  ;;  %v2230_v15 = vshrl.u32 %v1992_v60, 16  ;;  %v2233_v45 = vshll.u32 %v1992_v60, 16  ;;  %v2914_v21 = vld [vmem:[#allocation2 + $0x28] sm:$0xf] }
  0xfa   : > { %4840 = vmatprep.mubr.bf16.mxu0 %v5786_v29  ;;  %v2965_v5 = vor.u32 %v2964_v3, %v2961_v37  ;;  %v2239_v6 = vshll.u32 %v1993_v10, 16  ;;  %v2243_v58 = vshrl.u32 %v1993_v10, 16  ;;  %v2228_v32 = vsel %vm6962_vm2, %v2223_v46, %v2227_v41  ;;  %v2915_v10 = vld [vmem:[#allocation2 + $0x2c] sm:$0x1]  ;;  %v1995_v3 = vld [vmem:[#allocation2 + $0x84] sm:$0xf] }
  0xfb   : > { %v2974_v51 = vrot.slane %v2972_v14, 4  ;;  %v2980_v26 = vrot.slane %v2978_v1, 5  ;;  %v2232_v11 = vrot.slane %v2230_v15, 4  ;;  %v2235_v19 = vrot.slane %v2233_v45, 5 }
  0xfc   : > { %v2966_v18 = vrot.slane %v2965_v5, 4  ;;  %v2241_v22 = vrot.slane %v2239_v6, 5  ;;  %v2245_v27 = vrot.slane %v2243_v58, 4  ;;  %v2249_v8 = vshll.u32 %v1994_v47, 16 }
  0xfd   : > { %v2975_v7 = vor.u32 %v2974_v51, %v2970_v43  ;;  %v5773_v29 = vrot.slane %v2507_v49, 9  ;;  %v2645_v24 = vrot.slane %v2508_v61, 5  ;;  %v2236_v12 = vor.u32 %v2235_v19, %v2232_v11  ;;  %v1996_v49 = vld [vmem:[#allocation2 + $0x88] sm:$0xf]  ;;  %v2511_v51 = vld [vmem:[#allocation2 + $0x94] sm:$0xf] }
  0xfe   : > { %v2971_v16 = vsel %vm6962_vm2, %v2966_v18, %v2970_v43  ;;  %v2246_v39 = vor.u32 %v2245_v27, %v2241_v22  ;;  %v2648_v28 = vrot.slane %v2509_v9, 5  ;;  %v2251_v63 = vrot.slane %v2249_v8, 5  ;;  %v2512_v11 = vld [vmem:[#allocation2 + $0x98] sm:$0x1] }
  0xff   : > { %v2976_v35 = vrot.slane %v2975_v7, 4  ;;  %v7865_v41 = vsel %vm7199_vm8, %v5773_v29, %v2645_v24  ;;  %v2647_v23 = vrot.slane %v2645_v24, 4  ;;  %v6817_v4 = vld [vmem:[#allocation2 + $0xc0] sm:$0xff]   ;;  %v5755_v13 = vcombine.low %v2218_v54, %v2228_v32 }
 0x100   : > { %v2237_v30 = vrot.slane %v2236_v12, 4  ;;  %v2247_v38 = vrot.slane %v2246_v39, 4  ;;  %v2983_v46 = vshrl.u32 %v2913_v25, 16  ;;  %4743 = vmatprep.mubr.bf16.mxu1 %v6817_v4  ;;  %v2986_v47 = vshll.u32 %v2913_v25, 16  ;;  %v2917_v25 = vld [vmem:[#allocation2 + $0x34] sm:$0xf] }
 0x101   : > { %v6189_v42 = vpop.f32.mrb[0].mxu0  ;;  %4841 = vmatmul.mubr.bf16.gmra.mrb[76].mxu0 %v7813_v0  ;;  %v2981_v60 = vsel %vm6962_vm2, %v2976_v35, %v2980_v26  ;;  %v7876_v36 = vsel %vm7199_vm8, %v2647_v23, %v2648_v28  ;;  %4744 = vmatmul.mubr.bf16.gmra.mrb[76].mxu1 %v5730_v48  ;;  %v2992_v2 = vshll.u32 %v2914_v21, 16  ;;  %v2996_v40 = vshrl.u32 %v2914_v21, 16  ;;  %v2918_v21 = vld [vmem:[#allocation2 + $0x38] sm:$0x1] }
 0x102   : > { %v6190_v33 = vpop.f32.mrb[1].mxu0  ;;  %4848 = vmatprep.mubr.bf16.mxu0 %v5787_v56  ;;  %v5811_v54 = vcombine.low %v2971_v16, %v2981_v60  ;;  %v2242_v0 = vsel %vm6962_vm2, %v2237_v30, %v2241_v22  ;;  %v5789_v43 = vcombine.low %v7865_v41, %v7876_v36  ;;  %v2252_v14 = vsel %vm6962_vm2, %v2247_v38, %v2251_v63  ;;  %v2510_v56 = vld [vmem:[#allocation2 + $0x90] sm:$0xe] }
 0x103   : > { %v6192_v44 = vpop.f32.mrb[2].mxu0  ;;  %v7867_v37 = vadd.f32 %v6190_v33, %v6189_v42  ;;  %v1997_v42 = vld [vmem:[#allocation2 + $0x8c] sm:$0x1]  ;;  %v2985_v1 = vrot.slane %v2983_v46, 4  ;;  %v7890_v15 = vcombine.low %v2242_v0, %v2252_v14  ;;  %v2988_v45 = vrot.slane %v2986_v47, 5  ;;  %v6819_v33 = vld [vmem:[#allocation2 + $0x18] sm:$0xff]  }
 0x104   : > { %v6193_v59 = vpop.f32.mrb[3].mxu0  ;;  %4945 = vmatprep.mubr.bf16.mxu1 %v5811_v54  ;;  %v3002_v61 = vshll.u32 %v2915_v10, 16  ;;  %v2254_v5 = vshrl.u32 %v1995_v3, 16  ;;  %v2994_v6 = vrot.slane %v2992_v2, 5  ;;  %v2998_v58 = vrot.slane %v2996_v40, 4  ;;  %v6820_v14 = vld [vmem:[#allocation2 + $0x24] sm:$0xff]  }
 0x105   : > { %v7869_v55 = vadd.f32 %v6193_v59, %v6192_v44  ;;  %v2257_v9 = vshll.u32 %v1995_v3, 16  ;;  %v2263_v32 = vshll.u32 %v1996_v49, 16  ;;  %v2989_v57 = vor.u32 %v2988_v45, %v2985_v1  ;;  %v2916_v44 = vld [vmem:[#allocation2 + $0x30] sm:$0xf]  ;;  %v1999_v46 = vld [vmem:[#allocation2 + $0x94] sm:$0xf] }
 0x106   : > { %v3004_v53 = vrot.slane %v3002_v61, 5  ;;  %v2256_v48 = vrot.slane %v2254_v5, 4  ;;  %v2267_v26 = vshrl.u32 %v1996_v49, 16  ;;  %v2999_v18 = vor.u32 %v2998_v58, %v2994_v6  ;;  %v1998_v10 = vld [vmem:[#allocation2 + $0x90] sm:$0xf] }
 0x107   : > { %v2259_v19 = vrot.slane %v2257_v9, 5  ;;  %v2265_v22 = vrot.slane %v2263_v32, 5  ;;  %v2273_v27 = vshll.u32 %v1997_v42, 16  ;;  %v2990_v7 = vrot.slane %v2989_v57, 4  ;;  %v2000_v49 = vld [vmem:[#allocation2 + $0x98] sm:$0x1] }
 0x108   : > { %v2269_v8 = vrot.slane %v2267_v26, 4  ;;  %v5774_v29 = vrot.slane %v2510_v56, 9  ;;  %v2652_v24 = vrot.slane %v2511_v51, 5  ;;  %v3000_v16 = vrot.slane %v2999_v18, 4  ;;  %v2514_v58 = vld [vmem:[#allocation2 + $0xa0] sm:$0xf] }
 0x109   : > { %4849 = vmatmul.mubr.bf16.gmra.mrb[80].mxu0 %v5755_v13  ;;  %v2260_v12 = vor.u32 %v2259_v19, %v2256_v48  ;;  %v2275_v39 = vrot.slane %v2273_v27, 5  ;;  %v2655_v28 = vrot.slane %v2512_v11, 5  ;;  %v2995_v59 = vsel %vm6962_vm2, %v2990_v7, %v2994_v6  ;;  %4946 = vmatmul.mubr.bf16.vlgmr.msra.gmra.mrb[80].mxu1 %v6819_v33  ;;  %v2513_v6 = vld [vmem:[#allocation2 + $0x9c] sm:$0xe] }
 0x10a   : > { %4856 = vmatprep.mubr.bf16.mxu0 %v5788_v50  ;;  %v2270_v35 = vor.u32 %v2269_v8, %v2265_v22  ;;  %v7899_v63 = vsel %vm7199_vm8, %v5774_v29, %v2652_v24  ;;  %v2654_v23 = vrot.slane %v2652_v24, 4  ;;  %v3005_v4 = vsel %vm6962_vm2, %v3000_v16, %v3004_v53  ;;  %v2515_v53 = vld [vmem:[#allocation2 + $0xa4] sm:$0x1]  ;;  %v2919_v18 = vld [vmem:[#allocation2 + $0x3c] sm:$0xf] }
 0x10b   : > { %v2261_v13 = vrot.slane %v2260_v12, 4  ;;  %v3007_v30 = vshrl.u32 %v2916_v44, 16  ;;  %v3010_v60 = vshll.u32 %v2916_v44, 16  ;;  %v5812_v38 = vcombine.low %v2995_v59, %v3005_v4  ;;  %v2920_v16 = vld [vmem:[#allocation2 + $0x40] sm:$0xf]  ;;  %v6822_v59 = vld [vmem:[#allocation2 + $0x30] sm:$0xff]  }
 0x10c   : > { %v2271_v17 = vrot.slane %v2270_v35, 4  ;;  %v7905_v52 = vsel %vm7199_vm8, %v2654_v23, %v2655_v28  ;;  %v3016_v50 = vshll.u32 %v2917_v25, 16  ;;  %v3020_v2 = vshrl.u32 %v2917_v25, 16  ;;  %v2921_v25 = vld [vmem:[#allocation2 + $0x44] sm:$0x1] }
 0x10d   : > { %v2266_v3 = vsel %vm6962_vm2, %v2261_v13, %v2265_v22  ;;  %v5790_v54 = vcombine.low %v7899_v63, %v7905_v52  ;;  %v3009_v0 = vrot.slane %v3007_v30, 4  ;;  %v3012_v47 = vrot.slane %v3010_v60, 5  ;;  %4953 = vmatprep.mubr.bf16.mxu1 %v5812_v38  ;;  %v2001_v4 = vld [vmem:[#allocation2 + $0x9c] sm:$0xf] }
 0x10e   : > { %v2276_v42 = vsel %vm6962_vm2, %v2271_v17, %v2275_v39  ;;  %v3018_v1 = vrot.slane %v3016_v50, 5  ;;  %v3026_v40 = vshll.u32 %v2918_v21, 16  ;;  %v2278_v61 = vshrl.u32 %v1998_v10, 16 }
 0x10f   : > { %v5757_v56 = vcombine.low %v2266_v3, %v2276_v42  ;;  %v3013_v45 = vor.u32 %v3012_v47, %v3009_v0  ;;  %v2281_v5 = vshll.u32 %v1998_v10, 16  ;;  %v3022_v9 = vrot.slane %v3020_v2, 4  ;;  %v2002_v47 = vld [vmem:[#allocation2 + $0xa0] sm:$0xf] }
 0x110   : > { %v3028_v32 = vrot.slane %v3026_v40, 5  ;;  %v2287_v51 = vshll.u32 %v1999_v46, 16  ;;  %v2291_v57 = vshrl.u32 %v1999_v46, 16  ;;  %v2280_v26 = vrot.slane %v2278_v61, 4  ;;  %v2003_v40 = vld [vmem:[#allocation2 + $0xa4] sm:$0x1] }
 0x111   : > { %4857 = vmatmul.mubr.bf16.gmra.mrb[84].mxu0 %v7890_v15  ;;  %v3014_v48 = vrot.slane %v3013_v45, 4  ;;  %v2283_v11 = vrot.slane %v2281_v5, 5  ;;  %v2297_v33 = vshll.u32 %v2000_v49, 16  ;;  %v3023_v19 = vor.u32 %v3022_v9, %v3018_v1  ;;  %4954 = vmatmul.mubr.bf16.gmra.mrb[84].mxu1 %v6820_v14  ;;  %v2516_v45 = vld [vmem:[#allocation2 + $0xa8] sm:$0xe] }
 0x112   : > { %4864 = vmatprep.mubr.bf16.mxu0 %v5789_v43  ;;  %v2289_v22 = vrot.slane %v2287_v51, 5  ;;  %v2293_v27 = vrot.slane %v2291_v57, 4  ;;  %v5775_v7 = vrot.slane %v2513_v6, 9  ;;  %v2659_v44 = vrot.slane %v2514_v58, 5  ;;  %v2517_v9 = vld [vmem:[#allocation2 + $0xac] sm:$0xf] }
 0x113   : > { %v7917_v8 = vpop.f32.mrb[4].mxu0  ;;  %v3019_v29 = vsel %vm6962_vm2, %v3014_v48, %v3018_v1  ;;  %v2284_v15 = vor.u32 %v2283_v11, %v2280_v26  ;;  %v2299_v24 = vrot.slane %v2297_v33, 5  ;;  %v3024_v12 = vrot.slane %v3023_v19, 4 }
 0x114   : > { %v2294_v39 = vor.u32 %v2293_v27, %v2289_v22  ;;  %v2662_v28 = vrot.slane %v2515_v53, 5  ;;  %v3031_v41 = vshrl.u32 %v2919_v18, 16  ;;  %v7921_v36 = vpop.f32.mrb[5].mxu0  ;;  %v7925_v35 = vsel %vm7199_vm8, %v5775_v7, %v2659_v44  ;;  %v2922_v7 = vld [vmem:[#allocation2 + $0x48] sm:$0xf] }
 0x115   : > { %v2285_v43 = vrot.slane %v2284_v15, 4  ;;  %v2661_v23 = vrot.slane %v2659_v44, 4  ;;  %v3034_v21 = vshll.u32 %v2919_v18, 16  ;;  %v3029_v30 = vsel %vm6962_vm2, %v3024_v12, %v3028_v32  ;;  %v2518_v32 = vld [vmem:[#allocation2 + $0xb0] sm:$0x1]  ;;  %v7952_v44 = vpop.f32.mrb[6].mxu0 }
 0x116   : > { %v7927_v13 = vpop.f32.mrb[0].mxu1  ;;  %v2295_v60 = vrot.slane %v2294_v39, 4  ;;  %v3033_v38 = vrot.slane %v3031_v41, 4  ;;  %v3040_v17 = vshll.u32 %v2920_v16, 16  ;;  %v5813_v10 = vcombine.low %v3019_v29, %v3029_v30 }
 0x117   : > { %v7931_v50 = vpop.f32.mrb[1].mxu1  ;;  %v2290_v46 = vsel %vm6962_vm2, %v2285_v43, %v2289_v22  ;;  %v7937_v3 = vsel %vm7199_vm8, %v2661_v23, %v2662_v28  ;;  %v3036_v0 = vrot.slane %v3034_v21, 5  ;;  %v3044_v2 = vshrl.u32 %v2920_v16, 16  ;;  %v7958_v23 = vpop.f32.mrb[7].mxu0 }
 0x118   : > { %v7939_v49 = vpop.f32.mrb[2].mxu1  ;;  %v2300_v42 = vsel %vm6962_vm2, %v2295_v60, %v2299_v24  ;;  %v5791_v14 = vcombine.low %v7925_v35, %v7937_v3  ;;  %v3042_v1 = vrot.slane %v3040_v17, 5  ;;  %4961 = vmatprep.mubr.bf16.mxu1 %v5813_v10  ;;  %v3050_v6 = vshll.u32 %v2921_v25, 16  ;;  %v2923_v24 = vld [vmem:[#allocation2 + $0x4c] sm:$0xf]  ;;  %v6823_v25 = vld [vmem:[#allocation2 + $0x3c] sm:$0xff]  }
 0x119   : > { %4865 = vmatmul.mubr.bf16.gmra.mrb[88].mxu0 %v5757_v56  ;;  %v5758_v61 = vcombine.low %v2290_v46, %v2300_v42  ;;  %v3037_v5 = vor.u32 %v3036_v0, %v3033_v38  ;;  %v2302_v58 = vshrl.u32 %v2001_v4, 16  ;;  %v3046_v51 = vrot.slane %v3044_v2, 4  ;;  %4962 = vmatmul.mubr.bf16.gmra.mrb[88].mxu1 %v6822_v59  ;;  %v7948_v29 = vpop.f32.mrb[3].mxu1  ;;  %v2924_v60 = vld [vmem:[#allocation2 + $0x50] sm:$0x1] }
 0x11a   : > { %4872 = vmatprep.mubr.bf16.mxu0 %v5790_v54  ;;  %v2305_v57 = vshll.u32 %v2001_v4, 16  ;;  %v2311_v53 = vshll.u32 %v2002_v47, 16  ;;  %v2315_v48 = vshrl.u32 %v2002_v47, 16  ;;  %v3052_v11 = vrot.slane %v3050_v6, 5  ;;  %v2004_v47 = vld [vmem:[#allocation2 + $0xa8] sm:$0xf] }
 0x11b   : > { %v3038_v26 = vrot.slane %v3037_v5, 4  ;;  %v2304_v33 = vrot.slane %v2302_v58, 4  ;;  %v2321_v56 = vshll.u32 %v2003_v40, 16  ;;  %v3047_v18 = vor.u32 %v3046_v51, %v3042_v1  ;;  %v2005_v42 = vld [vmem:[#allocation2 + $0xac] sm:$0xf] }
 0x11c   : > { %v2307_v19 = vrot.slane %v2305_v57, 5  ;;  %v2313_v22 = vrot.slane %v2311_v53, 5  ;;  %v2317_v27 = vrot.slane %v2315_v48, 4  ;;  %v5776_v54 = vrot.slane %v2516_v45, 9  ;;  %v2006_v5 = vld [vmem:[#allocation2 + $0xb0] sm:$0x1] }
 0x11d   : > { %v3043_v63 = vsel %vm6962_vm2, %v3038_v26, %v3042_v1  ;;  %v2323_v52 = vrot.slane %v2321_v56, 5  ;;  %v2666_v15 = vrot.slane %v2517_v9, 5  ;;  %v3048_v16 = vrot.slane %v3047_v18, 4  ;;  %v2520_v57 = vld [vmem:[#allocation2 + $0xb8] sm:$0xf] }
 0x11e   : > { %v2308_v12 = vor.u32 %v2307_v19, %v2304_v33  ;;  %v2318_v39 = vor.u32 %v2317_v27, %v2313_v22  ;;  %v2669_v28 = vrot.slane %v2518_v32, 5  ;;  %v3055_v59 = vshrl.u32 %v2922_v7, 16 }
 0x11f   : > { %v7956_v41 = vsel %vm7199_vm8, %v5776_v54, %v2666_v15  ;;  %v2668_v43 = vrot.slane %v2666_v15, 4  ;;  %v3058_v35 = vshll.u32 %v2922_v7, 16  ;;  %v3053_v21 = vsel %vm6962_vm2, %v3048_v16, %v3052_v11  ;;  %v2521_v11 = vld [vmem:[#allocation2 + $0xbc] sm:$0x1]  ;;  %v2926_v54 = vld [vmem:[#allocation2 + $0x58] sm:$0xf] }
 0x120   : > { %v2309_v4 = vrot.slane %v2308_v12, 4  ;;  %v2319_v30 = vrot.slane %v2318_v39, 4  ;;  %v3064_v38 = vshll.u32 %v2923_v24, 16  ;;  %v7962_v17 = vpop.f32.mrb[4].mxu1  ;;  %v5814_v10 = vcombine.low %v3043_v63, %v3053_v21 }
 0x121   : > { %4873 = vmatmul.mubr.bf16.gmra.mrb[92].mxu0 %v5758_v61  ;;  %v2670_v46 = vsel %vm7199_vm8, %v2668_v43, %v2669_v28  ;;  %v3057_v3 = vrot.slane %v3055_v59, 4  ;;  %v3060_v0 = vrot.slane %v3058_v35, 5  ;;  %v2519_v61 = vld [vmem:[#allocation2 + $0xb4] sm:$0xe]  ;;  %v7971_v6 = vpop.f32.mrb[5].mxu1  ;;  %v3068_v32 = vshrl.u32 %v2923_v24, 16 }
 0x122   : > { %4880 = vmatprep.mubr.bf16.mxu0 %v5791_v14  ;;  %v2314_v1 = vsel %vm6962_vm2, %v2309_v4, %v2313_v22  ;;  %v2324_v2 = vsel %vm6962_vm2, %v2319_v30, %v2323_v52  ;;  %v5792_v40 = vcombine.low %v7956_v41, %v2670_v46  ;;  %v3066_v45 = vrot.slane %v3064_v38, 5  ;;  %4969 = vmatprep.mubr.bf16.mxu1 %v5814_v10  ;;  %v2925_v22 = vld [vmem:[#allocation2 + $0x54] sm:$0xf]  ;;  %v7975_v39 = vpop.f32.mrb[6].mxu1  ;;  %v7977_v28 = vpop.f32.mrb[8].mxu0  ;;  %v6825_v30 = vld [vmem:[#allocation2 + $0x48] sm:$0xff]  }
 0x123   : > { %v5759_v58 = vcombine.low %v2314_v1, %v2324_v2  ;;  %v3061_v9 = vor.u32 %v3060_v0, %v3057_v3  ;;  %v3074_v51 = vshll.u32 %v2924_v60, 16  ;;  %4970 = vmatmul.mubr.bf16.gmra.mrb[92].mxu1 %v6823_v25  ;;  %v2326_v14 = vshrl.u32 %v2004_v47, 16  ;;  %v7979_v35 = vpop.f32.mrb[7].mxu1  ;;  %v7981_v21 = vpop.f32.mrb[9].mxu0  ;;  %v2927_v60 = vld [vmem:[#allocation2 + $0x5c] sm:$0x1] }
 0x124   : > { %v2329_v53 = vshll.u32 %v2004_v47, 16  ;;  %v2335_v48 = vshll.u32 %v2005_v42, 16  ;;  %v2339_v26 = vshrl.u32 %v2005_v42, 16  ;;  %v3070_v56 = vrot.slane %v3068_v32, 4  ;;  %v2007_v1 = vld [vmem:[#allocation2 + $0xb4] sm:$0xf] }
 0x125   : > { %v3062_v33 = vrot.slane %v3061_v9, 4  ;;  %v3076_v18 = vrot.slane %v3074_v51, 5  ;;  %v2345_v19 = vshll.u32 %v2006_v5, 16  ;;  %v2328_v27 = vrot.slane %v2326_v14, 4  ;;  %v7985_v2 = vpop.f32.mrb[10].mxu0 }
 0x126   : > { %v2331_v7 = vrot.slane %v2329_v53, 5  ;;  %v2337_v63 = vrot.slane %v2335_v48, 5  ;;  %v2341_v52 = vrot.slane %v2339_v26, 4  ;;  %v3071_v24 = vor.u32 %v3070_v56, %v3066_v45  ;;  %v2008_v9 = vld [vmem:[#allocation2 + $0xb8] sm:$0xf]  ;;  %v7989_v32 = vpop.f32.mrb[11].mxu0 }
 0x127   : > { %v3067_v15 = vsel %vm6962_vm2, %v3062_v33, %v3066_v45  ;;  %v2347_v16 = vrot.slane %v2345_v19, 5  ;;  %v5777_v12 = vrot.slane %v2519_v61, 9  ;;  %v2673_v43 = vrot.slane %v2520_v57, 5  ;;  %v2009_v53 = vld [vmem:[#allocation2 + $0xbc] sm:$0x1] }
 0x128   : > { %v2332_v25 = vor.u32 %v2331_v7, %v2328_v27  ;;  %v2342_v41 = vor.u32 %v2341_v52, %v2337_v63  ;;  %v2676_v59 = vrot.slane %v2521_v11, 5  ;;  %v3072_v4 = vrot.slane %v3071_v24, 4  ;;  %v2522_v27 = vld [vmem:[#allocation2 + $0xc0] sm:$0xe]  ;;  %v2523_v24 = vld [vmem:[#allocation2 + $0xc4] sm:$0xf] }
 0x129   : > { %4881 = vmatmul.mubr.bf16.gmra.mrb[96].mxu0 %v5759_v58  ;;  %v3079_v38 = vshrl.u32 %v2925_v22, 16  ;;  %v3082_v10 = vshll.u32 %v2925_v22, 16  ;;  %v3088_v46 = vshll.u32 %v2926_v54, 16  ;;  %v2674_v47 = vsel %vm7199_vm8, %v5777_v12, %v2673_v43 }
 0x12a   : > { %4888 = vmatprep.mubr.bf16.mxu0 %v5792_v40  ;;  %v2333_v3 = vrot.slane %v2332_v25, 4  ;;  %v2343_v0 = vrot.slane %v2342_v41, 4  ;;  %v2675_v42 = vrot.slane %v2673_v43, 4  ;;  %v3077_v45 = vsel %vm6962_vm2, %v3072_v4, %v3076_v18  ;;  %v2928_v43 = vld [vmem:[#allocation2 + $0x60] sm:$0xf] }
 0x12b   : > { %v3081_v5 = vrot.slane %v3079_v38, 4  ;;  %v3084_v61 = vrot.slane %v3082_v10, 5  ;;  %v3090_v58 = vrot.slane %v3088_v46, 5  ;;  %v5815_v51 = vcombine.low %v3067_v15, %v3077_v45  ;;  %v2929_v38 = vld [vmem:[#allocation2 + $0x64] sm:$0xf] }
 0x12c   : > { %v2338_v40 = vsel %vm6962_vm2, %v2333_v3, %v2337_v63  ;;  %v2348_v57 = vsel %vm6962_vm2, %v2343_v0, %v2347_v16  ;;  %v2677_v14 = vsel %vm7199_vm8, %v2675_v42, %v2676_v59  ;;  %v3092_v33 = vshrl.u32 %v2926_v54, 16  ;;  %v2930_v0 = vld [vmem:[#allocation2 + $0x68] sm:$0x1] }
 0x12d   : > { %v5760_v48 = vcombine.low %v2338_v40, %v2348_v57  ;;  %v5793_v26 = vcombine.low %v2674_v47, %v2677_v14  ;;  %v3085_v11 = vor.u32 %v3084_v61, %v3081_v5  ;;  %4977 = vmatprep.mubr.bf16.mxu1 %v5815_v51  ;;  %v3098_v56 = vshll.u32 %v2927_v60, 16  ;;  %v2010_v61 = vld [vmem:[#allocation2 + $0xc0] sm:$0xf]  ;;  %v6826_v14 = vld [vmem:[#allocation2 + $0x54] sm:$0xff]  }
 0x12e   : > { %v2350_v18 = vshrl.u32 %v2007_v1, 16  ;;  %v2353_v19 = vshll.u32 %v2007_v1, 16  ;;  %v2359_v22 = vshll.u32 %v2008_v9, 16  ;;  %4978 = vmatmul.mubr.bf16.gmra.mrb[96].mxu1 %v6825_v30  ;;  %v3094_v63 = vrot.slane %v3092_v33, 4 }
 0x12f   : > { %v3086_v7 = vrot.slane %v3085_v11, 4  ;;  %v2363_v52 = vshrl.u32 %v2008_v9, 16  ;;  %v2369_v15 = vshll.u32 %v2009_v53, 16  ;;  %v3100_v16 = vrot.slane %v3098_v56, 5 }
 0x130   : > { %v2352_v12 = vrot.slane %v2350_v18, 4  ;;  %v2355_v25 = vrot.slane %v2353_v19, 5  ;;  %v2361_v41 = vrot.slane %v2359_v22, 5  ;;  %v3095_v59 = vor.u32 %v3094_v63, %v3090_v58  ;;  %v2011_v19 = vld [vmem:[#allocation2 + $0xc4] sm:$0xf] }
 0x131   : > { %4889 = vmatmul.mubr.bf16.gmra.mrb[100].mxu0 %v5760_v48  ;;  %v3091_v54 = vsel %vm6962_vm2, %v3086_v7, %v3090_v58  ;;  %v2365_v4 = vrot.slane %v2363_v52, 4  ;;  %v2371_v60 = vrot.slane %v2369_v15, 5  ;;  %v645_v10 = vsel %vm7011_vm5, %v7829_v31, 0 }
 0x132   : > { %4896 = vmatprep.mubr.bf16.mxu0 %v5793_v26  ;;  %v2356_v30 = vor.u32 %v2355_v25, %v2352_v12  ;;  %v5778_v46 = vrot.slane %v2522_v27, 9  ;;  %v2680_v3 = vrot.slane %v2523_v24, 5  ;;  %v8002_v47 = vpop.f32.mrb[12].mxu0  ;;  %v3096_v42 = vrot.slane %v3095_v59, 4 }
 0x133   : > { %v2366_v1 = vor.u32 %v2365_v4, %v2361_v41  ;;  %v5666_v45 = vcombine.low %v645_v10, %v645_v10  ;;  %v3103_v5 = vshrl.u32 %v2928_v43, 16  ;;  %v3106_v40 = vshll.u32 %v2928_v43, 16  ;;  %v8010_v20 = vpop.f32.mrb[13].mxu0  ;;  %v2931_v43 = vld [vmem:[#allocation2 + $0x6c] sm:$0xf] }
 0x134   : > { %v2357_v58 = vrot.slane %v2356_v30, 4  ;;  %v8006_v9 = vsel %vm7199_vm8, %v5778_v46, %v2680_v3  ;;  %v8008_v51 = vrot.slane %v2680_v3, 4  ;;  %v3101_v31 = vsel %vm6962_vm2, %v3096_v42, %v3100_v16  ;;  %v8014_v26 = vpop.f32.mrb[14].mxu0 }
 0x135   : > { %v2367_v57 = vrot.slane %v2366_v1, 4  ;;  %870 = vst [vmem:[#allocation2 + $0xc8] sm:$0x1] %v5666_v45  ;;  %v3105_v53 = vrot.slane %v3103_v5, 4  ;;  %v3112_v48 = vshll.u32 %v2929_v38, 16  ;;  %v5816_v11 = vcombine.low %v3091_v54, %v3101_v31  ;;  %v8020_v27 = vpop.f32.mrb[15].mxu0 }
 0x136   : > { %v2362_v33 = vsel %vm6962_vm2, %v2357_v58, %v2361_v41  ;;  %v3108_v56 = vrot.slane %v3106_v40, 5  ;;  %v3116_v18 = vshrl.u32 %v2929_v38, 16  ;;  %v3122_v52 = vshll.u32 %v2930_v0, 16  ;;  %v2932_v5 = vld [vmem:[#allocation2 + $0x70] sm:$0xf] }
 0x137   : > { %v8018_v22 = vpop.f32.mrb[8].mxu1  ;;  %v2372_v7 = vsel %vm6962_vm2, %v2367_v57, %v2371_v60  ;;  %v3114_v63 = vrot.slane %v3112_v48, 5  ;;  %v2374_v15 = vshrl.u32 %v2010_v61, 16  ;;  %4985 = vmatprep.mubr.bf16.mxu1 %v5816_v11  ;;  %v2377_v41 = vshll.u32 %v2010_v61, 16  ;;  %v3422_v11 = vld [vmem:[#allocation2 + $0x18] sm:$0xe] }
 0x138   : > { %v8024_v24 = vpop.f32.mrb[9].mxu1  ;;  %v5761_v16 = vcombine.low %v2362_v33, %v2372_v7  ;;  %v3109_v12 = vor.u32 %v3108_v56, %v3105_v53  ;;  %v3118_v25 = vrot.slane %v3116_v18, 4  ;;  %4986 = vmatmul.mubr.bf16.gmra.mrb[100].mxu1 %v6826_v14  ;;  %v3124_v59 = vrot.slane %v3122_v52, 5  ;;  %v2933_v53 = vld [vmem:[#allocation2 + $0x74] sm:$0x1]  ;;  %v6828_v7 = vld [vmem:[#allocation2 + $0x60] sm:$0xff]  }
 0x139   : > { %v8026_v54 = vpop.f32.mrb[10].mxu1  ;;  %v2376_v4 = vrot.slane %v2374_v15, 4  ;;  %v2383_v38 = vshll.u32 %v2011_v19, 16  ;;  %v2387_v30 = vshrl.u32 %v2011_v19, 16  ;;  %v2379_v3 = vrot.slane %v2377_v41, 5 }
 0x13a   : > { %v8028_v10 = vpop.f32.mrb[11].mxu1  ;;  %4897 = vmatmul.mubr.bf16.gmra.mrb[104].mxu0 %v5761_v16  ;;  %v3110_v60 = vrot.slane %v3109_v12, 4  ;;  %v3119_v46 = vor.u32 %v3118_v25, %v3114_v63  ;;  %v8032_v0 = vadd.f32 %v7931_v50, %v7927_v13  ;;  %v8036_v45 = vadd.f32 %v7948_v29, %v7939_v49  ;;  %v3423_v18 = vld [vmem:[#allocation2 + $0x1c] sm:$0xf]  ;;  %v3424_v19 = vld [vmem:[#allocation2 + $0x20] sm:$0x1] }
 0x13b   : > { %v2385_v42 = vrot.slane %v2383_v38, 5  ;;  %v2389_v1 = vrot.slane %v2387_v30, 4  ;;  %v3127_v61 = vshrl.u32 %v2931_v43, 16  ;;  %v2380_v14 = vor.u32 %v2379_v3, %v2376_v4 }
 0x13c   : > { %v2524_v58 = vld [vmem:[#allocation2 + $0xc8] sm:$0x1]  ;;  %v3115_v40 = vsel %vm6962_vm2, %v3110_v60, %v3114_v63  ;;  %v3120_v31 = vrot.slane %v3119_v46, 4  ;;  %v3130_v48 = vshll.u32 %v2931_v43, 16  ;;  %v3136_v15 = vshll.u32 %v2932_v5, 16 }
 0x13d   : > { %v2012_v57 = vld [vmem:[#allocation2 + $0xc8] sm:$0x1]  ;;  %v2683_v13 = vrot.slane %v2524_v58, 5  ;;  %v2390_v50 = vor.u32 %v2389_v1, %v2385_v42  ;;  %v3129_v56 = vrot.slane %v3127_v61, 4  ;;  %v2381_v29 = vrot.slane %v2380_v14, 4 }
 0x13e   : > { %v2393_v33 = vshll.u32 %v2012_v57, 16  ;;  %v3125_v49 = vsel %vm6962_vm2, %v3120_v31, %v3124_v59  ;;  %v3132_v52 = vrot.slane %v3130_v48, 5  ;;  %v3425_v63 = vld [vmem:[#allocation2 + $0x24] sm:$0xe]  ;;  %v3138_v30 = vrot.slane %v3136_v15, 5 }
 0x13f   : > { %v2684_v16 = vsel %vm7199_vm8, %v8008_v51, %v2683_v13  ;;  %v5817_v12 = vcombine.low %v3115_v40, %v3125_v49  ;;  %v2391_v25 = vrot.slane %v2390_v50, 4  ;;  %v8045_v43 = vpop.f32.mrb[16].mxu0  ;;  %v2386_v38 = vsel %vm6962_vm2, %v2381_v29, %v2385_v42  ;;  %v3426_v60 = vld [vmem:[#allocation2 + $0x28] sm:$0xf]  ;;  %v3427_v58 = vld [vmem:[#allocation2 + $0x2c] sm:$0x1] }
 0x140   : > { %v2395_v41 = vrot.slane %v2393_v33, 5  ;;  %v5794_v4 = vcombine.low %v8006_v9, %v2684_v16  ;;  %v3133_v59 = vor.u32 %v3132_v52, %v3129_v56  ;;  %v8050_v46 = vpop.f32.mrb[17].mxu0  ;;  %v3140_v51 = vshrl.u32 %v2932_v5, 16  ;;  %v2934_v49 = vld [vmem:[#allocation2 + $0x78] sm:$0xf] }
 0x141   : > { %4993 = vmatprep.mubr.bf16.mxu1 %v5817_v12  ;;  %v3146_v1 = vshll.u32 %v2933_v53, 16  ;;  %v5827_v61 = vrot.slane %v3422_v11, 9  ;;  %v8054_v40 = vpop.f32.mrb[18].mxu0  ;;  %v3520_v42 = vrot.slane %v3423_v18, 5  ;;  %v3523_v57 = vrot.slane %v3424_v19, 5 }
 0x142   : > { %v2396_v3 = vsel %vm6962_vm2, %v2391_v25, %v2395_v41  ;;  %4904 = vmatprep.mubr.bf16.mxu0 %v5794_v4  ;;  %4994 = vmatmul.mubr.bf16.gmra.mrb[104].mxu1 %v6828_v7  ;;  %v3134_v31 = vrot.slane %v3133_v59, 4  ;;  %v8056_v14 = vpop.f32.mrb[19].mxu0  ;;  %v3142_v48 = vrot.slane %v3140_v51, 4  ;;  %v5828_v50 = vrot.slane %v3425_v63, 9  ;;  %v2935_v29 = vld [vmem:[#allocation2 + $0x7c] sm:$0xf] }
 0x143   : > { %v5762_v9 = vcombine.low %v2386_v38, %v2396_v3  ;;  %v3148_v13 = vrot.slane %v3146_v1, 5  ;;  %v3527_v33 = vrot.slane %v3426_v60, 5  ;;  %v3521_v53 = vsel %vm7199_vm8, %v5827_v61, %v3520_v42  ;;  %v2936_v15 = vld [vmem:[#allocation2 + $0x80] sm:$0x1]  ;;  %v3428_v63 = vld [vmem:[#allocation2 + $0x30] sm:$0xe] }
 0x144   : > { %v3139_v5 = vsel %vm6962_vm2, %v3134_v31, %v3138_v30  ;;  %v3522_v11 = vrot.slane %v3520_v42, 4  ;;  %v3530_v56 = vrot.slane %v3427_v58, 5  ;;  %v3143_v7 = vor.u32 %v3142_v48, %v3138_v30  ;;  %v3429_v4 = vld [vmem:[#allocation2 + $0x34] sm:$0xf]  ;;  %v6829_v60 = vld [vmem:[#allocation2 + $0x6c] sm:$0xff]  }
 0x145   : > { %4905 = vmatmul.mubr.bf16.gmra.mrb[108].mxu0 %v5762_v9  ;;  %v3528_v18 = vsel %vm7199_vm8, %v5828_v50, %v3527_v33  ;;  %v3529_v19 = vrot.slane %v3527_v33, 4  ;;  %v8066_v52 = vadd.f32 %v7921_v36, %v7917_v8  ;;  %v8072_v12 = vadd.f32 %v7958_v23, %v7952_v44  ;;  %v3430_v8 = vld [vmem:[#allocation2 + $0x38] sm:$0x1]  ;;  %v3431_v36 = vld [vmem:[#allocation2 + $0x3c] sm:$0xe]  ;;  %v8082_v38 = vpop.f32.mrb[12].mxu1 }
 0x146   : > { %v3524_v16 = vsel %vm7199_vm8, %v3522_v11, %v3523_v57  ;;  %v8076_v25 = vadd.f32 %v7971_v6, %v7962_v17  ;;  %v8080_v41 = vadd.f32 %v7979_v35, %v7975_v39  ;;  %v3144_v59 = vrot.slane %v3143_v7, 4  ;;  %v8086_v3 = vpop.f32.mrb[13].mxu1  ;;  %v3432_v39 = vld [vmem:[#allocation2 + $0x40] sm:$0xf]  ;;  %v3433_v42 = vld [vmem:[#allocation2 + $0x44] sm:$0x1] }
 0x147   : > { %v5843_v30 = vcombine.low %v3521_v53, %v3524_v16  ;;  %v3531_v44 = vsel %vm7199_vm8, %v3529_v19, %v3530_v56  ;;  %v3151_v23 = vshrl.u32 %v2934_v49, 16  ;;  %v3154_v6 = vshll.u32 %v2934_v49, 16  ;;  %v8088_v35 = vpop.f32.mrb[14].mxu1  ;;  %v2937_v16 = vld [vmem:[#allocation2 + $0x84] sm:$0xf] }
 0x148   : > { %8701 = vst [vmem:[#allocation4_spill] sm:$0xff] %v8076_v25  ;;  %8702 = vst [vmem:[#allocation5_spill] sm:$0xff] %v8080_v41  ;;  %v5844_v17 = vcombine.low %v3528_v18, %v3531_v44  ;;  %v3160_v51 = vshll.u32 %v2935_v29, 16  ;;  %v3164_v1 = vshrl.u32 %v2935_v29, 16  ;;  %v3149_v61 = vsel %vm6962_vm2, %v3144_v59, %v3148_v13  ;;  %v8092_v57 = vpop.f32.mrb[15].mxu1 }
 0x149   : > { %6661 = vmatprep.mubr.bf16.mxu0 %v5843_v30  ;;  %v3153_v58 = vrot.slane %v3151_v23, 4  ;;  %v3170_v9 = vshll.u32 %v2936_v15, 16  ;;  %v5829_v31 = vrot.slane %v3428_v63, 9  ;;  %v5818_v48 = vcombine.low %v3139_v5, %v3149_v61  ;;  %v3434_v59 = vld [vmem:[#allocation2 + $0x48] sm:$0xe] }
 0x14a   : > { %v3156_v50 = vrot.slane %v3154_v6, 5  ;;  %v3162_v33 = vrot.slane %v3160_v51, 5  ;;  %v3166_v53 = vrot.slane %v3164_v1, 4  ;;  %v3534_v56 = vrot.slane %v3429_v4, 5  ;;  %v3436_v6 = vld [vmem:[#allocation2 + $0x50] sm:$0x1] }
 0x14b   : > { %v3172_v11 = vrot.slane %v3170_v9, 5  ;;  %v3537_v49 = vrot.slane %v3430_v8, 5  ;;  %v5830_v29 = vrot.slane %v3431_v36, 9  ;;  %5001 = vmatprep.mubr.bf16.mxu1 %v5818_v48  ;;  %v3541_v13 = vrot.slane %v3432_v39, 5  ;;  %v2938_v8 = vld [vmem:[#allocation2 + $0x88] sm:$0xf] }
 0x14c   : > { %v3157_v7 = vor.u32 %v3156_v50, %v3153_v58  ;;  %v3167_v18 = vor.u32 %v3166_v53, %v3162_v33  ;;  %v3544_v19 = vrot.slane %v3433_v42, 5  ;;  %5002 = vmatmul.mubr.bf16.gmra.mrb[108].mxu1 %v6829_v60  ;;  %v3535_v15 = vsel %vm7199_vm8, %v5829_v31, %v3534_v56  ;;  %v2939_v36 = vld [vmem:[#allocation2 + $0x8c] sm:$0x1]  ;;  %v3437_v51 = vld [vmem:[#allocation2 + $0x54] sm:$0xe] }
 0x14d   : > { %6662 = vmatmul.mubr.bf16.vlgmr.msra.gmra.mrb[112].mxu0 %v5844_v17  ;;  %v3536_v63 = vrot.slane %v3534_v56, 4  ;;  %v8098_v5 = vadd.f32 %v7981_v21, %v7977_v28  ;;  %v8102_v4 = vadd.f32 %v7989_v32, %v7985_v2  ;;  %v3542_v60 = vsel %vm7199_vm8, %v5830_v29, %v3541_v13  ;;  %v3435_v17 = vld [vmem:[#allocation2 + $0x4c] sm:$0xf]  ;;  %v8106_v1 = vpop.f32.mrb[16].mxu1  ;;  %v6830_v21 = vld [vmem:[#allocation2 + $0x78] sm:$0xff]  }
 0x14e   : > { %v3158_v30 = vrot.slane %v3157_v7, 4  ;;  %v3168_v44 = vrot.slane %v3167_v18, 4  ;;  %v3543_v23 = vrot.slane %v3541_v13, 4  ;;  %v8112_v2 = vadd.f32 %v8024_v24, %v8018_v22  ;;  %v8118_v61 = vpop.f32.mrb[17].mxu1  ;;  %v3438_v24 = vld [vmem:[#allocation2 + $0x58] sm:$0xf] }
 0x14f   : > { %v3538_v28 = vsel %vm7199_vm8, %v3536_v63, %v3537_v49  ;;  %v8116_v32 = vadd.f32 %v8028_v10, %v8026_v54  ;;  %v3175_v39 = vshrl.u32 %v2937_v16, 16  ;;  %v8120_v58 = vpop.f32.mrb[20].mxu0  ;;  %v8128_v48 = vpop.f32.mrb[18].mxu1  ;;  %v3178_v56 = vshll.u32 %v2937_v16, 16  ;;  %v3439_v49 = vld [vmem:[#allocation2 + $0x5c] sm:$0x1] }
 0x150   : > { %8703 = vst [vmem:[#allocation6_spill] sm:$0xff] %v8112_v2  ;;  %v3163_v9 = vsel %vm6962_vm2, %v3158_v30, %v3162_v33  ;;  %v3173_v31 = vsel %vm6962_vm2, %v3168_v44, %v3172_v11  ;;  %v5845_v42 = vcombine.low %v3535_v15, %v3538_v28  ;;  %v3545_v22 = vsel %vm7199_vm8, %v3543_v23, %v3544_v19  ;;  %v8130_v54 = vpop.f32.mrb[21].mxu0  ;;  %v8132_v29 = vpop.f32.mrb[19].mxu1 }
 0x151   : > { %8704 = vst [vmem:[#allocation7_spill] sm:$0xff] %v8116_v32  ;;  %v5819_v10 = vcombine.low %v3163_v9, %v3173_v31  ;;  %v5846_v50 = vcombine.low %v3542_v60, %v3545_v22  ;;  %v3177_v53 = vrot.slane %v3175_v39, 4  ;;  %v8134_v33 = vpop.f32.mrb[22].mxu0  ;;  %v3184_v11 = vshll.u32 %v2938_v8, 16  ;;  %v2941_v31 = vld [vmem:[#allocation2 + $0x94] sm:$0xf] }
 0x152   : > { %6665 = vmatprep.mubr.bf16.mxu0 %v5845_v42  ;;  %v3188_v7 = vshrl.u32 %v2938_v8, 16  ;;  %v3194_v18 = vshll.u32 %v2939_v36, 16  ;;  %v5831_v13 = vrot.slane %v3434_v59, 9  ;;  %v8136_v19 = vpop.f32.mrb[23].mxu0  ;;  %v3180_v15 = vrot.slane %v3178_v56, 5 }
 0x153   : > { %5009 = vmatprep.mubr.bf16.mxu1 %v5819_v10  ;;  %v3548_v63 = vrot.slane %v3435_v17, 5  ;;  %v3551_v30 = vrot.slane %v3436_v6, 5  ;;  %v5832_v44 = vrot.slane %v3437_v51, 9  ;;  %v3186_v60 = vrot.slane %v3184_v11, 5  ;;  %v2940_v59 = vld [vmem:[#allocation2 + $0x90] sm:$0xf] }
 0x154   : > { %v3190_v16 = vrot.slane %v3188_v7, 4  ;;  %v3196_v23 = vrot.slane %v3194_v18, 5  ;;  %v3555_v28 = vrot.slane %v3438_v24, 5  ;;  %5010 = vmatmul.mubr.bf16.gmra.mrb[112].mxu1 %v6830_v21  ;;  %v3181_v39 = vor.u32 %v3180_v15, %v3177_v53  ;;  %v2942_v22 = vld [vmem:[#allocation2 + $0x98] sm:$0x1] }
 0x155   : > { %6666 = vmatmul.mubr.bf16.gmra.mrb[116].mxu0 %v5846_v50  ;;  %v3549_v9 = vsel %vm7199_vm8, %v5831_v13, %v3548_v63  ;;  %v3550_v8 = vrot.slane %v3548_v63, 4  ;;  %v3558_v36 = vrot.slane %v3439_v49, 5  ;;  %v8144_v51 = vadd.f32 %v8010_v20, %v8002_v47  ;;  %v3440_v24 = vld [vmem:[#allocation2 + $0x60] sm:$0xe]  ;;  %v8146_v21 = vpop.f32.mrb[20].mxu1 }
 0x156   : > { %v3191_v42 = vor.u32 %v3190_v16, %v3186_v60  ;;  %v3556_v17 = vsel %vm7199_vm8, %v5832_v44, %v3555_v28  ;;  %v3557_v6 = vrot.slane %v3555_v28, 4  ;;  %v3182_v10 = vrot.slane %v3181_v39, 4  ;;  %v3441_v49 = vld [vmem:[#allocation2 + $0x64] sm:$0xf]  ;;  %v8158_v11 = vpop.f32.mrb[21].mxu1 }
 0x157   : > { %v3552_v50 = vsel %vm7199_vm8, %v3550_v8, %v3551_v30  ;;  %v8152_v53 = vadd.f32 %v8020_v27, %v8014_v26  ;;  %v8156_v56 = vadd.f32 %v8086_v3, %v8082_v38  ;;  %v8164_v18 = vadd.f32 %v8092_v57, %v8088_v35  ;;  %v3442_v13 = vld [vmem:[#allocation2 + $0x68] sm:$0x1]  ;;  %v8166_v15 = vpop.f32.mrb[22].mxu1  ;;  %v3443_v63 = vld [vmem:[#allocation2 + $0x6c] sm:$0xe] }
 0x158   : > { %v3192_v47 = vrot.slane %v3191_v42, 4  ;;  %v5847_v20 = vcombine.low %v3549_v9, %v3552_v50  ;;  %v3559_v7 = vsel %vm7199_vm8, %v3557_v6, %v3558_v36  ;;  %v3187_v26 = vsel %vm6962_vm2, %v3182_v10, %v3186_v60  ;;  %v8170_v30 = vpop.f32.mrb[23].mxu1  ;;  %v6831_v16 = vld [vmem:[#allocation2 + $0x84] sm:$0xff]   ;;  %v3444_v39 = vld [vmem:[#allocation2 + $0x70] sm:$0xf] }
 0x159   : > { %8705 = vst [vmem:[#allocation8_spill] sm:$0xff] %v8156_v56  ;;  %8706 = vst [vmem:[#allocation9_spill] sm:$0xff] %v8164_v18  ;;  %v5848_v27 = vcombine.low %v3556_v17, %v3559_v7  ;;  %v3199_v38 = vshrl.u32 %v2940_v59, 16  ;;  %v3202_v3 = vshll.u32 %v2940_v59, 16  ;;  %v3208_v28 = vshll.u32 %v2941_v31, 16 }
 0x15a   : > { %v3197_v44 = vsel %vm6962_vm2, %v3192_v47, %v3196_v23  ;;  %6669 = vmatprep.mubr.bf16.mxu0 %v5847_v20  ;;  %v3212_v35 = vshrl.u32 %v2941_v31, 16  ;;  %v3218_v57 = vshll.u32 %v2942_v22, 16  ;;  %v5833_v42 = vrot.slane %v3440_v24, 9  ;;  %v3445_v60 = vld [vmem:[#allocation2 + $0x74] sm:$0x1] }
 0x15b   : > { %v5820_v9 = vcombine.low %v3187_v26, %v3197_v44  ;;  %v3201_v8 = vrot.slane %v3199_v38, 4  ;;  %v3204_v36 = vrot.slane %v3202_v3, 5  ;;  %v3210_v17 = vrot.slane %v3208_v28, 5  ;;  %v2943_v20 = vld [vmem:[#allocation2 + $0x9c] sm:$0xf] }
 0x15c   : > { %v3214_v59 = vrot.slane %v3212_v35, 4  ;;  %v3220_v6 = vrot.slane %v3218_v57, 5  ;;  %v3562_v10 = vrot.slane %v3441_v49, 5  ;;  %v3565_v7 = vrot.slane %v3442_v13, 5 }
 0x15d   : > { %6670 = vmatmul.mubr.bf16.gmra.mrb[120].mxu0 %v5848_v27  ;;  %5017 = vmatprep.mubr.bf16.mxu1 %v5820_v9  ;;  %v3205_v50 = vor.u32 %v3204_v36, %v3201_v8  ;;  %v5834_v23 = vrot.slane %v3443_v63, 9  ;;  %v3569_v47 = vrot.slane %v3444_v39, 5  ;;  %v3572_v38 = vrot.slane %v3445_v60, 5  ;;  %v8178_v27 = vpop.f32.mrb[24].mxu1  ;;  %v2944_v9 = vld [vmem:[#allocation2 + $0xa0] sm:$0xf] }
 0x15e   : > { %5018 = vmatmul.mubr.bf16.gmra.mrb[116].mxu1 %v6831_v16  ;;  %v3215_v31 = vor.u32 %v3214_v59, %v3210_v17  ;;  %v3563_v22 = vsel %vm7199_vm8, %v5833_v42, %v3562_v10  ;;  %v3564_v26 = vrot.slane %v3562_v10, 4  ;;  %v8176_v24 = vpop.f32.mrb[24].mxu0  ;;  %v8184_v13 = vadd.f32 %v8050_v46, %v8045_v43  ;;  %v8188_v16 = vpop.f32.mrb[25].mxu1  ;;  %v6832_v10 = vld [vmem:[#allocation2 + $0x90] sm:$0xff]  }
 0x15f   : > { %v3206_v3 = vrot.slane %v3205_v50, 4  ;;  %v3570_v49 = vsel %vm7199_vm8, %v5834_v23, %v3569_v47  ;;  %v3571_v44 = vrot.slane %v3569_v47, 4  ;;  %v8186_v63 = vpop.f32.mrb[25].mxu0  ;;  %v8194_v57 = vadd.f32 %v8056_v14, %v8054_v40  ;;  %v8200_v43 = vpop.f32.mrb[26].mxu1  ;;  %v2945_v40 = vld [vmem:[#allocation2 + $0xa4] sm:$0x1] }
 0x160   : > { %v3216_v28 = vrot.slane %v3215_v31, 4  ;;  %v3566_v35 = vsel %vm7199_vm8, %v3564_v26, %v3565_v7  ;;  %v6303_v39 = vadd.f32 %v8118_v61, %v8106_v1  ;;  %v8198_v8 = vpop.f32.mrb[26].mxu0  ;;  %v6306_v60 = vadd.f32 %v8132_v29, %v8128_v48  ;;  %v3446_v14 = vld [vmem:[#allocation2 + $0x78] sm:$0xe]  ;;  %v8210_v1 = vpop.f32.mrb[27].mxu1 }
 0x161   : > { %v3211_v46 = vsel %vm6962_vm2, %v3206_v3, %v3210_v17  ;;  %v5849_v36 = vcombine.low %v3563_v22, %v3566_v35  ;;  %v3573_v42 = vsel %vm7199_vm8, %v3571_v44, %v3572_v38  ;;  %v8208_v59 = vpop.f32.mrb[27].mxu0  ;;  %v3223_v7 = vshrl.u32 %v2943_v20, 16  ;;  %v3447_v23 = vld [vmem:[#allocation2 + $0x7c] sm:$0xf]  ;;  %v3448_v47 = vld [vmem:[#allocation2 + $0x80] sm:$0x1] }
 0x162   : > { %v3221_v61 = vsel %vm6962_vm2, %v3216_v28, %v3220_v6  ;;  %v5850_v50 = vcombine.low %v3570_v49, %v3573_v42  ;;  %v8215_v17 = vadd.f32 %v6303_v39, %v7867_v37  ;;  %v8218_v48 = vadd.f32 %v6306_v60, %v7869_v55  ;;  %v3449_v26 = vld [vmem:[#allocation2 + $0x84] sm:$0xe]  ;;  %v3450_v38 = vld [vmem:[#allocation2 + $0x88] sm:$0xf]  ;;  %v3451_v28 = vld [vmem:[#allocation2 + $0x8c] sm:$0x1] }
 0x163   : > { %v5821_v31 = vcombine.low %v3211_v46, %v3221_v61  ;;  %6673 = vmatprep.mubr.bf16.mxu0 %v5849_v36  ;;  %v3226_v29 = vshll.u32 %v2943_v20, 16  ;;  %v3232_v22 = vshll.u32 %v2944_v9, 16  ;;  %v3225_v3 = vrot.slane %v3223_v7, 4  ;;  %v2946_v20 = vld [vmem:[#allocation2 + $0xa8] sm:$0xf] }
 0x164   : > { %v3236_v6 = vshrl.u32 %v2944_v9, 16  ;;  %v3242_v44 = vshll.u32 %v2945_v40, 16  ;;  %v5835_v49 = vrot.slane %v3446_v14, 9  ;;  %v3576_v39 = vrot.slane %v3447_v23, 5 }
 0x165   : > { %6674 = vmatmul.mubr.bf16.gmra.mrb[124].mxu0 %v5850_v50  ;;  %5025 = vmatprep.mubr.bf16.mxu1 %v5821_v31  ;;  %v3228_v37 = vrot.slane %v3226_v29, 5  ;;  %v3234_v35 = vrot.slane %v3232_v22, 5  ;;  %v3579_v42 = vrot.slane %v3448_v47, 5  ;;  %v5836_v55 = vrot.slane %v3449_v26, 9  ;;  %v8220_v61 = vpop.f32.mrb[28].mxu1 }
 0x166   : > { %5026 = vmatmul.mubr.bf16.gmra.mrb[120].mxu1 %v6832_v10  ;;  %v3238_v46 = vrot.slane %v3236_v6, 4  ;;  %v3244_v36 = vrot.slane %v3242_v44, 5  ;;  %v3583_v60 = vrot.slane %v3450_v38, 5  ;;  %v3577_v9 = vsel %vm7199_vm8, %v5835_v49, %v3576_v39  ;;  %v8224_v50 = vpop.f32.mrb[29].mxu1  ;;  %v2947_v6 = vld [vmem:[#allocation2 + $0xac] sm:$0xf] }
 0x167   : > { %v3229_v18 = vor.u32 %v3228_v37, %v3225_v3  ;;  %v3578_v40 = vrot.slane %v3576_v39, 4  ;;  %v3586_v14 = vrot.slane %v3451_v28, 5  ;;  %v8230_v47 = vadd.f32 %v8130_v54, %v8120_v58  ;;  %v8232_v31 = vpop.f32.mrb[28].mxu0  ;;  %v8234_v29 = vpop.f32.mrb[30].mxu1  ;;  %v6833_v28 = vld [vmem:[#allocation2 + $0x9c] sm:$0xff]  }
 0x168   : > { %v3239_v7 = vor.u32 %v3238_v46, %v3234_v35  ;;  %v3584_v23 = vsel %vm7199_vm8, %v5836_v55, %v3583_v60  ;;  %v3585_v10 = vrot.slane %v3583_v60, 4  ;;  %v8240_v38 = vadd.f32 %v8136_v19, %v8134_v33  ;;  %v8244_v44 = vpop.f32.mrb[29].mxu0  ;;  %v8246_v58 = vpop.f32.mrb[31].mxu1  ;;  %v2948_v39 = vld [vmem:[#allocation2 + $0xb0] sm:$0x1] }
 0x169   : > { %v3230_v22 = vrot.slane %v3229_v18, 4  ;;  %v3580_v26 = vsel %vm7199_vm8, %v3578_v40, %v3579_v42  ;;  %v6309_v3 = vadd.f32 %v8158_v11, %v8146_v21  ;;  %v6312_v37 = vadd.f32 %v8170_v30, %v8166_v15  ;;  %v3452_v33 = vld [vmem:[#allocation2 + $0x90] sm:$0xe]  ;;  %v8252_v19 = vpop.f32.mrb[30].mxu0  ;;  %v3453_v55 = vld [vmem:[#allocation2 + $0x94] sm:$0xf] }
 0x16a   : > { %v3240_v54 = vrot.slane %v3239_v7, 4  ;;  %v5851_v49 = vcombine.low %v3577_v9, %v3580_v26  ;;  %v3587_v18 = vsel %vm7199_vm8, %v3585_v10, %v3586_v14  ;;  %v3247_v46 = vshrl.u32 %v2946_v20, 16  ;;  %v3454_v60 = vld [vmem:[#allocation2 + $0x98] sm:$0x1]  ;;  %v8259_v9 = vpop.f32.mrb[31].mxu0 }
 0x16b   : > { %v3235_v21 = vsel %vm6962_vm2, %v3230_v22, %v3234_v35  ;;  %v5852_v11 = vcombine.low %v3584_v23, %v3587_v18  ;;  %v8257_v42 = vadd.f32 %v6309_v3, %v8066_v52  ;;  %v8264_v15 = vadd.f32 %v6312_v37, %v8072_v12  ;;  %v3455_v7 = vld [vmem:[#allocation2 + $0x9c] sm:$0xe]  ;;  %v3456_v35 = vld [vmem:[#allocation2 + $0xa0] sm:$0xf]  ;;  %v3457_v26 = vld [vmem:[#allocation2 + $0xa4] sm:$0x1] }
 0x16c   : > { %v3245_v40 = vsel %vm6962_vm2, %v3240_v54, %v3244_v36  ;;  %6677 = vmatprep.mubr.bf16.mxu0 %v5851_v49  ;;  %v3250_v30 = vshll.u32 %v2946_v20, 16  ;;  %v3256_v14 = vshll.u32 %v2947_v6, 16  ;;  %v3249_v52 = vrot.slane %v3247_v46, 4 }
 0x16d   : > { %v5822_v23 = vcombine.low %v3235_v21, %v3245_v40  ;;  %6678 = vmatmul.mubr.bf16.gmra.mrb[128].mxu0 %v5852_v11  ;;  %v3260_v10 = vshrl.u32 %v2947_v6, 16  ;;  %v3266_v22 = vshll.u32 %v2948_v39, 16  ;;  %v5837_v56 = vrot.slane %v3452_v33, 9  ;;  %v8266_v2 = vpop.f32.mrb[32].mxu1  ;;  %v2949_v40 = vld [vmem:[#allocation2 + $0xb4] sm:$0xf] }
 0x16e   : > { %v3252_v3 = vrot.slane %v3250_v30, 5  ;;  %v3258_v18 = vrot.slane %v3256_v14, 5  ;;  %v3590_v32 = vrot.slane %v3453_v55, 5  ;;  %v3593_v54 = vrot.slane %v3454_v60, 5  ;;  %v8268_v49 = vpop.f32.mrb[33].mxu1 }
 0x16f   : > { %5033 = vmatprep.mubr.bf16.mxu1 %v5822_v23  ;;  %v3262_v36 = vrot.slane %v3260_v10, 4  ;;  %v3268_v12 = vrot.slane %v3266_v22, 5  ;;  %v5838_v20 = vrot.slane %v3455_v7, 9  ;;  %v3597_v21 = vrot.slane %v3456_v35, 5  ;;  %v8272_v11 = vpop.f32.mrb[34].mxu1 }
 0x170   : > { %5034 = vmatmul.mubr.bf16.gmra.mrb[124].mxu1 %v6833_v28  ;;  %v3253_v37 = vor.u32 %v3252_v3, %v3249_v52  ;;  %v3591_v6 = vsel %vm7199_vm8, %v5837_v56, %v3590_v32  ;;  %v3592_v39 = vrot.slane %v3590_v32, 4  ;;  %v3600_v46 = vrot.slane %v3457_v26, 5  ;;  %v8282_v28 = vpop.f32.mrb[32].mxu0  ;;  %v8284_v30 = vpop.f32.mrb[35].mxu1  ;;  %v2950_v35 = vld [vmem:[#allocation2 + $0xb8] sm:$0xf] }
 0x171   : > { %v3263_v33 = vor.u32 %v3262_v36, %v3258_v18  ;;  %v8276_v55 = vadd.f32 %v8186_v63, %v8176_v24  ;;  %v8280_v60 = vadd.f32 %v8208_v59, %v8198_v8  ;;  %v3598_v14 = vsel %vm7199_vm8, %v5838_v20, %v3597_v21  ;;  %v8290_v24 = vpop.f32.mrb[33].mxu0  ;;  %v2951_v52 = vld [vmem:[#allocation2 + $0xbc] sm:$0x1]  ;;  %v3458_v10 = vld [vmem:[#allocation2 + $0xa8] sm:$0xe] }
 0x172   : > { %v3254_v56 = vrot.slane %v3253_v37, 4  ;;  %v3594_v32 = vsel %vm7199_vm8, %v3592_v39, %v3593_v54  ;;  %v3599_v7 = vrot.slane %v3597_v21, 4  ;;  %v6315_v8 = vadd.f32 %v8188_v16, %v8178_v27  ;;  %v8296_v22 = vpop.f32.mrb[34].mxu0  ;;  %v6834_v3 = vld [vmem:[#allocation2 + $0xa8] sm:$0xff]   ;;  %v3461_v39 = vld [vmem:[#allocation2 + $0xb4] sm:$0xe] }
 0x173   : > { %v3264_v63 = vrot.slane %v3263_v33, 4  ;;  %v5853_v23 = vcombine.low %v3591_v6, %v3594_v32  ;;  %v6318_v59 = vadd.f32 %v8210_v1, %v8200_v43  ;;  %v3271_v54 = vshrl.u32 %v2949_v40, 16  ;;  %v3459_v37 = vld [vmem:[#allocation2 + $0xac] sm:$0xf]  ;;  %v8302_v6 = vpop.f32.mrb[35].mxu0 }
 0x174   : > { %v3259_v26 = vsel %vm6962_vm2, %v3254_v56, %v3258_v18  ;;  %v3601_v36 = vsel %vm7199_vm8, %v3599_v7, %v3600_v46  ;;  %v3274_v20 = vshll.u32 %v2949_v40, 16  ;;  %v8307_v43 = vadd.f32 %v6315_v8, %v8098_v5  ;;  %v3460_v18 = vld [vmem:[#allocation2 + $0xb0] sm:$0x1]  ;;  %v3462_v21 = vld [vmem:[#allocation2 + $0xb8] sm:$0xf] }
 0x175   : > { %v3269_v27 = vsel %vm6962_vm2, %v3264_v63, %v3268_v12  ;;  %6681 = vmatprep.mubr.bf16.mxu0 %v5853_v23  ;;  %v5854_v16 = vcombine.low %v3598_v14, %v3601_v36  ;;  %v8310_v1 = vadd.f32 %v6318_v59, %v8102_v4  ;;  %v3273_v46 = vrot.slane %v3271_v54, 4  ;;  %v3463_v32 = vld [vmem:[#allocation2 + $0xbc] sm:$0x1]  ;;  %v8312_v7 = vpop.f32.mrb[36].mxu1 }
 0x176   : > { %v5823_v33 = vcombine.low %v3259_v26, %v3269_v27  ;;  %v3276_v40 = vrot.slane %v3274_v20, 5  ;;  %v3280_v56 = vshll.u32 %v2950_v35, 16  ;;  %v3284_v12 = vshrl.u32 %v2950_v35, 16  ;;  %v8314_v5 = vpop.f32.mrb[37].mxu1 }
 0x177   : > { %6682 = vmatmul.mubr.bf16.gmra.mrb[132].mxu0 %v5854_v16  ;;  %v3290_v63 = vshll.u32 %v2951_v52, 16  ;;  %v5839_v14 = vrot.slane %v3458_v10, 9  ;;  %v3604_v23 = vrot.slane %v3459_v37, 5  ;;  %v3607_v59 = vrot.slane %v3460_v18, 5  ;;  %v8316_v41 = vpop.f32.mrb[38].mxu1 }
 0x178   : > { %5041 = vmatprep.mubr.bf16.mxu1 %v5823_v33  ;;  %v3277_v4 = vor.u32 %v3276_v40, %v3273_v46  ;;  %v3282_v8 = vrot.slane %v3280_v56, 5  ;;  %v5840_v36 = vrot.slane %v3461_v39, 9  ;;  %v3286_v26 = vrot.slane %v3284_v12, 4  ;;  %v8320_v35 = vpop.f32.mrb[39].mxu1  ;;  %v2952_v18 = vld [vmem:[#allocation2 + $0xc0] sm:$0xf] }
 0x179   : > { %5042 = vmatmul.mubr.bf16.gmra.mrb[128].mxu1 %v6834_v3  ;;  %v3292_v54 = vrot.slane %v3290_v63, 5  ;;  %v3605_v20 = vsel %vm7199_vm8, %v5839_v14, %v3604_v23  ;;  %v3606_v27 = vrot.slane %v3604_v23, 4  ;;  %v3611_v10 = vrot.slane %v3462_v21, 5  ;;  %v2953_v21 = vld [vmem:[#allocation2 + $0xc4] sm:$0xf] }
 0x17a   : > { %v3278_v52 = vrot.slane %v3277_v4, 4  ;;  %v3614_v37 = vrot.slane %v3463_v32, 5  ;;  %v8324_v16 = vadd.f32 %v8244_v44, %v8232_v31  ;;  %v8326_v39 = vpop.f32.mrb[36].mxu0  ;;  %v3287_v33 = vor.u32 %v3286_v26, %v3282_v8  ;;  %v2954_v63 = vld [vmem:[#allocation2 + $0xc8] sm:$0x1] }
 0x17b   : > { %v3608_v3 = vsel %vm7199_vm8, %v3606_v27, %v3607_v59  ;;  %v8332_v46 = vadd.f32 %v8259_v9, %v8252_v19  ;;  %v6321_v40 = vadd.f32 %v8224_v50, %v8220_v61  ;;  %v8336_v56 = vpop.f32.mrb[37].mxu0  ;;  %v3612_v32 = vsel %vm7199_vm8, %v5840_v36, %v3611_v10  ;;  %v6835_v19 = vld [vmem:[#allocation2 + $0xb4] sm:$0xff]   ;;  %v3464_v4 = vld [vmem:[#allocation2 + $0xc0] sm:$0xe]  ;;  %v3465_v27 = vld [vmem:[#allocation2 + $0xc4] sm:$0xf] }
 0x17c   : > { %v3283_v31 = vsel %vm6962_vm2, %v3278_v52, %v3282_v8  ;;  %v5855_v44 = vcombine.low %v3605_v20, %v3608_v3  ;;  %v3613_v12 = vrot.slane %v3611_v10, 4  ;;  %v8342_v14 = vpop.f32.mrb[38].mxu0  ;;  %v3288_v23 = vrot.slane %v3287_v33, 4  ;;  %v3466_v33 = vld [vmem:[#allocation2 + $0xc8] sm:$0x1] }
 0x17d   : > { %v8345_v9 = vadd.f32 %v6321_v40, %v8144_v51  ;;  %v6324_v61 = vadd.f32 %v8246_v58, %v8234_v29  ;;  %v3295_v50 = vshrl.u32 %v2952_v18, 16  ;;  %v8349_v59 = vpop.f32.mrb[39].mxu0  ;;  %v3298_v36 = vshll.u32 %v2952_v18, 16  ;;  %v8353_v52 = vpop.f32.mrb[40].mxu1  ;;  %v3467_v3 = vld [vmem:[#allocation2 + $0xcc] sm:$0xe] }
 0x17e   : > { %6685 = vmatprep.mubr.bf16.mxu0 %v5855_v44  ;;  %v3615_v8 = vsel %vm7199_vm8, %v3613_v12, %v3614_v37  ;;  %v3304_v26 = vshll.u32 %v2953_v21, 16  ;;  %v3308_v20 = vshrl.u32 %v2953_v21, 16  ;;  %v3293_v51 = vsel %vm6962_vm2, %v3288_v23, %v3292_v54  ;;  %v8360_v40 = vpop.f32.mrb[41].mxu1  ;;  %v3468_v21 = vld [vmem:[#allocation2 + $0xd0] sm:$0xf] }
 0x17f   : > { %8707 = vst [vmem:[#allocation10_spill] sm:$0xff] %v8345_v9  ;;  %v5856_v10 = vcombine.low %v3612_v32, %v3615_v8  ;;  %v8358_v29 = vadd.f32 %v6324_v61, %v8152_v53  ;;  %v3297_v58 = vrot.slane %v3295_v50, 4  ;;  %v5824_v44 = vcombine.low %v3283_v31, %v3293_v51  ;;  %v8362_v25 = vpop.f32.mrb[42].mxu1 }
 0x180   : > { %v3300_v37 = vrot.slane %v3298_v36, 5  ;;  %v3306_v18 = vrot.slane %v3304_v26, 5  ;;  %v3310_v12 = vrot.slane %v3308_v20, 4  ;;  %v3314_v9 = vshll.u32 %v2954_v63, 16  ;;  %v8372_v23 = vpop.f32.mrb[43].mxu1 }
 0x181   : > { %6686 = vmatmul.mubr.bf16.gmra.mrb[136].mxu0 %v5856_v10  ;;  %v8366_v54 = vadd.f32 %v8290_v24, %v8282_v28  ;;  %v8370_v53 = vadd.f32 %v8302_v6, %v8296_v22  ;;  %v5841_v32 = vrot.slane %v3464_v4, 9  ;;  %5049 = vmatprep.mubr.bf16.mxu1 %v5824_v44  ;;  %v3618_v50 = vrot.slane %v3465_v27, 5  ;;  %v3469_v36 = vld [vmem:[#allocation2 + $0xd4] sm:$0x1]  ;;  %v2955_v4 = vld [vmem:[#allocation2 + $0xcc] sm:$0xf] }
 0x182   : > { %v3301_v31 = vor.u32 %v3300_v37, %v3297_v58  ;;  %v3311_v61 = vor.u32 %v3310_v12, %v3306_v18  ;;  %v3621_v8 = vrot.slane %v3466_v33, 5  ;;  %5050 = vmatmul.mubr.bf16.gmra.mrb[132].mxu1 %v6835_v19  ;;  %v3316_v26 = vrot.slane %v3314_v9, 5  ;;  %v2956_v58 = vld [vmem:[#allocation2 + $0xd0] sm:$0xf]  ;;  %v6836_v12 = vld [vmem:[#allocation2 + $0xc0] sm:$0xff]  }
 0x183   : > { %v6327_v63 = vadd.f32 %v8268_v49, %v8266_v2  ;;  %v5842_v28 = vrot.slane %v3467_v3, 9  ;;  %v3625_v24 = vrot.slane %v3468_v21, 5  ;;  %v3619_v22 = vsel %vm7199_vm8, %v5841_v32, %v3618_v50 }
 0x184   : > { %v3302_v20 = vrot.slane %v3301_v31, 4  ;;  %v3312_v51 = vrot.slane %v3311_v61, 4  ;;  %v3620_v6 = vrot.slane %v3618_v50, 4  ;;  %v3628_v9 = vrot.slane %v3469_v36, 5 }
 0x185   : > { %v8379_v10 = vadd.f32 %v6327_v63, %v8184_v13  ;;  %v3626_v27 = vsel %vm7199_vm8, %v5842_v28, %v3625_v24  ;;  %v3627_v19 = vrot.slane %v3625_v24, 4  ;;  %v6330_v3 = vadd.f32 %v8284_v30, %v8272_v11  ;;  %v2957_v13 = vld [vmem:[#allocation2 + $0xd4] sm:$0x1]  ;;  %v6343_v44 = vpop.f32.mrb[44].mxu1 }
 0x186   : > { %v3307_v2 = vsel %vm6962_vm2, %v3302_v20, %v3306_v18  ;;  %v3317_v49 = vsel %vm6962_vm2, %v3312_v51, %v3316_v26  ;;  %v3622_v33 = vsel %vm7199_vm8, %v3620_v6, %v3621_v8  ;;  %v3319_v31 = vshrl.u32 %v2955_v4, 16  ;;  %v6344_v18 = vpop.f32.mrb[45].mxu1 }
 0x187   : > { %v5825_v37 = vcombine.low %v3307_v2, %v3317_v49  ;;  %v5857_v21 = vcombine.low %v3619_v22, %v3622_v33  ;;  %v3629_v32 = vsel %vm7199_vm8, %v3627_v19, %v3628_v9  ;;  %v6249_v61 = vpop.f32.mrb[40].mxu0  ;;  %v8394_v36 = vadd.f32 %v6330_v3, %v8194_v57  ;;  %v6346_v28 = vpop.f32.mrb[46].mxu1 }
 0x188   : > { %v5858_v50 = vcombine.low %v3626_v27, %v3629_v32  ;;  %v3322_v26 = vshll.u32 %v2955_v4, 16  ;;  %v3328_v8 = vshll.u32 %v2956_v58, 16  ;;  %v6250_v63 = vpop.f32.mrb[41].mxu0  ;;  %v3321_v11 = vrot.slane %v3319_v31, 4  ;;  %v6347_v51 = vpop.f32.mrb[47].mxu1 }
 0x189   : > { %5057 = vmatprep.mubr.bf16.mxu1 %v5825_v37  ;;  %6689 = vmatprep.mubr.bf16.mxu0 %v5857_v21  ;;  %v3332_v30 = vshrl.u32 %v2956_v58, 16  ;;  %v3338_v24 = vshll.u32 %v2957_v13, 16  ;;  %v6245_v62 = vadd.f32 %v8336_v56, %v8326_v39  ;;  %v6252_v20 = vpop.f32.mrb[42].mxu0  ;;  %v6248_v57 = vadd.f32 %v8349_v59, %v8342_v14 }
 0x18a   : > { %6690 = vmatmul.mubr.bf16.gmra.mrb[140].mxu0 %v5858_v50  ;;  %v3324_v22 = vrot.slane %v3322_v26, 5  ;;  %v3330_v6 = vrot.slane %v3328_v8, 5  ;;  %v6333_v4 = vadd.f32 %v8314_v5, %v8312_v7  ;;  %v6253_v27 = vpop.f32.mrb[43].mxu0  ;;  %5058 = vmatmul.mubr.bf16.gmra.mrb[136].mxu1 %v6836_v12  ;;  %v6336_v58 = vadd.f32 %v8320_v35, %v8316_v41  ;;  %v6837_v12 = vld [vmem:[#allocation2 + $0xcc] sm:$0xff]  }
 0x18b   : > { %v3334_v19 = vrot.slane %v3332_v30, 4  ;;  %v3340_v9 = vrot.slane %v3338_v24, 5  ;;  %v6251_v2 = vadd.f32 %v6250_v63, %v6249_v61  ;;  %v6254_v49 = vadd.f32 %v6253_v27, %v6252_v20 }
 0x18c   : > { %v3325_v39 = vor.u32 %v3324_v22, %v3321_v11  ;;  %v8405_v56 = vadd.f32 %v6333_v4, %v8230_v47  ;;  %v6339_v33 = vadd.f32 %v8360_v40, %v8353_v52  ;;  %v8410_v59 = vadd.f32 %v6336_v58, %v8240_v38 }
 0x18d   : > { %v3335_v14 = vor.u32 %v3334_v19, %v3330_v6  ;;  %v6342_v7 = vadd.f32 %v8372_v23, %v8362_v25  ;;  %v6345_v5 = vadd.f32 %v6344_v18, %v6343_v44  ;;  %v6348_v35 = vadd.f32 %v6347_v51, %v6346_v28  ;;  %v6349_v13 = vpop.f32.mrb[48].mxu1 }
 0x18e   : > { %v3326_v3 = vrot.slane %v3325_v39, 4  ;;  %v8415_v41 = vadd.f32 %v6339_v33, %v8276_v55  ;;  %v6350_v40 = vpop.f32.mrb[49].mxu1 }
 0x18f   : > { %v3336_v47 = vrot.slane %v3335_v14, 4  ;;  %v8418_v37 = vadd.f32 %v6342_v7, %v8280_v60  ;;  %v8421_v52 = vadd.f32 %v6345_v5, %v8324_v16  ;;  %v8426_v25 = vadd.f32 %v6348_v35, %v8332_v46  ;;  %v6352_v44 = vpop.f32.mrb[50].mxu1 }
 0x190   : > { %v3331_v38 = vsel %vm6962_vm2, %v3326_v3, %v3330_v6  ;;  %v6351_v23 = vadd.f32 %v6350_v40, %v6349_v13  ;;  %v6353_v21 = vpop.f32.mrb[51].mxu1 }
 0x191   : > { %v3341_v55 = vsel %vm6962_vm2, %v3336_v47, %v3340_v9  ;;  %v6354_v16 = vadd.f32 %v6353_v21, %v6352_v44 }
 0x192   : > { %v5826_v32 = vcombine.low %v3331_v38, %v3341_v55  ;;  %v8431_v60 = vadd.f32 %v6351_v23, %v8366_v54 }
 0x193   : > { %v8434_v61 = vadd.f32 %v6354_v16, %v8370_v53 }
 0x194   : > { %5065 = vmatprep.mubr.bf16.mxu1 %v5826_v32  ;;  %v6255_v31 = vpop.f32.mrb[44].mxu0 }
 0x195   : > { %5066 = vmatmul.mubr.bf16.gmra.mrb[140].mxu1 %v6837_v12  ;;  %v6256_v46 = vpop.f32.mrb[45].mxu0 }
 0x196   : > { %v6257_v18 = vadd.f32 %v6256_v46, %v6255_v31  ;;  %v6258_v50 = vpop.f32.mrb[46].mxu0  ;;  %v6355_v8 = vpop.f32.mrb[52].mxu1 }
 0x197   : > { %v6259_v26 = vpop.f32.mrb[47].mxu0  ;;  %v6356_v63 = vpop.f32.mrb[53].mxu1 }
 0x198   : > { %v6260_v34 = vadd.f32 %v6259_v26, %v6258_v50  ;;  %v6357_v28 = vadd.f32 %v6356_v63, %v6355_v8  ;;  %v6358_v11 = vpop.f32.mrb[54].mxu1 }
 0x199   : > { %v6359_v30 = vpop.f32.mrb[55].mxu1 }
 0x19a   : > { %v8436_v24 = vadd.f32 %v6357_v28, %v6245_v62  ;;  %v6360_v54 = vadd.f32 %v6359_v30, %v6358_v11 }
 0x19c   : > { %v6413_v20 = vpop.f32.mrb[48].mxu0  ;;  %v8438_v22 = vadd.f32 %v6360_v54, %v6248_v57 }
 0x19d   : > { %v6414_v51 = vpop.f32.mrb[49].mxu0 }
 0x19e   : > { %v6415_v53 = vadd.f32 %v6414_v51, %v6413_v20  ;;  %v6416_v6 = vpop.f32.mrb[50].mxu0  ;;  %v6361_v27 = vpop.f32.mrb[56].mxu1 }
 0x19f   : > { %v6417_v4 = vpop.f32.mrb[51].mxu0  ;;  %v6362_v58 = vpop.f32.mrb[57].mxu1 }
 0x1a0   : > { %v8441_v19 = vadd.f32 %v6415_v53, %v8215_v17  ;;  %v6418_v9 = vadd.f32 %v6417_v4, %v6416_v6  ;;  %v6363_v39 = vadd.f32 %v6362_v58, %v6361_v27  ;;  %v6364_v33 = vpop.f32.mrb[58].mxu1 }
 0x1a1   : > { %v6365_v62 = vpop.f32.mrb[59].mxu1 }
 0x1a2   : > { %v8444_v14 = vadd.f32 %v6418_v9, %v8218_v48  ;;  %v8446_v7 = vadd.f32 %v6363_v39, %v6251_v2  ;;  %v6366_v5 = vadd.f32 %v6365_v62, %v6364_v33  ;;  %v8708_v9 = vld [vmem:[#allocation10_spill] sm:$0xff] }
 0x1a4   : > { %v6419_v57 = vpop.f32.mrb[52].mxu0  ;;  %v8448_v35 = vadd.f32 %v6366_v5, %v6254_v49 }
 0x1a5   : > { %v6420_v3 = vpop.f32.mrb[53].mxu0 }
 0x1a6   : > { %v6421_v13 = vadd.f32 %v6420_v3, %v6419_v57  ;;  %v6422_v47 = vpop.f32.mrb[54].mxu0  ;;  %v6367_v17 = vpop.f32.mrb[60].mxu1  ;;  %v8709_v57 = vld [vmem:[#allocation4_spill] sm:$0xff] }
 0x1a7   : > { %v6423_v40 = vpop.f32.mrb[55].mxu0  ;;  %v6368_v44 = vpop.f32.mrb[61].mxu1 }
 0x1a8   : > { %v8451_v38 = vadd.f32 %v6421_v13, %v8257_v42  ;;  %v6424_v23 = vadd.f32 %v6423_v40, %v6422_v47  ;;  %v6369_v55 = vadd.f32 %v6368_v44, %v6367_v17  ;;  %v6370_v48 = vpop.f32.mrb[62].mxu1  ;;  %v8710_v40 = vld [vmem:[#allocation5_spill] sm:$0xff] }
 0x1a9   : > { %v6371_v2 = vpop.f32.mrb[63].mxu1 }
 0x1aa   : > { %v8454_v12 = vadd.f32 %v6424_v23, %v8264_v15  ;;  %v8456_v21 = vadd.f32 %v6369_v55, %v6257_v18  ;;  %v6372_v32 = vadd.f32 %v6371_v2, %v6370_v48 }
 0x1ac   : > { %v6425_v49 = vpop.f32.mrb[56].mxu0  ;;  %v8458_v31 = vadd.f32 %v6372_v32, %v6260_v34 }
 0x1ad   : > { %v6426_v16 = vpop.f32.mrb[57].mxu0 }
 0x1ae   : > { %v6427_v46 = vadd.f32 %v6426_v16, %v6425_v49  ;;  %v6428_v50 = vpop.f32.mrb[58].mxu0  ;;  %v6373_v42 = vpop.f32.mrb[64].mxu1 }
 0x1af   : > { %v6429_v26 = vpop.f32.mrb[59].mxu0  ;;  %v6374_v28 = vpop.f32.mrb[65].mxu1 }
 0x1b0   : > { %v8461_v8 = vadd.f32 %v6427_v46, %v8307_v43  ;;  %v6430_v63 = vadd.f32 %v6429_v26, %v6428_v50  ;;  %v6375_v11 = vadd.f32 %v6374_v28, %v6373_v42  ;;  %v6376_v15 = vpop.f32.mrb[66].mxu1  ;;  %v8711_v26 = vld [vmem:[#allocation6_spill] sm:$0xff] }
 0x1b1   : > { %v6377_v18 = vpop.f32.mrb[67].mxu1 }
 0x1b2   : > { %v8464_v30 = vadd.f32 %v6430_v63, %v8310_v1  ;;  %v8467_v54 = vadd.f32 %v6375_v11, %v8032_v0  ;;  %v6378_v34 = vadd.f32 %v6377_v18, %v6376_v15  ;;  %v8712_v15 = vld [vmem:[#allocation7_spill] sm:$0xff] }
 0x1b4   : > { %v6431_v20 = vpop.f32.mrb[60].mxu0  ;;  %v8470_v53 = vadd.f32 %v6378_v34, %v8036_v45 }
 0x1b5   : > { %v6432_v51 = vpop.f32.mrb[61].mxu0 }
 0x1b6   : > { %v6433_v6 = vadd.f32 %v6432_v51, %v6431_v20  ;;  %v6434_v43 = vpop.f32.mrb[62].mxu0  ;;  %v6379_v27 = vpop.f32.mrb[68].mxu1 }
 0x1b7   : > { %v6435_v4 = vpop.f32.mrb[63].mxu0  ;;  %v6380_v1 = vpop.f32.mrb[69].mxu1 }
 0x1b8   : > { %v8473_v58 = vadd.f32 %v6433_v6, %v8708_v9  ;;  %v6436_v39 = vadd.f32 %v6435_v4, %v6434_v43  ;;  %v6381_v33 = vadd.f32 %v6380_v1, %v6379_v27  ;;  %v6382_v62 = vpop.f32.mrb[70].mxu1 }
 0x1b9   : > { %v6383_v5 = vpop.f32.mrb[71].mxu1 }
 0x1ba   : > { %v8476_v0 = vadd.f32 %v6436_v39, %v8358_v29  ;;  %v8479_v3 = vadd.f32 %v6381_v33, %v8709_v57  ;;  %v6384_v45 = vadd.f32 %v6383_v5, %v6382_v62 }
 0x1bc   : > { %v6437_v13 = vpop.f32.mrb[64].mxu0  ;;  %v8482_v17 = vadd.f32 %v6384_v45, %v8710_v40 }
 0x1bd   : > { %v6438_v47 = vpop.f32.mrb[65].mxu0 }
 0x1be   : > { %v6439_v23 = vadd.f32 %v6438_v47, %v6437_v13  ;;  %v6440_v44 = vpop.f32.mrb[66].mxu0  ;;  %v6385_v48 = vpop.f32.mrb[72].mxu1 }
 0x1bf   : > { %v6441_v55 = vpop.f32.mrb[67].mxu0  ;;  %v6386_v29 = vpop.f32.mrb[73].mxu1 }
 0x1c0   : > { %v8485_v2 = vadd.f32 %v6439_v23, %v8379_v10  ;;  %v6442_v32 = vadd.f32 %v6441_v55, %v6440_v44  ;;  %v6387_v49 = vadd.f32 %v6386_v29, %v6385_v48  ;;  %v6388_v16 = vpop.f32.mrb[74].mxu1 }
 0x1c1   : > { %v6389_v50 = vpop.f32.mrb[75].mxu1 }
 0x1c2   : > { %v8488_v46 = vadd.f32 %v6442_v32, %v8394_v36  ;;  %v8491_v42 = vadd.f32 %v6387_v49, %v8711_v26  ;;  %v6390_v63 = vadd.f32 %v6389_v50, %v6388_v16  ;;  %v8713_v32 = vld [vmem:[#allocation8_spill] sm:$0xff]  ;;  %v8714_v16 = vld [vmem:[#allocation9_spill] sm:$0xff] }
 0x1c4   : > { %v6443_v28 = vpop.f32.mrb[68].mxu0  ;;  %v8494_v18 = vadd.f32 %v6390_v63, %v8712_v15 }
 0x1c5   : > { %v6444_v11 = vpop.f32.mrb[69].mxu0 }
 0x1c6   : > { %v6445_v34 = vadd.f32 %v6444_v11, %v6443_v28  ;;  %v6446_v10 = vpop.f32.mrb[70].mxu0 }
 0x1c7   : > { %v6447_v20 = vpop.f32.mrb[71].mxu0 }
 0x1c8   : > { %v8497_v51 = vadd.f32 %v6445_v34, %v8405_v56  ;;  %v6448_v6 = vadd.f32 %v6447_v20, %v6446_v10 }
 0x1ca   : > { %v8500_v36 = vadd.f32 %v6448_v6, %v8410_v59 }
 0x1cc   : > { %v6449_v43 = vpop.f32.mrb[72].mxu0 }
 0x1cd   : > { %v6450_v4 = vpop.f32.mrb[73].mxu0 }
 0x1ce   : > { %v6451_v27 = vadd.f32 %v6450_v4, %v6449_v43  ;;  %v6452_v9 = vpop.f32.mrb[74].mxu0 }
 0x1cf   : > { %v6453_v39 = vpop.f32.mrb[75].mxu0 }
 0x1d0   : > { %v8503_v1 = vadd.f32 %v6451_v27, %v8415_v41  ;;  %v6454_v33 = vadd.f32 %v6453_v39, %v6452_v9 }
 0x1d2   : > { %v8506_v62 = vadd.f32 %v6454_v33, %v8418_v37 }
 0x1d4   : > { %v6455_v5 = vpop.f32.mrb[76].mxu0  ;;  %v6391_v13 = vpop.f32.mrb[76].mxu1 }
 0x1d5   : > { %v6456_v57 = vpop.f32.mrb[77].mxu0  ;;  %v6392_v59 = vpop.f32.mrb[77].mxu1 }
 0x1d6   : > { %v6457_v56 = vadd.f32 %v6456_v57, %v6455_v5  ;;  %v6458_v45 = vpop.f32.mrb[78].mxu0  ;;  %v6393_v44 = vadd.f32 %v6392_v59, %v6391_v13  ;;  %v6394_v55 = vpop.f32.mrb[78].mxu1 }
 0x1d7   : > { %v6459_v47 = vpop.f32.mrb[79].mxu0  ;;  %v6395_v48 = vpop.f32.mrb[79].mxu1 }
 0x1d8   : > { %v8509_v40 = vadd.f32 %v6457_v56, %v8421_v52  ;;  %v6460_v23 = vadd.f32 %v6459_v47, %v6458_v45  ;;  %v8515_v37 = vadd.f32 %v6393_v44, %v8713_v32  ;;  %v6396_v29 = vadd.f32 %v6395_v48, %v6394_v55 }
 0x1da   : > { %v8512_v41 = vadd.f32 %v6460_v23, %v8426_v25  ;;  %v8518_v50 = vadd.f32 %v6396_v29, %v8714_v16 }
 0x1dc   : > { %v6461_v49 = vpop.f32.mrb[80].mxu0  ;;  %v6525_v52 = vpop.f32.mrb[80].mxu1 }
 0x1dd   : > { %v6462_v26 = vpop.f32.mrb[81].mxu0  ;;  %v6526_v15 = vpop.f32.mrb[81].mxu1 }
 0x1de   : > { %v6463_v63 = vadd.f32 %v6462_v26, %v6461_v49  ;;  %v6464_v28 = vpop.f32.mrb[82].mxu0  ;;  %v6527_v25 = vadd.f32 %v6526_v15, %v6525_v52  ;;  %v6528_v20 = vpop.f32.mrb[82].mxu1 }
 0x1df   : > { %v6465_v11 = vpop.f32.mrb[83].mxu0  ;;  %v6529_v6 = vpop.f32.mrb[83].mxu1 }
 0x1e0   : > { %v8521_v34 = vadd.f32 %v6463_v63, %v8431_v60  ;;  %v6466_v10 = vadd.f32 %v6465_v11, %v6464_v28  ;;  %v6530_v4 = vadd.f32 %v6529_v6, %v6528_v20  ;;  %v8527_v27 = vadd.f32 %v6527_v25, %v8441_v19 }
 0x1e2   : > { %v8524_v43 = vadd.f32 %v6466_v10, %v8434_v61  ;;  %v8530_v39 = vadd.f32 %v6530_v4, %v8444_v14 }
 0x1e4   : > { %v6467_v9 = vpop.f32.mrb[84].mxu0  ;;  %v6531_v60 = vpop.f32.mrb[84].mxu1 }
 0x1e5   : > { %v6468_v33 = vpop.f32.mrb[85].mxu0  ;;  %v6532_v45 = vpop.f32.mrb[85].mxu1 }
 0x1e6   : > { %v6469_v5 = vadd.f32 %v6468_v33, %v6467_v9  ;;  %v6470_v57 = vpop.f32.mrb[86].mxu0  ;;  %v6533_v61 = vadd.f32 %v6532_v45, %v6531_v60  ;;  %v6534_v59 = vpop.f32.mrb[86].mxu1 }
 0x1e7   : > { %v6471_v56 = vpop.f32.mrb[87].mxu0  ;;  %v6535_v23 = vpop.f32.mrb[87].mxu1 }
 0x1e8   : > { %v8533_v13 = vadd.f32 %v6469_v5, %v8436_v24  ;;  %v6472_v47 = vadd.f32 %v6471_v56, %v6470_v57  ;;  %v6536_v44 = vadd.f32 %v6535_v23, %v6534_v59  ;;  %v8539_v14 = vadd.f32 %v6533_v61, %v8451_v38 }
 0x1ea   : > { %v8536_v19 = vadd.f32 %v6472_v47, %v8438_v22  ;;  %v8542_v48 = vadd.f32 %v6536_v44, %v8454_v12 }
 0x1ec   : > { %v6473_v55 = vpop.f32.mrb[88].mxu0  ;;  %v6537_v24 = vpop.f32.mrb[88].mxu1 }
 0x1ed   : > { %v6474_v32 = vpop.f32.mrb[89].mxu0  ;;  %v6538_v26 = vpop.f32.mrb[89].mxu1 }
 0x1ee   : > { %v6475_v29 = vadd.f32 %v6474_v32, %v6473_v55  ;;  %v6476_v49 = vpop.f32.mrb[90].mxu0  ;;  %v6539_v22 = vadd.f32 %v6538_v26, %v6537_v24  ;;  %v6540_v52 = vpop.f32.mrb[90].mxu1 }
 0x1ef   : > { %v6477_v16 = vpop.f32.mrb[91].mxu0  ;;  %v6541_v11 = vpop.f32.mrb[91].mxu1 }
 0x1f0   : > { %v8545_v63 = vadd.f32 %v6475_v29, %v8446_v7  ;;  %v6478_v28 = vadd.f32 %v6477_v16, %v6476_v49  ;;  %v6542_v15 = vadd.f32 %v6541_v11, %v6540_v52  ;;  %v8551_v12 = vadd.f32 %v6539_v22, %v8461_v8 }
 0x1f2   : > { %v8548_v38 = vadd.f32 %v6478_v28, %v8448_v35  ;;  %v8554_v25 = vadd.f32 %v6542_v15, %v8464_v30 }
 0x1f4   : > { %v6479_v10 = vpop.f32.mrb[92].mxu0 }
 0x1f5   : > { %v6480_v20 = vpop.f32.mrb[93].mxu0 }
 0x1f6   : > { %v6481_v6 = vadd.f32 %v6480_v20, %v6479_v10  ;;  %v6482_v4 = vpop.f32.mrb[94].mxu0  ;;  %v6543_v9 = vpop.f32.mrb[92].mxu1 }
 0x1f7   : > { %v6483_v7 = vpop.f32.mrb[95].mxu0  ;;  %v6544_v57 = vpop.f32.mrb[93].mxu1 }
 0x1f8   : > { %v8557_v33 = vadd.f32 %v6481_v6, %v8456_v21  ;;  %v6484_v5 = vadd.f32 %v6483_v7, %v6482_v4  ;;  %v6545_v35 = vadd.f32 %v6544_v57, %v6543_v9  ;;  %v6546_v60 = vpop.f32.mrb[94].mxu1 }
 0x1f9   : > { %v6547_v8 = vpop.f32.mrb[95].mxu1 }
 0x1fa   : > { %v8560_v56 = vadd.f32 %v6484_v5, %v8458_v31  ;;  %v6548_v45 = vadd.f32 %v6547_v8, %v6546_v60  ;;  %v8563_v30 = vadd.f32 %v6545_v35, %v8473_v58 }
 0x1fc   : > { %v6485_v47 = vpop.f32.mrb[96].mxu0  ;;  %v8566_v59 = vadd.f32 %v6548_v45, %v8476_v0 }
 0x1fd   : > { %v6486_v61 = vpop.f32.mrb[97].mxu0 }
 0x1fe   : > { %v6487_v23 = vadd.f32 %v6486_v61, %v6485_v47  ;;  %v6488_v21 = vpop.f32.mrb[98].mxu0 }
 0x1ff   : > { %v6489_v44 = vpop.f32.mrb[99].mxu0 }
 0x200   : > { %v8569_v55 = vadd.f32 %v6487_v23, %v8467_v54  ;;  %v6490_v32 = vadd.f32 %v6489_v44, %v6488_v21 }
 0x201   : > { %v6549_v29 = vpop.f32.mrb[96].mxu1 }
 0x202   : > { %v8572_v31 = vadd.f32 %v6490_v32, %v8470_v53  ;;  %v6550_v49 = vpop.f32.mrb[97].mxu1 }
 0x203   : > { %v6551_v58 = vadd.f32 %v6550_v49, %v6549_v29  ;;  %v6552_v16 = vpop.f32.mrb[98].mxu1 }
 0x204   : > { %v6491_v24 = vpop.f32.mrb[100].mxu0  ;;  %v6553_v28 = vpop.f32.mrb[99].mxu1 }
 0x205   : > { %v6492_v26 = vpop.f32.mrb[101].mxu0  ;;  %v6554_v52 = vadd.f32 %v6553_v28, %v6552_v16  ;;  %v8575_v11 = vadd.f32 %v6551_v58, %v8485_v2 }
 0x206   : > { %v6493_v22 = vadd.f32 %v6492_v26, %v6491_v24  ;;  %v6494_v0 = vpop.f32.mrb[102].mxu0 }
 0x207   : > { %v6495_v15 = vpop.f32.mrb[103].mxu0  ;;  %v8581_v53 = vadd.f32 %v6554_v52, %v8488_v46 }
 0x208   : > { %v8578_v54 = vadd.f32 %v6493_v22, %v8479_v3  ;;  %v6496_v10 = vadd.f32 %v6495_v15, %v6494_v0 }
 0x20a   : > { %v8584_v20 = vadd.f32 %v6496_v10, %v8482_v17 }
 0x20b   : > { %v6555_v6 = vpop.f32.mrb[100].mxu1 }
 0x20c   : > { %v6556_v7 = vpop.f32.mrb[101].mxu1 }
 0x20d   : > { %v6497_v4 = vpop.f32.mrb[104].mxu0  ;;  %v6557_v5 = vadd.f32 %v6556_v7, %v6555_v6  ;;  %v6558_v57 = vpop.f32.mrb[102].mxu1 }
 0x20e   : > { %v6498_v9 = vpop.f32.mrb[105].mxu0  ;;  %v6559_v60 = vpop.f32.mrb[103].mxu1 }
 0x20f   : > { %v6499_v35 = vadd.f32 %v6498_v9, %v6497_v4  ;;  %v6500_v2 = vpop.f32.mrb[106].mxu0  ;;  %v6560_v45 = vadd.f32 %v6559_v60, %v6558_v57  ;;  %v8587_v3 = vadd.f32 %v6557_v5, %v8497_v51 }
 0x210   : > { %v6501_v8 = vpop.f32.mrb[107].mxu0 }
 0x211   : > { %v8590_v46 = vadd.f32 %v6499_v35, %v8491_v42  ;;  %v6502_v47 = vadd.f32 %v6501_v8, %v6500_v2  ;;  %v8593_v17 = vadd.f32 %v6560_v45, %v8500_v36 }
 0x213   : > { %v8596_v61 = vadd.f32 %v6502_v47, %v8494_v18 }
 0x215   : > { %v6561_v23 = vpop.f32.mrb[104].mxu1 }
 0x216   : > { %v6562_v21 = vpop.f32.mrb[105].mxu1 }
 0x217   : > { %v6563_v32 = vadd.f32 %v6562_v21, %v6561_v23  ;;  %v6564_v29 = vpop.f32.mrb[106].mxu1 }
 0x218   : > { %v6503_v44 = vpop.f32.mrb[108].mxu0  ;;  %v6565_v24 = vpop.f32.mrb[107].mxu1 }
 0x219   : > { %v6504_v49 = vpop.f32.mrb[109].mxu0  ;;  %v6566_v16 = vadd.f32 %v6565_v24, %v6564_v29  ;;  %v8599_v42 = vadd.f32 %v6563_v32, %v8503_v1 }
 0x21a   : > { %v6505_v58 = vadd.f32 %v6504_v49, %v6503_v44  ;;  %v6506_v51 = vpop.f32.mrb[110].mxu0 }
 0x21b   : > { %v6507_v26 = vpop.f32.mrb[111].mxu0  ;;  %v8605_v28 = vadd.f32 %v6566_v16, %v8506_v62 }
 0x21c   : > { %v8602_v36 = vadd.f32 %v6505_v58, %v8515_v37  ;;  %v6508_v18 = vadd.f32 %v6507_v26, %v6506_v51 }
 0x21e   : > { %v8608_v22 = vadd.f32 %v6508_v18, %v8518_v50 }
 0x21f   : > { %v6567_v52 = vpop.f32.mrb[108].mxu1 }
 0x220   : > { %v6663_v0 = vpop.f32.mrb[112].mxu0  ;;  %v6568_v6 = vpop.f32.mrb[109].mxu1 }
 0x221   : > { %v5117_v15 = vadd.f32 %v6663_v0, %v8539_v14  ;;  %v5108_v10 = vpop.f32.mrb[113].mxu0  ;;  %v6569_v7 = vadd.f32 %v6568_v6, %v6567_v52  ;;  %v6570_v9 = vpop.f32.mrb[110].mxu1 }
 0x222   : > { %v5109_v1 = vadd.f32 %v5108_v10, %v8527_v27  ;;  %v6664_v4 = vpop.f32.mrb[114].mxu0  ;;  %v6571_v62 = vpop.f32.mrb[111].mxu1 }
 0x223   : > { %v5120_v37 = vadd.f32 %v6664_v4, %v8542_v48  ;;  %v5111_v5 = vpop.f32.mrb[115].mxu0  ;;  %v6572_v57 = vadd.f32 %v6571_v62, %v6570_v9  ;;  %v8622_v27 = vadd.f32 %v6569_v7, %v8509_v40  ;;  %v5435_v45 = vmul.f32 %v5117_v15, %v5117_v15 }
 0x224   : > { %v5112_v50 = vadd.f32 %v5111_v5, %v8530_v39  ;;  %v5433_v35 = vmul.f32 %v5109_v1, %v5109_v1 }
 0x225   : > { %v6071_v14 = vpack.c.bf16 %v5120_v37, %v5117_v15  ;;  %v8626_v8 = vadd.f32 %v6572_v57, %v8512_v41  ;;  %v5436_v29 = vmul.f32 %v5120_v37, %v5120_v37 }
 0x226   : > { %v6066_v2 = vpack.c.bf16 %v5112_v50, %v5109_v1  ;;  %v5395_v48 = vadd.f32 %v5112_v50, %v5109_v1  ;;  %v5434_v60 = vmul.f32 %v5112_v50, %v5112_v50 }
 0x227   : > { %6158 = vst [vmem:[%s8618_s20 + $0x8] sm:$0xff] %v6071_v14   ;;  %v6573_v44 = vpop.f32.mrb[112].mxu1 }
 0x228   : > { %6067 = vst [vmem:[%s8618_s20] sm:$0xff] %v6066_v2   ;;  %v5396_v47 = vadd.f32 %v5395_v48, %v5117_v15  ;;  %v5465_v23 = vadd.f32 %v5434_v60, %v5433_v35  ;;  %v6667_v21 = vpop.f32.mrb[116].mxu0  ;;  %v6574_v49 = vpop.f32.mrb[113].mxu1 }
 0x229   : > { %v5133_v39 = vadd.f32 %v6667_v21, %v8563_v30  ;;  %v5124_v32 = vpop.f32.mrb[117].mxu0  ;;  %v6575_v16 = vadd.f32 %v6574_v49, %v6573_v44  ;;  %v6576_v41 = vpop.f32.mrb[114].mxu1 }
 0x22a   : > { %v5466_v40 = vadd.f32 %v5465_v23, %v5435_v45  ;;  %v5125_v24 = vadd.f32 %v5124_v32, %v8551_v12  ;;  %v5397_v58 = vadd.f32 %v5396_v47, %v5120_v37  ;;  %v6668_v51 = vpop.f32.mrb[118].mxu0  ;;  %v6577_v10 = vpop.f32.mrb[115].mxu1 }
 0x22b   : > { %v5136_v26 = vadd.f32 %v6668_v51, %v8566_v59  ;;  %v5127_v18 = vpop.f32.mrb[119].mxu0  ;;  %v6578_v1 = vadd.f32 %v6577_v10, %v6576_v41  ;;  %v8634_v4 = vadd.f32 %v6575_v16, %v8521_v34  ;;  %v5439_v5 = vmul.f32 %v5133_v39, %v5133_v39 }
 0x22c   : > { %v5398_v0 = vadd.f32 %v5397_v58, %v5125_v24  ;;  %v5437_v52 = vmul.f32 %v5125_v24, %v5125_v24  ;;  %v5467_v15 = vadd.f32 %v5466_v40, %v5436_v29  ;;  %v5128_v30 = vadd.f32 %v5127_v18, %v8554_v25 }
 0x22d   : > { %v6081_v6 = vpack.c.bf16 %v5136_v26, %v5133_v39  ;;  %v8638_v59 = vadd.f32 %v6578_v1, %v8524_v43  ;;  %v5440_v35 = vmul.f32 %v5136_v26, %v5136_v26 }
 0x22e   : > { %v5468_v12 = vadd.f32 %v5467_v15, %v5437_v52  ;;  %v6076_v7 = vpack.c.bf16 %v5128_v30, %v5125_v24  ;;  %v5399_v9 = vadd.f32 %v5398_v0, %v5128_v30  ;;  %v5438_v37 = vmul.f32 %v5128_v30, %v5128_v30 }
 0x22f   : > { %6160 = vst [vmem:[%s8618_s20 + $0x18] sm:$0xff] %v6081_v6  }
 0x230   : > { %6159 = vst [vmem:[%s8618_s20 + $0x10] sm:$0xff] %v6076_v7   ;;  %v5400_v62 = vadd.f32 %v5399_v9, %v5133_v39  ;;  %v5469_v50 = vadd.f32 %v5468_v12, %v5438_v37  ;;  %v6671_v14 = vpop.f32.mrb[120].mxu0 }
 0x231   : > { %v5149_v25 = vadd.f32 %v6671_v14, %v8587_v3  ;;  %v5140_v57 = vpop.f32.mrb[121].mxu0  ;;  %v6579_v34 = vpop.f32.mrb[116].mxu1 }
 0x232   : > { %v5470_v2 = vadd.f32 %v5469_v50, %v5439_v5  ;;  %v5141_v48 = vadd.f32 %v5140_v57, %v8575_v11  ;;  %v5401_v60 = vadd.f32 %v5400_v62, %v5136_v26  ;;  %v6672_v45 = vpop.f32.mrb[122].mxu0  ;;  %v6580_v47 = vpop.f32.mrb[117].mxu1 }
 0x233   : > { %v5152_v43 = vadd.f32 %v6672_v45, %v8593_v17  ;;  %v5143_v23 = vpop.f32.mrb[123].mxu0  ;;  %v6581_v21 = vadd.f32 %v6580_v47, %v6579_v34  ;;  %v6582_v29 = vpop.f32.mrb[118].mxu1  ;;  %v5443_v18 = vmul.f32 %v5149_v25, %v5149_v25 }
 0x234   : > { %v5402_v44 = vadd.f32 %v5401_v60, %v5141_v48  ;;  %v5441_v39 = vmul.f32 %v5141_v48, %v5141_v48  ;;  %v5471_v32 = vadd.f32 %v5470_v2, %v5440_v35  ;;  %v6583_v40 = vpop.f32.mrb[119].mxu1  ;;  %v5144_v49 = vadd.f32 %v5143_v23, %v8581_v53 }
 0x235   : > { %v6091_v3 = vpack.c.bf16 %v5152_v43, %v5149_v25  ;;  %v6584_v58 = vadd.f32 %v6583_v40, %v6582_v29  ;;  %v5020_v11 = vadd.f32 %v6581_v21, %v8533_v13  ;;  %v5444_v1 = vmul.f32 %v5152_v43, %v5152_v43 }
 0x236   : > { %v5472_v24 = vadd.f32 %v5471_v32, %v5441_v39  ;;  %v6086_v51 = vpack.c.bf16 %v5144_v49, %v5141_v48  ;;  %v5403_v16 = vadd.f32 %v5402_v44, %v5144_v49  ;;  %v5442_v41 = vmul.f32 %v5144_v49, %v5144_v49 }
 0x237   : > { %6162 = vst [vmem:[%s8618_s20 + $0x28] sm:$0xff] %v6091_v3   ;;  %v5023_v26 = vadd.f32 %v6584_v58, %v8536_v19 }
 0x238   : > { %v6675_v17 = vpop.f32.mrb[124].mxu0  ;;  %6161 = vst [vmem:[%s8618_s20 + $0x20] sm:$0xff] %v6086_v51   ;;  %v5404_v0 = vadd.f32 %v5403_v16, %v5149_v25  ;;  %v5473_v52 = vadd.f32 %v5472_v24, %v5442_v41 }
 0x239   : > { %v5165_v15 = vadd.f32 %v6675_v17, %v8622_v27  ;;  %v5156_v10 = vpop.f32.mrb[125].mxu0  ;;  %v6585_v30 = vpop.f32.mrb[120].mxu1 }
 0x23a   : > { %v5157_v53 = vadd.f32 %v5156_v10, %v8599_v42  ;;  %v6676_v6 = vpop.f32.mrb[126].mxu0  ;;  %v5474_v13 = vadd.f32 %v5473_v52, %v5443_v18  ;;  %v6586_v12 = vpop.f32.mrb[121].mxu1  ;;  %v5405_v7 = vadd.f32 %v5404_v0, %v5152_v43 }
 0x23b   : > { %v5168_v9 = vadd.f32 %v6676_v6, %v8626_v8  ;;  %v5159_v37 = vpop.f32.mrb[127].mxu0  ;;  %v6587_v19 = vadd.f32 %v6586_v12, %v6585_v30  ;;  %v6588_v62 = vpop.f32.mrb[122].mxu1  ;;  %v5447_v45 = vmul.f32 %v5165_v15, %v5165_v15 }
 0x23c   : > { %v5445_v5 = vmul.f32 %v5157_v53, %v5157_v53  ;;  %v5160_v50 = vadd.f32 %v5159_v37, %v8605_v28  ;;  %v5406_v27 = vadd.f32 %v5405_v7, %v5157_v53  ;;  %v5475_v14 = vadd.f32 %v5474_v13, %v5444_v1  ;;  %v6589_v57 = vpop.f32.mrb[123].mxu1 }
 0x23d   : > { %v6101_v25 = vpack.c.bf16 %v5168_v9, %v5165_v15  ;;  %v6590_v42 = vadd.f32 %v6589_v57, %v6588_v62  ;;  %v5028_v34 = vadd.f32 %v6587_v19, %v8545_v63  ;;  %v5448_v44 = vmul.f32 %v5168_v9, %v5168_v9 }
 0x23e   : > { %v6096_v35 = vpack.c.bf16 %v5160_v50, %v5157_v53  ;;  %v5446_v2 = vmul.f32 %v5160_v50, %v5160_v50  ;;  %v5476_v48 = vadd.f32 %v5475_v14, %v5445_v5  ;;  %v5407_v60 = vadd.f32 %v5406_v27, %v5160_v50 }
 0x23f   : > { %6164 = vst [vmem:[%s8618_s20 + $0x38] sm:$0xff] %v6101_v25   ;;  %v5031_v8 = vadd.f32 %v6590_v42, %v8548_v38 }
 0x240   : > { %6163 = vst [vmem:[%s8618_s20 + $0x30] sm:$0xff] %v6096_v35   ;;  %v5408_v47 = vadd.f32 %v5407_v60, %v5165_v15  ;;  %v5477_v43 = vadd.f32 %v5476_v48, %v5446_v2  ;;  %v6679_v23 = vpop.f32.mrb[128].mxu0 }
 0x241   : > { %v5181_v28 = vadd.f32 %v6679_v23, %v5020_v11  ;;  %v5172_v21 = vpop.f32.mrb[129].mxu0 }
 0x242   : > { %v5478_v39 = vadd.f32 %v5477_v43, %v5447_v45  ;;  %v5173_v32 = vadd.f32 %v5172_v21, %v8634_v4  ;;  %v5409_v29 = vadd.f32 %v5408_v47, %v5168_v9  ;;  %v6680_v3 = vpop.f32.mrb[130].mxu0 }
 0x243   : > { %v6591_v40 = vpop.f32.mrb[124].mxu1  ;;  %v5184_v63 = vadd.f32 %v6680_v3, %v5023_v26  ;;  %v5175_v49 = vpop.f32.mrb[131].mxu0  ;;  %v5451_v30 = vmul.f32 %v5181_v28, %v5181_v28 }
 0x244   : > { %v6592_v24 = vpop.f32.mrb[125].mxu1  ;;  %v5410_v58 = vadd.f32 %v5409_v29, %v5173_v32  ;;  %v5449_v38 = vmul.f32 %v5173_v32, %v5173_v32  ;;  %v5479_v51 = vadd.f32 %v5478_v39, %v5448_v44  ;;  %v5176_v16 = vadd.f32 %v5175_v49, %v8638_v59 }
 0x245   : > { %v6593_v41 = vadd.f32 %v6592_v24, %v6591_v40  ;;  %v6594_v11 = vpop.f32.mrb[126].mxu1  ;;  %v6111_v17 = vpack.c.bf16 %v5184_v63, %v5181_v28  ;;  %v5452_v13 = vmul.f32 %v5184_v63, %v5184_v63 }
 0x246   : > { %v5480_v18 = vadd.f32 %v5479_v51, %v5449_v38  ;;  %v6595_v0 = vpop.f32.mrb[127].mxu1  ;;  %v6106_v52 = vpack.c.bf16 %v5176_v16, %v5173_v32  ;;  %v5411_v4 = vadd.f32 %v5410_v58, %v5176_v16  ;;  %v5450_v15 = vmul.f32 %v5176_v16, %v5176_v16 }
 0x247   : > { %6166 = vst [vmem:[%s8618_s20 + $0x48] sm:$0xff] %v6111_v17   ;;  %v6596_v10 = vadd.f32 %v6595_v0, %v6594_v11  ;;  %v5036_v26 = vadd.f32 %v6593_v41, %v8557_v33 }
 0x248   : > { %6165 = vst [vmem:[%s8618_s20 + $0x40] sm:$0xff] %v6106_v52   ;;  %v5412_v53 = vadd.f32 %v5411_v4, %v5181_v28  ;;  %v5481_v6 = vadd.f32 %v5480_v18, %v5450_v15 }
 0x249   : > { %v5039_v1 = vadd.f32 %v6596_v10, %v8560_v56 }
 0x24a   : > { %v5482_v59 = vadd.f32 %v5481_v6, %v5451_v30  ;;  %v6683_v12 = vpop.f32.mrb[132].mxu0  ;;  %v5413_v7 = vadd.f32 %v5412_v53, %v5184_v63 }
 0x24b   : > { %v5197_v9 = vadd.f32 %v6683_v12, %v5036_v26  ;;  %v5188_v37 = vpop.f32.mrb[133].mxu0 }
 0x24c   : > { %v6597_v19 = vpop.f32.mrb[128].mxu1  ;;  %v5189_v5 = vadd.f32 %v5188_v37, %v5028_v34  ;;  %v5483_v62 = vadd.f32 %v5482_v59, %v5452_v13  ;;  %v6684_v50 = vpop.f32.mrb[134].mxu0 }
 0x24d   : > { %v6598_v27 = vpop.f32.mrb[129].mxu1  ;;  %v5200_v14 = vadd.f32 %v6684_v50, %v5039_v1  ;;  %v5191_v33 = vpop.f32.mrb[135].mxu0  ;;  %v5455_v44 = vmul.f32 %v5197_v9, %v5197_v9 }
 0x24e   : > { %v6599_v25 = vadd.f32 %v6598_v27, %v6597_v19  ;;  %v5414_v57 = vadd.f32 %v5413_v7, %v5189_v5  ;;  %v5453_v42 = vmul.f32 %v5189_v5, %v5189_v5  ;;  %v6600_v35 = vpop.f32.mrb[130].mxu1  ;;  %v5192_v56 = vadd.f32 %v5191_v33, %v5031_v8 }
 0x24f   : > { %v6121_v2 = vpack.c.bf16 %v5200_v14, %v5197_v9  ;;  %v6601_v48 = vpop.f32.mrb[131].mxu1  ;;  %v5456_v3 = vmul.f32 %v5200_v14, %v5200_v14 }
 0x250   : > { %v5484_v60 = vadd.f32 %v5483_v62, %v5453_v42  ;;  %v6602_v45 = vadd.f32 %v6601_v48, %v6600_v35  ;;  %v6116_v47 = vpack.c.bf16 %v5192_v56, %v5189_v5  ;;  %v5415_v43 = vadd.f32 %v5414_v57, %v5192_v56 }
 0x251   : > { %6168 = vst [vmem:[%s8618_s20 + $0x58] sm:$0xff] %v6121_v2   ;;  %v5454_v34 = vmul.f32 %v5192_v56, %v5192_v56  ;;  %v5044_v23 = vadd.f32 %v6599_v25, %v8569_v55 }
 0x252   : > { %6167 = vst [vmem:[%s8618_s20 + $0x50] sm:$0xff] %v6116_v47   ;;  %v5416_v28 = vadd.f32 %v5415_v43, %v5197_v9  ;;  %v5047_v21 = vadd.f32 %v6602_v45, %v8572_v31 }
 0x253   : > { %v5485_v39 = vadd.f32 %v5484_v60, %v5454_v34 }
 0x254   : > { %v6687_v32 = vpop.f32.mrb[136].mxu0  ;;  %v5417_v29 = vadd.f32 %v5416_v28, %v5200_v14 }
 0x255   : > { %v5486_v8 = vadd.f32 %v5485_v39, %v5455_v44  ;;  %v5204_v40 = vpop.f32.mrb[137].mxu0  ;;  %v6603_v63 = vpop.f32.mrb[132].mxu1 }
 0x256   : > { %v5205_v49 = vadd.f32 %v5204_v40, %v5044_v23  ;;  %v6688_v24 = vpop.f32.mrb[138].mxu0  ;;  %v6604_v58 = vpop.f32.mrb[133].mxu1 }
 0x257   : > { %v5487_v38 = vadd.f32 %v5486_v8, %v5456_v3  ;;  %v5207_v51 = vpop.f32.mrb[139].mxu0  ;;  %v6605_v16 = vadd.f32 %v6604_v58, %v6603_v63  ;;  %v6606_v11 = vpop.f32.mrb[134].mxu1 }
 0x258   : > { %v5418_v55 = vadd.f32 %v5417_v29, %v5205_v49  ;;  %v5457_v41 = vmul.f32 %v5205_v49, %v5205_v49  ;;  %v5208_v17 = vadd.f32 %v5207_v51, %v5047_v21  ;;  %v6607_v31 = vpop.f32.mrb[135].mxu1 }
 0x259   : > { %v5052_v18 = vadd.f32 %v6605_v16, %v8578_v54  ;;  %v6608_v52 = vadd.f32 %v6607_v31, %v6606_v11 }
 0x25a   : > { %v5488_v0 = vadd.f32 %v5487_v38, %v5457_v41  ;;  %v6126_v4 = vpack.c.bf16 %v5208_v17, %v5205_v49  ;;  %v5419_v15 = vadd.f32 %v5418_v55, %v5208_v17  ;;  %v5458_v10 = vmul.f32 %v5208_v17, %v5208_v17 }
 0x25b   : > { %v5213_v26 = vadd.f32 %v6687_v32, %v5052_v18  ;;  %v5055_v30 = vadd.f32 %v6608_v52, %v8584_v20 }
 0x25c   : > { %6169 = vst [vmem:[%s8618_s20 + $0x60] sm:$0xff] %v6126_v4   ;;  %v5489_v53 = vadd.f32 %v5488_v0, %v5458_v10 }
 0x25d   : > { %v6691_v6 = vpop.f32.mrb[140].mxu0  ;;  %v5459_v1 = vmul.f32 %v5213_v26, %v5213_v26  ;;  %v5216_v13 = vadd.f32 %v6688_v24, %v5055_v30  ;;  %v5420_v59 = vadd.f32 %v5419_v15, %v5213_v26  ;;  %v6609_v12 = vpop.f32.mrb[136].mxu1 }
 0x25e   : > { %v5220_v7 = vpop.f32.mrb[141].mxu0  ;;  %v6610_v9 = vpop.f32.mrb[137].mxu1 }
 0x25f   : > { %v6692_v37 = vpop.f32.mrb[142].mxu0  ;;  %v6131_v54 = vpack.c.bf16 %v5216_v13, %v5213_v26  ;;  %v5460_v19 = vmul.f32 %v5216_v13, %v5216_v13  ;;  %v5490_v5 = vadd.f32 %v5489_v53, %v5459_v1  ;;  %v6611_v62 = vadd.f32 %v6610_v9, %v6609_v12  ;;  %v6612_v50 = vpop.f32.mrb[138].mxu1 }
 0x260   : > { %v5223_v27 = vpop.f32.mrb[143].mxu0  ;;  %v6613_v14 = vpop.f32.mrb[139].mxu1  ;;  %v5421_v33 = vadd.f32 %v5420_v59, %v5216_v13 }
 0x261   : > { %6170 = vst [vmem:[%s8618_s20 + $0x68] sm:$0xff] %v6131_v54   ;;  %v6614_v20 = vadd.f32 %v6613_v14, %v6612_v50  ;;  %v5060_v25 = vadd.f32 %v6611_v62, %v8590_v46  ;;  %v5491_v57 = vadd.f32 %v5490_v5, %v5460_v19 }
 0x263   : > { %v5221_v42 = vadd.f32 %v5220_v7, %v5060_v25  ;;  %v5063_v35 = vadd.f32 %v6614_v20, %v8596_v61 }
 0x265   : > { %v5422_v56 = vadd.f32 %v5421_v33, %v5221_v42  ;;  %v5461_v2 = vmul.f32 %v5221_v42, %v5221_v42  ;;  %v5224_v48 = vadd.f32 %v5223_v27, %v5063_v35 }
 0x267   : > { %v5492_v60 = vadd.f32 %v5491_v57, %v5461_v2  ;;  %v6136_v45 = vpack.c.bf16 %v5224_v48, %v5221_v42  ;;  %v5423_v47 = vadd.f32 %v5422_v56, %v5224_v48  ;;  %v5462_v43 = vmul.f32 %v5224_v48, %v5224_v48 }
 0x268   : > { %v6615_v34 = vpop.f32.mrb[140].mxu1 }
 0x269   : > { %v6616_v23 = vpop.f32.mrb[141].mxu1  ;;  %6171 = vst [vmem:[%s8618_s20 + $0x70] sm:$0xff] %v6136_v45   ;;  %v5493_v28 = vadd.f32 %v5492_v60, %v5462_v43 }
 0x26a   : > { %v6617_v21 = vadd.f32 %v6616_v23, %v6615_v34  ;;  %v6618_v44 = vpop.f32.mrb[142].mxu1 }
 0x26b   : > { %v6619_v39 = vpop.f32.mrb[143].mxu1 }
 0x26c   : > { %v5068_v46 = vadd.f32 %v6617_v21, %v8602_v36  ;;  %v6620_v32 = vadd.f32 %v6619_v39, %v6618_v44 }
 0x26e   : > { %v5229_v29 = vadd.f32 %v6691_v6, %v5068_v46  ;;  %v5071_v61 = vadd.f32 %v6620_v32, %v8608_v22 }
 0x270   : > { %v5424_v3 = vadd.f32 %v5423_v47, %v5229_v29  ;;  %v5463_v8 = vmul.f32 %v5229_v29, %v5229_v29  ;;  %v5232_v40 = vadd.f32 %v6692_v37, %v5071_v61 }
 0x272   : > { %v5494_v63 = vadd.f32 %v5493_v28, %v5463_v8  ;;  %v6141_v49 = vpack.c.bf16 %v5232_v40, %v5229_v29  ;;  %v5425_v24 = vadd.f32 %v5424_v3, %v5232_v40  ;;  %v5464_v58 = vmul.f32 %v5232_v40, %v5232_v40 }
 0x274   : > { %6172 = vst [vmem:[%s8618_s20 + $0x78] sm:$0xff] %v6141_v49   ;;  %v5426_v38 = vrot.slane %v5425_v24, 4  ;;  %v5495_v51 = vadd.f32 %v5494_v63, %v5464_v58 }
 0x276   : > { %v5427_v16 = vadd.f32 %v5426_v38, %v5425_v24  ;;  %v5496_v55 = vrot.slane %v5495_v51, 4 }
 0x278   : > { %v5428_v41 = vrot.slane %v5427_v16, 2  ;;  %v5497_v36 = vadd.f32 %v5496_v55, %v5495_v51 }
 0x27a   : > { %v5429_v11 = vadd.f32 %v5428_v41, %v5427_v16  ;;  %v5498_v17 = vrot.slane %v5497_v36, 2 }
 0x27c   : > { %v5430_v31 = vrot.slane %v5429_v11, 1  ;;  %v5499_v22 = vadd.f32 %v5498_v17, %v5497_v36 }
 0x27e   : > { %v5431_v18 = vadd.f32 %v5430_v31, %v5429_v11  ;;  %v5500_v0 = vrot.slane %v5499_v22, 1 }
 0x280   : > { %5432 = vst [vmem:[%s265_s24] sm:$0x1] %v5431_v18  ;;  %v5501_v52 = vadd.f32 %v5500_v0, %v5499_v22 }
 0x282   : > { %5502 = vst [vmem:[%s268_s28] sm:$0x1] %v5501_v52 }
 0x283 PF: > { %s17_s21 = sadd.s32 1, %s6849_s21  }
 0x284   : > { %p14_p4 = scmp.ge.s32.totalorder %s17_s21, 6  }
 0x286   :  { %16 = sbr.rel (!%p14_p4) target bundleno = 1 (0x1), region = 93 }

</bundles_post_ra>
